<compile_context>
chip_gen: v6e
topology: v6e:2x2x1
jax: 0.10.0
libtpu: 0.0.40
codegen_flags: <defaults>
</compile_context>

<pallas_src>
import jax
import jax.numpy as jnp
from jax.experimental import pallas as pl
from jax.experimental.pallas import tpu as pltpu

BN_EPS = 1e-5


def _cnn_encoder_impl(x_nchw, params):
    """Forward pass equivalent to CNNEncoder.forward. Input/output are NCHW."""
    x = jnp.transpose(x_nchw, (0, 2, 3, 1)).astype(jnp.float32)   # NCHW -> NHWC
    N, H, W, Cin = x.shape
    C = params[0][0].shape[-1]                                    # width (64)

    # Static sizes (valid 3x3 conv + /2 floor pool; layers 3/4 keep spatial size).
    H1c, W1c = H - 2, W - 2
    H1, W1 = H1c // 2, W1c // 2
    H2c, W2c = H1 - 2, W1 - 2
    H2, W2 = H2c // 2, W2c // 2
    Hout, Wout = H2, W2
    M1 = N * H1c * W1c

    # ---------------- wrapper-side (XLA) input packing ----------------
    # Layer1 im2col, lane-dense: (M1, 9*Cin) zero-padded to a multiple of 128 lanes.
    K1 = 9 * Cin
    K1p = ((K1 + 127) // 128) * 128
    taps = [x[:, dy:dy + H1c, dx:dx + W1c, :].reshape(M1, Cin)
            for dy in range(3) for dx in range(3)]
    p1 = jnp.pad(jnp.concatenate(taps, axis=-1), ((0, 0), (0, K1p - K1)))

    # Layer1 weight flattened (9*Cin, C) in matching (dy, dx, cin) row order, padded.
    w1p = jnp.pad(params[0][0].reshape(K1, C), ((0, K1p - K1), (0, 0)))

    # Layers 2-4 HWIO weights stacked tap-major: (3, 3, 3, C, C) -> (27, C, C).
    w234 = jnp.stack([params[i][0] for i in (1, 2, 3)]).reshape(27, C, C)

    # All BN affine params in one (8, C) array: rows [g1, b1, g2, b2, g3, b3, g4, b4].
    bn = jnp.concatenate([jnp.concatenate([params[i][2], params[i][3]], axis=0)
                          for i in range(4)], axis=0)
    # Conv biases (params[i][1]) are intentionally unused: cancelled by train-mode BN.

    # ---------------- fused kernel ----------------
    def kernel(p1_ref, w1_ref, w234_ref, bn_ref, o_ref, pad_ref):

        def bn_relu(acc, li):
            # Train-mode BatchNorm (biased stats over N*H*W), folded affine, + ReLU.
            # One-pass var = E[x^2]-E[x]^2 (adequate at these magnitudes/tolerance).
            m = acc.shape[0]
            gamma = bn_ref[2 * li:2 * li + 1, :]
            beta = bn_ref[2 * li + 1:2 * li + 2, :]
            inv_m = 1.0 / m
            mean = jnp.sum(acc, axis=0, keepdims=True) * inv_m
            ex2 = jnp.sum(acc * acc, axis=0, keepdims=True) * inv_m
            var = ex2 - mean * mean
            scale = gamma * jax.lax.rsqrt(var + BN_EPS)
            shift = beta - mean * scale
            return jnp.maximum(acc * scale + shift, 0.0)

        def conv_taps(xv, li):
            # Valid 3x3 conv as 9 accumulating MXU dots (no im2col scratch / stores).
            n, hi, wi, cin = xv.shape
            ho, wo = hi - 2, wi - 2
            m = n * ho * wo
            acc = None
            for dy in range(3):
                for dx in range(3):
                    xt = xv[:, dy:dy + ho, dx:dx + wo, :].reshape(m, cin)
                    wt = w234_ref[(li - 1) * 9 + dy * 3 + dx]
                    d = jnp.dot(xt, wt, preferred_element_type=jnp.float32)
                    acc = d if acc is None else acc + d
            return acc, (n, ho, wo)

        def pool2(y):
            # 2x2 stride-2 floor-mode max-pool: pairwise maxima along W, then H.
            n, h, w, c = y.shape
            hp, wp = h // 2, w // 2
            yw = y[:, :hp * 2, :wp * 2, :].reshape(n, hp * 2, wp, 2, c)
            yw = jnp.maximum(yw[:, :, :, 0, :], yw[:, :, :, 1, :])
            yh = yw.reshape(n, hp, 2, wp, c)
            return jnp.maximum(yh[:, :, 0], yh[:, :, 1])

        # layer1: single lane-dense matmul on wrapper-built patches, then BN+ReLU+pool.
        acc = jnp.dot(p1_ref[...], w1_ref[...], preferred_element_type=jnp.float32)
        y = pool2(bn_relu(acc, 0).reshape(N, H1c, W1c, C))

        # layer2: valid conv (9 per-tap dots) + BN + ReLU + pool.
        acc, (n2, h2c, w2c) = conv_taps(y, 1)
        y = pool2(bn_relu(acc, 1).reshape(n2, h2c, w2c, C))

        # layers 3/4: pad=1 via one shared zero-bordered VMEM scratch.  Zeroed once;
        # the border stays zero for both layers, only the interior is rewritten.
        pad_ref[...] = jnp.zeros_like(pad_ref)
        for li in (2, 3):
            pad_ref[:, 1:1 + y.shape[1], 1:1 + y.shape[2], :] = y
            acc, (n, ho, wo) = conv_taps(pad_ref[...], li)
            y = bn_relu(acc, li).reshape(n, ho, wo, C)

        # Lane-dense output store: (N, Ho, Wo, C) -> (N*Ho, Wo*C), one column block
        # per W position (no minor-dim-changing reshape).
        n, ho, wo, c = y.shape
        for j in range(wo):
            o_ref[:, j * c:(j + 1) * c] = y[:, :, j, :].reshape(n * ho, c)

    vmem = pl.BlockSpec(memory_space=pltpu.MemorySpace.VMEM)
    out_flat = pl.pallas_call(
        kernel,
        out_shape=jax.ShapeDtypeStruct((N * Hout, Wout * C), jnp.float32),
        in_specs=[vmem] * 4,
        out_specs=vmem,
        scratch_shapes=[
            pltpu.VMEM((N, H2 + 2, W2 + 2, C), jnp.float32),   # shared pad=1 buffer
        ],
    )(p1, w1p, w234, bn)

    out = out_flat.reshape(N, Hout, Wout, C)
    return jnp.transpose(out, (0, 3, 1, 2))                        # NHWC -> NCHW


cnn_encoder = jax.jit(_cnn_encoder_impl)


def init_params(key, in_c=3, width=64):
    """Deterministic synthetic parameters matching CNNEncoder's shapes (HWIO weights)."""
    layer_cins = [in_c, width, width, width]
    params = []
    for cin in layer_cins:
        key, kw, kb, kg, kbe = jax.random.split(key, 5)
        fan_in = 3 * 3 * cin
        w = jax.random.normal(kw, (3, 3, cin, width), jnp.float32) * jnp.sqrt(2.0 / fan_in)
        b = jax.random.normal(kb, (1, width), jnp.float32) * 0.01
        gamma = 1.0 + 0.1 * jax.random.normal(kg, (1, width), jnp.float32)
        beta = 0.1 * jax.random.normal(kbe, (1, width), jnp.float32)
        params.append((w, b, gamma, beta))
    return params


# ---------------- plain-JAX reference (for correctness check) ----------------
def _ref_layer(x, w, b, gamma, beta, *, pad, pool):
    y = jax.lax.conv_general_dilated(
        x, w, window_strides=(1, 1), padding=[(pad, pad), (pad, pad)],
        dimension_numbers=("NHWC", "HWIO", "NHWC"),
        precision=jax.lax.Precision.HIGHEST) + b.reshape(1, 1, 1, -1)
    mean = y.mean(axis=(0, 1, 2))
    var = ((y - mean) ** 2).mean(axis=(0, 1, 2))
    y = (y - mean) / jnp.sqrt(var + BN_EPS) * gamma.reshape(-1) + beta.reshape(-1)
    y = jnp.maximum(y, 0.0)
    if pool:
        N, H, W, C = y.shape
        y = y[:, :H // 2 * 2, :W // 2 * 2, :].reshape(N, H // 2, 2, W // 2, 2, C)
        y = y.max(axis=(2, 4))
    return y


def _ref_encoder(x_nchw, params):
    x = jnp.transpose(x_nchw, (0, 2, 3, 1)).astype(jnp.float32)
    pads = [0, 0, 1, 1]
    pools = [True, True, False, False]
    for (w, b, g, be), pad, pool in zip(params, pads, pools):
        x = _ref_layer(x, w, b, g, be, pad=pad, pool=pool)
    return jnp.transpose(x, (0, 3, 1, 2))


if __name__ == "__main__":
    key = jax.random.PRNGKey(0)
    key, kx = jax.random.split(key)
    # Small NCHW input consistent with Conv2d(in_c=3, ...): (batch=2, C=3, H=16, W=16)
    x = jax.random.normal(kx, (2, 3, 16, 16), jnp.float32)
    params = init_params(key, in_c=3, width=64)

    out = jax.block_until_ready(cnn_encoder(x, params))
    ref = _ref_encoder(x, params)

    assert out.shape == (2, 64, 2, 2), out.shape
    max_err = float(jnp.max(jnp.abs(out - ref)))
    assert jnp.allclose(out, ref, atol=2e-4, rtol=2e-4), max_err

    print("KERNEL_OK")
</pallas_src>

<mosaic_0001>
module attributes {stable_mosaic.version = 11 : i64} {
  func.func @kernel(%arg0: memref<392x128xf32, #tpu.memory_space<vmem>>, %arg1: memref<128x64xf32, #tpu.memory_space<vmem>>, %arg2: memref<27x64x64xf32, #tpu.memory_space<vmem>>, %arg3: memref<8x64xf32, #tpu.memory_space<vmem>>, %arg4: memref<4x128xf32, #tpu.memory_space<vmem>>, %arg5: memref<2x4x4x64xf32, #tpu.memory_space<vmem>>) attributes {dimension_semantics = [], scalar_prefetch = 0 : i64, scratch_operands = 1 : i64, tpu.core_type = #tpu.core_type<tc>} {
    %c0 = arith.constant 0 : index
    %c0_0 = arith.constant 0 : index
    %0 = vector.load %arg0[%c0, %c0_0] : memref<392x128xf32, #tpu.memory_space<vmem>>, vector<392x128xf32>
    %c0_1 = arith.constant 0 : index
    %c0_2 = arith.constant 0 : index
    %1 = vector.load %arg1[%c0_1, %c0_2] : memref<128x64xf32, #tpu.memory_space<vmem>>, vector<128x64xf32>
    %cst = arith.constant dense<0.000000e+00> : vector<392x64xf32>
    %2 = tpu.matmul %0, %1, %cst {dimension_numbers = #tpu.dot_dimension_numbers<[1], [0], [0], [1], [0, 0, 1, 1], [], []>} : vector<392x128xf32>, vector<128x64xf32>, vector<392x64xf32> -> vector<392x64xf32>
    %c0_3 = arith.constant 0 : index
    %c0_4 = arith.constant 0 : index
    %3 = vector.load %arg3[%c0_3, %c0_4] : memref<8x64xf32, #tpu.memory_space<vmem>>, vector<1x64xf32>
    %c1 = arith.constant 1 : index
    %c0_5 = arith.constant 0 : index
    %4 = vector.load %arg3[%c1, %c0_5] : memref<8x64xf32, #tpu.memory_space<vmem>>, vector<1x64xf32>
    %cst_6 = arith.constant dense<0.000000e+00> : vector<64xf32>
    %5 = vector.multi_reduction <add>, %2, %cst_6 [0] : vector<392x64xf32> to vector<64xf32>
    %6 = vector.shape_cast %5 : vector<64xf32> to vector<1x64xf32>
    %cst_7 = arith.constant 0.00255102036 : f32
    %7 = vector.broadcast %cst_7 : f32 to vector<1x64xf32>
    %8 = arith.mulf %6, %7 : vector<1x64xf32>
    %9 = arith.mulf %2, %2 : vector<392x64xf32>
    %cst_8 = arith.constant dense<0.000000e+00> : vector<64xf32>
    %10 = vector.multi_reduction <add>, %9, %cst_8 [0] : vector<392x64xf32> to vector<64xf32>
    %11 = vector.shape_cast %10 : vector<64xf32> to vector<1x64xf32>
    %cst_9 = arith.constant 0.00255102036 : f32
    %12 = vector.broadcast %cst_9 : f32 to vector<1x64xf32>
    %13 = arith.mulf %11, %12 : vector<1x64xf32>
    %14 = arith.mulf %8, %8 : vector<1x64xf32>
    %15 = arith.subf %13, %14 : vector<1x64xf32>
    %cst_10 = arith.constant 9.99999974E-6 : f32
    %16 = vector.broadcast %cst_10 : f32 to vector<1x64xf32>
    %17 = arith.addf %15, %16 : vector<1x64xf32>
    %18 = math.rsqrt %17 : vector<1x64xf32>
    %19 = arith.mulf %3, %18 : vector<1x64xf32>
    %20 = arith.mulf %8, %19 : vector<1x64xf32>
    %21 = arith.subf %4, %20 : vector<1x64xf32>
    %22 = vector.broadcast %19 : vector<1x64xf32> to vector<392x64xf32>
    %23 = arith.mulf %2, %22 : vector<392x64xf32>
    %24 = vector.broadcast %21 : vector<1x64xf32> to vector<392x64xf32>
    %25 = arith.addf %23, %24 : vector<392x64xf32>
    %cst_11 = arith.constant 0.000000e+00 : f32
    %26 = vector.broadcast %cst_11 : f32 to vector<392x64xf32>
    %27 = arith.maximumf %25, %26 : vector<392x64xf32>
    %28 = vector.shape_cast %27 : vector<392x64xf32> to vector<2x14x14x64xf32>
    %29 = vector.shape_cast %28 : vector<2x14x14x64xf32> to vector<2x14x7x2x64xf32>
    %30 = vector.extract_strided_slice %29 {offsets = [0, 0, 0, 0, 0], sizes = [2, 14, 7, 1, 64], strides = [1, 1, 1, 1, 1]} : vector<2x14x7x2x64xf32> to vector<2x14x7x1x64xf32>
    %31 = vector.shape_cast %30 : vector<2x14x7x1x64xf32> to vector<2x14x7x64xf32>
    %32 = vector.extract_strided_slice %29 {offsets = [0, 0, 0, 1, 0], sizes = [2, 14, 7, 1, 64], strides = [1, 1, 1, 1, 1]} : vector<2x14x7x2x64xf32> to vector<2x14x7x1x64xf32>
    %33 = vector.shape_cast %32 : vector<2x14x7x1x64xf32> to vector<2x14x7x64xf32>
    %34 = arith.maximumf %31, %33 : vector<2x14x7x64xf32>
    %35 = vector.shape_cast %34 : vector<2x14x7x64xf32> to vector<2x7x2x7x64xf32>
    %36 = vector.extract_strided_slice %35 {offsets = [0, 0, 0, 0, 0], sizes = [2, 7, 1, 7, 64], strides = [1, 1, 1, 1, 1]} : vector<2x7x2x7x64xf32> to vector<2x7x1x7x64xf32>
    %37 = vector.shape_cast %36 : vector<2x7x1x7x64xf32> to vector<2x7x7x64xf32>
    %38 = vector.extract_strided_slice %35 {offsets = [0, 0, 1, 0, 0], sizes = [2, 7, 1, 7, 64], strides = [1, 1, 1, 1, 1]} : vector<2x7x2x7x64xf32> to vector<2x7x1x7x64xf32>
    %39 = vector.shape_cast %38 : vector<2x7x1x7x64xf32> to vector<2x7x7x64xf32>
    %40 = arith.maximumf %37, %39 : vector<2x7x7x64xf32>
    %41 = vector.extract_strided_slice %40 {offsets = [0, 0, 0, 0], sizes = [2, 5, 5, 64], strides = [1, 1, 1, 1]} : vector<2x7x7x64xf32> to vector<2x5x5x64xf32>
    %42 = vector.shape_cast %41 : vector<2x5x5x64xf32> to vector<50x64xf32>
    %c0_12 = arith.constant 0 : index
    %c0_13 = arith.constant 0 : index
    %c0_14 = arith.constant 0 : index
    %43 = vector.load %arg2[%c0_12, %c0_13, %c0_14] : memref<27x64x64xf32, #tpu.memory_space<vmem>>, vector<1x64x64xf32>
    %44 = vector.shape_cast %43 : vector<1x64x64xf32> to vector<64x64xf32>
    %cst_15 = arith.constant dense<0.000000e+00> : vector<50x64xf32>
    %45 = tpu.matmul %42, %44, %cst_15 {dimension_numbers = #tpu.dot_dimension_numbers<[1], [0], [0], [1], [0, 0, 1, 1], [], []>} : vector<50x64xf32>, vector<64x64xf32>, vector<50x64xf32> -> vector<50x64xf32>
    %46 = vector.extract_strided_slice %40 {offsets = [0, 0, 1, 0], sizes = [2, 5, 5, 64], strides = [1, 1, 1, 1]} : vector<2x7x7x64xf32> to vector<2x5x5x64xf32>
    %47 = vector.shape_cast %46 : vector<2x5x5x64xf32> to vector<50x64xf32>
    %c1_16 = arith.constant 1 : index
    %c0_17 = arith.constant 0 : index
    %c0_18 = arith.constant 0 : index
    %48 = vector.load %arg2[%c1_16, %c0_17, %c0_18] : memref<27x64x64xf32, #tpu.memory_space<vmem>>, vector<1x64x64xf32>
    %49 = vector.shape_cast %48 : vector<1x64x64xf32> to vector<64x64xf32>
    %cst_19 = arith.constant dense<0.000000e+00> : vector<50x64xf32>
    %50 = tpu.matmul %47, %49, %cst_19 {dimension_numbers = #tpu.dot_dimension_numbers<[1], [0], [0], [1], [0, 0, 1, 1], [], []>} : vector<50x64xf32>, vector<64x64xf32>, vector<50x64xf32> -> vector<50x64xf32>
    %51 = arith.addf %45, %50 : vector<50x64xf32>
    %52 = vector.extract_strided_slice %40 {offsets = [0, 0, 2, 0], sizes = [2, 5, 5, 64], strides = [1, 1, 1, 1]} : vector<2x7x7x64xf32> to vector<2x5x5x64xf32>
    %53 = vector.shape_cast %52 : vector<2x5x5x64xf32> to vector<50x64xf32>
    %c2 = arith.constant 2 : index
    %c0_20 = arith.constant 0 : index
    %c0_21 = arith.constant 0 : index
    %54 = vector.load %arg2[%c2, %c0_20, %c0_21] : memref<27x64x64xf32, #tpu.memory_space<vmem>>, vector<1x64x64xf32>
    %55 = vector.shape_cast %54 : vector<1x64x64xf32> to vector<64x64xf32>
    %cst_22 = arith.constant dense<0.000000e+00> : vector<50x64xf32>
    %56 = tpu.matmul %53, %55, %cst_22 {dimension_numbers = #tpu.dot_dimension_numbers<[1], [0], [0], [1], [0, 0, 1, 1], [], []>} : vector<50x64xf32>, vector<64x64xf32>, vector<50x64xf32> -> vector<50x64xf32>
    %57 = arith.addf %51, %56 : vector<50x64xf32>
    %58 = vector.extract_strided_slice %40 {offsets = [0, 1, 0, 0], sizes = [2, 5, 5, 64], strides = [1, 1, 1, 1]} : vector<2x7x7x64xf32> to vector<2x5x5x64xf32>
    %59 = vector.shape_cast %58 : vector<2x5x5x64xf32> to vector<50x64xf32>
    %c3 = arith.constant 3 : index
    %c0_23 = arith.constant 0 : index
    %c0_24 = arith.constant 0 : index
    %60 = vector.load %arg2[%c3, %c0_23, %c0_24] : memref<27x64x64xf32, #tpu.memory_space<vmem>>, vector<1x64x64xf32>
    %61 = vector.shape_cast %60 : vector<1x64x64xf32> to vector<64x64xf32>
    %cst_25 = arith.constant dense<0.000000e+00> : vector<50x64xf32>
    %62 = tpu.matmul %59, %61, %cst_25 {dimension_numbers = #tpu.dot_dimension_numbers<[1], [0], [0], [1], [0, 0, 1, 1], [], []>} : vector<50x64xf32>, vector<64x64xf32>, vector<50x64xf32> -> vector<50x64xf32>
    %63 = arith.addf %57, %62 : vector<50x64xf32>
    %64 = vector.extract_strided_slice %40 {offsets = [0, 1, 1, 0], sizes = [2, 5, 5, 64], strides = [1, 1, 1, 1]} : vector<2x7x7x64xf32> to vector<2x5x5x64xf32>
    %65 = vector.shape_cast %64 : vector<2x5x5x64xf32> to vector<50x64xf32>
    %c4 = arith.constant 4 : index
    %c0_26 = arith.constant 0 : index
    %c0_27 = arith.constant 0 : index
    %66 = vector.load %arg2[%c4, %c0_26, %c0_27] : memref<27x64x64xf32, #tpu.memory_space<vmem>>, vector<1x64x64xf32>
    %67 = vector.shape_cast %66 : vector<1x64x64xf32> to vector<64x64xf32>
    %cst_28 = arith.constant dense<0.000000e+00> : vector<50x64xf32>
    %68 = tpu.matmul %65, %67, %cst_28 {dimension_numbers = #tpu.dot_dimension_numbers<[1], [0], [0], [1], [0, 0, 1, 1], [], []>} : vector<50x64xf32>, vector<64x64xf32>, vector<50x64xf32> -> vector<50x64xf32>
    %69 = arith.addf %63, %68 : vector<50x64xf32>
    %70 = vector.extract_strided_slice %40 {offsets = [0, 1, 2, 0], sizes = [2, 5, 5, 64], strides = [1, 1, 1, 1]} : vector<2x7x7x64xf32> to vector<2x5x5x64xf32>
    %71 = vector.shape_cast %70 : vector<2x5x5x64xf32> to vector<50x64xf32>
    %c5 = arith.constant 5 : index
    %c0_29 = arith.constant 0 : index
    %c0_30 = arith.constant 0 : index
    %72 = vector.load %arg2[%c5, %c0_29, %c0_30] : memref<27x64x64xf32, #tpu.memory_space<vmem>>, vector<1x64x64xf32>
    %73 = vector.shape_cast %72 : vector<1x64x64xf32> to vector<64x64xf32>
    %cst_31 = arith.constant dense<0.000000e+00> : vector<50x64xf32>
    %74 = tpu.matmul %71, %73, %cst_31 {dimension_numbers = #tpu.dot_dimension_numbers<[1], [0], [0], [1], [0, 0, 1, 1], [], []>} : vector<50x64xf32>, vector<64x64xf32>, vector<50x64xf32> -> vector<50x64xf32>
    %75 = arith.addf %69, %74 : vector<50x64xf32>
    %76 = vector.extract_strided_slice %40 {offsets = [0, 2, 0, 0], sizes = [2, 5, 5, 64], strides = [1, 1, 1, 1]} : vector<2x7x7x64xf32> to vector<2x5x5x64xf32>
    %77 = vector.shape_cast %76 : vector<2x5x5x64xf32> to vector<50x64xf32>
    %c6 = arith.constant 6 : index
    %c0_32 = arith.constant 0 : index
    %c0_33 = arith.constant 0 : index
    %78 = vector.load %arg2[%c6, %c0_32, %c0_33] : memref<27x64x64xf32, #tpu.memory_space<vmem>>, vector<1x64x64xf32>
    %79 = vector.shape_cast %78 : vector<1x64x64xf32> to vector<64x64xf32>
    %cst_34 = arith.constant dense<0.000000e+00> : vector<50x64xf32>
    %80 = tpu.matmul %77, %79, %cst_34 {dimension_numbers = #tpu.dot_dimension_numbers<[1], [0], [0], [1], [0, 0, 1, 1], [], []>} : vector<50x64xf32>, vector<64x64xf32>, vector<50x64xf32> -> vector<50x64xf32>
    %81 = arith.addf %75, %80 : vector<50x64xf32>
    %82 = vector.extract_strided_slice %40 {offsets = [0, 2, 1, 0], sizes = [2, 5, 5, 64], strides = [1, 1, 1, 1]} : vector<2x7x7x64xf32> to vector<2x5x5x64xf32>
    %83 = vector.shape_cast %82 : vector<2x5x5x64xf32> to vector<50x64xf32>
    %c7 = arith.constant 7 : index
    %c0_35 = arith.constant 0 : index
    %c0_36 = arith.constant 0 : index
    %84 = vector.load %arg2[%c7, %c0_35, %c0_36] : memref<27x64x64xf32, #tpu.memory_space<vmem>>, vector<1x64x64xf32>
    %85 = vector.shape_cast %84 : vector<1x64x64xf32> to vector<64x64xf32>
    %cst_37 = arith.constant dense<0.000000e+00> : vector<50x64xf32>
    %86 = tpu.matmul %83, %85, %cst_37 {dimension_numbers = #tpu.dot_dimension_numbers<[1], [0], [0], [1], [0, 0, 1, 1], [], []>} : vector<50x64xf32>, vector<64x64xf32>, vector<50x64xf32> -> vector<50x64xf32>
    %87 = arith.addf %81, %86 : vector<50x64xf32>
    %88 = vector.extract_strided_slice %40 {offsets = [0, 2, 2, 0], sizes = [2, 5, 5, 64], strides = [1, 1, 1, 1]} : vector<2x7x7x64xf32> to vector<2x5x5x64xf32>
    %89 = vector.shape_cast %88 : vector<2x5x5x64xf32> to vector<50x64xf32>
    %c8 = arith.constant 8 : index
    %c0_38 = arith.constant 0 : index
    %c0_39 = arith.constant 0 : index
    %90 = vector.load %arg2[%c8, %c0_38, %c0_39] : memref<27x64x64xf32, #tpu.memory_space<vmem>>, vector<1x64x64xf32>
    %91 = vector.shape_cast %90 : vector<1x64x64xf32> to vector<64x64xf32>
    %cst_40 = arith.constant dense<0.000000e+00> : vector<50x64xf32>
    %92 = tpu.matmul %89, %91, %cst_40 {dimension_numbers = #tpu.dot_dimension_numbers<[1], [0], [0], [1], [0, 0, 1, 1], [], []>} : vector<50x64xf32>, vector<64x64xf32>, vector<50x64xf32> -> vector<50x64xf32>
    %93 = arith.addf %87, %92 : vector<50x64xf32>
    %c2_41 = arith.constant 2 : index
    %c0_42 = arith.constant 0 : index
    %94 = vector.load %arg3[%c2_41, %c0_42] : memref<8x64xf32, #tpu.memory_space<vmem>>, vector<1x64xf32>
    %c3_43 = arith.constant 3 : index
    %c0_44 = arith.constant 0 : index
    %95 = vector.load %arg3[%c3_43, %c0_44] : memref<8x64xf32, #tpu.memory_space<vmem>>, vector<1x64xf32>
    %cst_45 = arith.constant dense<0.000000e+00> : vector<64xf32>
    %96 = vector.multi_reduction <add>, %93, %cst_45 [0] : vector<50x64xf32> to vector<64xf32>
    %97 = vector.shape_cast %96 : vector<64xf32> to vector<1x64xf32>
    %cst_46 = arith.constant 2.000000e-02 : f32
    %98 = vector.broadcast %cst_46 : f32 to vector<1x64xf32>
    %99 = arith.mulf %97, %98 : vector<1x64xf32>
    %100 = arith.mulf %93, %93 : vector<50x64xf32>
    %cst_47 = arith.constant dense<0.000000e+00> : vector<64xf32>
    %101 = vector.multi_reduction <add>, %100, %cst_47 [0] : vector<50x64xf32> to vector<64xf32>
    %102 = vector.shape_cast %101 : vector<64xf32> to vector<1x64xf32>
    %cst_48 = arith.constant 2.000000e-02 : f32
    %103 = vector.broadcast %cst_48 : f32 to vector<1x64xf32>
    %104 = arith.mulf %102, %103 : vector<1x64xf32>
    %105 = arith.mulf %99, %99 : vector<1x64xf32>
    %106 = arith.subf %104, %105 : vector<1x64xf32>
    %cst_49 = arith.constant 9.99999974E-6 : f32
    %107 = vector.broadcast %cst_49 : f32 to vector<1x64xf32>
    %108 = arith.addf %106, %107 : vector<1x64xf32>
    %109 = math.rsqrt %108 : vector<1x64xf32>
    %110 = arith.mulf %94, %109 : vector<1x64xf32>
    %111 = arith.mulf %99, %110 : vector<1x64xf32>
    %112 = arith.subf %95, %111 : vector<1x64xf32>
    %113 = vector.broadcast %110 : vector<1x64xf32> to vector<50x64xf32>
    %114 = arith.mulf %93, %113 : vector<50x64xf32>
    %115 = vector.broadcast %112 : vector<1x64xf32> to vector<50x64xf32>
    %116 = arith.addf %114, %115 : vector<50x64xf32>
    %cst_50 = arith.constant 0.000000e+00 : f32
    %117 = vector.broadcast %cst_50 : f32 to vector<50x64xf32>
    %118 = arith.maximumf %116, %117 : vector<50x64xf32>
    %119 = vector.shape_cast %118 : vector<50x64xf32> to vector<2x5x5x64xf32>
    %120 = vector.extract_strided_slice %119 {offsets = [0, 0, 0, 0], sizes = [2, 4, 4, 64], strides = [1, 1, 1, 1]} : vector<2x5x5x64xf32> to vector<2x4x4x64xf32>
    %121 = vector.shape_cast %120 : vector<2x4x4x64xf32> to vector<2x4x2x2x64xf32>
    %122 = vector.extract_strided_slice %121 {offsets = [0, 0, 0, 0, 0], sizes = [2, 4, 2, 1, 64], strides = [1, 1, 1, 1, 1]} : vector<2x4x2x2x64xf32> to vector<2x4x2x1x64xf32>
    %123 = vector.shape_cast %122 : vector<2x4x2x1x64xf32> to vector<2x4x2x64xf32>
    %124 = vector.extract_strided_slice %121 {offsets = [0, 0, 0, 1, 0], sizes = [2, 4, 2, 1, 64], strides = [1, 1, 1, 1, 1]} : vector<2x4x2x2x64xf32> to vector<2x4x2x1x64xf32>
    %125 = vector.shape_cast %124 : vector<2x4x2x1x64xf32> to vector<2x4x2x64xf32>
    %126 = arith.maximumf %123, %125 : vector<2x4x2x64xf32>
    %127 = vector.shape_cast %126 : vector<2x4x2x64xf32> to vector<2x2x2x2x64xf32>
    %128 = vector.extract_strided_slice %127 {offsets = [0, 0, 0, 0, 0], sizes = [2, 2, 1, 2, 64], strides = [1, 1, 1, 1, 1]} : vector<2x2x2x2x64xf32> to vector<2x2x1x2x64xf32>
    %129 = vector.shape_cast %128 : vector<2x2x1x2x64xf32> to vector<2x2x2x64xf32>
    %130 = vector.extract_strided_slice %127 {offsets = [0, 0, 1, 0, 0], sizes = [2, 2, 1, 2, 64], strides = [1, 1, 1, 1, 1]} : vector<2x2x2x2x64xf32> to vector<2x2x1x2x64xf32>
    %131 = vector.shape_cast %130 : vector<2x2x1x2x64xf32> to vector<2x2x2x64xf32>
    %132 = arith.maximumf %129, %131 : vector<2x2x2x64xf32>
    %cst_51 = arith.constant 0.000000e+00 : f32
    %133 = vector.broadcast %cst_51 : f32 to vector<2x4x4x64xf32>
    %c0_52 = arith.constant 0 : index
    %c0_53 = arith.constant 0 : index
    %c0_54 = arith.constant 0 : index
    %c0_55 = arith.constant 0 : index
    %134 = vector.load %arg5[%c0_52, %c0_53, %c0_54, %c0_55] : memref<2x4x4x64xf32, #tpu.memory_space<vmem>>, vector<2x4x4x64xf32>
    tpu.vector_store %arg5[%c0_52, %c0_53, %c0_54, %c0_55], %133 {strides = array<i32>} : memref<2x4x4x64xf32, #tpu.memory_space<vmem>>, vector<2x4x4x64xf32>,
    %c0_56 = arith.constant 0 : index
    %c1_57 = arith.constant 1 : index
    %c1_58 = arith.constant 1 : index
    %c0_59 = arith.constant 0 : index
    %135 = vector.load %arg5[%c0_56, %c1_57, %c1_58, %c0_59] : memref<2x4x4x64xf32, #tpu.memory_space<vmem>>, vector<2x2x2x64xf32>
    tpu.vector_store %arg5[%c0_56, %c1_57, %c1_58, %c0_59], %132 {strides = array<i32>} : memref<2x4x4x64xf32, #tpu.memory_space<vmem>>, vector<2x2x2x64xf32>,
    %c0_60 = arith.constant 0 : index
    %c0_61 = arith.constant 0 : index
    %c0_62 = arith.constant 0 : index
    %c0_63 = arith.constant 0 : index
    %136 = vector.load %arg5[%c0_60, %c0_61, %c0_62, %c0_63] : memref<2x4x4x64xf32, #tpu.memory_space<vmem>>, vector<2x4x4x64xf32>
    %137 = vector.extract_strided_slice %136 {offsets = [0, 0, 0, 0], sizes = [2, 2, 2, 64], strides = [1, 1, 1, 1]} : vector<2x4x4x64xf32> to vector<2x2x2x64xf32>
    %138 = vector.shape_cast %137 : vector<2x2x2x64xf32> to vector<8x64xf32>
    %c9 = arith.constant 9 : index
    %c0_64 = arith.constant 0 : index
    %c0_65 = arith.constant 0 : index
    %139 = vector.load %arg2[%c9, %c0_64, %c0_65] : memref<27x64x64xf32, #tpu.memory_space<vmem>>, vector<1x64x64xf32>
    %140 = vector.shape_cast %139 : vector<1x64x64xf32> to vector<64x64xf32>
    %cst_66 = arith.constant dense<0.000000e+00> : vector<8x64xf32>
    %141 = tpu.matmul %138, %140, %cst_66 {dimension_numbers = #tpu.dot_dimension_numbers<[1], [0], [0], [1], [0, 0, 1, 1], [], []>} : vector<8x64xf32>, vector<64x64xf32>, vector<8x64xf32> -> vector<8x64xf32>
    %142 = vector.extract_strided_slice %136 {offsets = [0, 0, 1, 0], sizes = [2, 2, 2, 64], strides = [1, 1, 1, 1]} : vector<2x4x4x64xf32> to vector<2x2x2x64xf32>
    %143 = vector.shape_cast %142 : vector<2x2x2x64xf32> to vector<8x64xf32>
    %c10 = arith.constant 10 : index
    %c0_67 = arith.constant 0 : index
    %c0_68 = arith.constant 0 : index
    %144 = vector.load %arg2[%c10, %c0_67, %c0_68] : memref<27x64x64xf32, #tpu.memory_space<vmem>>, vector<1x64x64xf32>
    %145 = vector.shape_cast %144 : vector<1x64x64xf32> to vector<64x64xf32>
    %cst_69 = arith.constant dense<0.000000e+00> : vector<8x64xf32>
    %146 = tpu.matmul %143, %145, %cst_69 {dimension_numbers = #tpu.dot_dimension_numbers<[1], [0], [0], [1], [0, 0, 1, 1], [], []>} : vector<8x64xf32>, vector<64x64xf32>, vector<8x64xf32> -> vector<8x64xf32>
    %147 = arith.addf %141, %146 : vector<8x64xf32>
    %148 = vector.extract_strided_slice %136 {offsets = [0, 0, 2, 0], sizes = [2, 2, 2, 64], strides = [1, 1, 1, 1]} : vector<2x4x4x64xf32> to vector<2x2x2x64xf32>
    %149 = vector.shape_cast %148 : vector<2x2x2x64xf32> to vector<8x64xf32>
    %c11 = arith.constant 11 : index
    %c0_70 = arith.constant 0 : index
    %c0_71 = arith.constant 0 : index
    %150 = vector.load %arg2[%c11, %c0_70, %c0_71] : memref<27x64x64xf32, #tpu.memory_space<vmem>>, vector<1x64x64xf32>
    %151 = vector.shape_cast %150 : vector<1x64x64xf32> to vector<64x64xf32>
    %cst_72 = arith.constant dense<0.000000e+00> : vector<8x64xf32>
    %152 = tpu.matmul %149, %151, %cst_72 {dimension_numbers = #tpu.dot_dimension_numbers<[1], [0], [0], [1], [0, 0, 1, 1], [], []>} : vector<8x64xf32>, vector<64x64xf32>, vector<8x64xf32> -> vector<8x64xf32>
    %153 = arith.addf %147, %152 : vector<8x64xf32>
    %154 = vector.extract_strided_slice %136 {offsets = [0, 1, 0, 0], sizes = [2, 2, 2, 64], strides = [1, 1, 1, 1]} : vector<2x4x4x64xf32> to vector<2x2x2x64xf32>
    %155 = vector.shape_cast %154 : vector<2x2x2x64xf32> to vector<8x64xf32>
    %c12 = arith.constant 12 : index
    %c0_73 = arith.constant 0 : index
    %c0_74 = arith.constant 0 : index
    %156 = vector.load %arg2[%c12, %c0_73, %c0_74] : memref<27x64x64xf32, #tpu.memory_space<vmem>>, vector<1x64x64xf32>
    %157 = vector.shape_cast %156 : vector<1x64x64xf32> to vector<64x64xf32>
    %cst_75 = arith.constant dense<0.000000e+00> : vector<8x64xf32>
    %158 = tpu.matmul %155, %157, %cst_75 {dimension_numbers = #tpu.dot_dimension_numbers<[1], [0], [0], [1], [0, 0, 1, 1], [], []>} : vector<8x64xf32>, vector<64x64xf32>, vector<8x64xf32> -> vector<8x64xf32>
    %159 = arith.addf %153, %158 : vector<8x64xf32>
    %160 = vector.extract_strided_slice %136 {offsets = [0, 1, 1, 0], sizes = [2, 2, 2, 64], strides = [1, 1, 1, 1]} : vector<2x4x4x64xf32> to vector<2x2x2x64xf32>
    %161 = vector.shape_cast %160 : vector<2x2x2x64xf32> to vector<8x64xf32>
    %c13 = arith.constant 13 : index
    %c0_76 = arith.constant 0 : index
    %c0_77 = arith.constant 0 : index
    %162 = vector.load %arg2[%c13, %c0_76, %c0_77] : memref<27x64x64xf32, #tpu.memory_space<vmem>>, vector<1x64x64xf32>
    %163 = vector.shape_cast %162 : vector<1x64x64xf32> to vector<64x64xf32>
    %cst_78 = arith.constant dense<0.000000e+00> : vector<8x64xf32>
    %164 = tpu.matmul %161, %163, %cst_78 {dimension_numbers = #tpu.dot_dimension_numbers<[1], [0], [0], [1], [0, 0, 1, 1], [], []>} : vector<8x64xf32>, vector<64x64xf32>, vector<8x64xf32> -> vector<8x64xf32>
    %165 = arith.addf %159, %164 : vector<8x64xf32>
    %166 = vector.extract_strided_slice %136 {offsets = [0, 1, 2, 0], sizes = [2, 2, 2, 64], strides = [1, 1, 1, 1]} : vector<2x4x4x64xf32> to vector<2x2x2x64xf32>
    %167 = vector.shape_cast %166 : vector<2x2x2x64xf32> to vector<8x64xf32>
    %c14 = arith.constant 14 : index
    %c0_79 = arith.constant 0 : index
    %c0_80 = arith.constant 0 : index
    %168 = vector.load %arg2[%c14, %c0_79, %c0_80] : memref<27x64x64xf32, #tpu.memory_space<vmem>>, vector<1x64x64xf32>
    %169 = vector.shape_cast %168 : vector<1x64x64xf32> to vector<64x64xf32>
    %cst_81 = arith.constant dense<0.000000e+00> : vector<8x64xf32>
    %170 = tpu.matmul %167, %169, %cst_81 {dimension_numbers = #tpu.dot_dimension_numbers<[1], [0], [0], [1], [0, 0, 1, 1], [], []>} : vector<8x64xf32>, vector<64x64xf32>, vector<8x64xf32> -> vector<8x64xf32>
    %171 = arith.addf %165, %170 : vector<8x64xf32>
    %172 = vector.extract_strided_slice %136 {offsets = [0, 2, 0, 0], sizes = [2, 2, 2, 64], strides = [1, 1, 1, 1]} : vector<2x4x4x64xf32> to vector<2x2x2x64xf32>
    %173 = vector.shape_cast %172 : vector<2x2x2x64xf32> to vector<8x64xf32>
    %c15 = arith.constant 15 : index
    %c0_82 = arith.constant 0 : index
    %c0_83 = arith.constant 0 : index
    %174 = vector.load %arg2[%c15, %c0_82, %c0_83] : memref<27x64x64xf32, #tpu.memory_space<vmem>>, vector<1x64x64xf32>
    %175 = vector.shape_cast %174 : vector<1x64x64xf32> to vector<64x64xf32>
    %cst_84 = arith.constant dense<0.000000e+00> : vector<8x64xf32>
    %176 = tpu.matmul %173, %175, %cst_84 {dimension_numbers = #tpu.dot_dimension_numbers<[1], [0], [0], [1], [0, 0, 1, 1], [], []>} : vector<8x64xf32>, vector<64x64xf32>, vector<8x64xf32> -> vector<8x64xf32>
    %177 = arith.addf %171, %176 : vector<8x64xf32>
    %178 = vector.extract_strided_slice %136 {offsets = [0, 2, 1, 0], sizes = [2, 2, 2, 64], strides = [1, 1, 1, 1]} : vector<2x4x4x64xf32> to vector<2x2x2x64xf32>
    %179 = vector.shape_cast %178 : vector<2x2x2x64xf32> to vector<8x64xf32>
    %c16 = arith.constant 16 : index
    %c0_85 = arith.constant 0 : index
    %c0_86 = arith.constant 0 : index
    %180 = vector.load %arg2[%c16, %c0_85, %c0_86] : memref<27x64x64xf32, #tpu.memory_space<vmem>>, vector<1x64x64xf32>
    %181 = vector.shape_cast %180 : vector<1x64x64xf32> to vector<64x64xf32>
    %cst_87 = arith.constant dense<0.000000e+00> : vector<8x64xf32>
    %182 = tpu.matmul %179, %181, %cst_87 {dimension_numbers = #tpu.dot_dimension_numbers<[1], [0], [0], [1], [0, 0, 1, 1], [], []>} : vector<8x64xf32>, vector<64x64xf32>, vector<8x64xf32> -> vector<8x64xf32>
    %183 = arith.addf %177, %182 : vector<8x64xf32>
    %184 = vector.extract_strided_slice %136 {offsets = [0, 2, 2, 0], sizes = [2, 2, 2, 64], strides = [1, 1, 1, 1]} : vector<2x4x4x64xf32> to vector<2x2x2x64xf32>
    %185 = vector.shape_cast %184 : vector<2x2x2x64xf32> to vector<8x64xf32>
    %c17 = arith.constant 17 : index
    %c0_88 = arith.constant 0 : index
    %c0_89 = arith.constant 0 : index
    %186 = vector.load %arg2[%c17, %c0_88, %c0_89] : memref<27x64x64xf32, #tpu.memory_space<vmem>>, vector<1x64x64xf32>
    %187 = vector.shape_cast %186 : vector<1x64x64xf32> to vector<64x64xf32>
    %cst_90 = arith.constant dense<0.000000e+00> : vector<8x64xf32>
    %188 = tpu.matmul %185, %187, %cst_90 {dimension_numbers = #tpu.dot_dimension_numbers<[1], [0], [0], [1], [0, 0, 1, 1], [], []>} : vector<8x64xf32>, vector<64x64xf32>, vector<8x64xf32> -> vector<8x64xf32>
    %189 = arith.addf %183, %188 : vector<8x64xf32>
    %c4_91 = arith.constant 4 : index
    %c0_92 = arith.constant 0 : index
    %190 = vector.load %arg3[%c4_91, %c0_92] : memref<8x64xf32, #tpu.memory_space<vmem>>, vector<1x64xf32>
    %c5_93 = arith.constant 5 : index
    %c0_94 = arith.constant 0 : index
    %191 = vector.load %arg3[%c5_93, %c0_94] : memref<8x64xf32, #tpu.memory_space<vmem>>, vector<1x64xf32>
    %cst_95 = arith.constant dense<0.000000e+00> : vector<64xf32>
    %192 = vector.multi_reduction <add>, %189, %cst_95 [0] : vector<8x64xf32> to vector<64xf32>
    %193 = vector.shape_cast %192 : vector<64xf32> to vector<1x64xf32>
    %cst_96 = arith.constant 1.250000e-01 : f32
    %194 = vector.broadcast %cst_96 : f32 to vector<1x64xf32>
    %195 = arith.mulf %193, %194 : vector<1x64xf32>
    %196 = arith.mulf %189, %189 : vector<8x64xf32>
    %cst_97 = arith.constant dense<0.000000e+00> : vector<64xf32>
    %197 = vector.multi_reduction <add>, %196, %cst_97 [0] : vector<8x64xf32> to vector<64xf32>
    %198 = vector.shape_cast %197 : vector<64xf32> to vector<1x64xf32>
    %cst_98 = arith.constant 1.250000e-01 : f32
    %199 = vector.broadcast %cst_98 : f32 to vector<1x64xf32>
    %200 = arith.mulf %198, %199 : vector<1x64xf32>
    %201 = arith.mulf %195, %195 : vector<1x64xf32>
    %202 = arith.subf %200, %201 : vector<1x64xf32>
    %cst_99 = arith.constant 9.99999974E-6 : f32
    %203 = vector.broadcast %cst_99 : f32 to vector<1x64xf32>
    %204 = arith.addf %202, %203 : vector<1x64xf32>
    %205 = math.rsqrt %204 : vector<1x64xf32>
    %206 = arith.mulf %190, %205 : vector<1x64xf32>
    %207 = arith.mulf %195, %206 : vector<1x64xf32>
    %208 = arith.subf %191, %207 : vector<1x64xf32>
    %209 = vector.broadcast %206 : vector<1x64xf32> to vector<8x64xf32>
    %210 = arith.mulf %189, %209 : vector<8x64xf32>
    %211 = vector.broadcast %208 : vector<1x64xf32> to vector<8x64xf32>
    %212 = arith.addf %210, %211 : vector<8x64xf32>
    %cst_100 = arith.constant 0.000000e+00 : f32
    %213 = vector.broadcast %cst_100 : f32 to vector<8x64xf32>
    %214 = arith.maximumf %212, %213 : vector<8x64xf32>
    %215 = vector.shape_cast %214 : vector<8x64xf32> to vector<2x2x2x64xf32>
    %c0_101 = arith.constant 0 : index
    %c1_102 = arith.constant 1 : index
    %c1_103 = arith.constant 1 : index
    %c0_104 = arith.constant 0 : index
    %216 = vector.load %arg5[%c0_101, %c1_102, %c1_103, %c0_104] : memref<2x4x4x64xf32, #tpu.memory_space<vmem>>, vector<2x2x2x64xf32>
    tpu.vector_store %arg5[%c0_101, %c1_102, %c1_103, %c0_104], %215 {strides = array<i32>} : memref<2x4x4x64xf32, #tpu.memory_space<vmem>>, vector<2x2x2x64xf32>,
    %c0_105 = arith.constant 0 : index
    %c0_106 = arith.constant 0 : index
    %c0_107 = arith.constant 0 : index
    %c0_108 = arith.constant 0 : index
    %217 = vector.load %arg5[%c0_105, %c0_106, %c0_107, %c0_108] : memref<2x4x4x64xf32, #tpu.memory_space<vmem>>, vector<2x4x4x64xf32>
    %218 = vector.extract_strided_slice %217 {offsets = [0, 0, 0, 0], sizes = [2, 2, 2, 64], strides = [1, 1, 1, 1]} : vector<2x4x4x64xf32> to vector<2x2x2x64xf32>
    %219 = vector.shape_cast %218 : vector<2x2x2x64xf32> to vector<8x64xf32>
    %c18 = arith.constant 18 : index
    %c0_109 = arith.constant 0 : index
    %c0_110 = arith.constant 0 : index
    %220 = vector.load %arg2[%c18, %c0_109, %c0_110] : memref<27x64x64xf32, #tpu.memory_space<vmem>>, vector<1x64x64xf32>
    %221 = vector.shape_cast %220 : vector<1x64x64xf32> to vector<64x64xf32>
    %cst_111 = arith.constant dense<0.000000e+00> : vector<8x64xf32>
    %222 = tpu.matmul %219, %221, %cst_111 {dimension_numbers = #tpu.dot_dimension_numbers<[1], [0], [0], [1], [0, 0, 1, 1], [], []>} : vector<8x64xf32>, vector<64x64xf32>, vector<8x64xf32> -> vector<8x64xf32>
    %223 = vector.extract_strided_slice %217 {offsets = [0, 0, 1, 0], sizes = [2, 2, 2, 64], strides = [1, 1, 1, 1]} : vector<2x4x4x64xf32> to vector<2x2x2x64xf32>
    %224 = vector.shape_cast %223 : vector<2x2x2x64xf32> to vector<8x64xf32>
    %c19 = arith.constant 19 : index
    %c0_112 = arith.constant 0 : index
    %c0_113 = arith.constant 0 : index
    %225 = vector.load %arg2[%c19, %c0_112, %c0_113] : memref<27x64x64xf32, #tpu.memory_space<vmem>>, vector<1x64x64xf32>
    %226 = vector.shape_cast %225 : vector<1x64x64xf32> to vector<64x64xf32>
    %cst_114 = arith.constant dense<0.000000e+00> : vector<8x64xf32>
    %227 = tpu.matmul %224, %226, %cst_114 {dimension_numbers = #tpu.dot_dimension_numbers<[1], [0], [0], [1], [0, 0, 1, 1], [], []>} : vector<8x64xf32>, vector<64x64xf32>, vector<8x64xf32> -> vector<8x64xf32>
    %228 = arith.addf %222, %227 : vector<8x64xf32>
    %229 = vector.extract_strided_slice %217 {offsets = [0, 0, 2, 0], sizes = [2, 2, 2, 64], strides = [1, 1, 1, 1]} : vector<2x4x4x64xf32> to vector<2x2x2x64xf32>
    %230 = vector.shape_cast %229 : vector<2x2x2x64xf32> to vector<8x64xf32>
    %c20 = arith.constant 20 : index
    %c0_115 = arith.constant 0 : index
    %c0_116 = arith.constant 0 : index
    %231 = vector.load %arg2[%c20, %c0_115, %c0_116] : memref<27x64x64xf32, #tpu.memory_space<vmem>>, vector<1x64x64xf32>
    %232 = vector.shape_cast %231 : vector<1x64x64xf32> to vector<64x64xf32>
    %cst_117 = arith.constant dense<0.000000e+00> : vector<8x64xf32>
    %233 = tpu.matmul %230, %232, %cst_117 {dimension_numbers = #tpu.dot_dimension_numbers<[1], [0], [0], [1], [0, 0, 1, 1], [], []>} : vector<8x64xf32>, vector<64x64xf32>, vector<8x64xf32> -> vector<8x64xf32>
    %234 = arith.addf %228, %233 : vector<8x64xf32>
    %235 = vector.extract_strided_slice %217 {offsets = [0, 1, 0, 0], sizes = [2, 2, 2, 64], strides = [1, 1, 1, 1]} : vector<2x4x4x64xf32> to vector<2x2x2x64xf32>
    %236 = vector.shape_cast %235 : vector<2x2x2x64xf32> to vector<8x64xf32>
    %c21 = arith.constant 21 : index
    %c0_118 = arith.constant 0 : index
    %c0_119 = arith.constant 0 : index
    %237 = vector.load %arg2[%c21, %c0_118, %c0_119] : memref<27x64x64xf32, #tpu.memory_space<vmem>>, vector<1x64x64xf32>
    %238 = vector.shape_cast %237 : vector<1x64x64xf32> to vector<64x64xf32>
    %cst_120 = arith.constant dense<0.000000e+00> : vector<8x64xf32>
    %239 = tpu.matmul %236, %238, %cst_120 {dimension_numbers = #tpu.dot_dimension_numbers<[1], [0], [0], [1], [0, 0, 1, 1], [], []>} : vector<8x64xf32>, vector<64x64xf32>, vector<8x64xf32> -> vector<8x64xf32>
    %240 = arith.addf %234, %239 : vector<8x64xf32>
    %241 = vector.extract_strided_slice %217 {offsets = [0, 1, 1, 0], sizes = [2, 2, 2, 64], strides = [1, 1, 1, 1]} : vector<2x4x4x64xf32> to vector<2x2x2x64xf32>
    %242 = vector.shape_cast %241 : vector<2x2x2x64xf32> to vector<8x64xf32>
    %c22 = arith.constant 22 : index
    %c0_121 = arith.constant 0 : index
    %c0_122 = arith.constant 0 : index
    %243 = vector.load %arg2[%c22, %c0_121, %c0_122] : memref<27x64x64xf32, #tpu.memory_space<vmem>>, vector<1x64x64xf32>
    %244 = vector.shape_cast %243 : vector<1x64x64xf32> to vector<64x64xf32>
    %cst_123 = arith.constant dense<0.000000e+00> : vector<8x64xf32>
    %245 = tpu.matmul %242, %244, %cst_123 {dimension_numbers = #tpu.dot_dimension_numbers<[1], [0], [0], [1], [0, 0, 1, 1], [], []>} : vector<8x64xf32>, vector<64x64xf32>, vector<8x64xf32> -> vector<8x64xf32>
    %246 = arith.addf %240, %245 : vector<8x64xf32>
    %247 = vector.extract_strided_slice %217 {offsets = [0, 1, 2, 0], sizes = [2, 2, 2, 64], strides = [1, 1, 1, 1]} : vector<2x4x4x64xf32> to vector<2x2x2x64xf32>
    %248 = vector.shape_cast %247 : vector<2x2x2x64xf32> to vector<8x64xf32>
    %c23 = arith.constant 23 : index
    %c0_124 = arith.constant 0 : index
    %c0_125 = arith.constant 0 : index
    %249 = vector.load %arg2[%c23, %c0_124, %c0_125] : memref<27x64x64xf32, #tpu.memory_space<vmem>>, vector<1x64x64xf32>
    %250 = vector.shape_cast %249 : vector<1x64x64xf32> to vector<64x64xf32>
    %cst_126 = arith.constant dense<0.000000e+00> : vector<8x64xf32>
    %251 = tpu.matmul %248, %250, %cst_126 {dimension_numbers = #tpu.dot_dimension_numbers<[1], [0], [0], [1], [0, 0, 1, 1], [], []>} : vector<8x64xf32>, vector<64x64xf32>, vector<8x64xf32> -> vector<8x64xf32>
    %252 = arith.addf %246, %251 : vector<8x64xf32>
    %253 = vector.extract_strided_slice %217 {offsets = [0, 2, 0, 0], sizes = [2, 2, 2, 64], strides = [1, 1, 1, 1]} : vector<2x4x4x64xf32> to vector<2x2x2x64xf32>
    %254 = vector.shape_cast %253 : vector<2x2x2x64xf32> to vector<8x64xf32>
    %c24 = arith.constant 24 : index
    %c0_127 = arith.constant 0 : index
    %c0_128 = arith.constant 0 : index
    %255 = vector.load %arg2[%c24, %c0_127, %c0_128] : memref<27x64x64xf32, #tpu.memory_space<vmem>>, vector<1x64x64xf32>
    %256 = vector.shape_cast %255 : vector<1x64x64xf32> to vector<64x64xf32>
    %cst_129 = arith.constant dense<0.000000e+00> : vector<8x64xf32>
    %257 = tpu.matmul %254, %256, %cst_129 {dimension_numbers = #tpu.dot_dimension_numbers<[1], [0], [0], [1], [0, 0, 1, 1], [], []>} : vector<8x64xf32>, vector<64x64xf32>, vector<8x64xf32> -> vector<8x64xf32>
    %258 = arith.addf %252, %257 : vector<8x64xf32>
    %259 = vector.extract_strided_slice %217 {offsets = [0, 2, 1, 0], sizes = [2, 2, 2, 64], strides = [1, 1, 1, 1]} : vector<2x4x4x64xf32> to vector<2x2x2x64xf32>
    %260 = vector.shape_cast %259 : vector<2x2x2x64xf32> to vector<8x64xf32>
    %c25 = arith.constant 25 : index
    %c0_130 = arith.constant 0 : index
    %c0_131 = arith.constant 0 : index
    %261 = vector.load %arg2[%c25, %c0_130, %c0_131] : memref<27x64x64xf32, #tpu.memory_space<vmem>>, vector<1x64x64xf32>
    %262 = vector.shape_cast %261 : vector<1x64x64xf32> to vector<64x64xf32>
    %cst_132 = arith.constant dense<0.000000e+00> : vector<8x64xf32>
    %263 = tpu.matmul %260, %262, %cst_132 {dimension_numbers = #tpu.dot_dimension_numbers<[1], [0], [0], [1], [0, 0, 1, 1], [], []>} : vector<8x64xf32>, vector<64x64xf32>, vector<8x64xf32> -> vector<8x64xf32>
    %264 = arith.addf %258, %263 : vector<8x64xf32>
    %265 = vector.extract_strided_slice %217 {offsets = [0, 2, 2, 0], sizes = [2, 2, 2, 64], strides = [1, 1, 1, 1]} : vector<2x4x4x64xf32> to vector<2x2x2x64xf32>
    %266 = vector.shape_cast %265 : vector<2x2x2x64xf32> to vector<8x64xf32>
    %c26 = arith.constant 26 : index
    %c0_133 = arith.constant 0 : index
    %c0_134 = arith.constant 0 : index
    %267 = vector.load %arg2[%c26, %c0_133, %c0_134] : memref<27x64x64xf32, #tpu.memory_space<vmem>>, vector<1x64x64xf32>
    %268 = vector.shape_cast %267 : vector<1x64x64xf32> to vector<64x64xf32>
    %cst_135 = arith.constant dense<0.000000e+00> : vector<8x64xf32>
    %269 = tpu.matmul %266, %268, %cst_135 {dimension_numbers = #tpu.dot_dimension_numbers<[1], [0], [0], [1], [0, 0, 1, 1], [], []>} : vector<8x64xf32>, vector<64x64xf32>, vector<8x64xf32> -> vector<8x64xf32>
    %270 = arith.addf %264, %269 : vector<8x64xf32>
    %c6_136 = arith.constant 6 : index
    %c0_137 = arith.constant 0 : index
    %271 = vector.load %arg3[%c6_136, %c0_137] : memref<8x64xf32, #tpu.memory_space<vmem>>, vector<1x64xf32>
    %c7_138 = arith.constant 7 : index
    %c0_139 = arith.constant 0 : index
    %272 = vector.load %arg3[%c7_138, %c0_139] : memref<8x64xf32, #tpu.memory_space<vmem>>, vector<1x64xf32>
    %cst_140 = arith.constant dense<0.000000e+00> : vector<64xf32>
    %273 = vector.multi_reduction <add>, %270, %cst_140 [0] : vector<8x64xf32> to vector<64xf32>
    %274 = vector.shape_cast %273 : vector<64xf32> to vector<1x64xf32>
    %cst_141 = arith.constant 1.250000e-01 : f32
    %275 = vector.broadcast %cst_141 : f32 to vector<1x64xf32>
    %276 = arith.mulf %274, %275 : vector<1x64xf32>
    %277 = arith.mulf %270, %270 : vector<8x64xf32>
    %cst_142 = arith.constant dense<0.000000e+00> : vector<64xf32>
    %278 = vector.multi_reduction <add>, %277, %cst_142 [0] : vector<8x64xf32> to vector<64xf32>
    %279 = vector.shape_cast %278 : vector<64xf32> to vector<1x64xf32>
    %cst_143 = arith.constant 1.250000e-01 : f32
    %280 = vector.broadcast %cst_143 : f32 to vector<1x64xf32>
    %281 = arith.mulf %279, %280 : vector<1x64xf32>
    %282 = arith.mulf %276, %276 : vector<1x64xf32>
    %283 = arith.subf %281, %282 : vector<1x64xf32>
    %cst_144 = arith.constant 9.99999974E-6 : f32
    %284 = vector.broadcast %cst_144 : f32 to vector<1x64xf32>
    %285 = arith.addf %283, %284 : vector<1x64xf32>
    %286 = math.rsqrt %285 : vector<1x64xf32>
    %287 = arith.mulf %271, %286 : vector<1x64xf32>
    %288 = arith.mulf %276, %287 : vector<1x64xf32>
    %289 = arith.subf %272, %288 : vector<1x64xf32>
    %290 = vector.broadcast %287 : vector<1x64xf32> to vector<8x64xf32>
    %291 = arith.mulf %270, %290 : vector<8x64xf32>
    %292 = vector.broadcast %289 : vector<1x64xf32> to vector<8x64xf32>
    %293 = arith.addf %291, %292 : vector<8x64xf32>
    %cst_145 = arith.constant 0.000000e+00 : f32
    %294 = vector.broadcast %cst_145 : f32 to vector<8x64xf32>
    %295 = arith.maximumf %293, %294 : vector<8x64xf32>
    %296 = vector.shape_cast %295 : vector<8x64xf32> to vector<2x2x2x64xf32>
    %297 = vector.extract_strided_slice %296 {offsets = [0, 0, 0, 0], sizes = [2, 2, 1, 64], strides = [1, 1, 1, 1]} : vector<2x2x2x64xf32> to vector<2x2x1x64xf32>
    %298 = vector.shape_cast %297 : vector<2x2x1x64xf32> to vector<2x2x64xf32>
    %299 = vector.shape_cast %298 : vector<2x2x64xf32> to vector<4x64xf32>
    %c0_146 = arith.constant 0 : index
    %c0_147 = arith.constant 0 : index
    %300 = vector.load %arg4[%c0_146, %c0_147] : memref<4x128xf32, #tpu.memory_space<vmem>>, vector<4x64xf32>
    tpu.vector_store %arg4[%c0_146, %c0_147], %299 {strides = array<i32>} : memref<4x128xf32, #tpu.memory_space<vmem>>, vector<4x64xf32>,
    %301 = vector.extract_strided_slice %296 {offsets = [0, 0, 1, 0], sizes = [2, 2, 1, 64], strides = [1, 1, 1, 1]} : vector<2x2x2x64xf32> to vector<2x2x1x64xf32>
    %302 = vector.shape_cast %301 : vector<2x2x1x64xf32> to vector<2x2x64xf32>
    %303 = vector.shape_cast %302 : vector<2x2x64xf32> to vector<4x64xf32>
    %c0_148 = arith.constant 0 : index
    %c64 = arith.constant 64 : index
    %304 = vector.load %arg4[%c0_148, %c64] : memref<4x128xf32, #tpu.memory_space<vmem>>, vector<4x64xf32>
    tpu.vector_store %arg4[%c0_148, %c64], %303 {strides = array<i32>} : memref<4x128xf32, #tpu.memory_space<vmem>>, vector<4x64xf32>,
    return
  }
}

</mosaic_0001>

<bundles_post_ra>
// kernel: _cnn_encoder_impl.1
= control target key start
LH: loop header
LB: loop body
LE: loop exit
PB: predicated region body
PF: predicated region fallthrough
CT: control target
= control target key end

     0   :  { %v14953_v0 = vmov 0.0   ;;  %vm9209_vm0 = vmmov 0   ;;  %vm394_vm1 = vcmask 523264   ;;  %vm3041_vm2 = vcmask 1041409   ;;  %s14948_s1 = inlined_call_operand.vmem [shape: f32[128,64], index: 1, kind: input, shape index: {}]   ;;  %s14949_s0 = inlined_call_operand.vmem [shape: f32[392,128], index: 0, kind: input, shape index: {}]   ;;  %s14950_s3 = inlined_call_operand.vmem [shape: f32[8,64], index: 3, kind: input, shape index: {}]   ;;  %s14951_s2 = inlined_call_operand.vmem [shape: f32[27,64,64], index: 2, kind: input, shape index: {}]   ;;  %s14952_s4 = inlined_call_operand.vmem [shape: f32[4,128], index: 4, kind: output, shape index: {}]  }
   0x1   :  { %8329 = vmatprep.subr.mxu0 %v14953_v0  ;;  %v81_v1 = vld [vmem:[%s14948_s1 + $0x78] sm:$0xff]  ;;  %v80_v2 = vld [vmem:[%s14948_s1 + $0x70] sm:$0xff]  ;;  %8361 = vmatprep.mubr.msk.f32.mxu0 %vm9209_vm0, %v14953_v0  ;;  %v79_v3 = vld [vmem:[%s14948_s1 + $0x68] sm:$0xff]  ;;  %vm3043_vm3 = vcmask 1042434   ;;  %vm3045_vm4 = vcmask 1043459   ;;  %vm3047_vm5 = vcmask 1044484  }
   0x2   :  { %8330 = vmatpush3.msra.mxu0 %v81_v1  ;;  %8508 = vmatprep.subr.mxu1 %v14953_v0  ;;  %v78_v4 = vld [vmem:[%s14948_s1 + $0x60] sm:$0xff]  ;;  %v77_v5 = vld [vmem:[%s14948_s1 + $0x58] sm:$0xff]  ;;  %v76_v6 = vld [vmem:[%s14948_s1 + $0x50] sm:$0xff]  ;;  %vm3049_vm6 = vcmask 1045509   ;;  %vm3051_vm7 = vcmask 1046534   ;;  %vm3053_vm8 = vcmask 1047559  }
   0x3   :  { %8331 = vmatprep.subr.mxu0 %v14953_v0  ;;  %8524 = vmatprep.mubr.msk.f32.mxu1 %vm9209_vm0, %v14953_v0  ;;  %v75_v7 = vld [vmem:[%s14948_s1 + $0x48] sm:$0xff]  ;;  %v74_v8 = vld [vmem:[%s14948_s1 + $0x40] sm:$0xff]  ;;  %v73_v9 = vld [vmem:[%s14948_s1 + $0x38] sm:$0xff]  ;;  %vm5195_vm9 = vcmask 519168   ;;  %vm4823_vm10 = vcmask 517120   ;;  %vm5334_vm11 = vcmask 1040384  }
   0x4   :  { %8332 = vmatpush3.msra.mxu0 %v80_v2  ;;  %v72_v10 = vld [vmem:[%s14948_s1 + $0x30] sm:$0xff]  ;;  %v71_v11 = vld [vmem:[%s14948_s1 + $0x28] sm:$0xff]  ;;  %v70_v12 = vld [vmem:[%s14948_s1 + $0x20] sm:$0xff]  ;;  %vm7448_vm15 = vcmask 1044993  }
   0x5   :  { %8333 = vmatprep.subr.mxu0 %v14953_v0  ;;  %v69_v13 = vld [vmem:[%s14948_s1 + $0x18] sm:$0xff]  ;;  %v68_v14 = vld [vmem:[%s14948_s1 + $0x10] sm:$0xff]  ;;  %v67_v15 = vld [vmem:[%s14948_s1 + $0x8] sm:$0xff] }
   0x6   :  { %8334 = vmatpush3.msra.mxu0 %v79_v3  ;;  %v66_v16 = vld [vmem:[%s14948_s1] sm:$0xff]  ;;  %v18_v18 = vld [vmem:[%s14949_s0 + $0x8] sm:$0xff]  ;;  %v19_v19 = vld [vmem:[%s14949_s0 + $0x10] sm:$0xff] }
   0x7   :  { %8335 = vmatprep.subr.mxu0 %v14953_v0  ;;  %v17_v17 = vld [vmem:[%s14949_s0] sm:$0xff]  ;;  %v20_v20 = vld [vmem:[%s14949_s0 + $0x18] sm:$0xff]  ;;  %v22_v22 = vld [vmem:[%s14949_s0 + $0x28] sm:$0xff] }
   0x8   :  { %8336 = vmatpush3.msra.mxu0 %v78_v4  ;;  %v21_v21 = vld [vmem:[%s14949_s0 + $0x20] sm:$0xff]  ;;  %v23_v23 = vld [vmem:[%s14949_s0 + $0x30] sm:$0xff]  ;;  %v24_v24 = vld [vmem:[%s14949_s0 + $0x38] sm:$0xff] }
   0x9   :  { %8337 = vmatprep.subr.mxu0 %v14953_v0  ;;  %v25_v25 = vld [vmem:[%s14949_s0 + $0x40] sm:$0xff]  ;;  %v26_v26 = vld [vmem:[%s14949_s0 + $0x48] sm:$0xff]  ;;  %v27_v27 = vld [vmem:[%s14949_s0 + $0x50] sm:$0xff] }
   0xa   :  { %8338 = vmatpush3.msra.mxu0 %v77_v5  ;;  %v28_v28 = vld [vmem:[%s14949_s0 + $0x58] sm:$0xff]  ;;  %v29_v29 = vld [vmem:[%s14949_s0 + $0x60] sm:$0xff]  ;;  %v30_v30 = vld [vmem:[%s14949_s0 + $0x68] sm:$0xff] }
   0xb   :  { %8339 = vmatprep.subr.mxu0 %v14953_v0  ;;  %v31_v31 = vld [vmem:[%s14949_s0 + $0x70] sm:$0xff]  ;;  %v32_v32 = vld [vmem:[%s14949_s0 + $0x78] sm:$0xff]  ;;  %v33_v33 = vld [vmem:[%s14949_s0 + $0x80] sm:$0xff] }
   0xc   :  { %8340 = vmatpush3.msra.mxu0 %v76_v6  ;;  %v34_v34 = vld [vmem:[%s14949_s0 + $0x88] sm:$0xff]  ;;  %v35_v35 = vld [vmem:[%s14949_s0 + $0x90] sm:$0xff]  ;;  %v36_v36 = vld [vmem:[%s14949_s0 + $0x98] sm:$0xff] }
   0xd   :  { %8341 = vmatprep.subr.mxu0 %v14953_v0  ;;  %v37_v37 = vld [vmem:[%s14949_s0 + $0xa0] sm:$0xff]  ;;  %v38_v38 = vld [vmem:[%s14949_s0 + $0xa8] sm:$0xff]  ;;  %v39_v39 = vld [vmem:[%s14949_s0 + $0xb0] sm:$0xff] }
   0xe   :  { %8342 = vmatpush3.msra.mxu0 %v75_v7  ;;  %v40_v40 = vld [vmem:[%s14949_s0 + $0xb8] sm:$0xff]  ;;  %v41_v41 = vld [vmem:[%s14949_s0 + $0xc0] sm:$0xff]  ;;  %v42_v42 = vld [vmem:[%s14949_s0 + $0xc8] sm:$0xff] }
   0xf   :  { %8343 = vmatprep.subr.mxu0 %v14953_v0  ;;  %v43_v43 = vld [vmem:[%s14949_s0 + $0xd0] sm:$0xff]  ;;  %v44_v44 = vld [vmem:[%s14949_s0 + $0xd8] sm:$0xff]  ;;  %v45_v45 = vld [vmem:[%s14949_s0 + $0xe0] sm:$0xff] }
  0x10   :  { %8344 = vmatpush3.msra.mxu0 %v74_v8  ;;  %v46_v46 = vld [vmem:[%s14949_s0 + $0xe8] sm:$0xff]  ;;  %v47_v47 = vld [vmem:[%s14949_s0 + $0xf0] sm:$0xff]  ;;  %v48_v48 = vld [vmem:[%s14949_s0 + $0xf8] sm:$0xff] }
  0x11   :  { %8345 = vmatprep.subr.mxu0 %v14953_v0  ;;  %v49_v49 = vld [vmem:[%s14949_s0 + $0x100] sm:$0xff]  ;;  %v50_v50 = vld [vmem:[%s14949_s0 + $0x108] sm:$0xff]  ;;  %v51_v51 = vld [vmem:[%s14949_s0 + $0x110] sm:$0xff] }
  0x12   :  { %8346 = vmatpush3.msra.mxu0 %v73_v9  ;;  %v52_v52 = vld [vmem:[%s14949_s0 + $0x118] sm:$0xff]  ;;  %v53_v53 = vld [vmem:[%s14949_s0 + $0x120] sm:$0xff]  ;;  %v54_v54 = vld [vmem:[%s14949_s0 + $0x128] sm:$0xff] }
  0x13   :  { %8347 = vmatprep.subr.mxu0 %v14953_v0  ;;  %v55_v55 = vld [vmem:[%s14949_s0 + $0x130] sm:$0xff]  ;;  %v56_v56 = vld [vmem:[%s14949_s0 + $0x138] sm:$0xff]  ;;  %v57_v57 = vld [vmem:[%s14949_s0 + $0x140] sm:$0xff] }
  0x14   :  { %8348 = vmatpush3.msra.mxu0 %v72_v10  ;;  %v58_v58 = vld [vmem:[%s14949_s0 + $0x148] sm:$0xff]  ;;  %v59_v59 = vld [vmem:[%s14949_s0 + $0x150] sm:$0xff]  ;;  %v60_v60 = vld [vmem:[%s14949_s0 + $0x158] sm:$0xff] }
  0x15   :  { %8349 = vmatprep.subr.mxu0 %v14953_v0  ;;  %v61_v61 = vld [vmem:[%s14949_s0 + $0x160] sm:$0xff]  ;;  %v62_v62 = vld [vmem:[%s14949_s0 + $0x168] sm:$0xff]  ;;  %v63_v63 = vld [vmem:[%s14949_s0 + $0x170] sm:$0xff] }
  0x16   :  { %8350 = vmatpush3.msra.mxu0 %v71_v11  ;;  %v64_v1 = vld [vmem:[%s14949_s0 + $0x178] sm:$0xff]  ;;  %v65_v2 = vld [vmem:[%s14949_s0 + $0x180] sm:$0xff]  ;;  %vm5335_vm12 = vmor %vm5334_vm11, %vm3043_vm3 }
  0x17   :  { %8351 = vmatprep.subr.mxu0 %v14953_v0  ;;  %vm5336_vm13 = vmor %vm5335_vm12, %vm3047_vm5 }
  0x18   :  { %8352 = vmatpush3.msra.mxu0 %v70_v12  ;;  %vm14101_vm14 = vmor %vm5336_vm13, %vm3051_vm7 }
  0x19   :  { %8353 = vmatprep.subr.mxu0 %v14953_v0 }
  0x1a   :  { %8354 = vmatpush3.msra.mxu0 %v69_v13 }
  0x1b   :  { %8355 = vmatprep.subr.mxu0 %v14953_v0 }
  0x1c   :  { %8356 = vmatpush3.msra.mxu0 %v68_v14 }
  0x1d   :  { %8357 = vmatprep.subr.mxu0 %v14953_v0 }
  0x1e   :  { %8358 = vmatpush3.msra.mxu0 %v67_v15 }
  0x1f   :  { %8359 = vmatprep.subr.mxu0 %v14953_v0 }
  0x20   :  { %8360 = vmatpush3.msra.mxu0 %v66_v16 }
  0x21   :  { %8362 = vmatmul.mubr.f32.vlgmr.msra.gmra.mxu0 %v17_v17  ;;  %8804 = vmatprep.subr.mxu0 %v14953_v0 }
  0x22   :  { %8364 = vmatprep.mubr.msk.f32.mxu0 %vm9209_vm0, %v14953_v0 }
  0x25   :  { %8365 = vmatmul.mubr.f32.gmra.mxu0 %v18_v18 }
  0x26   :  { %8367 = vmatprep.mubr.msk.f32.mxu0 %vm9209_vm0, %v14953_v0 }
  0x29   :  { %8368 = vmatmul.mubr.f32.gmra.mxu0 %v19_v19 }
  0x2a   :  { %8370 = vmatprep.mubr.msk.f32.mxu0 %vm9209_vm0, %v14953_v0 }
  0x2d   :  { %8371 = vmatmul.mubr.f32.gmra.mxu0 %v20_v20 }
  0x2e   :  { %8373 = vmatprep.mubr.msk.f32.mxu0 %vm9209_vm0, %v14953_v0 }
  0x31   :  { %8374 = vmatmul.mubr.f32.gmra.mxu0 %v21_v21 }
  0x32   :  { %8376 = vmatprep.mubr.msk.f32.mxu0 %vm9209_vm0, %v14953_v0 }
  0x35   :  { %8377 = vmatmul.mubr.f32.gmra.mxu0 %v22_v22 }
  0x36   :  { %8379 = vmatprep.mubr.msk.f32.mxu0 %vm9209_vm0, %v14953_v0 }
  0x39   :  { %8380 = vmatmul.mubr.f32.gmra.mxu0 %v23_v23 }
  0x3a   :  { %8382 = vmatprep.mubr.msk.f32.mxu0 %vm9209_vm0, %v14953_v0 }
  0x3d   :  { %8383 = vmatmul.mubr.f32.gmra.mxu0 %v24_v24 }
  0x3e   :  { %8385 = vmatprep.mubr.msk.f32.mxu0 %vm9209_vm0, %v14953_v0 }
  0x41   :  { %8386 = vmatmul.mubr.f32.gmra.mxu0 %v25_v25 }
  0x42   :  { %8388 = vmatprep.mubr.msk.f32.mxu0 %vm9209_vm0, %v14953_v0 }
  0x45   :  { %8389 = vmatmul.mubr.f32.gmra.mxu0 %v26_v26 }
  0x46   :  { %8391 = vmatprep.mubr.msk.f32.mxu0 %vm9209_vm0, %v14953_v0 }
  0x49   :  { %8392 = vmatmul.mubr.f32.gmra.mxu0 %v27_v27 }
  0x4a   :  { %8394 = vmatprep.mubr.msk.f32.mxu0 %vm9209_vm0, %v14953_v0 }
  0x4d   :  { %8395 = vmatmul.mubr.f32.gmra.mxu0 %v28_v28 }
  0x4e   :  { %8397 = vmatprep.mubr.msk.f32.mxu0 %vm9209_vm0, %v14953_v0 }
  0x51   :  { %8398 = vmatmul.mubr.f32.gmra.mxu0 %v29_v29 }
  0x52   :  { %8400 = vmatprep.mubr.msk.f32.mxu0 %vm9209_vm0, %v14953_v0 }
  0x55   :  { %8401 = vmatmul.mubr.f32.gmra.mxu0 %v30_v30 }
  0x56   :  { %8403 = vmatprep.mubr.msk.f32.mxu0 %vm9209_vm0, %v14953_v0 }
  0x59   :  { %8404 = vmatmul.mubr.f32.gmra.mxu0 %v31_v31 }
  0x5a   :  { %8406 = vmatprep.mubr.msk.f32.mxu0 %vm9209_vm0, %v14953_v0 }
  0x5d   :  { %8407 = vmatmul.mubr.f32.gmra.mxu0 %v32_v32 }
  0x5e   :  { %8409 = vmatprep.mubr.msk.f32.mxu0 %vm9209_vm0, %v14953_v0 }
  0x61   :  { %8410 = vmatmul.mubr.f32.gmra.mxu0 %v33_v33 }
  0x62   :  { %8412 = vmatprep.mubr.msk.f32.mxu0 %vm9209_vm0, %v14953_v0 }
  0x65   :  { %8413 = vmatmul.mubr.f32.gmra.mxu0 %v34_v34 }
  0x66   :  { %8415 = vmatprep.mubr.msk.f32.mxu0 %vm9209_vm0, %v14953_v0 }
  0x69   :  { %8416 = vmatmul.mubr.f32.gmra.mxu0 %v35_v35 }
  0x6a   :  { %8418 = vmatprep.mubr.msk.f32.mxu0 %vm9209_vm0, %v14953_v0 }
  0x6d   :  { %8419 = vmatmul.mubr.f32.gmra.mxu0 %v36_v36 }
  0x6e   :  { %8421 = vmatprep.mubr.msk.f32.mxu0 %vm9209_vm0, %v14953_v0 }
  0x71   :  { %8422 = vmatmul.mubr.f32.gmra.mxu0 %v37_v37 }
  0x72   :  { %8424 = vmatprep.mubr.msk.f32.mxu0 %vm9209_vm0, %v14953_v0 }
  0x75   :  { %8425 = vmatmul.mubr.f32.gmra.mxu0 %v38_v38 }
  0x76   :  { %8427 = vmatprep.mubr.msk.f32.mxu0 %vm9209_vm0, %v14953_v0 }
  0x79   :  { %8428 = vmatmul.mubr.f32.gmra.mxu0 %v39_v39 }
  0x7a   :  { %8430 = vmatprep.mubr.msk.f32.mxu0 %vm9209_vm0, %v14953_v0 }
  0x7d   :  { %8431 = vmatmul.mubr.f32.gmra.mxu0 %v40_v40 }
  0x7e   :  { %8433 = vmatprep.mubr.msk.f32.mxu0 %vm9209_vm0, %v14953_v0 }
  0x81   :  { %8434 = vmatmul.mubr.f32.gmra.mxu0 %v41_v41 }
  0x82   :  { %8436 = vmatprep.mubr.msk.f32.mxu0 %vm9209_vm0, %v14953_v0 }
  0x85   :  { %8437 = vmatmul.mubr.f32.gmra.mxu0 %v42_v42 }
  0x86   :  { %8439 = vmatprep.mubr.msk.f32.mxu0 %vm9209_vm0, %v14953_v0 }
  0x89   :  { %8440 = vmatmul.mubr.f32.gmra.mxu0 %v43_v43 }
  0x8a   :  { %8442 = vmatprep.mubr.msk.f32.mxu0 %vm9209_vm0, %v14953_v0 }
  0x8d   :  { %8443 = vmatmul.mubr.f32.gmra.mxu0 %v44_v44 }
  0x8e   :  { %8445 = vmatprep.mubr.msk.f32.mxu0 %vm9209_vm0, %v14953_v0 }
  0x91   :  { %8446 = vmatmul.mubr.f32.gmra.mxu0 %v45_v45 }
  0x92   :  { %8448 = vmatprep.mubr.msk.f32.mxu0 %vm9209_vm0, %v14953_v0 }
  0x95   :  { %8449 = vmatmul.mubr.f32.gmra.mxu0 %v46_v46 }
  0x96   :  { %8451 = vmatprep.mubr.msk.f32.mxu0 %vm9209_vm0, %v14953_v0 }
  0x99   :  { %8452 = vmatmul.mubr.f32.gmra.mxu0 %v47_v47 }
  0x9a   :  { %8454 = vmatprep.mubr.msk.f32.mxu0 %vm9209_vm0, %v14953_v0 }
  0x9d   :  { %8455 = vmatmul.mubr.f32.gmra.mxu0 %v48_v48 }
  0x9e   :  { %8457 = vmatprep.mubr.msk.f32.mxu0 %vm9209_vm0, %v14953_v0 }
  0xa1   :  { %8458 = vmatmul.mubr.f32.gmra.mxu0 %v49_v49 }
  0xa2   :  { %8460 = vmatprep.mubr.msk.f32.mxu0 %vm9209_vm0, %v14953_v0 }
  0xa5   :  { %8461 = vmatmul.mubr.f32.gmra.mxu0 %v50_v50 }
  0xa6   :  { %8463 = vmatprep.mubr.msk.f32.mxu0 %vm9209_vm0, %v14953_v0 }
  0xa9   :  { %8464 = vmatmul.mubr.f32.gmra.mxu0 %v51_v51 }
  0xaa   :  { %8466 = vmatprep.mubr.msk.f32.mxu0 %vm9209_vm0, %v14953_v0 }
  0xad   :  { %8467 = vmatmul.mubr.f32.gmra.mxu0 %v52_v52 }
  0xae   :  { %8469 = vmatprep.mubr.msk.f32.mxu0 %vm9209_vm0, %v14953_v0 }
  0xb1   :  { %8470 = vmatmul.mubr.f32.gmra.mxu0 %v53_v53 }
  0xb2   :  { %8472 = vmatprep.mubr.msk.f32.mxu0 %vm9209_vm0, %v14953_v0 }
  0xb5   :  { %8473 = vmatmul.mubr.f32.gmra.mxu0 %v54_v54 }
  0xb6   :  { %8475 = vmatprep.mubr.msk.f32.mxu0 %vm9209_vm0, %v14953_v0 }
  0xb9   :  { %8476 = vmatmul.mubr.f32.gmra.mxu0 %v55_v55 }
  0xba   :  { %8478 = vmatprep.mubr.msk.f32.mxu0 %vm9209_vm0, %v14953_v0 }
  0xbd   :  { %8479 = vmatmul.mubr.f32.gmra.mxu0 %v56_v56 }
  0xbe   :  { %8481 = vmatprep.mubr.msk.f32.mxu0 %vm9209_vm0, %v14953_v0 }
  0xc1   :  { %8482 = vmatmul.mubr.f32.gmra.mxu0 %v57_v57 }
  0xc2   :  { %8484 = vmatprep.mubr.msk.f32.mxu0 %vm9209_vm0, %v14953_v0 }
  0xc5   :  { %8485 = vmatmul.mubr.f32.gmra.mxu0 %v58_v58 }
  0xc6   :  { %8487 = vmatprep.mubr.msk.f32.mxu0 %vm9209_vm0, %v14953_v0 }
  0xc9   :  { %8488 = vmatmul.mubr.f32.gmra.mxu0 %v59_v59 }
  0xca   :  { %8490 = vmatprep.mubr.msk.f32.mxu0 %vm9209_vm0, %v14953_v0 }
  0xcd   :  { %8491 = vmatmul.mubr.f32.gmra.mxu0 %v60_v60 }
  0xce   :  { %8493 = vmatprep.mubr.msk.f32.mxu0 %vm9209_vm0, %v14953_v0 }
  0xd1   :  { %8494 = vmatmul.mubr.f32.gmra.mxu0 %v61_v61 }
  0xd2   :  { %8496 = vmatprep.mubr.msk.f32.mxu0 %vm9209_vm0, %v14953_v0 }
  0xd5   :  { %8497 = vmatmul.mubr.f32.gmra.mxu0 %v62_v62 }
  0xd6   :  { %8499 = vmatprep.mubr.msk.f32.mxu0 %vm9209_vm0, %v14953_v0 }
  0xd9   :  { %8500 = vmatmul.mubr.f32.gmra.mxu0 %v63_v63 }
  0xda   :  { %8502 = vmatprep.mubr.msk.f32.mxu0 %vm9209_vm0, %v14953_v0 }
  0xdd   :  { %8503 = vmatmul.mubr.f32.gmra.mxu0 %v64_v1 }
  0xde   :  { %8505 = vmatprep.mubr.msk.f32.mxu0 %vm9209_vm0, %v14953_v0 }
  0xe1   :  { %v9551_v3 = vpop.f32.mrf.mxu0  ;;  %8506 = vmatmul.mubr.f32.gmra.mxu0 %v65_v2 }
  0xe2   :  { %8820 = vmatprep.mubr.msk.f32.mxu0 %vm9209_vm0, %v14953_v0  ;;  %v499_v52 = vmul.f32 %v9551_v3, %v9551_v3  ;;  %v395_v56 = vsel %vm394_vm1, %v9551_v3, 0.0 }
  0xe3   :  { %v8363_v4 = vpop.f32.mrf.mxu0 }
  0xe4   :  { %v548_v62 = vsel %vm394_vm1, %v499_v52, 0.0 }
  0xe5   :  { %v9555_v5 = vpop.f32.mrf.mxu0 }
  0xe6   :  { %v500_v50 = vmul.f32 %v9555_v5, %v9555_v5  ;;  %v396_v53 = vsel %vm394_vm1, %v9555_v5, 0.0 }
  0xe7   :  { %v8366_v6 = vpop.f32.mrf.mxu0  ;;  %v397_v60 = vadd.f32 %v396_v53, %v395_v56 }
  0xe8   :  { %v549_v57 = vsel %vm394_vm1, %v500_v50, 0.0 }
  0xe9   :  { %v9557_v7 = vpop.f32.mrf.mxu0  ;;  %v550_v4 = vadd.f32 %v549_v57, %v548_v62 }
  0xea   :  { %v501_v54 = vmul.f32 %v9557_v7, %v9557_v7  ;;  %v398_v58 = vsel %vm394_vm1, %v9557_v7, 0.0 }
  0xeb   :  { %v8369_v8 = vpop.f32.mrf.mxu0  ;;  %v399_v6 = vadd.f32 %v398_v58, %v397_v60 }
  0xec   :  { %v551_v63 = vsel %vm394_vm1, %v501_v54, 0.0 }
  0xed   :  { %v9559_v9 = vpop.f32.mrf.mxu0 }
  0xee   :  { %v502_v59 = vmul.f32 %v9559_v9, %v9559_v9  ;;  %v400_v1 = vsel %vm394_vm1, %v9559_v9, 0.0 }
  0xef   :  { %v8372_v10 = vpop.f32.mrf.mxu0 }
  0xf0   :  { %v553_v10 = vsel %vm394_vm1, %v502_v59, 0.0 }
  0xf1   :  { %v9561_v11 = vpop.f32.mrf.mxu0 }
  0xf2   :  { %v503_v2 = vmul.f32 %v9561_v11, %v9561_v11 }
  0xf3   :  { %v8375_v12 = vpop.f32.mrf.mxu0 }
  0xf4   :  { %v402_v12 = vsel %vm394_vm1, %v9561_v11, 0.0 }
  0xf5   :  { %v9563_v13 = vpop.f32.mrf.mxu0 }
  0xf7   :  { %v8378_v14 = vpop.f32.mrf.mxu0 }
  0xf8   :  { %v504_v14 = vmul.f32 %v9563_v13, %v9563_v13 }
  0xf9   :  { %v9565_v15 = vpop.f32.mrf.mxu0 }
  0xfb   :  { %v8381_v16 = vpop.f32.mrf.mxu0 }
  0xfc   :  { %v552_v16 = vadd.f32 %v551_v63, %v550_v4 }
  0xfd   :  { %v9567_v17 = vpop.f32.mrf.mxu0 }
  0xff   :  { %v8384_v18 = vpop.f32.mrf.mxu0 }
 0x100   :  { %v401_v18 = vadd.f32 %v400_v1, %v399_v6 }
 0x101   :  { %v9569_v19 = vpop.f32.mrf.mxu0 }
 0x102   :  { %v507_v50 = vmul.f32 %v9569_v19, %v9569_v19  ;;  %v410_v56 = vsel %vm394_vm1, %v9569_v19, 0.0 }
 0x103   :  { %v8387_v20 = vpop.f32.mrf.mxu0 }
 0x105   :  { %v9571_v21 = vpop.f32.mrf.mxu0 }
 0x106   :  { %v508_v57 = vmul.f32 %v9571_v21, %v9571_v21  ;;  %v412_v62 = vsel %vm394_vm1, %v9571_v21, 0.0 }
 0x107   :  { %v8390_v22 = vpop.f32.mrf.mxu0 }
 0x108   :  { %v555_v22 = vsel %vm394_vm1, %v503_v2, 0.0  ;;  %v565_v6 = vsel %vm394_vm1, %v508_v57, 0.0 }
 0x109   :  { %v9573_v23 = vpop.f32.mrf.mxu0 }
 0x10a   :  { %v509_v63 = vmul.f32 %v9573_v23, %v9573_v23 }
 0x10b   :  { %v8393_v24 = vpop.f32.mrf.mxu0 }
 0x10c   :  { %v404_v24 = vsel %vm394_vm1, %v9563_v13, 0.0 }
 0x10d   :  { %v9575_v25 = vpop.f32.mrf.mxu0 }
 0x10f   :  { %v8396_v26 = vpop.f32.mrf.mxu0 }
 0x110   :  { %v505_v26 = vmul.f32 %v9565_v15, %v9565_v15 }
 0x111   :  { %v9577_v27 = vpop.f32.mrf.mxu0 }
 0x113   :  { %v8399_v28 = vpop.f32.mrf.mxu0 }
 0x114   :  { %v554_v28 = vadd.f32 %v553_v10, %v552_v16  ;;  %v414_v10 = vsel %vm394_vm1, %v9573_v23, 0.0 }
 0x115   :  { %v9579_v29 = vpop.f32.mrf.mxu0 }
 0x117   :  { %v8402_v30 = vpop.f32.mrf.mxu0 }
 0x118   :  { %v403_v30 = vadd.f32 %v402_v12, %v401_v18  ;;  %v510_v12 = vmul.f32 %v9575_v25, %v9575_v25 }
 0x119   :  { %v9581_v31 = vpop.f32.mrf.mxu0 }
 0x11a   :  { %v422_v57 = vsel %vm394_vm1, %v9581_v31, 0.0 }
 0x11b   :  { %v8405_v32 = vpop.f32.mrf.mxu0 }
 0x11d   :  { %v9583_v33 = vpop.f32.mrf.mxu0 }
 0x11f   :  { %v8408_v34 = vpop.f32.mrf.mxu0 }
 0x120   :  { %v557_v34 = vsel %vm394_vm1, %v504_v14, 0.0 }
 0x121   :  { %v9585_v35 = vpop.f32.mrf.mxu0 }
 0x123   :  { %v8411_v36 = vpop.f32.mrf.mxu0 }
 0x124   :  { %v406_v36 = vsel %vm394_vm1, %v9565_v15, 0.0 }
 0x125   :  { %v9587_v37 = vpop.f32.mrf.mxu0 }
 0x127   :  { %v8414_v38 = vpop.f32.mrf.mxu0 }
 0x128   :  { %v506_v38 = vmul.f32 %v9567_v17, %v9567_v17 }
 0x129   :  { %v9589_v39 = vpop.f32.mrf.mxu0 }
 0x12a   :  { %v561_v54 = vsel %vm394_vm1, %v506_v38, 0.0  ;;  %v512_v38 = vmul.f32 %v9579_v29, %v9579_v29 }
 0x12b   :  { %v8417_v40 = vpop.f32.mrf.mxu0 }
 0x12c   :  { %v556_v40 = vadd.f32 %v555_v22, %v554_v28  ;;  %v416_v22 = vsel %vm394_vm1, %v9575_v25, 0.0 }
 0x12d   :  { %v9591_v41 = vpop.f32.mrf.mxu0 }
 0x12f   :  { %v8420_v42 = vpop.f32.mrf.mxu0 }
 0x130   :  { %v405_v42 = vadd.f32 %v404_v24, %v403_v30  ;;  %v511_v24 = vmul.f32 %v9577_v27, %v9577_v27 }
 0x131   :  { %v9593_v43 = vpop.f32.mrf.mxu0 }
 0x132   :  { %v407_v52 = vadd.f32 %v406_v36, %v405_v42  ;;  %v418_v36 = vsel %vm394_vm1, %v9577_v27, 0.0 }
 0x133   :  { %v8423_v44 = vpop.f32.mrf.mxu0 }
 0x135   :  { %v9595_v45 = vpop.f32.mrf.mxu0 }
 0x137   :  { %v8426_v46 = vpop.f32.mrf.mxu0 }
 0x138   :  { %v559_v46 = vsel %vm394_vm1, %v505_v26, 0.0 }
 0x139   :  { %v9597_v47 = vpop.f32.mrf.mxu0 }
 0x13b   :  { %v8429_v48 = vpop.f32.mrf.mxu0 }
 0x13c   :  { %v408_v48 = vsel %vm394_vm1, %v9567_v17, 0.0 }
 0x13d   :  { %v9599_v49 = vpop.f32.mrf.mxu0  ;;  %v409_v59 = vadd.f32 %v408_v48, %v407_v52  ;;  %v420_v48 = vsel %vm394_vm1, %v9579_v29, 0.0 }
 0x13f   :  { %v8432_v51 = vpop.f32.mrf.mxu0  ;;  %v411_v2 = vadd.f32 %v410_v56, %v409_v59  ;;  %v573_v56 = vsel %vm394_vm1, %v512_v38, 0.0 }
 0x140   :  { %v558_v51 = vadd.f32 %v557_v34, %v556_v40  ;;  %v569_v34 = vsel %vm394_vm1, %v510_v12, 0.0 }
 0x141   :  { %v9609_v55 = vpop.f32.mrf.mxu0  ;;  %v413_v16 = vadd.f32 %v412_v62, %v411_v2 }
 0x142   :  { %v560_v58 = vadd.f32 %v559_v46, %v558_v51  ;;  %v571_v46 = vsel %vm394_vm1, %v511_v24, 0.0 }
 0x143   :  { %v8435_v61 = vpop.f32.mrf.mxu0  ;;  %v415_v28 = vadd.f32 %v414_v10, %v413_v16  ;;  %v516_v16 = vmul.f32 %v9587_v37, %v9587_v37 }
 0x144   :  { %v563_v61 = vsel %vm394_vm1, %v507_v50, 0.0  ;;  %v562_v1 = vadd.f32 %v561_v54, %v560_v58  ;;  %v513_v50 = vmul.f32 %v9581_v31, %v9581_v31  ;;  %v514_v58 = vmul.f32 %v9583_v33, %v9583_v33 }
 0x145   :  { %v9624_v8 = vpop.f32.mrf.mxu0  ;;  %v417_v42 = vadd.f32 %v416_v22, %v415_v28  ;;  %v517_v28 = vmul.f32 %v9589_v39, %v9589_v39 }
 0x146   :  { %v564_v14 = vadd.f32 %v563_v61, %v562_v1  ;;  %v575_v62 = vsel %vm394_vm1, %v513_v50, 0.0  ;;  %v515_v1 = vmul.f32 %v9585_v35, %v9585_v35  ;;  %v577_v12 = vsel %vm394_vm1, %v514_v58, 0.0 }
 0x147   :  { %v8438_v20 = vpop.f32.mrf.mxu0  ;;  %v419_v52 = vadd.f32 %v418_v36, %v417_v42  ;;  %v430_v42 = vsel %vm394_vm1, %v9589_v39, 0.0 }
 0x148   :  { %v567_v20 = vsel %vm394_vm1, %v509_v63, 0.0  ;;  %v566_v26 = vadd.f32 %v565_v6, %v564_v14  ;;  %v424_v63 = vsel %vm394_vm1, %v9583_v33, 0.0  ;;  %v426_v14 = vsel %vm394_vm1, %v9585_v35, 0.0 }
 0x149   :  { %v9636_v32 = vpop.f32.mrf.mxu0  ;;  %v579_v24 = vsel %vm394_vm1, %v515_v1, 0.0 }
 0x14a   :  { %v568_v40 = vadd.f32 %v567_v20, %v566_v26  ;;  %v428_v26 = vsel %vm394_vm1, %v9587_v37, 0.0 }
 0x14b   :  { %v8441_v44 = vpop.f32.mrf.mxu0 }
 0x14c   :  { %v570_v51 = vadd.f32 %v569_v34, %v568_v40  ;;  %v581_v40 = vsel %vm394_vm1, %v516_v16, 0.0 }
 0x14d   :  { %v9648_v53 = vpop.f32.mrf.mxu0 }
 0x14e   :  { %v572_v59 = vadd.f32 %v571_v46, %v570_v51  ;;  %v583_v51 = vsel %vm394_vm1, %v517_v28, 0.0 }
 0x14f   :  { %v8444_v60 = vpop.f32.mrf.mxu0 }
 0x150   :  { %v421_v60 = vadd.f32 %v420_v48, %v419_v52  ;;  %v574_v2 = vadd.f32 %v573_v56, %v572_v59  ;;  %v432_v52 = vsel %vm394_vm1, %v9591_v41, 0.0  ;;  %v519_v56 = vmul.f32 %v9593_v43, %v9593_v43 }
 0x151   :  { %v9660_v4 = vpop.f32.mrf.mxu0 }
 0x152   :  { %v423_v6 = vadd.f32 %v422_v57, %v421_v60 }
 0x153   :  { %v8447_v18 = vpop.f32.mrf.mxu0 }
 0x154   :  { %v576_v18 = vadd.f32 %v575_v62, %v574_v2  ;;  %v425_v20 = vadd.f32 %v424_v63, %v423_v6  ;;  %v520_v62 = vmul.f32 %v9595_v45, %v9595_v45  ;;  %v587_v6 = vsel %vm394_vm1, %v519_v56, 0.0 }
 0x155   :  { %v9672_v30 = vpop.f32.mrf.mxu0  ;;  %v524_v56 = vmul.f32 %v9624_v8, %v9624_v8 }
 0x156   :  { %v578_v34 = vadd.f32 %v577_v12, %v576_v18  ;;  %v427_v36 = vadd.f32 %v426_v14, %v425_v20  ;;  %v436_v12 = vsel %vm394_vm1, %v9595_v45, 0.0  ;;  %v521_v14 = vmul.f32 %v9597_v47, %v9597_v47 }
 0x157   :  { %v8450_v44 = vpop.f32.mrf.mxu0 }
 0x158   :  { %v518_v44 = vmul.f32 %v9591_v41, %v9591_v41  ;;  %v580_v46 = vadd.f32 %v579_v24, %v578_v34  ;;  %v429_v48 = vadd.f32 %v428_v26, %v427_v36  ;;  %v438_v24 = vsel %vm394_vm1, %v9597_v47, 0.0 }
 0x159   :  { %v9684_v54 = vpop.f32.mrf.mxu0  ;;  %v522_v26 = vmul.f32 %v9599_v49, %v9599_v49 }
 0x15a   :  { %v582_v57 = vadd.f32 %v581_v40, %v580_v46  ;;  %v431_v58 = vadd.f32 %v430_v42, %v429_v48  ;;  %v585_v60 = vsel %vm394_vm1, %v518_v44, 0.0  ;;  %v591_v40 = vsel %vm394_vm1, %v521_v14, 0.0 }
 0x15b   :  { %v8453_v61 = vpop.f32.mrf.mxu0  ;;  %v440_v42 = vsel %vm394_vm1, %v9599_v49, 0.0  ;;  %v523_v44 = vmul.f32 %v9609_v55, %v9609_v55  ;;  %v446_v14 = vsel %vm394_vm1, %v9636_v32, 0.0 }
 0x15c   :  { %v434_v61 = vsel %vm394_vm1, %v9593_v43, 0.0  ;;  %v584_v63 = vadd.f32 %v583_v51, %v582_v57  ;;  %v433_v1 = vadd.f32 %v432_v52, %v431_v58  ;;  %v593_v51 = vsel %vm394_vm1, %v522_v26, 0.0 }
 0x15d   :  { %v9696_v10 = vpop.f32.mrf.mxu0  ;;  %v442_v52 = vsel %vm394_vm1, %v9609_v55, 0.0 }
 0x15e   :  { %v586_v16 = vadd.f32 %v585_v60, %v584_v63  ;;  %v435_v18 = vadd.f32 %v434_v61, %v433_v1  ;;  %v595_v61 = vsel %vm394_vm1, %v523_v44, 0.0  ;;  %v525_v63 = vmul.f32 %v9636_v32, %v9636_v32 }
 0x15f   :  { %v8456_v22 = vpop.f32.mrf.mxu0 }
 0x160   :  { %v589_v22 = vsel %vm394_vm1, %v520_v62, 0.0  ;;  %v588_v28 = vadd.f32 %v587_v6, %v586_v16  ;;  %v437_v34 = vadd.f32 %v436_v12, %v435_v18  ;;  %v444_v62 = vsel %vm394_vm1, %v9624_v8, 0.0 }
 0x161   :  { %v9708_v38 = vpop.f32.mrf.mxu0  ;;  %v597_v12 = vsel %vm394_vm1, %v524_v56, 0.0  ;;  %v526_v16 = vmul.f32 %v9648_v53, %v9648_v53  ;;  %v599_v26 = vsel %vm394_vm1, %v525_v63, 0.0 }
 0x162   :  { %v590_v46 = vadd.f32 %v589_v22, %v588_v28  ;;  %v439_v48 = vadd.f32 %v438_v24, %v437_v34  ;;  %v448_v28 = vsel %vm394_vm1, %v9648_v53, 0.0  ;;  %v527_v34 = vmul.f32 %v9660_v4, %v9660_v4 }
 0x163   :  { %v8459_v50 = vpop.f32.mrf.mxu0  ;;  %v601_v44 = vsel %vm394_vm1, %v526_v16, 0.0 }
 0x164   :  { %v592_v57 = vadd.f32 %v591_v40, %v590_v46  ;;  %v441_v58 = vadd.f32 %v440_v42, %v439_v48  ;;  %v450_v46 = vsel %vm394_vm1, %v9660_v4, 0.0  ;;  %v528_v48 = vmul.f32 %v9672_v30, %v9672_v30 }
 0x165   :  { %v9720_v59 = vpop.f32.mrf.mxu0 }
 0x166   :  { %v594_v1 = vadd.f32 %v593_v51, %v592_v57  ;;  %v603_v57 = vsel %vm394_vm1, %v527_v34, 0.0 }
 0x167   :  { %v8462_v2 = vpop.f32.mrf.mxu0 }
 0x168   :  { %v443_v2 = vadd.f32 %v442_v52, %v441_v58  ;;  %v596_v18 = vadd.f32 %v595_v61, %v594_v1  ;;  %v452_v58 = vsel %vm394_vm1, %v9672_v30, 0.0  ;;  %v605_v1 = vsel %vm394_vm1, %v528_v48, 0.0 }
 0x169   :  { %v9732_v20 = vpop.f32.mrf.mxu0 }
 0x16a   :  { %v445_v22 = vadd.f32 %v444_v62, %v443_v2  ;;  %v454_v2 = vsel %vm394_vm1, %v9684_v54, 0.0 }
 0x16b   :  { %v8465_v36 = vpop.f32.mrf.mxu0 }
 0x16c   :  { %v598_v36 = vadd.f32 %v597_v12, %v596_v18  ;;  %v447_v40 = vadd.f32 %v446_v14, %v445_v22  ;;  %v530_v12 = vmul.f32 %v9696_v10, %v9696_v10 }
 0x16d   :  { %v9744_v50 = vpop.f32.mrf.mxu0 }
 0x16e   :  { %v600_v51 = vadd.f32 %v599_v26, %v598_v36  ;;  %v449_v52 = vadd.f32 %v448_v28, %v447_v40  ;;  %v531_v26 = vmul.f32 %v9708_v38, %v9708_v38  ;;  %v609_v40 = vsel %vm394_vm1, %v530_v12, 0.0 }
 0x16f   :  { %v8468_v60 = vpop.f32.mrf.mxu0  ;;  %v534_v12 = vmul.f32 %v9744_v50, %v9744_v50 }
 0x170   :  { %v529_v60 = vmul.f32 %v9684_v54, %v9684_v54  ;;  %v602_v61 = vadd.f32 %v601_v44, %v600_v51  ;;  %v451_v62 = vadd.f32 %v450_v46, %v449_v52  ;;  %v458_v44 = vsel %vm394_vm1, %v9708_v38, 0.0 }
 0x171   :  { %v9756_v6 = vpop.f32.mrf.mxu0  ;;  %v532_v46 = vmul.f32 %v9720_v59, %v9720_v59 }
 0x172   :  { %v604_v14 = vadd.f32 %v603_v57, %v602_v61  ;;  %v453_v16 = vadd.f32 %v452_v58, %v451_v62  ;;  %v607_v22 = vsel %vm394_vm1, %v529_v60, 0.0  ;;  %v460_v57 = vsel %vm394_vm1, %v9720_v59, 0.0 }
 0x173   :  { %v8471_v24 = vpop.f32.mrf.mxu0  ;;  %v533_v58 = vmul.f32 %v9732_v20, %v9732_v20 }
 0x174   :  { %v456_v24 = vsel %vm394_vm1, %v9696_v10, 0.0  ;;  %v606_v28 = vadd.f32 %v605_v1, %v604_v14  ;;  %v455_v34 = vadd.f32 %v454_v2, %v453_v16  ;;  %v613_v1 = vsel %vm394_vm1, %v532_v46, 0.0 }
 0x175   :  { %v9768_v42 = vpop.f32.mrf.mxu0  ;;  %v462_v2 = vsel %vm394_vm1, %v9732_v20, 0.0  ;;  %v466_v46 = vsel %vm394_vm1, %v9756_v6, 0.0 }
 0x176   :  { %v608_v48 = vadd.f32 %v607_v22, %v606_v28  ;;  %v457_v51 = vadd.f32 %v456_v24, %v455_v34  ;;  %v615_v22 = vsel %vm394_vm1, %v533_v58, 0.0  ;;  %v464_v24 = vsel %vm394_vm1, %v9744_v50, 0.0 }
 0x177   :  { %v8474_v56 = vpop.f32.mrf.mxu0  ;;  %v468_v58 = vsel %vm394_vm1, %v9768_v42, 0.0 }
 0x178   :  { %v611_v56 = vsel %vm394_vm1, %v531_v26, 0.0  ;;  %v610_v60 = vadd.f32 %v609_v40, %v608_v48  ;;  %v459_v61 = vadd.f32 %v458_v44, %v457_v51  ;;  %v535_v26 = vmul.f32 %v9756_v6, %v9756_v6 }
 0x179   :  { %v9780_v63 = vpop.f32.mrf.mxu0  ;;  %v617_v44 = vsel %vm394_vm1, %v534_v12, 0.0  ;;  %v536_v48 = vmul.f32 %v9768_v42, %v9768_v42 }
 0x17a   :  { %v612_v14 = vadd.f32 %v611_v56, %v610_v60  ;;  %v461_v16 = vadd.f32 %v460_v57, %v459_v61  ;;  %v619_v57 = vsel %vm394_vm1, %v535_v26, 0.0  ;;  %v537_v60 = vmul.f32 %v9780_v63, %v9780_v63 }
 0x17b   :  { %v8477_v18 = vpop.f32.mrf.mxu0  ;;  %v621_v12 = vsel %vm394_vm1, %v536_v48, 0.0 }
 0x17c   :  { %v614_v28 = vadd.f32 %v613_v1, %v612_v14  ;;  %v463_v34 = vadd.f32 %v462_v2, %v461_v16  ;;  %v470_v14 = vsel %vm394_vm1, %v9780_v63, 0.0  ;;  %v623_v26 = vsel %vm394_vm1, %v537_v60, 0.0 }
 0x17d   :  { %v9792_v36 = vpop.f32.mrf.mxu0 }
 0x17e   :  { %v616_v51 = vadd.f32 %v615_v22, %v614_v28  ;;  %v538_v16 = vmul.f32 %v9792_v36, %v9792_v36  ;;  %v472_v28 = vsel %vm394_vm1, %v9792_v36, 0.0 }
 0x17f   :  { %v8480_v52 = vpop.f32.mrf.mxu0 }
 0x180   :  { %v465_v52 = vadd.f32 %v464_v24, %v463_v34  ;;  %v618_v61 = vadd.f32 %v617_v44, %v616_v51  ;;  %v625_v51 = vsel %vm394_vm1, %v538_v16, 0.0 }
 0x181   :  { %v9804_v62 = vpop.f32.mrf.mxu0 }
 0x182   :  { %15434 = vst [vmem:[#allocation3_spill] sm:$0xff] %v9804_v62  ;;  %v467_v1 = vadd.f32 %v466_v46, %v465_v52  ;;  %v539_v34 = vmul.f32 %v9804_v62, %v9804_v62  ;;  %v474_v52 = vsel %vm394_vm1, %v9804_v62, 0.0 }
 0x183   :  { %v8483_v18 = vpop.f32.mrf.mxu0 }
 0x184   :  { %v620_v18 = vadd.f32 %v619_v57, %v618_v61  ;;  %v469_v22 = vadd.f32 %v468_v58, %v467_v1  ;;  %v627_v61 = vsel %vm394_vm1, %v539_v34, 0.0 }
 0x185   :  { %v9816_v40 = vpop.f32.mrf.mxu0 }
 0x186   :  { %15435 = vst [vmem:[#allocation4_spill] sm:$0xff] %v9816_v40  ;;  %v622_v44 = vadd.f32 %v621_v12, %v620_v18  ;;  %v471_v46 = vadd.f32 %v470_v14, %v469_v22  ;;  %v476_v1 = vsel %vm394_vm1, %v9816_v40, 0.0 }
 0x187   :  { %v8486_v56 = vpop.f32.mrf.mxu0 }
 0x188   :  { %v540_v56 = vmul.f32 %v9816_v40, %v9816_v40  ;;  %v624_v57 = vadd.f32 %v623_v26, %v622_v44  ;;  %v473_v58 = vadd.f32 %v472_v28, %v471_v46 }
 0x189   :  { %v9828_v2 = vpop.f32.mrf.mxu0 }
 0x18a   :  { %15436 = vst [vmem:[#allocation5_spill] sm:$0xff] %v9828_v2  ;;  %v541_v12 = vmul.f32 %v9828_v2, %v9828_v2  ;;  %v626_v14 = vadd.f32 %v625_v51, %v624_v57  ;;  %v475_v18 = vadd.f32 %v474_v52, %v473_v58  ;;  %v629_v22 = vsel %vm394_vm1, %v540_v56, 0.0 }
 0x18b   :  { %v8489_v24 = vpop.f32.mrf.mxu0 }
 0x18c   :  { %v478_v24 = vsel %vm394_vm1, %v9828_v2, 0.0  ;;  %v628_v28 = vadd.f32 %v627_v61, %v626_v14  ;;  %v477_v34 = vadd.f32 %v476_v1, %v475_v18  ;;  %v631_v46 = vsel %vm394_vm1, %v541_v12, 0.0 }
 0x18d   :  { %v9840_v48 = vpop.f32.mrf.mxu0 }
 0x18e   :  { %15437 = vst [vmem:[#allocation6_spill] sm:$0xff] %v9840_v48  ;;  %v542_v26 = vmul.f32 %v9840_v48, %v9840_v48  ;;  %v630_v52 = vadd.f32 %v629_v22, %v628_v28  ;;  %v479_v57 = vadd.f32 %v478_v24, %v477_v34 }
 0x18f   :  { %v8492_v60 = vpop.f32.mrf.mxu0 }
 0x190   :  { %v480_v60 = vsel %vm394_vm1, %v9840_v48, 0.0  ;;  %v633_v58 = vsel %vm394_vm1, %v542_v26, 0.0  ;;  %v632_v1 = vadd.f32 %v631_v46, %v630_v52 }
 0x191   :  { %v9852_v16 = vpop.f32.mrf.mxu0  ;;  %v481_v12 = vadd.f32 %v480_v60, %v479_v57 }
 0x192   :  { %15438 = vst [vmem:[#allocation7_spill] sm:$0xff] %v9852_v16  ;;  %v543_v51 = vmul.f32 %v9852_v16, %v9852_v16  ;;  %v482_v0 = vsel %vm394_vm1, %v9852_v16, 0.0  ;;  %v634_v22 = vadd.f32 %v633_v58, %v632_v1 }
 0x193   :  { %v8495_v44 = vpop.f32.mrf.mxu0  ;;  %v483_v24 = vadd.f32 %v482_v0, %v481_v12 }
 0x194   :  { %v635_v18 = vsel %vm394_vm1, %v543_v51, 0.0 }
 0x195   :  { %v9864_v56 = vpop.f32.mrf.mxu0  ;;  %v636_v46 = vadd.f32 %v635_v18, %v634_v22 }
 0x196   :  { %15439 = vst [vmem:[#allocation8_spill] sm:$0xff] %v9864_v56  ;;  %v544_v61 = vmul.f32 %v9864_v56, %v9864_v56  ;;  %v484_v44 = vsel %vm394_vm1, %v9864_v56, 0.0 }
 0x197   :  { %v8498_v14 = vpop.f32.mrf.mxu0  ;;  %v485_v60 = vadd.f32 %v484_v44, %v483_v24 }
 0x198   :  { %v637_v26 = vsel %vm394_vm1, %v544_v61, 0.0 }
 0x199   :  { %v9874_v28 = vpop.f32.mrf.mxu0  ;;  %v638_v57 = vadd.f32 %v637_v26, %v636_v46 }
 0x19a   :  { %15440 = vst [vmem:[#allocation9_spill] sm:$0xff] %v9874_v28  ;;  %v486_v34 = vsel %vm394_vm1, %v9874_v28, 0.0  ;;  %v545_v16 = vmul.f32 %v9874_v28, %v9874_v28 }
 0x19b   :  { %v8501_v52 = vpop.f32.mrf.mxu0  ;;  %v487_v14 = vadd.f32 %v486_v34, %v485_v60 }
 0x19c   :  { %v639_v51 = vsel %vm394_vm1, %v545_v16, 0.0 }
 0x19d   :  { %v9882_v56 = vpop.f32.mrf.mxu0  ;;  %v640_v61 = vadd.f32 %v639_v51, %v638_v57 }
 0x19e   :  { %15441 = vst [vmem:[#allocation10_spill] sm:$0xff] %v9882_v56  ;;  %v488_v0 = vsel %vm394_vm1, %v9882_v56, 0.0  ;;  %v546_v58 = vmul.f32 %v9882_v56, %v9882_v56 }
 0x19f   :  { %v489_v1 = vadd.f32 %v488_v0, %v487_v14  ;;  %v8504_v12 = vpop.f32.mrf.mxu0 }
 0x1a0   :  { %v641_v28 = vsel %vm394_vm1, %v546_v58, 0.0 }
 0x1a1   :  { %v642_v18 = vadd.f32 %v641_v28, %v640_v61  ;;  %v388_v44 = vpop.f32.mrf.mxu0 }
 0x1a2   :  { %v490_v22 = vsel %vm394_vm1, %v388_v44, 0.0  ;;  %v547_v16 = vmul.f32 %v388_v44, %v388_v44 }
 0x1a3   :  { %v491_v24 = vadd.f32 %v490_v22, %v489_v1  ;;  %v8507_v26 = vpop.f32.mrf.mxu0 }
 0x1a4   :  { %v643_v34 = vsel %vm394_vm1, %v547_v16, 0.0  ;;  %v659_v16 = vlaneseq }
 0x1a5   :  { %v492_v46 = vrot.slane %v491_v24, 4  ;;  %v644_v60 = vadd.f32 %v643_v34, %v642_v18 }
 0x1a6   :  { %v9891_v26 = vshrl.u32 %v659_v16, 7 }
 0x1a7   :  { %v493_v52 = vadd.f32 %v492_v46, %v491_v24  ;;  %v645_v48 = vrot.slane %v644_v60, 4  ;;  %v393_v24 = vld [vmem:[%s14950_s3 + $0x1] sm:$0x1] }
 0x1a8   :  { %15442 = vst [vmem:[#allocation11_spill] sm:$0xff] %v9891_v26 }
 0x1a9   :  { %v494_v2 = vrot.slane %v493_v52, 2  ;;  %v646_v56 = vadd.f32 %v645_v48, %v644_v60  ;;  %v392_v48 = vld [vmem:[%s14950_s3] sm:$0x1] }
 0x1ab   :  { %v495_v51 = vadd.f32 %v494_v2, %v493_v52  ;;  %v647_v57 = vrot.slane %v646_v56, 2  ;;  %v9897_v2 = vsub.s32 0, %v9891_v26 }
 0x1ad   :  { %v496_v14 = vrot.slane %v495_v51, 1  ;;  %v648_v0 = vadd.f32 %v647_v57, %v646_v56  ;;  %15443 = vst [vmem:[#allocation12_spill] sm:$0xff] %v9897_v2  ;;  %v15451_v57 = vld [vmem:[#allocation10_spill] sm:$0xff] }
 0x1af   :  { %v497_v58 = vadd.f32 %v496_v14, %v495_v51  ;;  %v649_v28 = vrot.slane %v648_v0, 1 }
 0x1b1   :  { %v498_v61 = vmul.f32 0.0025510204, %v497_v58  ;;  %v650_v12 = vadd.f32 %v649_v28, %v648_v0 }
 0x1b3   :  { %v651_v40 = vmul.f32 0.0025510204, %v650_v12  ;;  %v652_v62 = vmul.f32 %v498_v61, %v498_v61 }
 0x1b5   :  { %v653_v1 = vsub.f32 %v651_v40, %v652_v62  ;;  %v9210_v40 = vmov 1983009808  }
 0x1b6   :  { %v9903_v46 = vunpack.c.l.s4 %v9210_v40  ;;  %v15448_v40 = vld [vmem:[#allocation7_spill] sm:$0xff] }
 0x1b7   :  { %v654_v22 = vadd.f32 1e-05, %v653_v1 }
 0x1b9   :  { %9200 = vrsqrt.f32 %v654_v22 }
 0x1c6   :  { %v9201_v56 = vpop.eup %9200 }
 0x1c7   :  { %v656_v18 = vmul.f32 %v9201_v56, %v392_v48  ;;  %v15444_v56 = vld [vmem:[#allocation3_spill] sm:$0xff] }
 0x1c9   :  { %v657_v34 = vmul.f32 %v656_v18, %v498_v61  ;;  %v662_v62 = vrot.slane %v656_v18, %v9897_v2  ;;  %v15445_v18 = vld [vmem:[#allocation4_spill] sm:$0xff] }
 0x1cb   :  { %v658_v60 = vsub.f32 %v393_v24, %v657_v34  ;;  %v711_v52 = vmul.f32 %v662_v62, %v388_v44  ;;  %v663_v14 = vmul.f32 %v662_v62, %v9551_v3  ;;  %v664_v0 = vmul.f32 %v662_v62, %v9555_v5  ;;  %v15446_v24 = vld [vmem:[#allocation5_spill] sm:$0xff]  ;;  %v15447_v34 = vld [vmem:[#allocation6_spill] sm:$0xff] }
 0x1cc   :  { %v665_v58 = vmul.f32 %v662_v62, %v9557_v7  ;;  %v666_v28 = vmul.f32 %v662_v62, %v9559_v9  ;;  %v667_v61 = vmul.f32 %v662_v62, %v9561_v11  ;;  %v668_v12 = vmul.f32 %v662_v62, %v9563_v13 }
 0x1cd   :  { %v9906_v51 = vrot.slane %v658_v60, %v9897_v2  ;;  %v669_v44 = vmul.f32 %v662_v62, %v9565_v15  ;;  %v670_v22 = vmul.f32 %v662_v62, %v9567_v17  ;;  %v671_v16 = vmul.f32 %v662_v62, %v9569_v19  ;;  %v15449_v60 = vld [vmem:[#allocation8_spill] sm:$0xff] }
 0x1ce   :  { %v672_v3 = vmul.f32 %v662_v62, %v9571_v21  ;;  %v673_v5 = vmul.f32 %v662_v62, %v9573_v23  ;;  %v674_v7 = vmul.f32 %v662_v62, %v9575_v25  ;;  %v675_v9 = vmul.f32 %v662_v62, %v9577_v27 }
 0x1cf   :  { %v9916_v1 = vadd.f32 %v9906_v51, %v711_v52  ;;  %v676_v11 = vmul.f32 %v662_v62, %v9579_v29  ;;  %v677_v13 = vmul.f32 %v662_v62, %v9581_v31  ;;  %v678_v48 = vmul.f32 %v662_v62, %v9583_v33  ;;  %v15450_v52 = vld [vmem:[#allocation9_spill] sm:$0xff] }
 0x1d0   :  { %v679_v15 = vmul.f32 %v662_v62, %v9585_v35  ;;  %v680_v17 = vmul.f32 %v662_v62, %v9587_v37  ;;  %v681_v19 = vmul.f32 %v662_v62, %v9589_v39  ;;  %v682_v21 = vmul.f32 %v662_v62, %v9591_v41 }
 0x1d1   :  { %v683_v23 = vmul.f32 %v662_v62, %v9593_v43  ;;  %v684_v25 = vmul.f32 %v662_v62, %v9595_v45  ;;  %v685_v27 = vmul.f32 %v662_v62, %v9597_v47  ;;  %v686_v29 = vmul.f32 %v662_v62, %v9599_v49 }
 0x1d2   :  { %v687_v31 = vmul.f32 %v662_v62, %v9609_v55  ;;  %v688_v33 = vmul.f32 %v662_v62, %v9624_v8  ;;  %v689_v35 = vmul.f32 %v662_v62, %v9636_v32  ;;  %v690_v37 = vmul.f32 %v662_v62, %v9648_v53 }
 0x1d3   :  { %v691_v39 = vmul.f32 %v662_v62, %v9660_v4  ;;  %v692_v41 = vmul.f32 %v662_v62, %v9672_v30  ;;  %v693_v43 = vmul.f32 %v662_v62, %v9684_v54  ;;  %v694_v45 = vmul.f32 %v662_v62, %v9696_v10 }
 0x1d4   :  { %v695_v47 = vmul.f32 %v662_v62, %v9708_v38  ;;  %v696_v49 = vmul.f32 %v662_v62, %v9720_v59  ;;  %v697_v55 = vmul.f32 %v662_v62, %v9732_v20  ;;  %v698_v8 = vmul.f32 %v662_v62, %v9744_v50 }
 0x1d5   :  { %v699_v32 = vmul.f32 %v662_v62, %v9756_v6  ;;  %v700_v53 = vmul.f32 %v662_v62, %v9768_v42  ;;  %v701_v4 = vmul.f32 %v662_v62, %v9780_v63  ;;  %v702_v30 = vmul.f32 %v662_v62, %v9792_v36 }
 0x1d6   :  { %v703_v54 = vmul.f32 %v662_v62, %v15444_v56  ;;  %v704_v10 = vmul.f32 %v662_v62, %v15445_v18  ;;  %v705_v38 = vmul.f32 %v662_v62, %v15446_v24  ;;  %v706_v59 = vmul.f32 %v662_v62, %v15447_v34 }
 0x1d7   :  { %v707_v20 = vmul.f32 %v662_v62, %v15448_v40  ;;  %v708_v50 = vmul.f32 %v662_v62, %v15449_v60  ;;  %v709_v6 = vmul.f32 %v662_v62, %v15450_v52  ;;  %v710_v42 = vmul.f32 %v662_v62, %v15451_v57 }
 0x1d8   :  { %v716_v63 = vadd.f32 %v9906_v51, %v663_v14  ;;  %v717_v36 = vadd.f32 %v9906_v51, %v664_v0  ;;  %v718_v56 = vadd.f32 %v9906_v51, %v665_v58  ;;  %v719_v18 = vadd.f32 %v9906_v51, %v666_v28 }
 0x1d9   :  { %v720_v24 = vadd.f32 %v9906_v51, %v667_v61  ;;  %v721_v34 = vadd.f32 %v9906_v51, %v668_v12  ;;  %v722_v40 = vadd.f32 %v9906_v51, %v669_v44  ;;  %v723_v60 = vadd.f32 %v9906_v51, %v670_v22 }
 0x1da   :  { %v724_v52 = vadd.f32 %v9906_v51, %v671_v16  ;;  %v725_v62 = vadd.f32 %v9906_v51, %v672_v3  ;;  %v726_v57 = vadd.f32 %v9906_v51, %v673_v5  ;;  %v727_v14 = vadd.f32 %v9906_v51, %v674_v7 }
 0x1db   :  { %v728_v0 = vadd.f32 %v9906_v51, %v675_v9  ;;  %v729_v58 = vadd.f32 %v9906_v51, %v676_v11  ;;  %v730_v28 = vadd.f32 %v9906_v51, %v677_v13  ;;  %v731_v61 = vadd.f32 %v9906_v51, %v678_v48 }
 0x1dc   :  { %v732_v12 = vadd.f32 %v9906_v51, %v679_v15  ;;  %v733_v44 = vadd.f32 %v9906_v51, %v680_v17  ;;  %v734_v22 = vadd.f32 %v9906_v51, %v681_v19  ;;  %v735_v16 = vadd.f32 %v9906_v51, %v682_v21 }
 0x1dd   :  { %v736_v3 = vadd.f32 %v9906_v51, %v683_v23  ;;  %v737_v5 = vadd.f32 %v9906_v51, %v684_v25  ;;  %v738_v7 = vadd.f32 %v9906_v51, %v685_v27  ;;  %v739_v9 = vadd.f32 %v9906_v51, %v686_v29 }
 0x1de   :  { %v740_v11 = vadd.f32 %v9906_v51, %v687_v31  ;;  %v741_v13 = vadd.f32 %v9906_v51, %v688_v33  ;;  %v742_v48 = vadd.f32 %v9906_v51, %v689_v35  ;;  %v743_v15 = vadd.f32 %v9906_v51, %v690_v37 }
 0x1df   :  { %v744_v17 = vadd.f32 %v9906_v51, %v691_v39  ;;  %v745_v19 = vadd.f32 %v9906_v51, %v692_v41  ;;  %v746_v21 = vadd.f32 %v9906_v51, %v693_v43  ;;  %v747_v23 = vadd.f32 %v9906_v51, %v694_v45 }
 0x1e0   :  { %v748_v25 = vadd.f32 %v9906_v51, %v695_v47  ;;  %v749_v27 = vadd.f32 %v9906_v51, %v696_v49  ;;  %v750_v29 = vadd.f32 %v9906_v51, %v697_v55  ;;  %v751_v31 = vadd.f32 %v9906_v51, %v698_v8 }
 0x1e1   :  { %v752_v33 = vadd.f32 %v9906_v51, %v699_v32  ;;  %v753_v35 = vadd.f32 %v9906_v51, %v700_v53  ;;  %v754_v37 = vadd.f32 %v9906_v51, %v701_v4  ;;  %v755_v39 = vadd.f32 %v9906_v51, %v702_v30 }
 0x1e2   :  { %v756_v41 = vadd.f32 %v9906_v51, %v703_v54  ;;  %v10002_v43 = vadd.f32 %v9906_v51, %v704_v10  ;;  %v10005_v45 = vadd.f32 %v9906_v51, %v705_v38  ;;  %v10008_v47 = vadd.f32 %v9906_v51, %v706_v59 }
 0x1e3   :  { %v10011_v49 = vadd.f32 %v9906_v51, %v707_v20  ;;  %v10014_v55 = vadd.f32 %v9906_v51, %v708_v50  ;;  %v10017_v8 = vadd.f32 %v9906_v51, %v709_v6  ;;  %v10020_v32 = vadd.f32 %v9906_v51, %v710_v42 }
 0x1e4   :  { %v813_v53 = vmax.f32 %v9916_v1, 0.0  ;;  %v15452_v4 = vunpack.c.0.s8 %v9903_v46  ;;  %v765_v51 = vmax.f32 %v716_v63, 0.0  ;;  %v766_v6 = vmax.f32 %v717_v36, 0.0 }
 0x1e5   :  { %v767_v42 = vmax.f32 %v718_v56, 0.0  ;;  %v768_v1 = vmax.f32 %v719_v18, 0.0  ;;  %v10036_v2 = vmax.f32 %v720_v24, 0.0  ;;  %v10038_v46 = vmax.f32 %v721_v34, 0.0 }
 0x1e6   :  { %v10026_v30 = vsub.s32 %v15452_v4, %v9891_v26  ;;  %v1679_v10 = vcombine.high %v813_v53, %v813_v53  ;;  %v10040_v4 = vmax.f32 %v722_v40, 0.0  ;;  %v10042_v26 = vmax.f32 %v723_v60, 0.0 }
 0x1e7   :  { %v10052_v63 = vmax.f32 %v728_v0, 0.0  ;;  %v10054_v36 = vmax.f32 %v729_v58, 0.0  ;;  %v10056_v56 = vmax.f32 %v730_v28, 0.0  ;;  %v10058_v18 = vmax.f32 %v731_v61, 0.0 }
 0x1e8   :  { %15453 = vst [vmem:[#allocation3_spill] sm:$0xff] %v10026_v30  ;;  %v1686_v54 = vrot.slane %v813_v53, %v10026_v30  ;;  %v10030_v59 = vrot.slane %v1679_v10, %v10026_v30  ;;  %v10044_v53 = vmax.f32 %v724_v52, 0.0  ;;  %v10046_v10 = vmax.f32 %v725_v62, 0.0 }
 0x1e9   :  { %v10060_v24 = vmax.f32 %v732_v12, 0.0  ;;  %v10062_v34 = vmax.f32 %v733_v44, 0.0  ;;  %v10064_v40 = vmax.f32 %v734_v22, 0.0  ;;  %v10066_v60 = vmax.f32 %v735_v16, 0.0 }
 0x1ea   :  { %v7646_v38 = vrot.slane %v1686_v54, 9  ;;  %15454 = vst [vmem:[#allocation4_spill] sm:$0xff] %v10030_v59  ;;  %v10032_v20 = vcombine.high %v1686_v54, %v1686_v54  ;;  %v10048_v59 = vmax.f32 %v726_v57, 0.0  ;;  %v10068_v52 = vmax.f32 %v736_v3, 0.0 }
 0x1eb   :  { %15457 = vst [vmem:[#allocation7_spill] sm:$0xff] %v10062_v34  ;;  %v10070_v62 = vmax.f32 %v737_v5, 0.0  ;;  %v10072_v57 = vmax.f32 %v738_v7, 0.0  ;;  %v10076_v0 = vmax.f32 %v740_v11, 0.0  ;;  %v10078_v58 = vmax.f32 %v741_v13, 0.0 }
 0x1ec   :  { %15455 = vst [vmem:[#allocation5_spill] sm:$0xff] %v10032_v20  ;;  %v10034_v50 = vmax.f32 %v1686_v54, %v7646_v38  ;;  %v10050_v54 = vmax.f32 %v727_v14, 0.0  ;;  %v10074_v14 = vmax.f32 %v739_v9, 0.0  ;;  %v10080_v28 = vmax.f32 %v742_v48, 0.0 }
 0x1ed   :  { %15458 = vst [vmem:[#allocation8_spill] sm:$0xff] %v10070_v62  ;;  %v10082_v61 = vmax.f32 %v743_v15, 0.0  ;;  %v10084_v12 = vmax.f32 %v744_v17, 0.0  ;;  %v10086_v44 = vmax.f32 %v745_v19, 0.0  ;;  %v10088_v22 = vmax.f32 %v746_v21, 0.0 }
 0x1ee   :  { %15456 = vst [vmem:[#allocation6_spill] sm:$0xff] %v10034_v50  ;;  %v10090_v16 = vmax.f32 %v747_v23, 0.0  ;;  %v863_v3 = vcombine.high %v765_v51, %v765_v51  ;;  %v10092_v5 = vmax.f32 %v748_v25, 0.0  ;;  %v10094_v7 = vmax.f32 %v749_v27, 0.0 }
 0x1ef   :  { %v10096_v9 = vmax.f32 %v750_v29, 0.0  ;;  %v10098_v11 = vmax.f32 %v751_v31, 0.0  ;;  %v10100_v13 = vmax.f32 %v752_v33, 0.0  ;;  %v10102_v48 = vmax.f32 %v753_v35, 0.0 }
 0x1f0   :  { %v880_v15 = vcombine.high %v766_v6, %v766_v6  ;;  %v897_v17 = vcombine.high %v767_v42, %v767_v42  ;;  %v10104_v19 = vmax.f32 %v754_v37, 0.0  ;;  %v10107_v21 = vrot.slane %v765_v51, %v10026_v30 }
 0x1f1   :  { %v10110_v23 = vrot.slane %v766_v6, %v10026_v30  ;;  %v914_v25 = vcombine.high %v768_v1, %v768_v1  ;;  %v10112_v27 = vmax.f32 %v755_v39, 0.0  ;;  %v10114_v29 = vmax.f32 %v756_v41, 0.0 }
 0x1f2   :  { %15459 = vst [vmem:[#allocation9_spill] sm:$0xff] %v10107_v21  ;;  %v10117_v31 = vrot.slane %v863_v3, %v10026_v30  ;;  %v10120_v33 = vrot.slane %v767_v42, %v10026_v30  ;;  %v10123_v35 = vmax.f32 %v10002_v43, 0.0  ;;  %v10126_v37 = vmax.f32 %v10005_v45, 0.0 }
 0x1f3   :  { %15460 = vst [vmem:[#allocation10_spill] sm:$0xff] %v10110_v23  ;;  %v10129_v38 = vrot.slane %v768_v1, %v10026_v30  ;;  %v931_v39 = vcombine.high %v10036_v2, %v10036_v2  ;;  %v10134_v41 = vmax.f32 %v10011_v49, 0.0  ;;  %v10137_v51 = vrot.slane %v880_v15, %v10026_v30 }
 0x1f4   :  { %15461 = vst [vmem:[#allocation13_spill] sm:$0xff] %v10117_v31  ;;  %15462 = vst [vmem:[#allocation14_spill] sm:$0xff] %v10120_v33  ;;  %v10140_v6 = vrot.slane %v897_v17, %v10026_v30  ;;  %v948_v43 = vcombine.high %v10038_v46, %v10038_v46  ;;  %v10146_v45 = vcombine.high %v10107_v21, %v10107_v21 }
 0x1f5   :  { %15463 = vst [vmem:[#allocation15_spill] sm:$0xff] %v10126_v37  ;;  %15464 = vst [vmem:[#allocation16_spill] sm:$0xff] %v10129_v38  ;;  %v10150_v42 = vcombine.high %v10110_v23, %v10110_v23  ;;  %v10153_v49 = vrot.slane %v914_v25, %v10026_v30  ;;  %v965_v1 = vcombine.high %v10040_v4, %v10040_v4 }
 0x1f6   :  { %15465 = vst [vmem:[#allocation17_spill] sm:$0xff] %v10137_v51  ;;  %15466 = vst [vmem:[#allocation18_spill] sm:$0xff] %v10140_v6  ;;  %v10159_v3 = vcombine.high %v10117_v31, %v10117_v31  ;;  %v10163_v15 = vcombine.high %v10120_v33, %v10120_v33  ;;  %v10167_v17 = vrot.slane %v10036_v2, %v10026_v30 }
 0x1f7   :  { %15467 = vst [vmem:[#allocation19_spill] sm:$0xff] %v10146_v45  ;;  %15468 = vst [vmem:[#allocation20_spill] sm:$0xff] %v10150_v42  ;;  %v10171_v50 = vrot.slane %v10038_v46, %v10026_v30  ;;  %v10175_v25 = vcombine.high %v10129_v38, %v10129_v38  ;;  %v10178_v20 = vrot.slane %v931_v39, %v10026_v30 }
 0x1f8   :  { %15469 = vst [vmem:[#allocation21_spill] sm:$0xff] %v10153_v49  ;;  %15470 = vst [vmem:[#allocation22_spill] sm:$0xff] %v10159_v3  ;;  %v982_v42 = vcombine.high %v10042_v26, %v10042_v26  ;;  %v10186_v2 = vcombine.high %v10137_v51, %v10137_v51  ;;  %v10190_v46 = vcombine.high %v10140_v6, %v10140_v6 }
 0x1f9   :  { %15471 = vst [vmem:[#allocation23_spill] sm:$0xff] %v10163_v15  ;;  %15472 = vst [vmem:[#allocation24_spill] sm:$0xff] %v10167_v17  ;;  %v999_v15 = vcombine.high %v10044_v53, %v10044_v53  ;;  %v10193_v38 = vrot.slane %v948_v43, %v10026_v30  ;;  %v10197_v39 = vrot.slane %v10040_v4, %v10026_v30 }
 0x1fa   :  { %15473 = vst [vmem:[#allocation25_spill] sm:$0xff] %v10171_v50  ;;  %15474 = vst [vmem:[#allocation26_spill] sm:$0xff] %v10175_v25  ;;  %v10201_v25 = vcombine.high %v10153_v49, %v10153_v49  ;;  %v10204_v33 = vrot.slane %v965_v1, %v10026_v30  ;;  %v10214_v43 = vcombine.high %v10167_v17, %v10167_v17 }
 0x1fb   :  { %15475 = vst [vmem:[#allocation27_spill] sm:$0xff] %v10178_v20  ;;  %15476 = vst [vmem:[#allocation28_spill] sm:$0xff] %v10186_v2  ;;  %v10208_v2 = vrot.slane %v10042_v26, %v10026_v30  ;;  %v10218_v4 = vcombine.high %v10171_v50, %v10171_v50  ;;  %v1050_v1 = vcombine.high %v10050_v54, %v10050_v54 }
 0x1fc   :  { %15477 = vst [vmem:[#allocation29_spill] sm:$0xff] %v10190_v46  ;;  %15478 = vst [vmem:[#allocation30_spill] sm:$0xff] %v10193_v38  ;;  %v1016_v46 = vcombine.high %v10046_v10, %v10046_v10  ;;  %v10226_v26 = vcombine.high %v10178_v20, %v10178_v20  ;;  %v10229_v49 = vrot.slane %v982_v42, %v10026_v30 }
 0x1fd   :  { %15479 = vst [vmem:[#allocation31_spill] sm:$0xff] %v10197_v39  ;;  %15480 = vst [vmem:[#allocation32_spill] sm:$0xff] %v10201_v25  ;;  %v1033_v25 = vcombine.high %v10048_v59, %v10048_v59  ;;  %v10236_v50 = vrot.slane %v999_v15, %v10026_v30  ;;  %v10244_v17 = vcombine.high %v10197_v39, %v10197_v39 }
 0x1fe   :  { %15481 = vst [vmem:[#allocation33_spill] sm:$0xff] %v10204_v33  ;;  %15482 = vst [vmem:[#allocation34_spill] sm:$0xff] %v10208_v2  ;;  %v10252_v42 = vrot.slane %v10048_v59, %v10026_v30  ;;  %v10260_v15 = vcombine.high %v10208_v2, %v10208_v2  ;;  %v10272_v59 = vrot.slane %v10050_v54, %v10026_v30 }
 0x1ff   :  { %15483 = vst [vmem:[#allocation35_spill] sm:$0xff] %v10214_v43  ;;  %15484 = vst [vmem:[#allocation36_spill] sm:$0xff] %v10218_v4  ;;  %v10233_v43 = vrot.slane %v10044_v53, %v10026_v30  ;;  %v10240_v4 = vcombine.high %v10193_v38, %v10193_v38  ;;  %v10256_v53 = vcombine.high %v10204_v33, %v10204_v33 }
 0x200   :  { %15485 = vst [vmem:[#allocation37_spill] sm:$0xff] %v10226_v26  ;;  %15486 = vst [vmem:[#allocation38_spill] sm:$0xff] %v10229_v49  ;;  %v10248_v26 = vrot.slane %v10046_v10, %v10026_v30  ;;  %v10268_v10 = vrot.slane %v1033_v25, %v10026_v30  ;;  %v10275_v33 = vrot.slane %v1050_v1, %v10026_v30 }
 0x201   :  { %15487 = vst [vmem:[#allocation39_spill] sm:$0xff] %v10236_v50  ;;  %15488 = vst [vmem:[#allocation40_spill] sm:$0xff] %v10240_v4  ;;  %v10263_v4 = vrot.slane %v1016_v46, %v10026_v30  ;;  %v1084_v2 = vcombine.high %v10054_v36, %v10054_v36  ;;  %v10281_v46 = vcombine.high %v10229_v49, %v10229_v49  ;;  %v15638_v23 = vld [vmem:[#allocation26_spill] sm:$0xff] }
 0x202   :  { %15489 = vst [vmem:[#allocation41_spill] sm:$0xff] %v10244_v17  ;;  %15490 = vst [vmem:[#allocation42_spill] sm:$0xff] %v10248_v26  ;;  %v1067_v17 = vcombine.high %v10052_v63, %v10052_v63  ;;  %v10289_v25 = vcombine.high %v10236_v50, %v10236_v50  ;;  %v1101_v54 = vcombine.high %v10056_v56, %v10056_v56 }
 0x203   :  { %15491 = vst [vmem:[#allocation43_spill] sm:$0xff] %v10252_v42  ;;  %15492 = vst [vmem:[#allocation44_spill] sm:$0xff] %v10256_v53  ;;  %v10295_v1 = vcombine.high %v10248_v26, %v10248_v26  ;;  %v10299_v53 = vcombine.high %v10252_v42, %v10252_v42  ;;  %v10326_v42 = vcombine.high %v10272_v59, %v10272_v59  ;;  %v15636_v31 = vld [vmem:[#allocation29_spill] sm:$0xff] }
 0x204   :  { %15493 = vst [vmem:[#allocation45_spill] sm:$0xff] %v10260_v15  ;;  %15494 = vst [vmem:[#allocation46_spill] sm:$0xff] %v10263_v4  ;;  %v10285_v15 = vcombine.high %v10233_v43, %v10233_v43  ;;  %v10312_v50 = vrot.slane %v1067_v17, %v10026_v30  ;;  %v10333_v17 = vrot.slane %v1084_v2, %v10026_v30 }
 0x205   :  { %15495 = vst [vmem:[#allocation47_spill] sm:$0xff] %v10268_v10  ;;  %15496 = vst [vmem:[#allocation48_spill] sm:$0xff] %v10275_v33 }
 0x206   :  { %15497 = vst [vmem:[#allocation49_spill] sm:$0xff] %v10281_v46  ;;  %15498 = vst [vmem:[#allocation50_spill] sm:$0xff] %v10285_v15  ;;  %v10303_v46 = vrot.slane %v10052_v63, %v10026_v30  ;;  %v1118_v15 = vcombine.high %v10058_v18, %v10058_v18  ;;  %v10322_v63 = vcombine.high %v10268_v10, %v10268_v10  ;;  %v15645_v6 = vld [vmem:[#allocation36_spill] sm:$0xff] }
 0x207   :  { %15499 = vst [vmem:[#allocation51_spill] sm:$0xff] %v10289_v25  ;;  %15500 = vst [vmem:[#allocation52_spill] sm:$0xff] %v10295_v1  ;;  %v10309_v25 = vcombine.high %v10263_v4, %v10263_v4  ;;  %v10316_v1 = vrot.slane %v10054_v36, %v10026_v30  ;;  %v10337_v36 = vrot.slane %v10056_v56, %v10026_v30 }
 0x208   :  { %15501 = vst [vmem:[#allocation53_spill] sm:$0xff] %v10299_v53  ;;  %15502 = vst [vmem:[#allocation54_spill] sm:$0xff] %v10303_v46  ;;  %v1135_v53 = vcombine.high %v10060_v24, %v10060_v24  ;;  %v10340_v4 = vrot.slane %v1101_v54, %v10026_v30  ;;  %v10344_v10 = vrot.slane %v10058_v18, %v10026_v30 }
 0x209   :  { %15503 = vst [vmem:[#allocation55_spill] sm:$0xff] %v10309_v25  ;;  %15504 = vst [vmem:[#allocation56_spill] sm:$0xff] %v10312_v50  ;;  %v10330_v25 = vcombine.high %v10275_v33, %v10275_v33  ;;  %v10353_v2 = vrot.slane %v1118_v15, %v10026_v30  ;;  %v10357_v56 = vrot.slane %v10060_v24, %v10026_v30 }
 0x20a   :  { %15505 = vst [vmem:[#allocation57_spill] sm:$0xff] %v10316_v1  ;;  %15506 = vst [vmem:[#allocation58_spill] sm:$0xff] %v10322_v63  ;;  %v1186_v54 = vcombine.high %v10066_v60, %v10066_v60  ;;  %v10363_v18 = vcombine.high %v10312_v50, %v10312_v50  ;;  %v10367_v33 = vcombine.high %v10316_v1, %v10316_v1 }
 0x20b   :  { %15507 = vst [vmem:[#allocation59_spill] sm:$0xff] %v10326_v42  ;;  %15508 = vst [vmem:[#allocation60_spill] sm:$0xff] %v10330_v25  ;;  %v1169_v42 = vcombine.high %v10064_v40, %v10064_v40  ;;  %v10350_v25 = vcombine.high %v10303_v46, %v10303_v46  ;;  %v1203_v15 = vcombine.high %v10068_v52, %v10068_v52 }
 0x20c   :  { %15509 = vst [vmem:[#allocation61_spill] sm:$0xff] %v10333_v17  ;;  %15510 = vst [vmem:[#allocation62_spill] sm:$0xff] %v10337_v36  ;;  %v10376_v24 = vcombine.high %v10333_v17, %v10333_v17  ;;  %v10380_v46 = vrot.slane %v10062_v34, %v10026_v30  ;;  %v10394_v1 = vcombine.high %v10340_v4, %v10340_v4  ;;  %v15662_v3 = vld [vmem:[#allocation48_spill] sm:$0xff] }
 0x20d   :  { %15511 = vst [vmem:[#allocation63_spill] sm:$0xff] %v10340_v4  ;;  %15512 = vst [vmem:[#allocation64_spill] sm:$0xff] %v10344_v10  ;;  %v10401_v34 = vrot.slane %v1169_v42, %v10026_v30  ;;  %v10422_v42 = vrot.slane %v10068_v52, %v10026_v30  ;;  %v1237_v52 = vcombine.high %v10072_v57, %v10072_v57  ;;  %v15652_v21 = vld [vmem:[#allocation49_spill] sm:$0xff] }
 0x20e   :  { %15513 = vst [vmem:[#allocation65_spill] sm:$0xff] %v10350_v25  ;;  %15514 = vst [vmem:[#allocation66_spill] sm:$0xff] %v10353_v2  ;;  %v10370_v25 = vrot.slane %v1135_v53, %v10026_v30  ;;  %v10390_v53 = vcombine.high %v10337_v36, %v10337_v36 }
 0x20f   :  { %15515 = vst [vmem:[#allocation67_spill] sm:$0xff] %v10357_v56  ;;  %15516 = vst [vmem:[#allocation68_spill] sm:$0xff] %v10363_v18  ;;  %v10384_v18 = vrot.slane %v10064_v40, %v10026_v30  ;;  %v10405_v40 = vcombine.high %v10353_v2, %v10353_v2  ;;  %v15660_v49 = vld [vmem:[#allocation53_spill] sm:$0xff]  ;;  %v15664_v26 = vld [vmem:[#allocation54_spill] sm:$0xff] }
 0x210   :  { %15517 = vst [vmem:[#allocation69_spill] sm:$0xff] %v10367_v33  ;;  %15518 = vst [vmem:[#allocation70_spill] sm:$0xff] %v10370_v25  ;;  %v1220_v33 = vcombine.high %v10070_v62, %v10070_v62  ;;  %v10409_v62 = vcombine.high %v10357_v56, %v10357_v56 }
 0x211   :  { %15519 = vst [vmem:[#allocation71_spill] sm:$0xff] %v10376_v24  ;;  %15520 = vst [vmem:[#allocation72_spill] sm:$0xff] %v10380_v46  ;;  %v10398_v24 = vcombine.high %v10344_v10, %v10344_v10  ;;  %v10435_v56 = vcombine.high %v10384_v18, %v10384_v18 }
 0x212   :  { %15521 = vst [vmem:[#allocation73_spill] sm:$0xff] %v10384_v18  ;;  %15522 = vst [vmem:[#allocation74_spill] sm:$0xff] %v10390_v53  ;;  %v10412_v53 = vrot.slane %v1186_v54, %v10026_v30  ;;  %v10431_v54 = vcombine.high %v10380_v46, %v10380_v46  ;;  %v10462_v18 = vrot.slane %v10074_v14, %v10026_v30 }
 0x213   :  { %15523 = vst [vmem:[#allocation75_spill] sm:$0xff] %v10394_v1  ;;  %15524 = vst [vmem:[#allocation76_spill] sm:$0xff] %v10398_v24  ;;  %v1254_v1 = vcombine.high %v10074_v14, %v10074_v14  ;;  %v10418_v24 = vcombine.high %v10370_v25, %v10370_v25  ;;  %v10448_v25 = vrot.slane %v10066_v60, %v10026_v30 }
 0x214   :  { %15525 = vst [vmem:[#allocation77_spill] sm:$0xff] %v10401_v34  ;;  %15526 = vst [vmem:[#allocation78_spill] sm:$0xff] %v10405_v40  ;;  %v10425_v40 = vrot.slane %v1203_v15, %v10026_v30  ;;  %v10444_v15 = vcombine.high %v10401_v34, %v10401_v34  ;;  %v1305_v60 = vcombine.high %v10080_v28, %v10080_v28 }
 0x215   :  { %15527 = vst [vmem:[#allocation79_spill] sm:$0xff] %v10409_v62  ;;  %15528 = vst [vmem:[#allocation80_spill] sm:$0xff] %v10412_v53  ;;  %v1271_v62 = vcombine.high %v10076_v0, %v10076_v0 }
 0x216   :  { %15529 = vst [vmem:[#allocation81_spill] sm:$0xff] %v10418_v24  ;;  %15530 = vst [vmem:[#allocation82_spill] sm:$0xff] %v10422_v42  ;;  %v10438_v24 = vrot.slane %v1220_v33, %v10026_v30  ;;  %v10458_v33 = vcombine.high %v10412_v53, %v10412_v53  ;;  %v10479_v53 = vrot.slane %v10076_v0, %v10026_v30 }
 0x217   :  { %15531 = vst [vmem:[#allocation83_spill] sm:$0xff] %v10425_v40  ;;  %15532 = vst [vmem:[#allocation84_spill] sm:$0xff] %v10431_v54  ;;  %v10452_v54 = vrot.slane %v10072_v57, %v10026_v30  ;;  %v10471_v57 = vcombine.high %v10422_v42, %v10422_v42  ;;  %v10482_v14 = vrot.slane %v1271_v62, %v10026_v30 }
 0x218   :  { %15533 = vst [vmem:[#allocation85_spill] sm:$0xff] %v10435_v56  ;;  %15534 = vst [vmem:[#allocation86_spill] sm:$0xff] %v10438_v24  ;;  %v1288_v56 = vcombine.high %v10078_v58, %v10078_v58 }
 0x219   :  { %15535 = vst [vmem:[#allocation87_spill] sm:$0xff] %v10444_v15  ;;  %15536 = vst [vmem:[#allocation88_spill] sm:$0xff] %v10448_v25  ;;  %v10465_v15 = vrot.slane %v1254_v1, %v10026_v30  ;;  %v10475_v25 = vcombine.high %v10425_v40, %v10425_v40  ;;  %v10486_v1 = vcombine.high %v10438_v24, %v10438_v24  ;;  %v15669_v38 = vld [vmem:[#allocation74_spill] sm:$0xff]  ;;  %v15678_v39 = vld [vmem:[#allocation73_spill] sm:$0xff] }
 0x21a   :  { %15537 = vst [vmem:[#allocation89_spill] sm:$0xff] %v10452_v54  ;;  %15538 = vst [vmem:[#allocation90_spill] sm:$0xff] %v10458_v33  ;;  %v10489_v33 = vrot.slane %v1237_v52, %v10026_v30  ;;  %v10499_v0 = vcombine.high %v10452_v54, %v10452_v54  ;;  %v10502_v62 = vrot.slane %v1288_v56, %v10026_v30  ;;  %v15671_v50 = vld [vmem:[#allocation76_spill] sm:$0xff] }
 0x21b   :  { %15539 = vst [vmem:[#allocation91_spill] sm:$0xff] %v10462_v18  ;;  %15540 = vst [vmem:[#allocation92_spill] sm:$0xff] %v10465_v15  ;;  %v1356_v52 = vcombine.high %v10086_v44, %v10086_v44  ;;  %v1322_v56 = vcombine.high %v10082_v61, %v10082_v61  ;;  %v10529_v54 = vcombine.high %v10482_v14, %v10482_v14 }
 0x21c   :  { %15541 = vst [vmem:[#allocation93_spill] sm:$0xff] %v10471_v57  ;;  %15542 = vst [vmem:[#allocation94_spill] sm:$0xff] %v10475_v25  ;;  %v10493_v57 = vrot.slane %v10078_v58, %v10026_v30  ;;  %v1339_v25 = vcombine.high %v10084_v12, %v10084_v12  ;;  %v10512_v58 = vcombine.high %v10462_v18, %v10462_v18  ;;  %v15674_v17 = vld [vmem:[#allocation79_spill] sm:$0xff] }
 0x21d   :  { %15543 = vst [vmem:[#allocation95_spill] sm:$0xff] %v10479_v53  ;;  %15544 = vst [vmem:[#allocation96_spill] sm:$0xff] %v10482_v14  ;;  %v10533_v18 = vrot.slane %v10082_v61, %v10026_v30  ;;  %v10554_v61 = vcombine.high %v10502_v62, %v10502_v62  ;;  %v15676_v36 = vld [vmem:[#allocation81_spill] sm:$0xff] }
 0x21e   :  { %15545 = vst [vmem:[#allocation97_spill] sm:$0xff] %v10486_v1  ;;  %15546 = vst [vmem:[#allocation98_spill] sm:$0xff] %v10489_v33  ;;  %v10506_v1 = vrot.slane %v10080_v28, %v10026_v30  ;;  %v10516_v33 = vcombine.high %v10465_v15, %v10465_v15  ;;  %v10525_v28 = vcombine.high %v10479_v53, %v10479_v53 }
 0x21f   :  { %15547 = vst [vmem:[#allocation99_spill] sm:$0xff] %v10493_v57  ;;  %15548 = vst [vmem:[#allocation100_spill] sm:$0xff] %v10499_v0  ;;  %v10519_v0 = vrot.slane %v1305_v60, %v10026_v30  ;;  %v10539_v60 = vcombine.high %v10493_v57, %v10493_v57  ;;  %v10543_v15 = vrot.slane %v10084_v12, %v10026_v30 }
 0x220   :  { %15549 = vst [vmem:[#allocation101_spill] sm:$0xff] %v10502_v62  ;;  %15550 = vst [vmem:[#allocation102_spill] sm:$0xff] %v10506_v1  ;;  %v10558_v14 = vcombine.high %v10506_v1, %v10506_v1  ;;  %v1390_v12 = vcombine.high %v10090_v16, %v10090_v16  ;;  %v1407_v1 = vcombine.high %v10092_v5, %v10092_v5  ;;  %v15680_v2 = vld [vmem:[#allocation87_spill] sm:$0xff] }
 0x221   :  { %15551 = vst [vmem:[#allocation103_spill] sm:$0xff] %v10512_v58  ;;  %15552 = vst [vmem:[#allocation104_spill] sm:$0xff] %v10516_v33  ;;  %v1373_v33 = vcombine.high %v10088_v22, %v10088_v22  ;;  %v15682_v20 = vld [vmem:[#allocation90_spill] sm:$0xff]  ;;  %v15686_v10 = vld [vmem:[#allocation89_spill] sm:$0xff] }
 0x222   :  { %15553 = vst [vmem:[#allocation105_spill] sm:$0xff] %v10519_v0  ;;  %15554 = vst [vmem:[#allocation106_spill] sm:$0xff] %v10525_v28  ;;  %v10546_v28 = vrot.slane %v1339_v25, %v10026_v30  ;;  %v10567_v25 = vcombine.high %v10519_v0, %v10519_v0 }
 0x223   :  { %15555 = vst [vmem:[#allocation107_spill] sm:$0xff] %v10529_v54  ;;  %15556 = vst [vmem:[#allocation108_spill] sm:$0xff] %v10533_v18  ;;  %v10550_v54 = vrot.slane %v10086_v44, %v10026_v30  ;;  %v10570_v44 = vrot.slane %v1322_v56, %v10026_v30  ;;  %v1424_v56 = vcombine.high %v10094_v7, %v10094_v7  ;;  %v15684_v46 = vld [vmem:[#allocation94_spill] sm:$0xff] }
 0x224   :  { %15557 = vst [vmem:[#allocation109_spill] sm:$0xff] %v10539_v60  ;;  %15558 = vst [vmem:[#allocation110_spill] sm:$0xff] %v10543_v15  ;;  %v10561_v60 = vrot.slane %v1356_v52, %v10026_v30  ;;  %v10580_v52 = vcombine.high %v10533_v18, %v10533_v18  ;;  %v7769_v18 = vld [vmem:[%s14951_s2 + $0x238] sm:$0xff] }
 0x225   :  { %15559 = vst [vmem:[#allocation111_spill] sm:$0xff] %v10546_v28  ;;  %15560 = vst [vmem:[#allocation112_spill] sm:$0xff] %v10550_v54  ;;  %8805 = vmatpush3.msra.mxu0 %v7769_v18  ;;  %v7768_v18 = vld [vmem:[%s14951_s2 + $0x230] sm:$0xff] }
 0x226   :  { %15561 = vst [vmem:[#allocation113_spill] sm:$0xff] %v10554_v61  ;;  %15562 = vst [vmem:[#allocation114_spill] sm:$0xff] %v10558_v14  ;;  %v10574_v61 = vrot.slane %v10088_v22, %v10026_v30  ;;  %v10583_v14 = vrot.slane %v1373_v33, %v10026_v30  ;;  %v7657_v22 = vld [vmem:[%s14951_s2 + $0x78] sm:$0xff]  ;;  %v10604_v33 = vcombine.high %v10550_v54, %v10550_v54  ;;  %v15576_v54 = vmov 0.0  }
 0x227   :  { %15563 = vst [vmem:[#allocation115_spill] sm:$0xff] %v10561_v60  ;;  %15564 = vst [vmem:[#allocation116_spill] sm:$0xff] %v10567_v25  ;;  %v10587_v25 = vrot.slane %v10090_v16, %v10026_v30  ;;  %v1441_v16 = vcombine.high %v10096_v9, %v10096_v9  ;;  %8509 = vmatpush3.msra.mxu1 %v7657_v22  ;;  %v7656_v22 = vld [vmem:[%s14951_s2 + $0x70] sm:$0xff]  ;;  %8806 = vmatprep.subr.mxu0 %v15576_v54 }
 0x228   :  { %15565 = vst [vmem:[#allocation117_spill] sm:$0xff] %v10570_v44  ;;  %15566 = vst [vmem:[#allocation118_spill] sm:$0xff] %v10574_v61  ;;  %v10596_v44 = vcombine.high %v10543_v15, %v10543_v15  ;;  %v10613_v15 = vcombine.high %v10561_v60, %v10561_v60  ;;  %8510 = vmatprep.subr.mxu1 %v15576_v54  ;;  %v10630_v60 = vcombine.high %v10574_v61, %v10574_v61 }
 0x229   :  { %15567 = vst [vmem:[#allocation119_spill] sm:$0xff] %v10580_v52  ;;  %15568 = vst [vmem:[#allocation120_spill] sm:$0xff] %v10583_v14  ;;  %v10600_v52 = vcombine.high %v10546_v28, %v10546_v28  ;;  %8511 = vmatpush3.msra.mxu1 %v7656_v22  ;;  %v10643_v28 = vcombine.high %v10583_v14, %v10583_v14  ;;  %v10647_v0 = vcombine.high %v10587_v25, %v10587_v25 }
 0x22a   :  { %15569 = vst [vmem:[#allocation121_spill] sm:$0xff] %v10587_v25  ;;  %15570 = vst [vmem:[#allocation122_spill] sm:$0xff] %v10596_v44  ;;  %v10616_v44 = vrot.slane %v1390_v12, %v10026_v30  ;;  %v10633_v12 = vrot.slane %v1407_v1, %v10026_v30  ;;  %v1492_v1 = vcombine.high %v10102_v48, %v10102_v48  ;;  %8512 = vmatprep.subr.mxu1 %v15576_v54 }
 0x22b   :  { %15571 = vst [vmem:[#allocation123_spill] sm:$0xff] %v10600_v52  ;;  %15572 = vst [vmem:[#allocation124_spill] sm:$0xff] %v10604_v33  ;;  %v10620_v52 = vrot.slane %v10092_v5, %v10026_v30  ;;  %v1458_v33 = vcombine.high %v10098_v11, %v10098_v11  ;;  %v10637_v5 = vrot.slane %v10094_v7, %v10026_v30  ;;  %v7655_v7 = vld [vmem:[%s14951_s2 + $0x68] sm:$0xff]  ;;  %8807 = vmatpush3.msra.mxu0 %v7768_v18 }
 0x22c   :  { %15573 = vst [vmem:[#allocation125_spill] sm:$0xff] %v10613_v15  ;;  %15574 = vst [vmem:[#allocation126_spill] sm:$0xff] %v10616_v44  ;;  %v1475_v15 = vcombine.high %v10100_v13, %v10100_v13  ;;  %v10659_v22 = vrot.slane %v10096_v9, %v10026_v30  ;;  %v10676_v9 = vcombine.high %v10616_v44, %v10616_v44  ;;  %8513 = vmatpush3.msra.mxu1 %v7655_v7  ;;  %v7767_v7 = vld [vmem:[%s14951_s2 + $0x228] sm:$0xff]  ;;  %v15702_v24 = vld [vmem:[#allocation111_spill] sm:$0xff] }
 0x22d   :  { %15575 = vst [vmem:[#allocation127_spill] sm:$0xff] %v10620_v52  ;;  %15577 = vst [vmem:[#allocation128_spill] sm:$0xff] %v10630_v60  ;;  %v10650_v60 = vrot.slane %v1424_v56, %v10026_v30  ;;  %v1509_v56 = vcombine.high %v10104_v19, %v10104_v19  ;;  %v10687_v25 = vrot.slane %v10100_v13, %v10026_v30  ;;  %8514 = vmatprep.subr.mxu1 %v15576_v54 }
 0x22e   :  { %15578 = vst [vmem:[#allocation129_spill] sm:$0xff] %v10633_v12  ;;  %15579 = vst [vmem:[#allocation130_spill] sm:$0xff] %v10637_v5  ;;  %v10692_v14 = vcombine.high %v10633_v12, %v10633_v12  ;;  %8808 = vmatprep.subr.mxu0 %v15576_v54  ;;  %v15696_v51 = vld [vmem:[#allocation116_spill] sm:$0xff]  ;;  %v15706_v58 = vld [vmem:[#allocation115_spill] sm:$0xff] }
 0x22f   :  { %15580 = vst [vmem:[#allocation131_spill] sm:$0xff] %v10643_v28  ;;  %15581 = vst [vmem:[#allocation132_spill] sm:$0xff] %v10647_v0  ;;  %v10662_v28 = vrot.slane %v1441_v16, %v10026_v30  ;;  %v10666_v0 = vrot.slane %v10098_v11, %v10026_v30  ;;  %v10680_v16 = vcombine.high %v10620_v52, %v10620_v52  ;;  %8809 = vmatpush3.msra.mxu0 %v7767_v7 }
 0x230   :  { %15582 = vst [vmem:[#allocation133_spill] sm:$0xff] %v10650_v60  ;;  %15583 = vst [vmem:[#allocation134_spill] sm:$0xff] %v10659_v22  ;;  %v10683_v11 = vrot.slane %v1458_v33, %v10026_v30  ;;  %v10699_v52 = vrot.slane %v1475_v15, %v10026_v30  ;;  %v1526_v33 = vcombine.high %v10112_v27, %v10112_v27  ;;  %v7654_v15 = vld [vmem:[%s14951_s2 + $0x60] sm:$0xff]  ;;  %8810 = vmatprep.subr.mxu0 %v15576_v54 }
 0x231   :  { %15584 = vst [vmem:[#allocation135_spill] sm:$0xff] %v10662_v28  ;;  %15585 = vst [vmem:[#allocation136_spill] sm:$0xff] %v10666_v0  ;;  %v10705_v13 = vcombine.high %v10650_v60, %v10650_v60  ;;  %v10737_v18 = vrot.slane %v1509_v56, %v10026_v30  ;;  %v7653_v56 = vld [vmem:[%s14951_s2 + $0x58] sm:$0xff]  ;;  %8515 = vmatpush3.msra.mxu1 %v7654_v15  ;;  %v10793_v15 = vmax.f32 %v10014_v55, 0.0 }
 0x232   :  { %15586 = vst [vmem:[#allocation137_spill] sm:$0xff] %v10676_v9  ;;  %15587 = vst [vmem:[#allocation138_spill] sm:$0xff] %v10680_v16  ;;  %v10696_v9 = vcombine.high %v10637_v5, %v10637_v5  ;;  %v10709_v16 = vrot.slane %v10102_v48, %v10026_v30  ;;  %v10726_v48 = vcombine.high %v10659_v22, %v10659_v22  ;;  %8516 = vmatprep.subr.mxu1 %v15576_v54 }
 0x233   :  { %15588 = vst [vmem:[#allocation139_spill] sm:$0xff] %v10683_v11  ;;  %15589 = vst [vmem:[#allocation140_spill] sm:$0xff] %v10687_v25  ;;  %v10797_v7 = vcombine.high %v10737_v18, %v10737_v18  ;;  %8517 = vmatpush3.msra.mxu1 %v7653_v56 }
 0x234   :  { %15590 = vst [vmem:[#allocation141_spill] sm:$0xff] %v10692_v14  ;;  %15591 = vst [vmem:[#allocation142_spill] sm:$0xff] %v10696_v9  ;;  %v10712_v14 = vrot.slane %v1492_v1, %v10026_v30  ;;  %v10716_v9 = vrot.slane %v10104_v19, %v10026_v30  ;;  %v10730_v1 = vcombine.high %v10662_v28, %v10662_v28  ;;  %8518 = vmatprep.subr.mxu1 %v15576_v54  ;;  %v15707_v53 = vld [vmem:[#allocation128_spill] sm:$0xff] }
 0x235   :  { %15592 = vst [vmem:[#allocation143_spill] sm:$0xff] %v10699_v52  ;;  %15593 = vst [vmem:[#allocation144_spill] sm:$0xff] %v10705_v13  ;;  %v10734_v19 = vcombine.high %v10666_v0, %v10666_v0  ;;  %v10742_v13 = vcombine.high %v10683_v11, %v10683_v11  ;;  %v1577_v11 = vcombine.high %v10126_v37, %v10126_v37  ;;  %v812_v0 = vmax.f32 %v10020_v32, 0.0  ;;  %v7652_v32 = vld [vmem:[%s14951_s2 + $0x50] sm:$0xff] }
 0x236   :  { %15594 = vst [vmem:[#allocation145_spill] sm:$0xff] %v10709_v16  ;;  %15595 = vst [vmem:[#allocation146_spill] sm:$0xff] %v10712_v14  ;;  %v10774_v28 = vcombine.high %v10709_v16, %v10709_v16  ;;  %v10801_v37 = vrot.slane %v10114_v29, %v10026_v30  ;;  %8519 = vmatpush3.msra.mxu1 %v7652_v32  ;;  %v10854_v32 = vrot.slane %v10793_v15, %v10026_v30  ;;  %v15709_v63 = vld [vmem:[#allocation131_spill] sm:$0xff]  ;;  %v15711_v57 = vld [vmem:[#allocation132_spill] sm:$0xff] }
 0x237   :  { %15596 = vst [vmem:[#allocation147_spill] sm:$0xff] %v10716_v9  ;;  %15597 = vst [vmem:[#allocation148_spill] sm:$0xff] %v10726_v48  ;;  %v10746_v48 = vcombine.high %v10687_v25, %v10687_v25  ;;  %v808_v25 = vmax.f32 %v10008_v47, 0.0  ;;  %v10778_v47 = vcombine.high %v10712_v14, %v10712_v14  ;;  %v10832_v56 = vrot.slane %v1577_v11, %v10026_v30 }
 0x238   :  { %15598 = vst [vmem:[#allocation149_spill] sm:$0xff] %v10730_v1  ;;  %15599 = vst [vmem:[#allocation150_spill] sm:$0xff] %v10734_v19  ;;  %v10750_v1 = vrot.slane %v10112_v27, %v10026_v30  ;;  %v1543_v19 = vcombine.high %v10114_v29, %v10114_v29  ;;  %v10767_v27 = vrot.slane %v1526_v33, %v10026_v30  ;;  %v7765_v33 = vld [vmem:[%s14951_s2 + $0x218] sm:$0xff]  ;;  %v7651_v29 = vld [vmem:[%s14951_s2 + $0x48] sm:$0xff]  ;;  %8520 = vmatprep.subr.mxu1 %v15576_v54 }
 0x239   :  { %15600 = vst [vmem:[#allocation151_spill] sm:$0xff] %v10737_v18  ;;  %15601 = vst [vmem:[#allocation152_spill] sm:$0xff] %v10742_v13  ;;  %v7766_v13 = vld [vmem:[%s14951_s2 + $0x220] sm:$0xff]  ;;  %v1662_v18 = vcombine.high %v812_v0, %v812_v0  ;;  %v10847_v11 = vrot.slane %v10134_v41, %v10026_v30  ;;  %8521 = vmatpush3.msra.mxu1 %v7651_v29 }
 0x23a   :  { %15602 = vst [vmem:[#allocation153_spill] sm:$0xff] %v10746_v48  ;;  %15603 = vst [vmem:[#allocation154_spill] sm:$0xff] %v10750_v1  ;;  %v10764_v48 = vcombine.high %v10699_v52, %v10699_v52  ;;  %8811 = vmatpush3.msra.mxu0 %v7766_v13  ;;  %v10811_v55 = vrot.slane %v1543_v19, %v10026_v30  ;;  %v10825_v13 = vcombine.high %v10767_v27, %v10767_v27  ;;  %v15719_v62 = vld [vmem:[#allocation135_spill] sm:$0xff] }
 0x23b   :  { %15605 = vst [vmem:[#allocation156_spill] sm:$0xff] %v10767_v27  ;;  %15606 = vst [vmem:[#allocation157_spill] sm:$0xff] %v10778_v47  ;;  %v10808_v47 = vcombine.high %v10750_v1, %v10750_v1  ;;  %8812 = vmatprep.subr.mxu0 %v15576_v54  ;;  %v10829_v19 = vrot.slane %v10123_v35, %v10026_v30  ;;  %v10835_v1 = vrot.slane %v808_v25, %v10026_v30 }
 0x23c   :  { %15604 = vst [vmem:[#allocation155_spill] sm:$0xff] %v10764_v48  ;;  %v10782_v48 = vcombine.high %v10716_v9, %v10716_v9  ;;  %15608 = vst [vmem:[#allocation159_spill] sm:$0xff] %v10793_v15  ;;  %v811_v9 = vmax.f32 %v10017_v8, 0.0  ;;  %v7764_v8 = vld [vmem:[%s14951_s2 + $0x210] sm:$0xff]  ;;  %8813 = vmatpush3.msra.mxu0 %v7765_v33  ;;  %v10858_v33 = vcombine.high %v10801_v37, %v10801_v37  ;;  %8522 = vmatprep.subr.mxu1 %v15576_v54  ;;  %v15717_v40 = vld [vmem:[#allocation144_spill] sm:$0xff] }
 0x23d   :  { %15609 = vst [vmem:[#allocation160_spill] sm:$0xff] %v10797_v7  ;;  %15610 = vst [vmem:[#allocation161_spill] sm:$0xff] %v10801_v37  ;;  %v1560_v7 = vcombine.high %v10123_v35, %v10123_v35  ;;  %8814 = vmatprep.subr.mxu0 %v15576_v54  ;;  %v7763_v35 = vld [vmem:[%s14951_s2 + $0x208] sm:$0xff] }
 0x23e   :  { %15607 = vst [vmem:[#allocation158_spill] sm:$0xff] %v10782_v48  ;;  %v1611_v48 = vcombine.high %v10134_v41, %v10134_v41  ;;  %15611 = vst [vmem:[#allocation162_spill] sm:$0xff] %v10808_v47  ;;  %v1594_v47 = vcombine.high %v808_v25, %v808_v25  ;;  %8815 = vmatpush3.msra.mxu0 %v7764_v8  ;;  %v1645_v27 = vcombine.high %v811_v9, %v811_v9  ;;  %v7762_v41 = vld [vmem:[%s14951_s2 + $0x200] sm:$0xff]  ;;  %v15718_v44 = vld [vmem:[#allocation148_spill] sm:$0xff] }
 0x23f   :  { %15612 = vst [vmem:[#allocation163_spill] sm:$0xff] %v10825_v13  ;;  %15613 = vst [vmem:[#allocation164_spill] sm:$0xff] %v10829_v19  ;;  %v7650_v13 = vld [vmem:[%s14951_s2 + $0x40] sm:$0xff]  ;;  %v10861_v14 = vrot.slane %v811_v9, %v10026_v30  ;;  %8816 = vmatprep.subr.mxu0 %v15576_v54  ;;  %v10873_v29 = vrot.slane %v1560_v7, %v10026_v30  ;;  %v10877_v8 = vcombine.high %v10829_v19, %v10829_v19 }
 0x240   :  { %15614 = vst [vmem:[#allocation165_spill] sm:$0xff] %v10832_v56  ;;  %15615 = vst [vmem:[#allocation166_spill] sm:$0xff] %v10847_v11  ;;  %v10850_v25 = vrot.slane %v1611_v48, %v10026_v30  ;;  %v10870_v48 = vcombine.high %v10811_v55, %v10811_v55  ;;  %8523 = vmatpush3.msra.mxu1 %v7650_v13  ;;  %8817 = vmatpush3.msra.mxu0 %v7763_v35  ;;  %v15730_v12 = vld [vmem:[#allocation147_spill] sm:$0xff] }
 0x241   :  { %15617 = vst [vmem:[#allocation168_spill] sm:$0xff] %v10854_v32  ;;  %15618 = vst [vmem:[#allocation169_spill] sm:$0xff] %v10858_v33  ;;  %v10881_v9 = vcombine.high %v10832_v56, %v10832_v56  ;;  %v10884_v15 = vrot.slane %v1594_v47, %v10026_v30  ;;  %v10887_v33 = vrot.slane %v1662_v18, %v10026_v30  ;;  %8545 = vmatprep.subr.mxu1 %v15576_v54  ;;  %v15734_v60 = vld [vmem:[#allocation154_spill] sm:$0xff]  ;;  %v15745_v56 = vld [vmem:[#allocation9_spill] sm:$0xff] }
 0x242   :  { %15616 = vst [vmem:[#allocation167_spill] sm:$0xff] %v10850_v25  ;;  %15619 = vst [vmem:[#allocation170_spill] sm:$0xff] %v10861_v14  ;;  %8818 = vmatprep.subr.mxu0 %v15576_v54  ;;  %v10893_v7 = vcombine.high %v10835_v1, %v10835_v1  ;;  %v10897_v13 = vcombine.high %v10847_v11, %v10847_v11  ;;  %v10901_v35 = vcombine.high %v10850_v25, %v10850_v25  ;;  %v15729_v34 = vld [vmem:[#allocation157_spill] sm:$0xff]  ;;  %v15736_v22 = vld [vmem:[#allocation156_spill] sm:$0xff] }
 0x243   :  { %15620 = vst [vmem:[#allocation171_spill] sm:$0xff] %v10873_v29  ;;  %15621 = vst [vmem:[#allocation172_spill] sm:$0xff] %v10877_v8  ;;  %v10905_v18 = vcombine.high %v10854_v32, %v10854_v32  ;;  %8819 = vmatpush3.msra.mxu0 %v7762_v41  ;;  %v10908_v47 = vrot.slane %v1645_v27, %v10026_v30  ;;  %v15746_v45 = vrot.slane %v15745_v56, 9  ;;  %v15750_v11 = vld [vmem:[#allocation13_spill] sm:$0xff]  ;;  %v15753_v32 = vld [vmem:[#allocation22_spill] sm:$0xff] }
 0x244   :  { %15622 = vst [vmem:[#allocation173_spill] sm:$0xff] %v10884_v15  ;;  %15623 = vst [vmem:[#allocation174_spill] sm:$0xff] %v10887_v33  ;;  %v10912_v15 = vcombine.high %v10861_v14, %v10861_v14  ;;  %8860 = vmatprep.subr.mxu0 %v15576_v54  ;;  %v15733_v42 = vld [vmem:[#allocation160_spill] sm:$0xff]  ;;  %v15748_v14 = vld [vmem:[#allocation19_spill] sm:$0xff]  ;;  %v15751_v54 = vrot.slane %v15750_v11, 9  ;;  %v15754_v19 = vrot.slane %v15753_v32, 9 }
 0x245   :  { %15624 = vst [vmem:[#allocation175_spill] sm:$0xff] %v10893_v7  ;;  %15625 = vst [vmem:[#allocation176_spill] sm:$0xff] %v10897_v13  ;;  %v10915_v7 = vrot.slane %v812_v0, %v10026_v30  ;;  %v15633_v30 = vld [vmem:[#allocation28_spill] sm:$0xff]  ;;  %v15731_v61 = vld [vmem:[#allocation158_spill] sm:$0xff]  ;;  %v15749_v5 = vrot.slane %v15748_v14, 9 }
 0x246   :  { %15626 = vst [vmem:[#allocation177_spill] sm:$0xff] %v10901_v35  ;;  %15627 = vst [vmem:[#allocation178_spill] sm:$0xff] %v10905_v18  ;;  %v15656_v18 = vld [vmem:[#allocation52_spill] sm:$0xff]  ;;  %v15735_v52 = vld [vmem:[#allocation162_spill] sm:$0xff]  ;;  %v11098_v35 = vmax.f32 %v15750_v11, %v15751_v54  ;;  %v11103_v41 = vmax.f32 %v15753_v32, %v15754_v19  ;;  %v15765_v11 = vrot.slane %v15633_v30, 9 }
 0x247   :  { %15628 = vst [vmem:[#allocation179_spill] sm:$0xff] %v10908_v47  ;;  %15629 = vst [vmem:[#allocation180_spill] sm:$0xff] %v10912_v15  ;;  %v10925_v47 = vcombine.high %v10887_v33, %v10887_v33  ;;  %v15647_v33 = vld [vmem:[#allocation41_spill] sm:$0xff]  ;;  %v15665_v15 = vld [vmem:[#allocation68_spill] sm:$0xff]  ;;  %v11093_v0 = vmax.f32 %v15748_v14, %v15749_v5 }
 0x248   :  { %15630 = vst [vmem:[#allocation181_spill] sm:$0xff] %v10915_v7  ;;  %v15643_v7 = vld [vmem:[#allocation37_spill] sm:$0xff]  ;;  %v15737_v16 = vld [vmem:[#allocation163_spill] sm:$0xff]  ;;  %15752 = vst [vmem:[#allocation29_spill] sm:$0xff] %v11098_v35  ;;  %v11123_v19 = vmax.f32 %v15633_v30, %v15765_v11 }
 0x249   :  { %15631 = vst [vmem:[#allocation182_spill] sm:$0xff] %v10925_v47  ;;  %v11088_v47 = vmax.f32 %v15745_v56, %v15746_v45  ;;  %15755 = vst [vmem:[#allocation26_spill] sm:$0xff] %v11103_v41  ;;  %v15756_v27 = vld [vmem:[#allocation10_spill] sm:$0xff]  ;;  %v15759_v56 = vld [vmem:[#allocation20_spill] sm:$0xff] }
 0x24a   :  { %v15757_v29 = vrot.slane %v15756_v27, 9  ;;  %v15760_v8 = vrot.slane %v15759_v56, 9  ;;  %v15762_v5 = vld [vmem:[#allocation17_spill] sm:$0xff]  ;;  %15766 = vst [vmem:[#allocation49_spill] sm:$0xff] %v11123_v19  ;;  %v15767_v32 = vld [vmem:[#allocation14_spill] sm:$0xff]  ;;  %v15777_v11 = vld [vmem:[#allocation16_spill] sm:$0xff] }
 0x24b   :  { %15747 = vst [vmem:[#allocation28_spill] sm:$0xff] %v11088_v47  ;;  %v15763_v4 = vrot.slane %v15762_v5, 9  ;;  %v15768_v25 = vrot.slane %v15767_v32, 9 }
 0x24c   :  { %v11108_v45 = vmax.f32 %v15756_v27, %v15757_v29  ;;  %v11113_v14 = vmax.f32 %v15759_v56, %v15760_v8  ;;  %v15769_v27 = vld [vmem:[#allocation23_spill] sm:$0xff]  ;;  %v15772_v56 = vld [vmem:[#allocation18_spill] sm:$0xff] }
 0x24d   :  { %v11118_v54 = vmax.f32 %v15762_v5, %v15763_v4  ;;  %v11128_v29 = vmax.f32 %v15767_v32, %v15768_v25  ;;  %v15770_v13 = vrot.slane %v15769_v27, 9  ;;  %v15773_v37 = vrot.slane %v15772_v56, 9 }
 0x24e   :  { %15758 = vst [vmem:[#allocation37_spill] sm:$0xff] %v11108_v45  ;;  %15761 = vst [vmem:[#allocation36_spill] sm:$0xff] %v11113_v14  ;;  %v15775_v5 = vrot.slane %v15636_v31, 9  ;;  %v15780_v32 = vrot.slane %v15638_v23, 9 }
 0x24f   :  { %15764 = vst [vmem:[#allocation41_spill] sm:$0xff] %v11118_v54  ;;  %v11133_v8 = vmax.f32 %v15769_v27, %v15770_v13  ;;  %v11138_v4 = vmax.f32 %v15772_v56, %v15773_v37  ;;  %v15778_v54 = vrot.slane %v15777_v11, 9  ;;  %v15782_v27 = vld [vmem:[#allocation21_spill] sm:$0xff]  ;;  %v15785_v56 = vld [vmem:[#allocation32_spill] sm:$0xff] }
 0x250   :  { %v11143_v30 = vmax.f32 %v15636_v31, %v15775_v5  ;;  %v11153_v13 = vmax.f32 %v15638_v23, %v15780_v32  ;;  %v15783_v14 = vrot.slane %v15782_v27, 9  ;;  %v15786_v45 = vrot.slane %v15785_v56, 9  ;;  %v15788_v5 = vld [vmem:[#allocation24_spill] sm:$0xff]  ;;  %v15794_v32 = vld [vmem:[#allocation27_spill] sm:$0xff] }
 0x251   :  { %15771 = vst [vmem:[#allocation52_spill] sm:$0xff] %v11133_v8  ;;  %15774 = vst [vmem:[#allocation53_spill] sm:$0xff] %v11138_v4  ;;  %v11148_v25 = vmax.f32 %v15777_v11, %v15778_v54  ;;  %v15791_v11 = vld [vmem:[#allocation35_spill] sm:$0xff] }
 0x252   :  { %15776 = vst [vmem:[#allocation48_spill] sm:$0xff] %v11143_v30  ;;  %15781 = vst [vmem:[#allocation68_spill] sm:$0xff] %v11153_v13  ;;  %v11158_v37 = vmax.f32 %v15782_v27, %v15783_v14  ;;  %v11163_v31 = vmax.f32 %v15785_v56, %v15786_v45  ;;  %v15789_v30 = vrot.slane %v15788_v5, 9  ;;  %v15795_v13 = vrot.slane %v15794_v32, 9  ;;  %v15799_v56 = vld [vmem:[#allocation25_spill] sm:$0xff] }
 0x253   :  { %15779 = vst [vmem:[#allocation54_spill] sm:$0xff] %v11148_v25  ;;  %v15792_v25 = vrot.slane %v15791_v11, 9  ;;  %v15797_v27 = vrot.slane %v15643_v7, 9 }
 0x254   :  { %15784 = vst [vmem:[#allocation74_spill] sm:$0xff] %v11158_v37  ;;  %15787 = vst [vmem:[#allocation76_spill] sm:$0xff] %v11163_v31  ;;  %v11168_v54 = vmax.f32 %v15788_v5, %v15789_v30  ;;  %v11178_v14 = vmax.f32 %v15794_v32, %v15795_v13  ;;  %v15800_v31 = vrot.slane %v15799_v56, 9  ;;  %v15802_v5 = vrot.slane %v15645_v6, 9  ;;  %v15807_v32 = vld [vmem:[#allocation40_spill] sm:$0xff] }
 0x255   :  { %v11173_v23 = vmax.f32 %v15791_v11, %v15792_v25  ;;  %v11183_v45 = vmax.f32 %v15643_v7, %v15797_v27  ;;  %v15804_v11 = vld [vmem:[#allocation30_spill] sm:$0xff]  ;;  %v15810_v27 = vld [vmem:[#allocation31_spill] sm:$0xff] }
 0x256   :  { %15790 = vst [vmem:[#allocation79_spill] sm:$0xff] %v11168_v54  ;;  %15796 = vst [vmem:[#allocation73_spill] sm:$0xff] %v11178_v14  ;;  %v11188_v30 = vmax.f32 %v15799_v56, %v15800_v31  ;;  %v11193_v25 = vmax.f32 %v15645_v6, %v15802_v5  ;;  %v15808_v14 = vrot.slane %v15807_v32, 9  ;;  %v15813_v56 = vrot.slane %v15647_v33, 9  ;;  %v15815_v5 = vld [vmem:[#allocation33_spill] sm:$0xff] }
 0x257   :  { %15793 = vst [vmem:[#allocation81_spill] sm:$0xff] %v11173_v23  ;;  %15798 = vst [vmem:[#allocation87_spill] sm:$0xff] %v11183_v45  ;;  %v15805_v23 = vrot.slane %v15804_v11, 9  ;;  %v15811_v45 = vrot.slane %v15810_v27, 9 }
 0x258   :  { %15801 = vst [vmem:[#allocation90_spill] sm:$0xff] %v11188_v30  ;;  %15803 = vst [vmem:[#allocation94_spill] sm:$0xff] %v11193_v25  ;;  %v11203_v7 = vmax.f32 %v15807_v32, %v15808_v14  ;;  %v11213_v6 = vmax.f32 %v15647_v33, %v15813_v56  ;;  %v15816_v30 = vrot.slane %v15815_v5, 9  ;;  %v15821_v32 = vld [vmem:[#allocation34_spill] sm:$0xff] }
 0x259   :  { %v11198_v13 = vmax.f32 %v15804_v11, %v15805_v23  ;;  %v11208_v31 = vmax.f32 %v15810_v27, %v15811_v45  ;;  %v15818_v11 = vld [vmem:[#allocation44_spill] sm:$0xff]  ;;  %v15824_v27 = vld [vmem:[#allocation45_spill] sm:$0xff]  ;;  %v15827_v56 = vld [vmem:[#allocation38_spill] sm:$0xff] }
 0x25a   :  { %15809 = vst [vmem:[#allocation116_spill] sm:$0xff] %v11203_v7  ;;  %15814 = vst [vmem:[#allocation115_spill] sm:$0xff] %v11213_v6  ;;  %v11218_v23 = vmax.f32 %v15815_v5, %v15816_v30  ;;  %v15819_v54 = vrot.slane %v15818_v11, 9  ;;  %v15822_v7 = vrot.slane %v15821_v32, 9  ;;  %v15828_v6 = vrot.slane %v15827_v56, 9 }
 0x25b   :  { %15806 = vst [vmem:[#allocation89_spill] sm:$0xff] %v11198_v13  ;;  %15812 = vst [vmem:[#allocation111_spill] sm:$0xff] %v11208_v31  ;;  %v15825_v31 = vrot.slane %v15824_v27, 9  ;;  %v15830_v5 = vrot.slane %v15652_v21, 9 }
 0x25c   :  { %15817 = vst [vmem:[#allocation128_spill] sm:$0xff] %v11218_v23  ;;  %v11223_v14 = vmax.f32 %v15818_v11, %v15819_v54  ;;  %v11228_v45 = vmax.f32 %v15821_v32, %v15822_v7  ;;  %v11238_v30 = vmax.f32 %v15827_v56, %v15828_v6  ;;  %v15832_v11 = vrot.slane %v10233_v43, 9  ;;  %v15834_v32 = vld [vmem:[#allocation50_spill] sm:$0xff]  ;;  %v15840_v56 = vld [vmem:[#allocation51_spill] sm:$0xff] }
 0x25d   :  { %v11233_v33 = vmax.f32 %v15824_v27, %v15825_v31  ;;  %v11243_v54 = vmax.f32 %v15652_v21, %v15830_v5  ;;  %v15837_v27 = vld [vmem:[#allocation39_spill] sm:$0xff]  ;;  %v15843_v5 = vld [vmem:[#allocation42_spill] sm:$0xff] }
 0x25e   :  { %15820 = vst [vmem:[#allocation131_spill] sm:$0xff] %v11223_v14  ;;  %15823 = vst [vmem:[#allocation132_spill] sm:$0xff] %v11228_v45  ;;  %v11248_v7 = vmax.f32 %v10233_v43, %v15832_v11  ;;  %v15835_v45 = vrot.slane %v15834_v32, 9  ;;  %v15845_v11 = vrot.slane %v15656_v18, 9 }
 0x25f   :  { %15826 = vst [vmem:[#allocation144_spill] sm:$0xff] %v11233_v33  ;;  %15829 = vst [vmem:[#allocation148_spill] sm:$0xff] %v11238_v30  ;;  %v15838_v33 = vrot.slane %v15837_v27, 9  ;;  %v15841_v30 = vrot.slane %v15840_v56, 9 }
 0x260   :  { %15831 = vst [vmem:[#allocation135_spill] sm:$0xff] %v11243_v54  ;;  %15833 = vst [vmem:[#allocation157_spill] sm:$0xff] %v11248_v7  ;;  %v11253_v31 = vmax.f32 %v15834_v32, %v15835_v45  ;;  %v15844_v54 = vrot.slane %v15843_v5, 9  ;;  %v11273_v45 = vmax.f32 %v15656_v18, %v15845_v11  ;;  %v15847_v32 = vld [vmem:[#allocation46_spill] sm:$0xff] }
 0x261   :  { %v11258_v6 = vmax.f32 %v15837_v27, %v15838_v33  ;;  %v11263_v21 = vmax.f32 %v15840_v56, %v15841_v30  ;;  %v15850_v27 = vld [vmem:[#allocation55_spill] sm:$0xff]  ;;  %v15858_v11 = vld [vmem:[#allocation58_spill] sm:$0xff]  ;;  %v16125_v47 = vld [vmem:[#allocation116_spill] sm:$0xff] }
 0x262   :  { %15836 = vst [vmem:[#allocation147_spill] sm:$0xff] %v11253_v31  ;;  %v11268_v43 = vmax.f32 %v15843_v5, %v15844_v54  ;;  %15846 = vst [vmem:[#allocation154_spill] sm:$0xff] %v11273_v45  ;;  %v15848_v31 = vrot.slane %v15847_v32, 9  ;;  %v15853_v56 = vld [vmem:[#allocation43_spill] sm:$0xff]  ;;  %v15856_v5 = vrot.slane %v15660_v49, 9  ;;  %v15859_v45 = vrot.slane %v15858_v11, 9 }
 0x263   :  { %15839 = vst [vmem:[#allocation158_spill] sm:$0xff] %v11258_v6  ;;  %15842 = vst [vmem:[#allocation160_spill] sm:$0xff] %v11263_v21  ;;  %v15851_v6 = vrot.slane %v15850_v27, 9  ;;  %v15854_v7 = vrot.slane %v15853_v56, 9  ;;  %v16127_v35 = vld [vmem:[#allocation111_spill] sm:$0xff] }
 0x264   :  { %v11278_v33 = vmax.f32 %v15847_v32, %v15848_v31  ;;  %v11293_v18 = vmax.f32 %v15660_v49, %v15856_v5  ;;  %v11298_v31 = vmax.f32 %v15858_v11, %v15859_v45  ;;  %v15860_v32 = vrot.slane %v10272_v59, 9  ;;  %v15867_v5 = vld [vmem:[#allocation60_spill] sm:$0xff]  ;;  %v16129_v41 = vld [vmem:[#allocation115_spill] sm:$0xff] }
 0x265   :  { %v11283_v30 = vmax.f32 %v15850_v27, %v15851_v6  ;;  %v11288_v54 = vmax.f32 %v15853_v56, %v15854_v7  ;;  %v15862_v27 = vld [vmem:[#allocation59_spill] sm:$0xff]  ;;  %v15865_v56 = vrot.slane %v15662_v3, 9  ;;  %v15870_v11 = vrot.slane %v15664_v26, 9 }
 0x266   :  { %15849 = vst [vmem:[#allocation162_spill] sm:$0xff] %v11278_v33  ;;  %15857 = vst [vmem:[#allocation9_spill] sm:$0xff] %v11293_v18  ;;  %v11303_v6 = vmax.f32 %v10272_v59, %v15860_v32  ;;  %v15868_v18 = vrot.slane %v15867_v5, 9  ;;  %v15872_v32 = vld [vmem:[#allocation56_spill] sm:$0xff] }
 0x267   :  { %15852 = vst [vmem:[#allocation156_spill] sm:$0xff] %v11283_v30  ;;  %15855 = vst [vmem:[#allocation163_spill] sm:$0xff] %v11288_v54  ;;  %v15863_v30 = vrot.slane %v15862_v27, 9  ;;  %v11313_v49 = vmax.f32 %v15662_v3, %v15865_v56  ;;  %v11323_v59 = vmax.f32 %v15664_v26, %v15870_v11  ;;  %v15876_v56 = vld [vmem:[#allocation57_spill] sm:$0xff]  ;;  %v16134_v19 = vld [vmem:[#allocation144_spill] sm:$0xff] }
 0x268   :  { %15861 = vst [vmem:[#allocation19_spill] sm:$0xff] %v11303_v6  ;;  %v11318_v45 = vmax.f32 %v15867_v5, %v15868_v18  ;;  %v15873_v6 = vrot.slane %v15872_v32, 9  ;;  %v15879_v5 = vld [vmem:[#allocation69_spill] sm:$0xff]  ;;  %v16136_v8 = vld [vmem:[#allocation148_spill] sm:$0xff] }
 0x269   :  { %v11308_v7 = vmax.f32 %v15862_v27, %v15863_v30  ;;  %15866 = vst [vmem:[#allocation22_spill] sm:$0xff] %v11313_v49  ;;  %15871 = vst [vmem:[#allocation20_spill] sm:$0xff] %v11323_v59  ;;  %v15874_v27 = vrot.slane %v15665_v15, 9  ;;  %v15877_v49 = vrot.slane %v15876_v56, 9  ;;  %v15882_v11 = vld [vmem:[#allocation61_spill] sm:$0xff]  ;;  %v16157_v33 = vld [vmem:[#allocation176_spill] sm:$0xff] }
 0x26a   :  { %15869 = vst [vmem:[#allocation10_spill] sm:$0xff] %v11318_v45  ;;  %v11328_v30 = vmax.f32 %v15872_v32, %v15873_v6  ;;  %v15880_v45 = vrot.slane %v15879_v5, 9  ;;  %v15883_v59 = vrot.slane %v15882_v11, 9  ;;  %v15885_v32 = vld [vmem:[#allocation71_spill] sm:$0xff]  ;;  %v16158_v37 = vrot.slane %v16157_v33, 9 }
 0x26b   :  { %15864 = vst [vmem:[#allocation13_spill] sm:$0xff] %v11308_v7  ;;  %v11333_v3 = vmax.f32 %v15665_v15, %v15874_v27  ;;  %v11338_v18 = vmax.f32 %v15876_v56, %v15877_v49  ;;  %v15886_v7 = vrot.slane %v15885_v32, 9  ;;  %v15888_v27 = vld [vmem:[#allocation62_spill] sm:$0xff]  ;;  %v15891_v56 = vrot.slane %v15669_v38, 9 }
 0x26c   :  { %v11343_v26 = vmax.f32 %v15879_v5, %v15880_v45  ;;  %v11348_v6 = vmax.f32 %v15882_v11, %v15883_v59  ;;  %v15893_v5 = vld [vmem:[#allocation63_spill] sm:$0xff] }
 0x26d   :  { %15875 = vst [vmem:[#allocation17_spill] sm:$0xff] %v11333_v3  ;;  %15878 = vst [vmem:[#allocation14_spill] sm:$0xff] %v11338_v18  ;;  %v11353_v15 = vmax.f32 %v15885_v32, %v15886_v7  ;;  %v15889_v3 = vrot.slane %v15888_v27, 9  ;;  %v11363_v45 = vmax.f32 %v15669_v38, %v15891_v56  ;;  %v15896_v11 = vld [vmem:[#allocation75_spill] sm:$0xff]  ;;  %v15899_v32 = vld [vmem:[#allocation64_spill] sm:$0xff] }
 0x26e   :  { %15881 = vst [vmem:[#allocation23_spill] sm:$0xff] %v11343_v26  ;;  %15884 = vst [vmem:[#allocation18_spill] sm:$0xff] %v11348_v6  ;;  %v15894_v26 = vrot.slane %v15893_v5, 9  ;;  %v15897_v6 = vrot.slane %v15896_v11, 9  ;;  %v15904_v56 = vld [vmem:[#allocation78_spill] sm:$0xff] }
 0x26f   :  { %15887 = vst [vmem:[#allocation16_spill] sm:$0xff] %v11353_v15  ;;  %v11358_v49 = vmax.f32 %v15888_v27, %v15889_v3  ;;  %15892 = vst [vmem:[#allocation32_spill] sm:$0xff] %v11363_v45  ;;  %v15900_v15 = vrot.slane %v15899_v32, 9  ;;  %v15902_v27 = vrot.slane %v15671_v50, 9  ;;  %v16144_v25 = vld [vmem:[#allocation19_spill] sm:$0xff] }
 0x270   :  { %v11368_v59 = vmax.f32 %v15893_v5, %v15894_v26  ;;  %v11373_v7 = vmax.f32 %v15896_v11, %v15897_v6  ;;  %v15907_v5 = vld [vmem:[#allocation67_spill] sm:$0xff]  ;;  %v15910_v11 = vrot.slane %v15674_v17, 9 }
 0x271   :  { %15890 = vst [vmem:[#allocation21_spill] sm:$0xff] %v11358_v49  ;;  %v11378_v3 = vmax.f32 %v15899_v32, %v15900_v15  ;;  %v11383_v38 = vmax.f32 %v15671_v50, %v15902_v27  ;;  %v15905_v49 = vrot.slane %v15904_v56, 9  ;;  %v15912_v32 = vld [vmem:[#allocation70_spill] sm:$0xff]  ;;  %v15915_v27 = vrot.slane %v15676_v36, 9 }
 0x272   :  { %15895 = vst [vmem:[#allocation24_spill] sm:$0xff] %v11368_v59  ;;  %15898 = vst [vmem:[#allocation35_spill] sm:$0xff] %v11373_v7  ;;  %v15908_v59 = vrot.slane %v15907_v5, 9  ;;  %v11398_v15 = vmax.f32 %v15674_v17, %v15910_v11  ;;  %v15922_v11 = vld [vmem:[#allocation85_spill] sm:$0xff] }
 0x273   :  { %15901 = vst [vmem:[#allocation27_spill] sm:$0xff] %v11378_v3  ;;  %15903 = vst [vmem:[#allocation25_spill] sm:$0xff] %v11383_v38  ;;  %v11388_v26 = vmax.f32 %v15904_v56, %v15905_v49  ;;  %v15913_v3 = vrot.slane %v15912_v32, 9  ;;  %v11408_v49 = vmax.f32 %v15676_v36, %v15915_v27  ;;  %v15917_v56 = vld [vmem:[#allocation72_spill] sm:$0xff]  ;;  %v15923_v38 = vrot.slane %v15922_v11, 9  ;;  %v16145_v13 = vld [vmem:[#allocation13_spill] sm:$0xff] }
 0x274   :  { %v11393_v6 = vmax.f32 %v15907_v5, %v15908_v59  ;;  %15911 = vst [vmem:[#allocation31_spill] sm:$0xff] %v11398_v15  ;;  %v15920_v5 = vrot.slane %v15678_v39, 9  ;;  %v15928_v27 = vrot.slane %v15680_v2, 9 }
 0x275   :  { %15906 = vst [vmem:[#allocation30_spill] sm:$0xff] %v11388_v26  ;;  %v11403_v50 = vmax.f32 %v15912_v32, %v15913_v3  ;;  %15916 = vst [vmem:[#allocation44_spill] sm:$0xff] %v11408_v49  ;;  %v15918_v26 = vrot.slane %v15917_v56, 9  ;;  %v11423_v3 = vmax.f32 %v15922_v11, %v15923_v38  ;;  %v15925_v32 = vld [vmem:[#allocation77_spill] sm:$0xff]  ;;  %v15935_v11 = vld [vmem:[#allocation82_spill] sm:$0xff] }
 0x276   :  { %15909 = vst [vmem:[#allocation40_spill] sm:$0xff] %v11393_v6  ;;  %v11418_v17 = vmax.f32 %v15678_v39, %v15920_v5  ;;  %v15926_v7 = vrot.slane %v15925_v32, 9  ;;  %v15933_v5 = vrot.slane %v15682_v20, 9  ;;  %v16171_v6 = vld [vmem:[#allocation168_spill] sm:$0xff] }
 0x277   :  { %15914 = vst [vmem:[#allocation33_spill] sm:$0xff] %v11403_v50  ;;  %v11413_v59 = vmax.f32 %v15917_v56, %v15918_v26  ;;  %15924 = vst [vmem:[#allocation38_spill] sm:$0xff] %v11423_v3  ;;  %v11433_v26 = vmax.f32 %v15680_v2, %v15928_v27  ;;  %v15930_v56 = vld [vmem:[#allocation88_spill] sm:$0xff]  ;;  %v15941_v27 = vld [vmem:[#allocation83_spill] sm:$0xff]  ;;  %v16172_v14 = vrot.slane %v16171_v6, 9 }
 0x278   :  { %15921 = vst [vmem:[#allocation45_spill] sm:$0xff] %v11418_v17  ;;  %v11428_v36 = vmax.f32 %v15925_v32, %v15926_v7  ;;  %v11443_v38 = vmax.f32 %v15682_v20, %v15933_v5  ;;  %v15936_v17 = vrot.slane %v15935_v11, 9  ;;  %v15938_v32 = vld [vmem:[#allocation93_spill] sm:$0xff]  ;;  %v15946_v5 = vld [vmem:[#allocation86_spill] sm:$0xff] }
 0x279   :  { %15919 = vst [vmem:[#allocation34_spill] sm:$0xff] %v11413_v59  ;;  %15929 = vst [vmem:[#allocation39_spill] sm:$0xff] %v11433_v26  ;;  %v15931_v59 = vrot.slane %v15930_v56, 9  ;;  %v15942_v26 = vrot.slane %v15941_v27, 9  ;;  %v11913_v23 = vmax.f32 %v16171_v6, %v16172_v14 }
 0x27a   :  { %15927 = vst [vmem:[#allocation50_spill] sm:$0xff] %v11428_v36  ;;  %15934 = vst [vmem:[#allocation42_spill] sm:$0xff] %v11443_v38  ;;  %v11448_v7 = vmax.f32 %v15935_v11, %v15936_v17  ;;  %v15939_v36 = vrot.slane %v15938_v32, 9  ;;  %v15949_v11 = vrot.slane %v15686_v10, 9 }
 0x27b   :  { %v11438_v39 = vmax.f32 %v15930_v56, %v15931_v59  ;;  %v11458_v59 = vmax.f32 %v15941_v27, %v15942_v26  ;;  %v15944_v56 = vrot.slane %v15684_v46, 9  ;;  %v15954_v27 = vld [vmem:[#allocation103_spill] sm:$0xff] }
 0x27c   :  { %15937 = vst [vmem:[#allocation46_spill] sm:$0xff] %v11448_v7  ;;  %v11453_v2 = vmax.f32 %v15938_v32, %v15939_v36  ;;  %v11473_v36 = vmax.f32 %v15686_v10, %v15949_v11  ;;  %v15951_v32 = vld [vmem:[#allocation98_spill] sm:$0xff]  ;;  %v15963_v11 = vld [vmem:[#allocation96_spill] sm:$0xff]  ;;  %v16211_v7 = vld [vmem:[#allocation151_spill] sm:$0xff] }
 0x27d   :  { %15932 = vst [vmem:[#allocation51_spill] sm:$0xff] %v11438_v39  ;;  %15943 = vst [vmem:[#allocation43_spill] sm:$0xff] %v11458_v59  ;;  %v11463_v20 = vmax.f32 %v15684_v46, %v15944_v56  ;;  %v15947_v39 = vrot.slane %v15946_v5, 9  ;;  %v15952_v38 = vrot.slane %v15951_v32, 9  ;;  %v15955_v59 = vrot.slane %v15954_v27, 9  ;;  %v15957_v56 = vld [vmem:[#allocation92_spill] sm:$0xff] }
 0x27e   :  { %15940 = vst [vmem:[#allocation55_spill] sm:$0xff] %v11453_v2  ;;  %15950 = vst [vmem:[#allocation60_spill] sm:$0xff] %v11473_v36  ;;  %v15964_v36 = vrot.slane %v15963_v11, 9 }
 0x27f   :  { %15945 = vst [vmem:[#allocation58_spill] sm:$0xff] %v11463_v20  ;;  %v11468_v17 = vmax.f32 %v15946_v5, %v15947_v39  ;;  %v11478_v26 = vmax.f32 %v15951_v32, %v15952_v38  ;;  %v11483_v46 = vmax.f32 %v15954_v27, %v15955_v59  ;;  %v15958_v20 = vrot.slane %v15957_v56, 9  ;;  %v15960_v5 = vld [vmem:[#allocation106_spill] sm:$0xff]  ;;  %v15966_v32 = vld [vmem:[#allocation107_spill] sm:$0xff] }
 0x280   :  { %v11498_v38 = vmax.f32 %v15963_v11, %v15964_v36  ;;  %v15969_v27 = vld [vmem:[#allocation99_spill] sm:$0xff]  ;;  %v15978_v11 = vld [vmem:[#allocation114_spill] sm:$0xff] }
 0x281   :  { %15948 = vst [vmem:[#allocation59_spill] sm:$0xff] %v11468_v17  ;;  %15953 = vst [vmem:[#allocation56_spill] sm:$0xff] %v11478_v26  ;;  %v11488_v39 = vmax.f32 %v15957_v56, %v15958_v20  ;;  %v15961_v17 = vrot.slane %v15960_v5, 9  ;;  %v15967_v26 = vrot.slane %v15966_v32, 9  ;;  %v15972_v56 = vld [vmem:[#allocation109_spill] sm:$0xff] }
 0x282   :  { %15956 = vst [vmem:[#allocation57_spill] sm:$0xff] %v11483_v46  ;;  %15965 = vst [vmem:[#allocation71_spill] sm:$0xff] %v11498_v38  ;;  %v15970_v46 = vrot.slane %v15969_v27, 9  ;;  %v15979_v38 = vrot.slane %v15978_v11, 9 }
 0x283   :  { %15959 = vst [vmem:[#allocation69_spill] sm:$0xff] %v11488_v39  ;;  %v11493_v10 = vmax.f32 %v15960_v5, %v15961_v17  ;;  %v11503_v59 = vmax.f32 %v15966_v32, %v15967_v26  ;;  %v15973_v39 = vrot.slane %v15972_v56, 9  ;;  %v15975_v5 = vld [vmem:[#allocation101_spill] sm:$0xff] }
 0x284   :  { %v11508_v20 = vmax.f32 %v15969_v27, %v15970_v46  ;;  %v11523_v32 = vmax.f32 %v15978_v11, %v15979_v38  ;;  %v15981_v26 = vld [vmem:[#allocation105_spill] sm:$0xff]  ;;  %v15984_v27 = vrot.slane %v15696_v51, 9 }
 0x285   :  { %15962 = vst [vmem:[#allocation61_spill] sm:$0xff] %v11493_v10  ;;  %15968 = vst [vmem:[#allocation62_spill] sm:$0xff] %v11503_v59  ;;  %v11513_v17 = vmax.f32 %v15972_v56, %v15973_v39  ;;  %v15976_v10 = vrot.slane %v15975_v5, 9  ;;  %v15982_v59 = vrot.slane %v15981_v26, 9  ;;  %v15986_v56 = vld [vmem:[#allocation108_spill] sm:$0xff]  ;;  %v15991_v11 = vld [vmem:[#allocation117_spill] sm:$0xff] }
 0x286   :  { %15971 = vst [vmem:[#allocation63_spill] sm:$0xff] %v11508_v20  ;;  %15980 = vst [vmem:[#allocation78_spill] sm:$0xff] %v11523_v32  ;;  %v11533_v39 = vmax.f32 %v15696_v51, %v15984_v27  ;;  %v15992_v20 = vrot.slane %v15991_v11, 9  ;;  %v15997_v27 = vld [vmem:[#allocation122_spill] sm:$0xff] }
 0x287   :  { %15974 = vst [vmem:[#allocation75_spill] sm:$0xff] %v11513_v17  ;;  %v11518_v36 = vmax.f32 %v15975_v5, %v15976_v10  ;;  %v11528_v46 = vmax.f32 %v15981_v26, %v15982_v59  ;;  %v15987_v17 = vrot.slane %v15986_v56, 9  ;;  %v15988_v5 = vld [vmem:[#allocation119_spill] sm:$0xff]  ;;  %v15994_v26 = vld [vmem:[#allocation110_spill] sm:$0xff] }
 0x288   :  { %15985 = vst [vmem:[#allocation70_spill] sm:$0xff] %v11533_v39  ;;  %v11548_v59 = vmax.f32 %v15991_v11, %v15992_v20  ;;  %v15998_v39 = vrot.slane %v15997_v27, 9  ;;  %v16005_v11 = vld [vmem:[#allocation112_spill] sm:$0xff] }
 0x289   :  { %15977 = vst [vmem:[#allocation64_spill] sm:$0xff] %v11518_v36  ;;  %15983 = vst [vmem:[#allocation67_spill] sm:$0xff] %v11528_v46  ;;  %v11538_v10 = vmax.f32 %v15986_v56, %v15987_v17  ;;  %v15989_v36 = vrot.slane %v15988_v5, 9  ;;  %v15995_v46 = vrot.slane %v15994_v26, 9  ;;  %v16000_v56 = vrot.slane %v15702_v24, 9 }
 0x28a   :  { %15993 = vst [vmem:[#allocation85_spill] sm:$0xff] %v11548_v59  ;;  %v11558_v17 = vmax.f32 %v15997_v27, %v15998_v39  ;;  %v16006_v59 = vrot.slane %v16005_v11, 9  ;;  %v16011_v27 = vrot.slane %v15706_v58, 9 }
 0x28b   :  { %v11543_v38 = vmax.f32 %v15988_v5, %v15989_v36  ;;  %v11553_v51 = vmax.f32 %v15994_v26, %v15995_v46  ;;  %v11563_v36 = vmax.f32 %v15702_v24, %v16000_v56  ;;  %v16002_v5 = vld [vmem:[#allocation123_spill] sm:$0xff]  ;;  %v16008_v26 = vld [vmem:[#allocation124_spill] sm:$0xff]  ;;  %v16013_v56 = vld [vmem:[#allocation118_spill] sm:$0xff] }
 0x28c   :  { %15999 = vst [vmem:[#allocation82_spill] sm:$0xff] %v11558_v17  ;;  %v11573_v46 = vmax.f32 %v16005_v11, %v16006_v59  ;;  %v11583_v24 = vmax.f32 %v15706_v58, %v16011_v27  ;;  %v16017_v59 = vld [vmem:[#allocation120_spill] sm:$0xff]  ;;  %v16021_v27 = vld [vmem:[#allocation121_spill] sm:$0xff] }
 0x28d   :  { %15990 = vst [vmem:[#allocation72_spill] sm:$0xff] %v11543_v38  ;;  %15996 = vst [vmem:[#allocation77_spill] sm:$0xff] %v11553_v51  ;;  %v16003_v38 = vrot.slane %v16002_v5, 9  ;;  %v16009_v51 = vrot.slane %v16008_v26, 9 }
 0x28e   :  { %16001 = vst [vmem:[#allocation93_spill] sm:$0xff] %v11563_v36  ;;  %16007 = vst [vmem:[#allocation86_spill] sm:$0xff] %v11573_v46  ;;  %v16014_v36 = vrot.slane %v16013_v56, 9  ;;  %v16018_v46 = vrot.slane %v16017_v59, 9 }
 0x28f   :  { %v11568_v20 = vmax.f32 %v16002_v5, %v16003_v38  ;;  %v11578_v39 = vmax.f32 %v16008_v26, %v16009_v51  ;;  %16012 = vst [vmem:[#allocation92_spill] sm:$0xff] %v11583_v24  ;;  %v16016_v5 = vrot.slane %v15707_v53, 9  ;;  %v16019_v26 = vrot.slane %v15709_v63, 9 }
 0x290   :  { %v11588_v38 = vmax.f32 %v16013_v56, %v16014_v36  ;;  %v11598_v51 = vmax.f32 %v16017_v59, %v16018_v46  ;;  %v16022_v24 = vrot.slane %v16021_v27, 9  ;;  %v16024_v56 = vrot.slane %v15711_v57, 9  ;;  %v16029_v59 = vld [vmem:[#allocation137_spill] sm:$0xff] }
 0x291   :  { %16004 = vst [vmem:[#allocation83_spill] sm:$0xff] %v11568_v20  ;;  %16010 = vst [vmem:[#allocation103_spill] sm:$0xff] %v11578_v39  ;;  %v11593_v11 = vmax.f32 %v15707_v53, %v16016_v5  ;;  %v11603_v58 = vmax.f32 %v15709_v63, %v16019_v26  ;;  %v16026_v5 = vld [vmem:[#allocation126_spill] sm:$0xff]  ;;  %v16030_v20 = vrot.slane %v16029_v59, 9  ;;  %v16032_v26 = vld [vmem:[#allocation127_spill] sm:$0xff] }
 0x292   :  { %16015 = vst [vmem:[#allocation106_spill] sm:$0xff] %v11588_v38  ;;  %v11608_v36 = vmax.f32 %v16021_v27, %v16022_v24  ;;  %v11613_v53 = vmax.f32 %v15711_v57, %v16024_v56  ;;  %v16027_v39 = vrot.slane %v16026_v5, 9  ;;  %v16035_v27 = vld [vmem:[#allocation138_spill] sm:$0xff]  ;;  %v16038_v56 = vld [vmem:[#allocation129_spill] sm:$0xff] }
 0x293   :  { %16020 = vst [vmem:[#allocation96_spill] sm:$0xff] %v11603_v58  ;;  %v11623_v63 = vmax.f32 %v16029_v59, %v16030_v20  ;;  %v16033_v58 = vrot.slane %v16032_v26, 9  ;;  %v16044_v59 = vld [vmem:[#allocation130_spill] sm:$0xff] }
 0x294   :  { %16023 = vst [vmem:[#allocation107_spill] sm:$0xff] %v11608_v36  ;;  %16025 = vst [vmem:[#allocation99_spill] sm:$0xff] %v11613_v53  ;;  %v11618_v46 = vmax.f32 %v16026_v5, %v16027_v39  ;;  %v16036_v36 = vrot.slane %v16035_v27, 9  ;;  %v16039_v53 = vrot.slane %v16038_v56, 9  ;;  %v16041_v5 = vld [vmem:[#allocation141_spill] sm:$0xff] }
 0x295   :  { %16031 = vst [vmem:[#allocation101_spill] sm:$0xff] %v11623_v63  ;;  %v11628_v24 = vmax.f32 %v16032_v26, %v16033_v58  ;;  %v16045_v63 = vrot.slane %v16044_v59, 9  ;;  %v16047_v26 = vld [vmem:[#allocation142_spill] sm:$0xff] }
 0x296   :  { %16028 = vst [vmem:[#allocation109_spill] sm:$0xff] %v11618_v46  ;;  %v11633_v57 = vmax.f32 %v16035_v27, %v16036_v36  ;;  %v11638_v39 = vmax.f32 %v16038_v56, %v16039_v53  ;;  %v16042_v46 = vrot.slane %v16041_v5, 9  ;;  %v16049_v27 = vld [vmem:[#allocation133_spill] sm:$0xff]  ;;  %v16051_v56 = vrot.slane %v15717_v40, 9  ;;  %v16187_v21 = vld [vmem:[#allocation86_spill] sm:$0xff] }
 0x297   :  { %16034 = vst [vmem:[#allocation114_spill] sm:$0xff] %v11628_v24  ;;  %v11648_v58 = vmax.f32 %v16044_v59, %v16045_v63  ;;  %v16048_v24 = vrot.slane %v16047_v26, 9  ;;  %v16055_v59 = vrot.slane %v15718_v44, 9 }
 0x298   :  { %16037 = vst [vmem:[#allocation105_spill] sm:$0xff] %v11633_v57  ;;  %16040 = vst [vmem:[#allocation108_spill] sm:$0xff] %v11638_v39  ;;  %v11643_v20 = vmax.f32 %v16041_v5, %v16042_v46  ;;  %v16050_v57 = vrot.slane %v16049_v27, 9  ;;  %v11663_v46 = vmax.f32 %v15717_v40, %v16051_v56  ;;  %v16052_v5 = vld [vmem:[#allocation134_spill] sm:$0xff]  ;;  %v16185_v2 = vld [vmem:[#allocation83_spill] sm:$0xff] }
 0x299   :  { %16046 = vst [vmem:[#allocation110_spill] sm:$0xff] %v11648_v58  ;;  %v11653_v36 = vmax.f32 %v16047_v26, %v16048_v24  ;;  %v11673_v24 = vmax.f32 %v15718_v44, %v16055_v59  ;;  %v16057_v26 = vrot.slane %v15719_v62, 9  ;;  %v16062_v56 = vld [vmem:[#allocation150_spill] sm:$0xff]  ;;  %v16068_v59 = vld [vmem:[#allocation152_spill] sm:$0xff]  ;;  %v2735_v32 = vmax.f32 %v16185_v2, %v11598_v51 }
 0x29a   :  { %16043 = vst [vmem:[#allocation119_spill] sm:$0xff] %v11643_v20  ;;  %v11658_v53 = vmax.f32 %v16049_v27, %v16050_v57  ;;  %v16053_v20 = vrot.slane %v16052_v5, 9  ;;  %v16059_v27 = vld [vmem:[#allocation136_spill] sm:$0xff]  ;;  %v16063_v39 = vrot.slane %v16062_v56, 9 }
 0x29b   :  { %16056 = vst [vmem:[#allocation123_spill] sm:$0xff] %v11673_v24  ;;  %v11678_v57 = vmax.f32 %v15719_v62, %v16057_v26  ;;  %v16060_v58 = vrot.slane %v16059_v27, 9  ;;  %v16069_v24 = vrot.slane %v16068_v59, 9  ;;  %v16071_v26 = vld [vmem:[#allocation140_spill] sm:$0xff] }
 0x29c   :  { %v11668_v63 = vmax.f32 %v16052_v5, %v16053_v20  ;;  %v11688_v20 = vmax.f32 %v16062_v56, %v16063_v39  ;;  %v16065_v5 = vld [vmem:[#allocation139_spill] sm:$0xff]  ;;  %v16186_v50 = vld [vmem:[#allocation96_spill] sm:$0xff]  ;;  %v16193_v54 = vld [vmem:[#allocation101_spill] sm:$0xff] }
 0x29d   :  { %16058 = vst [vmem:[#allocation112_spill] sm:$0xff] %v11678_v57  ;;  %v11683_v40 = vmax.f32 %v16059_v27, %v16060_v58  ;;  %v11698_v62 = vmax.f32 %v16068_v59, %v16069_v24  ;;  %v16072_v57 = vrot.slane %v16071_v26, 9  ;;  %v16073_v27 = vld [vmem:[#allocation153_spill] sm:$0xff]  ;;  %v16076_v56 = vld [vmem:[#allocation143_spill] sm:$0xff]  ;;  %v2740_v38 = vmax.f32 %v16193_v54, %v11658_v53 }
 0x29e   :  { %16054 = vst [vmem:[#allocation122_spill] sm:$0xff] %v11668_v63  ;;  %16064 = vst [vmem:[#allocation118_spill] sm:$0xff] %v11688_v20  ;;  %v16066_v63 = vrot.slane %v16065_v5, 9  ;;  %v16077_v20 = vrot.slane %v16076_v56, 9  ;;  %v16081_v59 = vld [vmem:[#allocation145_spill] sm:$0xff] }
 0x29f   :  { %16061 = vst [vmem:[#allocation124_spill] sm:$0xff] %v11683_v40  ;;  %16070 = vst [vmem:[#allocation121_spill] sm:$0xff] %v11698_v62  ;;  %v11703_v58 = vmax.f32 %v16071_v26, %v16072_v57  ;;  %v16074_v40 = vrot.slane %v16073_v27, 9  ;;  %v16082_v62 = vrot.slane %v16081_v59, 9  ;;  %v16083_v26 = vrot.slane %v10774_v28, 9  ;;  %v16192_v6 = vld [vmem:[#allocation109_spill] sm:$0xff] }
 0x2a0   :  { %v11693_v44 = vmax.f32 %v16065_v5, %v16066_v63  ;;  %v11713_v63 = vmax.f32 %v16076_v56, %v16077_v20  ;;  %v16078_v5 = vld [vmem:[#allocation155_spill] sm:$0xff]  ;;  %v16086_v56 = vrot.slane %v15729_v34, 9  ;;  %v16196_v2 = vld [vmem:[#allocation105_spill] sm:$0xff] }
 0x2a1   :  { %v11708_v39 = vmax.f32 %v16073_v27, %v16074_v40  ;;  %v11723_v57 = vmax.f32 %v16081_v59, %v16082_v62  ;;  %v11728_v40 = vmax.f32 %v10774_v28, %v16083_v26  ;;  %v16084_v27 = vld [vmem:[#allocation146_spill] sm:$0xff]  ;;  %v16088_v59 = vrot.slane %v15731_v61, 9 }
 0x2a2   :  { %16067 = vst [vmem:[#allocation120_spill] sm:$0xff] %v11693_v44  ;;  %v16079_v44 = vrot.slane %v16078_v5, 9  ;;  %v16090_v26 = vrot.slane %v15733_v42, 9  ;;  %v16197_v14 = vld [vmem:[#allocation123_spill] sm:$0xff] }
 0x2a3   :  { %16075 = vst [vmem:[#allocation126_spill] sm:$0xff] %v11708_v39  ;;  %v16085_v39 = vrot.slane %v16084_v27, 9  ;;  %v11748_v28 = vmax.f32 %v15731_v61, %v16088_v59  ;;  %v16097_v59 = vrot.slane %v15737_v16, 9 }
 0x2a4   :  { %v11718_v24 = vmax.f32 %v16078_v5, %v16079_v44  ;;  %v11738_v44 = vmax.f32 %v15729_v34, %v16086_v56  ;;  %v16087_v5 = vrot.slane %v15730_v12, 9  ;;  %v16093_v56 = vrot.slane %v15735_v52, 9  ;;  %v16199_v4 = vld [vmem:[#allocation112_spill] sm:$0xff] }
 0x2a5   :  { %v11733_v20 = vmax.f32 %v16084_v27, %v16085_v39  ;;  %16089 = vst [vmem:[#allocation127_spill] sm:$0xff] %v11748_v28  ;;  %v11753_v39 = vmax.f32 %v15733_v42, %v16090_v26  ;;  %v16091_v27 = vrot.slane %v15734_v60, 9  ;;  %v11773_v42 = vmax.f32 %v15737_v16, %v16097_v59  ;;  %v16106_v59 = vld [vmem:[#allocation171_spill] sm:$0xff]  ;;  %v16195_v17 = vld [vmem:[#allocation122_spill] sm:$0xff] }
 0x2a6   :  { %16080 = vst [vmem:[#allocation137_spill] sm:$0xff] %v11718_v24  ;;  %v11743_v62 = vmax.f32 %v15730_v12, %v16087_v5  ;;  %v11763_v12 = vmax.f32 %v15735_v52, %v16093_v56  ;;  %v16095_v5 = vrot.slane %v15736_v22, 9  ;;  %v16099_v26 = vrot.slane %v10811_v55, 9  ;;  %v16101_v56 = vld [vmem:[#allocation164_spill] sm:$0xff]  ;;  %v16202_v49 = vld [vmem:[#allocation118_spill] sm:$0xff] }
 0x2a7   :  { %v11758_v34 = vmax.f32 %v15734_v60, %v16091_v27  ;;  %16098 = vst [vmem:[#allocation130_spill] sm:$0xff] %v11773_v42  ;;  %v16100_v27 = vrot.slane %v10870_v48, 9  ;;  %v16107_v42 = vrot.slane %v16106_v59, 9  ;;  %v2742_v51 = vmax.f32 %v16196_v2, %v16195_v17 }
 0x2a8   :  { %16094 = vst [vmem:[#allocation129_spill] sm:$0xff] %v11763_v12  ;;  %v11768_v61 = vmax.f32 %v15736_v22, %v16095_v5  ;;  %v11778_v60 = vmax.f32 %v10811_v55, %v16099_v26  ;;  %v16102_v12 = vrot.slane %v16101_v56, 9  ;;  %v16103_v5 = vld [vmem:[#allocation172_spill] sm:$0xff]  ;;  %v16108_v26 = vld [vmem:[#allocation165_spill] sm:$0xff]  ;;  %v2750_v17 = vmax.f32 %v11703_v58, %v11738_v44 }
 0x2a9   :  { %16092 = vst [vmem:[#allocation138_spill] sm:$0xff] %v11758_v34  ;;  %v11783_v52 = vmax.f32 %v10870_v48, %v16100_v27  ;;  %v11798_v55 = vmax.f32 %v16106_v59, %v16107_v42  ;;  %v16109_v34 = vrot.slane %v16108_v26, 9  ;;  %v16111_v27 = vrot.slane %v10881_v9, 9  ;;  %v16203_v54 = vld [vmem:[#allocation120_spill] sm:$0xff] }
 0x2aa   :  { %16096 = vst [vmem:[#allocation141_spill] sm:$0xff] %v11768_v61  ;;  %v11788_v22 = vmax.f32 %v16101_v56, %v16102_v12  ;;  %v16104_v61 = vrot.slane %v16103_v5, 9  ;;  %v16113_v56 = vrot.slane %v10835_v1, 9  ;;  %v2748_v53 = vmax.f32 %v16203_v54, %v11728_v40 }
 0x2ab   :  { %v11803_v48 = vmax.f32 %v16108_v26, %v16109_v34  ;;  %v11808_v12 = vmax.f32 %v10881_v9, %v16111_v27  ;;  %v16126_v9 = vld [vmem:[#allocation79_spill] sm:$0xff]  ;;  %v16128_v26 = vld [vmem:[#allocation81_spill] sm:$0xff]  ;;  %v16147_v34 = vld [vmem:[#allocation22_spill] sm:$0xff] }
 0x2ac   :  { %v11793_v16 = vmax.f32 %v16103_v5, %v16104_v61  ;;  %v11813_v61 = vmax.f32 %v10835_v1, %v16113_v56  ;;  %v16115_v5 = vld [vmem:[#allocation175_spill] sm:$0xff]  ;;  %v16130_v56 = vld [vmem:[#allocation73_spill] sm:$0xff]  ;;  %v16149_v1 = vld [vmem:[#allocation10_spill] sm:$0xff] }
 0x2ad   :  { %16110 = vst [vmem:[#allocation133_spill] sm:$0xff] %v11803_v48  ;;  %16112 = vst [vmem:[#allocation134_spill] sm:$0xff] %v11808_v12  ;;  %v16140_v48 = vld [vmem:[#allocation147_spill] sm:$0xff] }
 0x2ae   :  { %16105 = vst [vmem:[#allocation142_spill] sm:$0xff] %v11793_v16  ;;  %16114 = vst [vmem:[#allocation136_spill] sm:$0xff] %v11813_v61  ;;  %v16116_v16 = vrot.slane %v16115_v5, 9  ;;  %v11888_v61 = vmax.f32 %v16157_v33, %v16158_v37  ;;  %v16162_v12 = vld [vmem:[#allocation167_spill] sm:$0xff]  ;;  %v16210_v58 = vld [vmem:[#allocation130_spill] sm:$0xff] }
 0x2af   :  { %v16163_v15 = vrot.slane %v16162_v12, 9  ;;  %v16188_v33 = vld [vmem:[#allocation107_spill] sm:$0xff]  ;;  %v16207_v40 = vld [vmem:[#allocation129_spill] sm:$0xff]  ;;  %v2758_v44 = vmax.f32 %v16210_v58, %v11798_v55 }
 0x2b0   :  { %v11818_v42 = vmax.f32 %v16115_v5, %v16116_v16  ;;  %v16168_v5 = vld [vmem:[#allocation177_spill] sm:$0xff] }
 0x2b1   :  { %v11897_v16 = vmax.f32 %v16162_v12, %v16163_v15  ;;  %v16169_v45 = vrot.slane %v16168_v5, 9  ;;  %v16173_v15 = vld [vmem:[#allocation178_spill] sm:$0xff]  ;;  %v16223_v58 = vld [vmem:[#allocation45_spill] sm:$0xff] }
 0x2b2   :  { %16117 = vst [vmem:[#allocation150_spill] sm:$0xff] %v11818_v42  ;;  %v16154_v42 = vld [vmem:[#allocation173_spill] sm:$0xff]  ;;  %v16174_v12 = vrot.slane %v16173_v15, 9 }
 0x2b3   :  { %v16155_v59 = vrot.slane %v16154_v42, 9  ;;  %16164 = vst [vmem:[#allocation152_spill] sm:$0xff] %v11897_v16  ;;  %v11908_v27 = vmax.f32 %v16168_v5, %v16169_v45  ;;  %v16181_v5 = vld [vmem:[#allocation75_spill] sm:$0xff]  ;;  %v16229_v16 = vld [vmem:[#allocation61_spill] sm:$0xff] }
 0x2b4   :  { %v2728_v3 = vmax.f32 %v16181_v5, %v11538_v10  ;;  %v16189_v45 = vld [vmem:[#allocation103_spill] sm:$0xff]  ;;  %v2747_v10 = vmax.f32 %v16202_v49, %v11723_v57  ;;  %v16206_v49 = vld [vmem:[#allocation138_spill] sm:$0xff]  ;;  %v16234_v5 = vld [vmem:[#allocation29_spill] sm:$0xff] }
 0x2b5   :  { %v11883_v18 = vmax.f32 %v16154_v42, %v16155_v59  ;;  %16170 = vst [vmem:[#allocation140_spill] sm:$0xff] %v11908_v27  ;;  %v11918_v59 = vmax.f32 %v16173_v15, %v16174_v12  ;;  %v16184_v15 = vld [vmem:[#allocation93_spill] sm:$0xff]  ;;  %v2736_v42 = vmax.f32 %v16187_v21, %v16186_v50  ;;  %v2737_v37 = vmax.f32 %v16189_v45, %v16188_v33  ;;  %v16198_v21 = vld [vmem:[#allocation108_spill] sm:$0xff]  ;;  %v16200_v33 = vld [vmem:[#allocation119_spill] sm:$0xff] }
 0x2b6   :  { %v2734_v12 = vmax.f32 %v16184_v15, %v11593_v11  ;;  %v16194_v11 = vld [vmem:[#allocation114_spill] sm:$0xff]  ;;  %v2743_v50 = vmax.f32 %v16198_v21, %v16197_v14  ;;  %v2744_v45 = vmax.f32 %v16200_v33, %v16199_v4  ;;  %v2754_v21 = vmax.f32 %v11753_v39, %v11778_v60  ;;  %v16214_v4 = vld [vmem:[#allocation169_spill] sm:$0xff]  ;;  %v16230_v60 = vld [vmem:[#allocation56_spill] sm:$0xff] }
 0x2b7   :  { %16156 = vst [vmem:[#allocation139_spill] sm:$0xff] %v11883_v18  ;;  %16175 = vst [vmem:[#allocation153_spill] sm:$0xff] %v11918_v59  ;;  %v2741_v15 = vmax.f32 %v16194_v11, %v11663_v46  ;;  %v16204_v46 = vld [vmem:[#allocation121_spill] sm:$0xff]  ;;  %v16205_v14 = vld [vmem:[#allocation126_spill] sm:$0xff]  ;;  %v2755_v57 = vmax.f32 %v16206_v49, %v11783_v52  ;;  %v2756_v33 = vmax.f32 %v16207_v40, %v11788_v22  ;;  %v16215_v24 = vrot.slane %v16214_v4, 9 }
 0x2b8   :  { %v2749_v11 = vmax.f32 %v16204_v46, %v11733_v20  ;;  %v2751_v2 = vmax.f32 %v16205_v14, %v11743_v62  ;;  %v16208_v54 = vld [vmem:[#allocation142_spill] sm:$0xff]  ;;  %v16209_v20 = vld [vmem:[#allocation141_spill] sm:$0xff]  ;;  %v16212_v62 = vrot.slane %v16211_v7, 9 }
 0x2b9   :  { %v2757_v46 = vmax.f32 %v16209_v20, %v16208_v54  ;;  %v11986_v39 = vmax.f32 %v16214_v4, %v16215_v24  ;;  %v16219_v40 = vld [vmem:[#allocation170_spill] sm:$0xff]  ;;  %v16231_v27 = vld [vmem:[#allocation133_spill] sm:$0xff]  ;;  %v16235_v4 = vld [vmem:[#allocation52_spill] sm:$0xff] }
 0x2ba   :  { %v11981_v14 = vmax.f32 %v16211_v7, %v16212_v62  ;;  %v16220_v54 = vrot.slane %v16219_v40, 9  ;;  %v16222_v20 = vld [vmem:[#allocation42_spill] sm:$0xff]  ;;  %v2762_v22 = vmax.f32 %v16231_v27, %v11888_v61  ;;  %v16238_v49 = vld [vmem:[#allocation53_spill] sm:$0xff]  ;;  %v16240_v61 = vmax.f32 %v16126_v9, %v16125_v47 }
 0x2bb   :  { %16216 = vst [vmem:[#allocation155_spill] sm:$0xff] %v11986_v39  ;;  %v2713_v7 = vmax.f32 %v16223_v58, %v16222_v20  ;;  %v16226_v24 = vld [vmem:[#allocation150_spill] sm:$0xff]  ;;  %v16233_v20 = vmax.f32 %v11093_v0, %v11128_v29  ;;  %v16241_v0 = vmax.f32 %v16128_v26, %v16127_v35  ;;  %v16248_v47 = vmax.f32 %v16134_v19, %v11268_v43  ;;  %v16259_v19 = vld [vmem:[#allocation163_spill] sm:$0xff] }
 0x2bc   :  { %16213 = vst [vmem:[#allocation143_spill] sm:$0xff] %v11981_v14  ;;  %v11995_v55 = vmax.f32 %v16219_v40, %v16220_v54  ;;  %v16232_v54 = vld [vmem:[#allocation12_spill] sm:$0xff]  ;;  %v16237_v52 = vld [vmem:[#allocation26_spill] sm:$0xff]  ;;  %v16260_v43 = vmax.f32 %v16140_v48, %v16259_v19  ;;  %v16268_v48 = vld [vmem:[#allocation23_spill] sm:$0xff] }
 0x2bd   :  { %v2844_v58 = vrot.slane %v16233_v20, %v16232_v54  ;;  %v16239_v39 = vmax.f32 %v16237_v52, %v16238_v49  ;;  %v12031_v27 = vrot.slane %v16240_v61, %v16232_v54  ;;  %v12037_v29 = vrot.slane %v16241_v0, %v16232_v54  ;;  %v16245_v52 = vld [vmem:[#allocation128_spill] sm:$0xff]  ;;  %v16250_v35 = vld [vmem:[#allocation154_spill] sm:$0xff] }
 0x2be   :  { %16221 = vst [vmem:[#allocation145_spill] sm:$0xff] %v11995_v55  ;;  %v16236_v55 = vmax.f32 %v16234_v5, %v16235_v4  ;;  %v16242_v5 = vmax.f32 %v16130_v56, %v16129_v41  ;;  %v12055_v9 = vrot.slane %v16248_v47, %v16232_v54  ;;  %v16251_v26 = vmax.f32 %v16136_v8, %v16250_v35  ;;  %v16252_v41 = vld [vmem:[#allocation135_spill] sm:$0xff]  ;;  %v16253_v56 = vld [vmem:[#allocation162_spill] sm:$0xff] }
 0x2bf   :  { %v12025_v28 = vrot.slane %v16239_v39, %v16232_v54  ;;  %v16244_v39 = vld [vmem:[#allocation87_spill] sm:$0xff]  ;;  %v16254_v61 = vmax.f32 %v16252_v41, %v16253_v56  ;;  %v12079_v47 = vrot.slane %v16260_v43, %v16232_v54  ;;  %v16262_v8 = vmax.f32 %v11298_v31, %v11328_v30  ;;  %v16271_v31 = vld [vmem:[#allocation18_spill] sm:$0xff]  ;;  %v16274_v43 = vld [vmem:[#allocation32_spill] sm:$0xff] }
 0x2c0   :  { %v12019_v62 = vrot.slane %v16236_v55, %v16232_v54  ;;  %v12043_v55 = vrot.slane %v16242_v5, %v16232_v54  ;;  %v16246_v49 = vmax.f32 %v16244_v39, %v16245_v52  ;;  %16249 = vst [vmem:[#allocation172_spill] sm:$0xff] %v12055_v9  ;;  %v12061_v20 = vrot.slane %v16251_v26, %v16232_v54  ;;  %v16256_v5 = vld [vmem:[#allocation157_spill] sm:$0xff]  ;;  %v16257_v39 = vld [vmem:[#allocation156_spill] sm:$0xff] }
 0x2c1   :  { %v12067_v0 = vrot.slane %v16254_v61, %v16232_v54  ;;  %v16258_v52 = vmax.f32 %v16256_v5, %v16257_v39  ;;  %16261 = vst [vmem:[#allocation175_spill] sm:$0xff] %v12079_v47  ;;  %v12085_v35 = vrot.slane %v16262_v8, %v16232_v54  ;;  %v16263_v26 = vld [vmem:[#allocation17_spill] sm:$0xff]  ;;  %v16265_v61 = vld [vmem:[#allocation14_spill] sm:$0xff]  ;;  %v16272_v30 = vmax.f32 %v16149_v1, %v16271_v31  ;;  %v16275_v8 = vld [vmem:[#allocation40_spill] sm:$0xff] }
 0x2c2   :  { %16243 = vst [vmem:[#allocation146_spill] sm:$0xff] %v12043_v55  ;;  %v12049_v4 = vrot.slane %v16246_v49, %v16232_v54  ;;  %v16264_v41 = vmax.f32 %v16144_v25, %v16263_v26  ;;  %v16266_v5 = vmax.f32 %v16145_v13, %v16265_v61  ;;  %v16276_v26 = vmax.f32 %v16274_v43, %v16275_v8  ;;  %v16279_v61 = vld [vmem:[#allocation31_spill] sm:$0xff]  ;;  %v16285_v31 = vld [vmem:[#allocation44_spill] sm:$0xff]  ;;  %v16287_v43 = vld [vmem:[#allocation25_spill] sm:$0xff] }
 0x2c3   :  { %16255 = vst [vmem:[#allocation165_spill] sm:$0xff] %v12067_v0  ;;  %v12073_v49 = vrot.slane %v16258_v52, %v16232_v54  ;;  %v16269_v52 = vmax.f32 %v16147_v34, %v16268_v48  ;;  %v12109_v25 = vrot.slane %v16272_v30, %v16232_v54  ;;  %v16281_v48 = vld [vmem:[#allocation35_spill] sm:$0xff]  ;;  %v16288_v8 = vld [vmem:[#allocation34_spill] sm:$0xff] }
 0x2c4   :  { %16247 = vst [vmem:[#allocation164_spill] sm:$0xff] %v12049_v4  ;;  %v12091_v56 = vrot.slane %v16264_v41, %v16232_v54  ;;  %v12097_v39 = vrot.slane %v16266_v5, %v16232_v54  ;;  %v12115_v13 = vrot.slane %v16276_v26, %v16232_v54  ;;  %v16278_v41 = vld [vmem:[#allocation24_spill] sm:$0xff]  ;;  %v16284_v1 = vld [vmem:[#allocation27_spill] sm:$0xff]  ;;  %v16289_v26 = vmax.f32 %v16287_v43, %v16288_v8  ;;  %v16308_v8 = vld [vmem:[#allocation49_spill] sm:$0xff] }
 0x2c5   :  { %v12103_v19 = vrot.slane %v16269_v52, %v16232_v54  ;;  %16273 = vst [vmem:[#allocation111_spill] sm:$0xff] %v12109_v25  ;;  %v16280_v5 = vmax.f32 %v16278_v41, %v16279_v61  ;;  %v16282_v52 = vld [vmem:[#allocation33_spill] sm:$0xff]  ;;  %v16286_v30 = vmax.f32 %v16284_v1, %v16285_v31  ;;  %v16291_v41 = vld [vmem:[#allocation62_spill] sm:$0xff]  ;;  %v16292_v61 = vld [vmem:[#allocation67_spill] sm:$0xff]  ;;  %v12157_v1 = vrot.slane %v2736_v42, %v16232_v54 }
 0x2c6   :  { %16267 = vst [vmem:[#allocation116_spill] sm:$0xff] %v12097_v39  ;;  %16277 = vst [vmem:[#allocation81_spill] sm:$0xff] %v12115_v13  ;;  %v16283_v40 = vmax.f32 %v16281_v48, %v16282_v52  ;;  %v12139_v14 = vrot.slane %v16289_v26, %v16232_v54  ;;  %v12151_v48 = vrot.slane %v2734_v12, %v16232_v54 }
 0x2c7   :  { %16270 = vst [vmem:[#allocation79_spill] sm:$0xff] %v12103_v19  ;;  %v12121_v34 = vrot.slane %v16280_v5, %v16232_v54  ;;  %v12133_v18 = vrot.slane %v16286_v30, %v16232_v54  ;;  %v16293_v5 = vmax.f32 %v16291_v41, %v16292_v61  ;;  %v12154_v52 = vrot.slane %v2735_v32, %v16232_v54  ;;  %v16311_v41 = vld [vmem:[#allocation78_spill] sm:$0xff] }
 0x2c8   :  { %v12127_v59 = vrot.slane %v16283_v40, %v16232_v54  ;;  %16290 = vst [vmem:[#allocation115_spill] sm:$0xff] %v12139_v14  ;;  %v12148_v40 = vrot.slane %v2728_v3, %v16232_v54  ;;  %16295 = vst [vmem:[#allocation144_spill] sm:$0xff] %v12157_v1  ;;  %v12160_v31 = vrot.slane %v2737_v37, %v16232_v54 }
 0x2c9   :  { %v12145_v13 = vrot.slane %v16293_v5, %v16232_v54  ;;  %16294 = vst [vmem:[#allocation73_spill] sm:$0xff] %v12154_v52  ;;  %v12163_v30 = vrot.slane %v2740_v38, %v16232_v54  ;;  %v12166_v43 = vrot.slane %v2741_v15, %v16232_v54  ;;  %v12169_v3 = vrot.slane %v2742_v51, %v16232_v54  ;;  %v16317_v5 = vld [vmem:[#allocation9_spill] sm:$0xff] }
 0x2ca   :  { %16296 = vst [vmem:[#allocation148_spill] sm:$0xff] %v12160_v31  ;;  %v12172_v12 = vrot.slane %v2743_v50, %v16232_v54  ;;  %v12175_v32 = vrot.slane %v2744_v45, %v16232_v54  ;;  %v12178_v42 = vrot.slane %v2747_v10, %v16232_v54  ;;  %v12181_v37 = vrot.slane %v2748_v53, %v16232_v54 }
 0x2cb   :  { %16297 = vst [vmem:[#allocation147_spill] sm:$0xff] %v12163_v30  ;;  %v12184_v38 = vrot.slane %v2749_v11, %v16232_v54  ;;  %v12187_v15 = vrot.slane %v2750_v17, %v16232_v54  ;;  %v12190_v51 = vrot.slane %v2751_v2, %v16232_v54  ;;  %v12193_v50 = vrot.slane %v2754_v21, %v16232_v54  ;;  %v16307_v17 = vld [vmem:[#allocation28_spill] sm:$0xff]  ;;  %v16310_v21 = vld [vmem:[#allocation71_spill] sm:$0xff] }
 0x2cc   :  { %16298 = vst [vmem:[#allocation19_spill] sm:$0xff] %v12172_v12  ;;  %16299 = vst [vmem:[#allocation13_spill] sm:$0xff] %v12175_v32  ;;  %v12196_v45 = vrot.slane %v2755_v57, %v16232_v54  ;;  %v12199_v10 = vrot.slane %v2756_v33, %v16232_v54  ;;  %v12202_v53 = vrot.slane %v2757_v46, %v16232_v54 }
 0x2cd   :  { %16300 = vst [vmem:[#allocation22_spill] sm:$0xff] %v12178_v42  ;;  %16301 = vst [vmem:[#allocation10_spill] sm:$0xff] %v12190_v51  ;;  %v12205_v11 = vrot.slane %v2758_v44, %v16232_v54  ;;  %v16309_v2 = vmax.f32 %v16307_v17, %v16308_v8  ;;  %v16312_v61 = vmax.f32 %v16310_v21, %v16311_v41  ;;  %v16316_v44 = vld [vmem:[#allocation158_spill] sm:$0xff]  ;;  %v16320_v17 = vld [vmem:[#allocation20_spill] sm:$0xff] }
 0x2ce   :  { %16302 = vst [vmem:[#allocation176_spill] sm:$0xff] %v12193_v50  ;;  %16303 = vst [vmem:[#allocation167_spill] sm:$0xff] %v12196_v45  ;;  %v16314_v33 = vmax.f32 %v16192_v6, %v11653_v36  ;;  %v16318_v50 = vmax.f32 %v16316_v44, %v16317_v5  ;;  %v16321_v8 = vld [vmem:[#allocation16_spill] sm:$0xff]  ;;  %v16324_v21 = vld [vmem:[#allocation127_spill] sm:$0xff]  ;;  %v12242_v36 = vrot.slane %v2713_v7, %v16232_v54 }
 0x2cf   :  { %16304 = vst [vmem:[#allocation177_spill] sm:$0xff] %v12199_v10  ;;  %16305 = vst [vmem:[#allocation168_spill] sm:$0xff] %v12202_v53  ;;  %v3218_v26 = vrot.slane %v16309_v2, %v16232_v54  ;;  %v12215_v57 = vrot.slane %v16312_v61, %v16232_v54  ;;  %v16322_v2 = vmax.f32 %v16320_v17, %v16321_v8  ;;  %v16328_v6 = vld [vmem:[#allocation38_spill] sm:$0xff]  ;;  %v16333_v17 = vld [vmem:[#allocation55_spill] sm:$0xff] }
 0x2d0   :  { %16306 = vst [vmem:[#allocation178_spill] sm:$0xff] %v12205_v11  ;;  %v12221_v46 = vrot.slane %v16314_v33, %v16232_v54  ;;  %v12227_v11 = vrot.slane %v16318_v50, %v16232_v54  ;;  %v16325_v41 = vmax.f32 %v11713_v63, %v16324_v21  ;;  %16327 = vst [vmem:[#allocation107_spill] sm:$0xff] %v12242_v36  ;;  %v16329_v33 = vld [vmem:[#allocation46_spill] sm:$0xff]  ;;  %v16338_v21 = vld [vmem:[#allocation152_spill] sm:$0xff] }
 0x2d1   :  { %16313 = vst [vmem:[#allocation75_spill] sm:$0xff] %v12215_v57  ;;  %v12233_v53 = vrot.slane %v16322_v2, %v16232_v54  ;;  %v16330_v50 = vmax.f32 %v16328_v6, %v16329_v33  ;;  %v16332_v5 = vld [vmem:[#allocation50_spill] sm:$0xff]  ;;  %v16341_v57 = vld [vmem:[#allocation136_spill] sm:$0xff]  ;;  %v16345_v10 = vld [vmem:[#allocation39_spill] sm:$0xff] }
 0x2d2   :  { %16315 = vst [vmem:[#allocation93_spill] sm:$0xff] %v12221_v46  ;;  %16319 = vst [vmem:[#allocation83_spill] sm:$0xff] %v12227_v11  ;;  %v12239_v61 = vrot.slane %v16325_v41, %v16232_v54  ;;  %v16334_v8 = vmax.f32 %v16332_v5, %v16333_v17  ;;  %v12257_v46 = vrot.slane %v2762_v22, %v16232_v54  ;;  %v16337_v63 = vld [vmem:[#allocation134_spill] sm:$0xff]  ;;  %v16342_v6 = vld [vmem:[#allocation140_spill] sm:$0xff] }
 0x2d3   :  { %16323 = vst [vmem:[#allocation96_spill] sm:$0xff] %v12233_v53  ;;  %v12248_v44 = vrot.slane %v16330_v50, %v16232_v54  ;;  %v16339_v7 = vmax.f32 %v16337_v63, %v16338_v21  ;;  %v16343_v33 = vmax.f32 %v16341_v57, %v16342_v6  ;;  %v16346_v5 = vld [vmem:[#allocation43_spill] sm:$0xff]  ;;  %v12278_v22 = vsel %vm3041_vm2, %v2844_v58, %v3218_v26  ;;  %v16350_v63 = vld [vmem:[#allocation48_spill] sm:$0xff]  ;;  %v16354_v57 = vld [vmem:[#allocation54_spill] sm:$0xff] }
 0x2d4   :  { %16326 = vst [vmem:[#allocation86_spill] sm:$0xff] %v12239_v61  ;;  %v12254_v2 = vrot.slane %v16334_v8, %v16232_v54  ;;  %16336 = vst [vmem:[#allocation101_spill] sm:$0xff] %v12257_v46  ;;  %v16347_v17 = vmax.f32 %v16345_v10, %v16346_v5  ;;  %v16349_v46 = vld [vmem:[#allocation37_spill] sm:$0xff]  ;;  %v3042_v26 = vsel %vm3041_vm2, %v12019_v62, %v2844_v58 }
 0x2d5   :  { %16331 = vst [vmem:[#allocation103_spill] sm:$0xff] %v12248_v44  ;;  %v12263_v41 = vrot.slane %v16339_v7, %v16232_v54  ;;  %v12269_v50 = vrot.slane %v16343_v33, %v16232_v54  ;;  %v16351_v21 = vmax.f32 %v16349_v46, %v16350_v63  ;;  %v16358_v10 = vld [vmem:[#allocation89_spill] sm:$0xff]  ;;  %v3044_v46 = vsel %vm3043_vm3, %v12025_v28, %v3042_v26  ;;  %v16360_v63 = vld [vmem:[#allocation66_spill] sm:$0xff]  ;;  %v16362_v26 = vld [vmem:[#allocation84_spill] sm:$0xff] }
 0x2d6   :  { %16335 = vst [vmem:[#allocation109_spill] sm:$0xff] %v12254_v2  ;;  %v12275_v8 = vrot.slane %v16347_v17, %v16232_v54  ;;  %v3055_v58 = vsel %vm3041_vm2, %v12049_v4, %v12043_v55  ;;  %v16364_v4 = vmax.f32 %v16226_v24, %v11913_v23 }
 0x2d7   :  { %16340 = vst [vmem:[#allocation114_spill] sm:$0xff] %v12263_v41  ;;  %16344 = vst [vmem:[#allocation122_spill] sm:$0xff] %v12269_v50  ;;  %v12284_v7 = vrot.slane %v16351_v21, %v16232_v54  ;;  %v16353_v41 = vld [vmem:[#allocation36_spill] sm:$0xff]  ;;  %v16361_v21 = vrot.slane %v16360_v63, 9 }
 0x2d8   :  { %16348 = vst [vmem:[#allocation105_spill] sm:$0xff] %v12275_v8  ;;  %v16355_v6 = vmax.f32 %v16353_v41, %v16354_v57  ;;  %v16357_v50 = vld [vmem:[#allocation76_spill] sm:$0xff]  ;;  %v12326_v55 = vrot.slane %v16364_v4, %v16232_v54 }
 0x2d9   :  { %16352 = vst [vmem:[#allocation123_spill] sm:$0xff] %v12284_v7  ;;  %v16359_v5 = vmax.f32 %v16357_v50, %v16358_v10  ;;  %v3046_v41 = vsel %vm3045_vm4, %v12284_v7, %v3044_v46  ;;  %v4646_v50 = vsel %vm3041_vm2, %v12067_v0, %v12061_v20  ;;  %v2542_v57 = vmax.f32 %v16360_v63, %v16361_v21  ;;  %v2781_v21 = vld [vmem:[%s14951_s2 + $0x38] sm:$0xff] }
 0x2da   :  { %v12290_v33 = vrot.slane %v16355_v6, %v16232_v54  ;;  %v4647_v10 = vsel %vm3043_vm3, %v12073_v49, %v4646_v50  ;;  %v16363_v46 = vrot.slane %v16362_v26, 9  ;;  %16365 = vst [vmem:[#allocation112_spill] sm:$0xff] %v12326_v55 }
 0x2db   :  { %v12296_v17 = vrot.slane %v16359_v5, %v16232_v54  ;;  %v3056_v5 = vsel %vm3043_vm3, %v12055_v9, %v3055_v58 }
 0x2dc   :  { %16356 = vst [vmem:[#allocation108_spill] sm:$0xff] %v12290_v33  ;;  %v3048_v6 = vsel %vm3047_vm5, %v12290_v33, %v3046_v41  ;;  %v2549_v7 = vmax.f32 %v16362_v26, %v16363_v46  ;;  %v4648_v41 = vsel %vm3045_vm4, %v12079_v47, %v4647_v10  ;;  %v3057_v50 = vsel %vm3045_vm4, %v12061_v20, %v3056_v5  ;;  %v16379_v33 = vld [vmem:[#allocation69_spill] sm:$0xff] }
 0x2dd   :  { %v3050_v63 = vsel %vm3049_vm6, %v12296_v17, %v3048_v6  ;;  %v4649_v23 = vsel %vm3047_vm5, %v12227_v11, %v4648_v41  ;;  %v3058_v24 = vsel %vm3047_vm5, %v12067_v0, %v3057_v50  ;;  %v4653_v26 = vsel %vm3041_vm2, %v12233_v53, %v12109_v25  ;;  %v2780_v41 = vld [vmem:[%s14951_s2 + $0x30] sm:$0xff] }
 0x2de   :  { %v3052_v58 = vsel %vm3051_vm7, %v12031_v27, %v3050_v63  ;;  %v2710_v4 = vmax.f32 %v2542_v57, %v2549_v7  ;;  %v4650_v10 = vsel %vm3049_vm6, %v12091_v56, %v4649_v23  ;;  %v3059_v5 = vsel %vm3049_vm6, %v12073_v49, %v3058_v24  ;;  %v16369_v24 = vld [vmem:[#allocation100_spill] sm:$0xff]  ;;  %v16374_v53 = vld [vmem:[#allocation181_spill] sm:$0xff] }
 0x2df   :  { %v3054_v6 = vsel %vm3053_vm8, %v12037_v29, %v3052_v58  ;;  %v16366_v46 = vmax.f32 %v16230_v60, %v16229_v16  ;;  %v4651_v7 = vsel %vm3051_vm7, %v12097_v39, %v4650_v10  ;;  %v3060_v57 = vsel %vm3051_vm7, %v12079_v47, %v3059_v5 }
 0x2e0   :  { %8525 = vmatmul.mubr.msk.f32.vlgmr.msra.gmra.mxu1 %vm394_vm1, %v3054_v6  ;;  %v4654_v50 = vsel %vm3043_vm3, %v12121_v34, %v4653_v26  ;;  %v4652_v16 = vsel %vm3053_vm8, %v12103_v19, %v4651_v7  ;;  %v16367_v60 = vmov 0.0   ;;  %v12373_v58 = vrot.slane %v2710_v4, %v16232_v54  ;;  %v2779_v4 = vld [vmem:[%s14951_s2 + $0x28] sm:$0xff] }
 0x2e1   :  { %v12356_v63 = vrot.slane %v16366_v46, %v16232_v54  ;;  %8546 = vmatpush3.msra.mxu1 %v2781_v21  ;;  %8527 = vmatprep.mubr.msk.f32.mxu1 %vm9209_vm0, %v16367_v60  ;;  %v4655_v23 = vsel %vm3045_vm4, %v12127_v59, %v4654_v50  ;;  %v7543_v6 = vrot.slane %v16369_v24, 9  ;;  %v3061_v21 = vsel %vm3053_vm8, %v12085_v35, %v3060_v57  ;;  %v16370_v26 = vld [vmem:[#allocation104_spill] sm:$0xff] }
 0x2e2   :  { %16368 = vst [vmem:[#allocation119_spill] sm:$0xff] %v12373_v58  ;;  %8821 = vmatmul.mubr.msk.f32.vlgmr.msra.gmra.mxu0 %vm394_vm1, %v4652_v16  ;;  %8547 = vmatprep.subr.mxu1 %v16367_v60  ;;  %v4656_v10 = vsel %vm3047_vm5, %v12133_v18, %v4655_v23  ;;  %v3062_v5 = vsel %vm3041_vm2, %v12097_v39, %v12091_v56  ;;  %v7549_v46 = vrot.slane %v16370_v26, 9  ;;  %v16371_v7 = vld [vmem:[#allocation180_spill] sm:$0xff]  ;;  %v16372_v23 = vld [vmem:[#allocation97_spill] sm:$0xff]  ;;  %v16375_v39 = vld [vmem:[#allocation182_spill] sm:$0xff] }
 0x2e3   :  { %8548 = vmatpush3.msra.mxu1 %v2780_v41  ;;  %8823 = vmatprep.mubr.msk.f32.mxu0 %vm9209_vm0, %v16367_v60  ;;  %v4657_v57 = vsel %vm3049_vm6, %v12139_v14, %v4656_v10  ;;  %v3063_v16 = vsel %vm3043_vm3, %v12103_v19, %v3062_v5  ;;  %v16373_v11 = vrot.slane %v16372_v23, 9  ;;  %v2569_v10 = vmax.f32 %v16369_v24, %v7543_v6  ;;  %v16377_v24 = vld [vmem:[#allocation95_spill] sm:$0xff] }
 0x2e4   :  { %8528 = vmatmul.mubr.msk.f32.gmra.mxu1 %vm394_vm1, %v3061_v21  ;;  %v4658_v41 = vsel %vm3051_vm7, %v12373_v58, %v4657_v57  ;;  %8549 = vmatprep.subr.mxu1 %v16367_v60  ;;  %v3064_v50 = vsel %vm3045_vm4, %v12109_v25, %v3063_v16  ;;  %v2575_v57 = vmax.f32 %v16370_v26, %v7549_v46  ;;  %v16378_v6 = vrot.slane %v16377_v24, 9  ;;  %v16380_v5 = vld [vmem:[#allocation51_spill] sm:$0xff]  ;;  %v16385_v26 = vld [vmem:[#allocation70_spill] sm:$0xff] }
 0x2e5   :  { %v2567_v47 = vmax.f32 %v16372_v23, %v16373_v11  ;;  %v4659_v19 = vsel %vm3053_vm8, %v12242_v36, %v4658_v41  ;;  %8530 = vmatprep.mubr.msk.f32.mxu1 %vm9209_vm0, %v16367_v60  ;;  %8550 = vmatpush3.msra.mxu1 %v2779_v4  ;;  %v16376_v11 = vld [vmem:[#allocation81_spill] sm:$0xff]  ;;  %v16381_v36 = vld [vmem:[#allocation58_spill] sm:$0xff]  ;;  %5197 = vst.msk [vmem:[#allocation2 + $0x4] sm:$0xf] %vm5195_vm9, %v16367_v60  ;;  %5198 = vst.msk [vmem:[#allocation2 + $0x8] sm:$0xf] %vm5195_vm9, %v16367_v60 }
 0x2e6   :  { %v3065_v21 = vsel %vm3047_vm5, %v16376_v11, %v3064_v50  ;;  %8824 = vmatmul.mubr.msk.f32.gmra.mxu0 %vm394_vm1, %v4659_v19  ;;  %v2576_v23 = vmax.f32 %v16377_v24, %v16378_v6  ;;  %v16382_v4 = vmax.f32 %v16380_v5, %v16381_v36  ;;  %v16384_v50 = vld [vmem:[#allocation63_spill] sm:$0xff]  ;;  %v16387_v24 = vld [vmem:[#allocation60_spill] sm:$0xff]  ;;  %v4660_v36 = vsel %vm3041_vm2, %v12254_v2, %v12248_v44  ;;  %v16402_v44 = vld [vmem:[#allocation85_spill] sm:$0xff] }
 0x2e7   :  { %v3066_v16 = vsel %vm3049_vm6, %v12121_v34, %v3065_v21  ;;  %v2721_v41 = vmax.f32 %v2567_v47, %v16379_v33  ;;  %v16386_v46 = vmax.f32 %v16384_v50, %v16385_v26  ;;  %8826 = vmatprep.mubr.msk.f32.mxu0 %vm9209_vm0, %v16367_v60  ;;  %v2722_v47 = vmax.f32 %v16387_v24, %v2575_v57  ;;  %v2778_v33 = vld [vmem:[%s14951_s2 + $0x20] sm:$0xff]  ;;  %v16426_v2 = vld [vmem:[#allocation153_spill] sm:$0xff] }
 0x2e8   :  { %v12428_v25 = vrot.slane %v16382_v4, %v16232_v54  ;;  %v3067_v21 = vsel %vm3051_vm7, %v12127_v59, %v3066_v16  ;;  %v2723_v6 = vmax.f32 %v2569_v10, %v2576_v23  ;;  %v16388_v4 = vld [vmem:[#allocation59_spill] sm:$0xff]  ;;  %v16389_v16 = vld [vmem:[#allocation57_spill] sm:$0xff]  ;;  %v4661_v57 = vsel %vm3043_vm3, %v12275_v8, %v4660_v36  ;;  %8551 = vmatprep.subr.mxu1 %v16367_v60 }
 0x2e9   :  { %v12434_v19 = vrot.slane %v16386_v46, %v16232_v54  ;;  %v3068_v5 = vsel %vm3053_vm8, %v12133_v18, %v3067_v21  ;;  %v16390_v50 = vmax.f32 %v16388_v4, %v16389_v16  ;;  %v12460_v46 = vrot.slane %v2721_v41, %v16232_v54  ;;  %v16393_v10 = vld [vmem:[#allocation113_spill] sm:$0xff]  ;;  %v2777_v4 = vld [vmem:[%s14951_s2 + $0x18] sm:$0xff]  ;;  %v16395_v16 = vld [vmem:[#allocation179_spill] sm:$0xff]  ;;  %8552 = vmatpush3.msra.mxu1 %v2778_v33 }
 0x2ea   :  { %16383 = vst [vmem:[#allocation118_spill] sm:$0xff] %v12428_v25  ;;  %8531 = vmatmul.mubr.msk.f32.gmra.mxu1 %vm394_vm1, %v3068_v5  ;;  %v4662_v21 = vsel %vm3045_vm4, %v12428_v25, %v4661_v57  ;;  %v16394_v23 = vrot.slane %v16393_v10, 9  ;;  %v16397_v5 = vld [vmem:[#allocation64_spill] sm:$0xff]  ;;  %v16400_v25 = vld [vmem:[#allocation5_spill] sm:$0xff]  ;;  %v12486_v36 = vrot.slane %v2723_v6, %v16232_v54  ;;  %v3069_v33 = vsel %vm3041_vm2, %v12145_v13, %v12139_v14 }
 0x2eb   :  { %v12453_v26 = vrot.slane %v16390_v50, %v16232_v54  ;;  %16392 = vst [vmem:[#allocation121_spill] sm:$0xff] %v12460_v46  ;;  %v12472_v50 = vrot.slane %v2722_v47, %v16232_v54  ;;  %8533 = vmatprep.mubr.msk.f32.mxu1 %vm9209_vm0, %v16367_v60  ;;  %v16398_v57 = vld [vmem:[#allocation72_spill] sm:$0xff]  ;;  %8553 = vmatprep.subr.mxu1 %v16367_v60  ;;  %5201 = vst.msk [vmem:[#allocation2 + $0x14] sm:$0xf] %vm5195_vm9, %v16367_v60 }
 0x2ec   :  { %v2583_v24 = vmax.f32 %v16393_v10, %v16394_v23  ;;  %v16399_v10 = vmax.f32 %v16397_v5, %v16398_v57  ;;  %16401 = vst [vmem:[#allocation138_spill] sm:$0xff] %v12486_v36  ;;  %v16403_v57 = vld [vmem:[#allocation82_spill] sm:$0xff]  ;;  %8554 = vmatpush3.msra.mxu1 %v2777_v4  ;;  %5202 = vst.msk [vmem:[#allocation2 + $0x18] sm:$0xf] %vm5195_vm9, %v16367_v60 }
 0x2ed   :  { %16391 = vst [vmem:[#allocation120_spill] sm:$0xff] %v12453_v26  ;;  %16396 = vst [vmem:[#allocation126_spill] sm:$0xff] %v12472_v50  ;;  %v4663_v41 = vsel %vm3047_vm5, %v12453_v26, %v4662_v21  ;;  %8555 = vmatprep.subr.mxu1 %v16367_v60 }
 0x2ee   :  { %v12482_v23 = vrot.slane %v16399_v10, %v16232_v54  ;;  %v4664_v47 = vsel %vm3049_vm6, %v12460_v46, %v4663_v41  ;;  %v2730_v21 = vmax.f32 %v2583_v24, %v16402_v44  ;;  %v16404_v10 = vld [vmem:[#allocation106_spill] sm:$0xff]  ;;  %v3070_v41 = vsel %vm3043_vm3, %v12434_v19, %v3069_v33  ;;  %v16406_v46 = vld [vmem:[#allocation149_spill] sm:$0xff]  ;;  %5196 = vst.msk [vmem:[#allocation2] sm:$0xf] %vm5195_vm9, %v16367_v60 }
 0x2ef   :  { %v4665_v5 = vsel %vm3051_vm7, %v12472_v50, %v4664_v47  ;;  %v16405_v8 = vmax.f32 %v16403_v57, %v16404_v10  ;;  %v16407_v44 = vrot.slane %v16406_v46, 9  ;;  %v3071_v47 = vsel %vm3045_vm4, %v12148_v40, %v3070_v41  ;;  %v16410_v41 = vld [vmem:[#allocation171_spill] sm:$0xff]  ;;  %5199 = vst.msk [vmem:[#allocation2 + $0xc] sm:$0xf] %vm5195_vm9, %v16367_v60  ;;  %5200 = vst.msk [vmem:[#allocation2 + $0x10] sm:$0xf] %vm5195_vm9, %v16367_v60 }
 0x2f0   :  { %v4666_v26 = vsel %vm3053_vm8, %v12486_v36, %v4665_v5  ;;  %v12511_v14 = vrot.slane %v2730_v21, %v16232_v54  ;;  %v3072_v4 = vsel %vm3047_vm5, %v12482_v23, %v3071_v47  ;;  %v16409_v21 = vld [vmem:[#allocation110_spill] sm:$0xff]  ;;  %5203 = vst.msk [vmem:[#allocation2 + $0x1c] sm:$0xf] %vm5195_vm9, %v16367_v60 }
 0x2f1   :  { %v12501_v6 = vrot.slane %v16405_v8, %v16232_v54  ;;  %v2619_v24 = vmax.f32 %v16406_v46, %v16407_v44  ;;  %v4667_v8 = vsel %vm3041_vm2, %v12166_v43, %v12356_v63  ;;  %v2776_v46 = vld [vmem:[%s14951_s2 + $0x10] sm:$0xff]  ;;  %8827 = vmatmul.mubr.msk.f32.gmra.mxu0 %vm394_vm1, %v4666_v26  ;;  %v3076_v63 = vsel %vm3041_vm2, %v12157_v1, %v12154_v52 }
 0x2f2   :  { %16408 = vst [vmem:[#allocation129_spill] sm:$0xff] %v12511_v14  ;;  %v4668_v5 = vsel %vm3043_vm3, %v12169_v3, %v4667_v8  ;;  %v3073_v57 = vsel %vm3049_vm6, %v12511_v14, %v3072_v4  ;;  %8829 = vmatprep.mubr.msk.f32.mxu0 %vm9209_vm0, %v16367_v60  ;;  %v3077_v10 = vsel %vm3043_vm3, %v12160_v31, %v3076_v63 }
 0x2f3   :  { %v2745_v33 = vmax.f32 %v16409_v21, %v2619_v24  ;;  %v4669_v26 = vsel %vm3045_vm4, %v12172_v12, %v4668_v5  ;;  %v1576_v44 = vcombine.high %v16410_v41, %v16410_v41  ;;  %v3074_v24 = vsel %vm3051_vm7, %v12501_v6, %v3073_v57  ;;  %8556 = vmatpush3.msra.mxu1 %v2776_v46  ;;  %v16412_v41 = vld [vmem:[#allocation161_spill] sm:$0xff] }
 0x2f4   :  { %v4670_v8 = vsel %vm3047_vm5, %v12175_v32, %v4669_v26  ;;  %v3078_v4 = vsel %vm3045_vm4, %v12163_v30, %v3077_v10  ;;  %v3075_v21 = vsel %vm3053_vm8, %v12151_v48, %v3074_v24  ;;  %v16413_v36 = vrot.slane %v16412_v41, 9  ;;  %8557 = vmatprep.subr.mxu1 %v16367_v60 }
 0x2f5   :  { %v12544_v47 = vrot.slane %v2745_v33, %v16232_v54  ;;  %v3079_v5 = vsel %vm3047_vm5, %v12166_v43, %v3078_v4  ;;  %v7621_v63 = vrot.slane %v1576_v44, 9  ;;  %v2775_v33 = vld [vmem:[%s14951_s2 + $0x8] sm:$0xff]  ;;  %8534 = vmatmul.mubr.msk.f32.gmra.mxu1 %vm394_vm1, %v3075_v21  ;;  %v4674_v10 = vsel %vm3041_vm2, %v12190_v51, %v12187_v15 }
 0x2f6   :  { %v2640_v57 = vmax.f32 %v16412_v41, %v16413_v36  ;;  %v3080_v26 = vsel %vm3049_vm6, %v12169_v3, %v3079_v5  ;;  %v3083_v36 = vsel %vm3041_vm2, %v12181_v37, %v12178_v42  ;;  %8536 = vmatprep.mubr.msk.f32.mxu1 %vm9209_vm0, %v16367_v60  ;;  %v4675_v21 = vsel %vm3043_vm3, %v12239_v61, %v4674_v10 }
 0x2f7   :  { %16411 = vst [vmem:[#allocation142_spill] sm:$0xff] %v12544_v47  ;;  %v4671_v46 = vsel %vm3049_vm6, %v12544_v47, %v4670_v8  ;;  %v3081_v8 = vsel %vm3051_vm7, %v12172_v12, %v3080_v26  ;;  %v2647_v4 = vmax.f32 %v1576_v44, %v7621_v63  ;;  %v4676_v50 = vsel %vm3045_vm4, %v12196_v45, %v4675_v21  ;;  %v16414_v44 = vld [vmem:[#allocation177_spill] sm:$0xff]  ;;  %v2774_v21 = vld [vmem:[%s14951_s2] sm:$0xff] }
 0x2f8   :  { %v4672_v24 = vsel %vm3051_vm7, %v12181_v37, %v4671_v46  ;;  %v3082_v41 = vsel %vm3053_vm8, %v12175_v32, %v3081_v8  ;;  %v3084_v46 = vsel %vm3043_vm3, %v12184_v38, %v3083_v36  ;;  %8558 = vmatpush3.msra.mxu1 %v2775_v33  ;;  %v4677_v63 = vsel %vm3047_vm5, %v16414_v44, %v4676_v50  ;;  %v16416_v36 = vld [vmem:[#allocation168_spill] sm:$0xff] }
 0x2f9   :  { %v4673_v5 = vsel %vm3053_vm8, %v12184_v38, %v4672_v24  ;;  %v2759_v26 = vmax.f32 %v2640_v57, %v2647_v4  ;;  %v3085_v10 = vsel %vm3045_vm4, %v12187_v15, %v3084_v46  ;;  %v16415_v24 = vrot.slane %v16371_v7, 9  ;;  %8537 = vmatmul.mubr.msk.f32.gmra.mxu1 %vm394_vm1, %v3082_v41  ;;  %v16420_v46 = vld [vmem:[#allocation178_spill] sm:$0xff]  ;;  %8559 = vmatprep.subr.mxu1 %v16367_v60 }
 0x2fa   :  { %8830 = vmatmul.mubr.msk.f32.gmra.mxu0 %vm394_vm1, %v4673_v5  ;;  %v4678_v33 = vsel %vm3049_vm6, %v16416_v36, %v4677_v63  ;;  %v3086_v57 = vsel %vm3047_vm5, %v12190_v51, %v3085_v10  ;;  %v16417_v50 = vrot.slane %v16395_v16, 9  ;;  %8539 = vmatprep.mubr.msk.f32.mxu1 %vm9209_vm0, %v16367_v60  ;;  %v16421_v63 = vld [vmem:[#allocation176_spill] sm:$0xff]  ;;  %v16423_v61 = vrot.slane %v16400_v25, 9  ;;  %v16424_v51 = vld [vmem:[#allocation6_spill] sm:$0xff] }
 0x2fb   :  { %v2665_v8 = vmax.f32 %v16371_v7, %v16415_v24  ;;  %8832 = vmatprep.mubr.msk.f32.mxu0 %vm9209_vm0, %v16367_v60  ;;  %v16418_v7 = vld [vmem:[#allocation4_spill] sm:$0xff]  ;;  %v12611_v41 = vrot.slane %v2759_v26, %v16232_v54  ;;  %v4679_v24 = vsel %vm3051_vm7, %v16420_v46, %v4678_v33  ;;  %v3087_v10 = vsel %vm3049_vm6, %v16421_v63, %v3086_v57  ;;  %v16425_v33 = vld [vmem:[#allocation139_spill] sm:$0xff] }
 0x2fc   :  { %v2666_v4 = vmax.f32 %v16395_v16, %v16417_v50  ;;  %v7648_v5 = vrot.slane %v16418_v7, 9  ;;  %v16422_v50 = vrot.slane %v16375_v39, 9  ;;  %v3088_v32 = vsel %vm3051_vm7, %v12196_v45, %v3087_v10  ;;  %v16429_v10 = vld [vmem:[#allocation145_spill] sm:$0xff]  ;;  %8560 = vmatpush3.msra.mxu1 %v2774_v21 }
 0x2fd   :  { %16419 = vst [vmem:[#allocation141_spill] sm:$0xff] %v12611_v41  ;;  %v2673_v26 = vmax.f32 %v16400_v25, %v16423_v61  ;;  %v2770_v31 = vmax.f32 %v2665_v8, %v16424_v51  ;;  %v16427_v14 = vmax.f32 %v16425_v33, %v16426_v2  ;;  %v3089_v57 = vsel %vm3053_vm8, %v16414_v44, %v3088_v32  ;;  %v16430_v45 = vld [vmem:[#allocation101_spill] sm:$0xff]  ;;  %v16431_v25 = vld [vmem:[#allocation114_spill] sm:$0xff] }
 0x2fe   :  { %v2671_v47 = vmax.f32 %v16375_v39, %v16422_v50  ;;  %v4680_v39 = vsel %vm3053_vm8, %v12611_v41, %v4679_v24  ;;  %v4681_v51 = vsel %vm3041_vm2, %v16431_v25, %v16430_v45  ;;  %8540 = vmatmul.mubr.msk.f32.gmra.mxu1 %vm394_vm1, %v3089_v57  ;;  %v16433_v2 = vld [vmem:[#allocation122_spill] sm:$0xff]  ;;  %v16434_v24 = vld [vmem:[#allocation47_spill] sm:$0xff]  ;;  %v1661_v57 = vcombine.high %v16395_v16, %v16395_v16 }
 0x2ff   :  { %v12632_v12 = vrot.slane %v16427_v14, %v16232_v54  ;;  %8833 = vmatmul.mubr.msk.f32.gmra.mxu0 %vm394_vm1, %v4680_v39  ;;  %v2771_v14 = vmax.f32 %v2666_v4, %v2673_v26  ;;  %v12646_v61 = vrot.slane %v2770_v31, %v16232_v54  ;;  %v4682_v8 = vsel %vm3043_vm3, %v16433_v2, %v4681_v51  ;;  %v16436_v4 = vld [vmem:[#allocation65_spill] sm:$0xff] }
 0x300   :  { %v2769_v50 = vmax.f32 %v16429_v10, %v2671_v47  ;;  %v7496_v32 = vrot.slane %v16434_v24, 9  ;;  %8835 = vmatprep.mubr.msk.f32.mxu0 %vm9209_vm0, %v16367_v60  ;;  %v4683_v21 = vsel %vm3045_vm4, %v12326_v55, %v4682_v8  ;;  %8542 = vmatprep.mubr.msk.f32.mxu1 %vm9209_vm0, %v16367_v60  ;;  %v3090_v31 = vsel %vm3041_vm2, %v16420_v46, %v16416_v36  ;;  %v16439_v55 = vld [vmem:[#allocation74_spill] sm:$0xff] }
 0x301   :  { %16428 = vst [vmem:[#allocation130_spill] sm:$0xff] %v12632_v12  ;;  %16432 = vst [vmem:[#allocation151_spill] sm:$0xff] %v12646_v61  ;;  %v7503_v26 = vrot.slane %v16436_v4, 9  ;;  %v12665_v33 = vrot.slane %v2771_v14, %v16232_v54  ;;  %v4684_v39 = vsel %vm3047_vm5, %v12632_v12, %v4683_v21  ;;  %v1695_v10 = vcombine.high %v16418_v7, %v16418_v7  ;;  %v16440_v21 = vld [vmem:[#allocation94_spill] sm:$0xff] }
 0x302   :  { %v12654_v47 = vrot.slane %v2769_v50, %v16232_v54  ;;  %8582 = vmatprep.subr.mxu1 %v16367_v60  ;;  %v16438_v51 = vrot.slane %v16374_v53, 9  ;;  %v2674_v14 = vmax.f32 %v16418_v7, %v7648_v5  ;;  %v16441_v12 = vmax.f32 %v16439_v55, %v16440_v21  ;;  %8543 = vmatmul.mubr.msk.f32.gmra.mxu1 %vm394_vm1, %v3090_v31  ;;  %v16443_v21 = vld [vmem:[#allocation132_spill] sm:$0xff] }
 0x303   :  { %16437 = vst [vmem:[#allocation170_spill] sm:$0xff] %v12665_v33  ;;  %v7641_v25 = vrot.slane %v1661_v57, 9  ;;  %v7649_v45 = vrot.slane %v1695_v10, 9  ;;  %8561 = vmatprep.mubr.msk.f32.mxu1 %vm9209_vm0, %v16367_v60  ;;  %v2529_v5 = vmax.f32 %v16436_v4, %v7503_v26 }
 0x304   :  { %16435 = vst [vmem:[#allocation169_spill] sm:$0xff] %v12654_v47  ;;  %v4685_v50 = vsel %vm3049_vm6, %v12654_v47, %v4684_v39  ;;  %v2668_v8 = vmax.f32 %v16374_v53, %v16438_v51  ;;  %v12684_v2 = vrot.slane %v16441_v12, %v16232_v54  ;;  %v3256_v39 = vsel %vm3043_vm3, %v12019_v62, %v12278_v22  ;;  %v16442_v51 = vld [vmem:[#allocation123_spill] sm:$0xff]  ;;  %v16446_v47 = vld [vmem:[#allocation124_spill] sm:$0xff] }
 0x305   :  { %v4686_v16 = vsel %vm3051_vm7, %v12646_v61, %v4685_v50  ;;  %v3257_v55 = vsel %vm3045_vm4, %v12025_v28, %v3256_v39  ;;  %v2522_v12 = vmax.f32 %v16434_v24, %v7496_v32  ;;  %v2667_v31 = vmax.f32 %v1661_v57, %v7641_v25  ;;  %v16447_v39 = vld [vmem:[#allocation137_spill] sm:$0xff]  ;;  %v16450_v32 = vld [vmem:[#allocation146_spill] sm:$0xff] }
 0x306   :  { %v4687_v7 = vsel %vm3053_vm8, %v12665_v33, %v4686_v16  ;;  %v2675_v50 = vmax.f32 %v1695_v10, %v7649_v45  ;;  %v3258_v22 = vsel %vm3047_vm5, %v16442_v51, %v3257_v55  ;;  %v16444_v16 = vld [vmem:[#allocation160_spill] sm:$0xff]  ;;  %v16448_v53 = vmax.f32 %v16446_v47, %v16447_v39 }
 0x307   :  { %8836 = vmatmul.mubr.msk.f32.gmra.mxu0 %vm394_vm1, %v4687_v7  ;;  %v16445_v33 = vmax.f32 %v16443_v21, %v16444_v16  ;;  %v3259_v45 = vsel %vm3049_vm6, %v12684_v2, %v3258_v22  ;;  %v2697_v25 = vmax.f32 %v2522_v12, %v2529_v5  ;;  %v3262_v4 = vsel %vm3041_vm2, %v16450_v32, %v12037_v29  ;;  %v7678_v22 = vld [vmem:[%s14951_s2 + $0xb0] sm:$0xff] }
 0x308   :  { %v12713_v24 = vrot.slane %v16448_v53, %v16232_v54  ;;  %8838 = vmatprep.mubr.msk.f32.mxu0 %vm9209_vm0, %v16367_v60  ;;  %v2772_v26 = vmax.f32 %v2667_v31, %v2674_v14  ;;  %v3260_v57 = vsel %vm3051_vm7, %v12296_v17, %v3259_v45  ;;  %v7679_v53 = vld [vmem:[%s14951_s2 + $0xb8] sm:$0xff]  ;;  %v16451_v14 = vld [vmem:[#allocation125_spill] sm:$0xff] }
 0x309   :  { %v12707_v61 = vrot.slane %v16445_v33, %v16232_v54  ;;  %v2773_v33 = vmax.f32 %v2668_v8, %v2675_v50  ;;  %v3261_v10 = vsel %vm3053_vm8, %v12031_v27, %v3260_v57  ;;  %v7573_v55 = vrot.slane %v16451_v14, 9  ;;  %v16454_v57 = vld [vmem:[#allocation21_spill] sm:$0xff] }
 0x30a   :  { %16449 = vst [vmem:[#allocation42_spill] sm:$0xff] %v12713_v24  ;;  %v12738_v12 = vrot.slane %v2772_v26, %v16232_v54  ;;  %8562 = vmatmul.mubr.msk.f32.vlgmr.msra.gmra.mxu1 %vm394_vm1, %v3261_v10  ;;  %v12752_v21 = vrot.slane %v2697_v25, %v16232_v54  ;;  %v7677_v25 = vld [vmem:[%s14951_s2 + $0xa8] sm:$0xff] }
 0x30b   :  { %v3263_v47 = vsel %vm3043_vm3, %v12707_v61, %v3262_v4  ;;  %v4283_v8 = vsel %vm3041_vm2, %v12055_v9, %v12707_v61  ;;  %v4645_v5 = vrot.slane %v2773_v33, %v16232_v54  ;;  %8583 = vmatpush3.msra.mxu1 %v7679_v53  ;;  %8564 = vmatprep.mubr.msk.f32.mxu1 %vm9209_vm0, %v16367_v60  ;;  %v16453_v33 = vld [vmem:[#allocation30_spill] sm:$0xff] }
 0x30c   :  { %v3264_v7 = vsel %vm3045_vm4, %v12055_v9, %v3263_v47  ;;  %16452 = vst [vmem:[#allocation45_spill] sm:$0xff] %v12738_v12  ;;  %v4284_v50 = vsel %vm3043_vm3, %v12061_v20, %v4283_v8  ;;  %8584 = vmatprep.subr.mxu1 %v16367_v60  ;;  %v2704_v53 = vmax.f32 %v16454_v57, %v16453_v33  ;;  %v7675_v57 = vld [vmem:[%s14951_s2 + $0x98] sm:$0xff] }
 0x30d   :  { %v3265_v31 = vsel %vm3047_vm5, %v12061_v20, %v3264_v7  ;;  %v4285_v39 = vsel %vm3045_vm4, %v12067_v0, %v4284_v50  ;;  %v4688_v45 = vsel %vm3041_vm2, %v4645_v5, %v12738_v12  ;;  %8585 = vmatpush3.msra.mxu1 %v7678_v22  ;;  %v3269_v7 = vsel %vm3041_vm2, %v12091_v56, %v12085_v35  ;;  %v16456_v5 = vld [vmem:[#allocation116_spill] sm:$0xff]  ;;  %v7676_v50 = vld [vmem:[%s14951_s2 + $0xa0] sm:$0xff] }
 0x30e   :  { %v3266_v16 = vsel %vm3049_vm6, %v12067_v0, %v3265_v31  ;;  %v4286_v26 = vsel %vm3047_vm5, %v12073_v49, %v4285_v39  ;;  %8839 = vmatmul.mubr.msk.f32.gmra.mxu0 %vm394_vm1, %v4688_v45  ;;  %8586 = vmatprep.subr.mxu1 %v16367_v60  ;;  %v12783_v8 = vrot.slane %v2704_v53, %v16232_v54  ;;  %v16458_v45 = vld [vmem:[#allocation75_spill] sm:$0xff] }
 0x30f   :  { %v3267_v4 = vsel %vm3051_vm7, %v12073_v49, %v3266_v16  ;;  %v12775_v10 = vsel %vm3049_vm6, %v12752_v21, %v4286_v26  ;;  %v3270_v31 = vsel %vm3043_vm3, %v16456_v5, %v3269_v7  ;;  %v2599_v22 = vmax.f32 %v16451_v14, %v7573_v55  ;;  %8587 = vmatpush3.msra.mxu1 %v7677_v25  ;;  %v16457_v16 = vld [vmem:[#allocation79_spill] sm:$0xff]  ;;  %v16459_v14 = vld [vmem:[#allocation77_spill] sm:$0xff] }
 0x310   :  { %v3268_v47 = vsel %vm3053_vm8, %v12752_v21, %v3267_v4  ;;  %16455 = vst [vmem:[#allocation150_spill] sm:$0xff] %v12775_v10  ;;  %v3271_v39 = vsel %vm3045_vm4, %v16457_v16, %v3270_v31  ;;  %v3276_v4 = vsel %vm3041_vm2, %v16458_v45, %v12133_v18  ;;  %v3283_v26 = vsel %vm3041_vm2, %v12154_v52, %v12151_v48  ;;  %v16460_v31 = vld [vmem:[#allocation93_spill] sm:$0xff]  ;;  %v16462_v45 = vld [vmem:[#allocation143_spill] sm:$0xff] }
 0x311   :  { %8565 = vmatmul.mubr.msk.f32.gmra.mxu1 %vm394_vm1, %v3268_v47  ;;  %v3272_v33 = vsel %vm3047_vm5, %v12783_v8, %v3271_v39  ;;  %8588 = vmatprep.subr.mxu1 %v16367_v60  ;;  %v2732_v55 = vmax.f32 %v16459_v14, %v2599_v22  ;;  %v3277_v25 = vsel %vm3043_vm3, %v12145_v13, %v3276_v4  ;;  %v16461_v39 = vld [vmem:[#allocation155_spill] sm:$0xff] }
 0x312   :  { %8567 = vmatprep.mubr.msk.f32.mxu1 %vm9209_vm0, %v16367_v60  ;;  %v3284_v53 = vsel %vm3043_vm3, %v12157_v1, %v3283_v26  ;;  %v3273_v47 = vsel %vm3049_vm6, %v16376_v11, %v3272_v33  ;;  %8589 = vmatpush3.msra.mxu1 %v7676_v50  ;;  %v3278_v7 = vsel %vm3045_vm4, %v12434_v19, %v3277_v25  ;;  %v7674_v33 = vld [vmem:[%s14951_s2 + $0x90] sm:$0xff] }
 0x313   :  { %v3285_v22 = vsel %vm3045_vm4, %v16460_v31, %v3284_v53  ;;  %v2753_v13 = vmax.f32 %v16462_v45, %v16461_v39  ;;  %v3274_v4 = vsel %vm3051_vm7, %v12121_v34, %v3273_v47  ;;  %v12823_v14 = vrot.slane %v2732_v55, %v16232_v54  ;;  %8590 = vmatprep.subr.mxu1 %v16367_v60  ;;  %v16463_v55 = vld [vmem:[#allocation117_spill] sm:$0xff]  ;;  %v16465_v39 = vld [vmem:[#allocation131_spill] sm:$0xff] }
 0x314   :  { %v3279_v26 = vsel %vm3047_vm5, %v12148_v40, %v3278_v7  ;;  %v3286_v50 = vsel %vm3047_vm5, %v12163_v30, %v3285_v22  ;;  %v3275_v25 = vsel %vm3053_vm8, %v12127_v59, %v3274_v4  ;;  %8591 = vmatpush3.msra.mxu1 %v7675_v57  ;;  %v1338_v47 = vcombine.high %v16463_v55, %v16463_v55  ;;  %v16464_v7 = vld [vmem:[#allocation90_spill] sm:$0xff]  ;;  %v7673_v57 = vld [vmem:[%s14951_s2 + $0x88] sm:$0xff]  ;;  %v16469_v55 = vld [vmem:[#allocation15_spill] sm:$0xff] }
 0x315   :  { %v3280_v53 = vsel %vm3049_vm6, %v12482_v23, %v3279_v26  ;;  %v16466_v45 = vmax.f32 %v16464_v7, %v16465_v39  ;;  %8568 = vmatmul.mubr.msk.f32.gmra.mxu1 %vm394_vm1, %v3275_v25  ;;  %8592 = vmatprep.subr.mxu1 %v16367_v60  ;;  %v3287_v26 = vsel %vm3049_vm6, %v12166_v43, %v3286_v50  ;;  %v16470_v39 = vld [vmem:[#allocation102_spill] sm:$0xff]  ;;  %v7672_v50 = vld [vmem:[%s14951_s2 + $0x80] sm:$0xff]  ;;  %v16472_v30 = vld [vmem:[#allocation68_spill] sm:$0xff] }
 0x316   :  { %v3281_v22 = vsel %vm3051_vm7, %v12823_v14, %v3280_v53  ;;  %8570 = vmatprep.mubr.msk.f32.mxu1 %vm9209_vm0, %v16367_v60  ;;  %8593 = vmatpush3.msra.mxu1 %v7674_v33  ;;  %v3290_v25 = vsel %vm3041_vm2, %v12178_v42, %v12713_v24  ;;  %v16468_v53 = vld [vmem:[#allocation3_spill] sm:$0xff]  ;;  %v3471_v33 = vsel %vm3041_vm2, %v12025_v28, %v12019_v62  ;;  %v7565_v41 = vrot.slane %v1338_v47, 9 }
 0x317   :  { %v12843_v12 = vrot.slane %v16466_v45, %v16232_v54  ;;  %v3282_v4 = vsel %vm3053_vm8, %v12501_v6, %v3281_v22  ;;  %v12863_v7 = vrot.slane %v16469_v55, %v16468_v53  ;;  %v7558_v45 = vrot.slane %v16470_v39, 9  ;;  %8594 = vmatprep.subr.mxu1 %v16367_v60  ;;  %v16471_v22 = vld [vmem:[#allocation41_spill] sm:$0xff]  ;;  %8876 = vmatprep.mubr.msk.f32.mxu0 %vm9209_vm0, %v16367_v60 }
 0x318   :  { %v3291_v10 = vsel %vm3043_vm3, %v12181_v37, %v3290_v25  ;;  %v16473_v55 = vmax.f32 %v16471_v22, %v16472_v30  ;;  %v12880_v24 = vrot.slane %v2753_v13, %v16232_v54  ;;  %8595 = vmatpush3.msra.mxu1 %v7673_v57  ;;  %v3472_v9 = vsel %vm3043_vm3, %v16442_v51, %v3471_v33  ;;  %v16474_v30 = vld [vmem:[#allocation108_spill] sm:$0xff] }
 0x319   :  { %16467 = vst [vmem:[#allocation61_spill] sm:$0xff] %v12843_v12  ;;  %v3292_v25 = vsel %vm3045_vm4, %v12184_v38, %v3291_v10  ;;  %8571 = vmatmul.mubr.msk.f32.gmra.mxu1 %vm394_vm1, %v3282_v4  ;;  %v3288_v28 = vsel %vm3051_vm7, %v12169_v3, %v3287_v26  ;;  %8596 = vmatprep.subr.mxu1 %v16367_v60  ;;  %v16475_v57 = vld [vmem:[#allocation164_spill] sm:$0xff] }
 0x31a   :  { %v3434_v42 = vrot.slane %v16473_v55, %v16232_v54  ;;  %v3293_v62 = vsel %vm3047_vm5, %v12187_v15, %v3292_v25  ;;  %v3473_v13 = vsel %vm3045_vm4, %v16474_v30, %v3472_v9  ;;  %8573 = vmatprep.mubr.msk.f32.mxu1 %vm9209_vm0, %v16367_v60  ;;  %8597 = vmatpush3.msra.mxu1 %v7672_v50  ;;  %v16476_v50 = vld [vmem:[#allocation19_spill] sm:$0xff] }
 0x31b   :  { %v3294_v51 = vsel %vm3049_vm6, %v12880_v24, %v3293_v62  ;;  %v3478_v4 = vsel %vm3041_vm2, %v12843_v12, %v16475_v57  ;;  %v3492_v26 = vsel %vm3041_vm2, %v12434_v19, %v12373_v58  ;;  %8619 = vmatprep.subr.mxu1 %v16367_v60  ;;  %v1592_v9 = vcombine.high %v12863_v7, %v12863_v7  ;;  %v16477_v62 = vld [vmem:[#allocation173_spill] sm:$0xff] }
 0x31c   :  { %v3474_v10 = vsel %vm3047_vm5, %v3434_v42, %v3473_v13  ;;  %v3701_v33 = vsel %vm3041_vm2, %v12073_v49, %v12067_v0  ;;  %v3289_v42 = vsel %vm3053_vm8, %v16476_v50, %v3288_v28  ;;  %v2584_v22 = vmax.f32 %v16470_v39, %v7558_v45  ;;  %v16480_v58 = vld [vmem:[#allocation129_spill] sm:$0xff] }
 0x31d   :  { %8574 = vmatmul.mubr.msk.f32.gmra.mxu1 %vm394_vm1, %v3289_v42  ;;  %v3295_v19 = vsel %vm3051_vm7, %v16421_v63, %v3294_v51  ;;  %v3479_v55 = vsel %vm3043_vm3, %v12061_v20, %v3478_v4  ;;  %v2591_v25 = vmax.f32 %v1338_v47, %v7565_v41  ;;  %v1610_v30 = vcombine.high %v16477_v62, %v16477_v62  ;;  %v16478_v47 = vld [vmem:[#allocation7_spill] sm:$0xff]  ;;  %v16483_v51 = vld [vmem:[#allocation109_spill] sm:$0xff] }
 0x31e   :  { %8576 = vmatprep.mubr.msk.f32.mxu1 %vm9209_vm0, %v16367_v60  ;;  %v12928_v28 = vsel %vm3041_vm2, %v16457_v16, %v16456_v5  ;;  %v3493_v39 = vsel %vm3043_vm3, %v12148_v40, %v3492_v26  ;;  %v3702_v45 = vsel %vm3043_vm3, %v12752_v21, %v3701_v33  ;;  %v16479_v4 = vld [vmem:[#allocation167_spill] sm:$0xff]  ;;  %v3480_v62 = vsel %vm3045_vm4, %v12067_v0, %v3479_v55 }
 0x31f   :  { %v2731_v13 = vmax.f32 %v2584_v22, %v2591_v25  ;;  %v3494_v41 = vsel %vm3045_vm4, %v12482_v23, %v3493_v39  ;;  %v3296_v42 = vsel %vm3053_vm8, %v16479_v4, %v3295_v19  ;;  %v7622_v40 = vrot.slane %v12863_v7, 9  ;;  %v16481_v21 = vld [vmem:[#allocation111_spill] sm:$0xff]  ;;  %v16482_v25 = vld [vmem:[#allocation166_spill] sm:$0xff] }
 0x320   :  { %v3495_v12 = vsel %vm3047_vm5, %v16480_v58, %v3494_v41  ;;  %v7623_v26 = vrot.slane %v1592_v9, 9  ;;  %v3486_v23 = vsel %vm3043_vm3, %v16481_v21, %v12928_v28  ;;  %v7629_v22 = vrot.slane %v1610_v30, 9 }
 0x321   :  { %8577 = vmatmul.mubr.msk.f32.gmra.mxu1 %vm394_vm1, %v3296_v42  ;;  %v3454_v33 = vrot.slane %v2731_v13, %v16232_v54  ;;  %v3475_v19 = vsel %vm3049_vm6, %v12031_v27, %v3474_v10  ;;  %v3694_v58 = vsel %vm3041_vm2, %v12296_v17, %v12684_v2  ;;  %v3703_v55 = vsel %vm3045_vm4, %v12085_v35, %v3702_v45  ;;  %v16484_v45 = vld [vmem:[#allocation96_spill] sm:$0xff] }
 0x322   :  { %8579 = vmatprep.mubr.msk.f32.mxu1 %vm9209_vm0, %v16367_v60  ;;  %v7630_v39 = vrot.slane %v16482_v25, 9  ;;  %v3481_v41 = vsel %vm3047_vm5, %v12073_v49, %v3480_v62  ;;  %v3695_v42 = vsel %vm3043_vm3, %v12031_v27, %v3694_v58  ;;  %v3715_v10 = vsel %vm3041_vm2, %v12823_v14, %v16483_v51 }
 0x323   :  { %v12963_v13 = vsel %vm3049_vm6, %v3454_v33, %v3495_v12  ;;  %v3297_v2 = vsel %vm3041_vm2, %v16416_v36, %v16414_v44  ;;  %v3487_v21 = vsel %vm3045_vm4, %v16484_v45, %v3486_v23  ;;  %v3696_v62 = vsel %vm3045_vm4, %v12037_v29, %v3695_v42  ;;  %v16485_v23 = vld [vmem:[#allocation175_spill] sm:$0xff]  ;;  %v16486_v42 = vld [vmem:[#allocation148_spill] sm:$0xff] }
 0x324   :  { %v2648_v12 = vmax.f32 %v12863_v7, %v7622_v40  ;;  %v3476_v33 = vsel %vm3051_vm7, %v12037_v29, %v3475_v19  ;;  %v3697_v14 = vsel %vm3047_vm5, %v16450_v32, %v3696_v62  ;;  %v3704_v58 = vsel %vm3047_vm5, %v12091_v56, %v3703_v55  ;;  %v16488_v55 = vld [vmem:[#allocation99_spill] sm:$0xff] }
 0x325   :  { %8580 = vmatmul.mubr.msk.f32.gmra.mxu1 %vm394_vm1, %v3297_v2  ;;  %v3482_v45 = vsel %vm3049_vm6, %v16485_v23, %v3481_v41  ;;  %v3499_v7 = vsel %vm3041_vm2, %v16486_v42, %v12157_v1  ;;  %v12994_v40 = vsel %vm3049_vm6, %v12707_v61, %v3697_v14  ;;  %v3705_v19 = vsel %vm3049_vm6, %v16456_v5, %v3704_v58  ;;  %v16487_v2 = vld [vmem:[#allocation92_spill] sm:$0xff]  ;;  %v7694_v41 = vld [vmem:[%s14951_s2 + $0xf8] sm:$0xff] }
 0x326   :  { %8598 = vmatprep.mubr.msk.f32.mxu1 %vm9209_vm0, %v16367_v60  ;;  %v16489_v62 = vmax.f32 %v16487_v2, %v16488_v55  ;;  %v3488_v42 = vsel %vm3047_vm5, %v12121_v34, %v3487_v21  ;;  %v3706_v61 = vsel %vm3051_vm7, %v16457_v16, %v3705_v19  ;;  %v3716_v14 = vsel %vm3043_vm3, %v12501_v6, %v3715_v10  ;;  %v16491_v21 = vld [vmem:[#allocation83_spill] sm:$0xff]  ;;  %v7693_v10 = vld [vmem:[%s14951_s2 + $0xf0] sm:$0xff] }
 0x327   :  { %v2649_v58 = vmax.f32 %v1592_v9, %v7623_v26  ;;  %v3477_v5 = vsel %vm3053_vm8, %v16450_v32, %v3476_v33  ;;  %v13017_v2 = vsel %vm3053_vm8, %v12783_v8, %v3706_v61  ;;  %v3717_v55 = vsel %vm3045_vm4, %v12151_v48, %v3716_v14 }
 0x328   :  { %v13002_v0 = vrot.slane %v16489_v62, %v16232_v54  ;;  %v3483_v62 = vsel %vm3051_vm7, %v16491_v21, %v3482_v45  ;;  %v3718_v26 = vsel %vm3047_vm5, %v12154_v52, %v3717_v55  ;;  %v2655_v33 = vmax.f32 %v1610_v30, %v7629_v22  ;;  %v7692_v30 = vld [vmem:[%s14951_s2 + $0xe8] sm:$0xff] }
 0x329   :  { %8599 = vmatmul.mubr.msk.f32.vlgmr.msra.gmra.mxu1 %vm394_vm1, %v3477_v5  ;;  %v3489_v5 = vsel %vm3049_vm6, %v12127_v59, %v3488_v42  ;;  %v3506_v45 = vsel %vm3041_vm2, %v12184_v38, %v12181_v37  ;;  %v3719_v19 = vsel %vm3049_vm6, %v12157_v1, %v3718_v26  ;;  %v3484_v42 = vsel %vm3053_vm8, %v12091_v56, %v3483_v62  ;;  %v7690_v26 = vld [vmem:[%s14951_s2 + $0xd8] sm:$0xff] }
 0x32a   :  { %16490 = vst [vmem:[#allocation56_spill] sm:$0xff] %v13002_v0  ;;  %v3500_v9 = vsel %vm3043_vm3, %v13002_v0, %v3499_v7  ;;  %8620 = vmatpush3.msra.mxu1 %v7694_v41  ;;  %8601 = vmatprep.mubr.msk.f32.mxu1 %vm9209_vm0, %v16367_v60  ;;  %v2656_v7 = vmax.f32 %v16482_v25, %v7630_v39  ;;  %v7691_v39 = vld [vmem:[%s14951_s2 + $0xe0] sm:$0xff]  ;;  %v16500_v1 = vld [vmem:[#allocation142_spill] sm:$0xff] }
 0x32b   :  { %8621 = vmatprep.subr.mxu1 %v16367_v60  ;;  %v13047_v22 = vsel %vm3051_vm7, %v16460_v31, %v3719_v19  ;;  %v3501_v41 = vsel %vm3045_vm4, %v12166_v43, %v3500_v9  ;;  %v2760_v61 = vmax.f32 %v2648_v12, %v2655_v33  ;;  %v3490_v25 = vsel %vm3051_vm7, %v12133_v18, %v3489_v5  ;;  %v16494_v5 = vld [vmem:[#allocation115_spill] sm:$0xff]  ;;  %v16495_v19 = vld [vmem:[#allocation10_spill] sm:$0xff] }
 0x32c   :  { %8622 = vmatpush3.msra.mxu1 %v7693_v10  ;;  %v2761_v14 = vmax.f32 %v2649_v58, %v2656_v7  ;;  %v13062_v55 = vsel %vm3043_vm3, %v12187_v15, %v3506_v45  ;;  %v16492_v12 = vcombine.high %v16478_v47, %v16478_v47  ;;  %v3729_v62 = vsel %vm3041_vm2, %v16421_v63, %v12880_v24  ;;  %v16493_v10 = vld [vmem:[#allocation88_spill] sm:$0xff] }
 0x32d   :  { %8602 = vmatmul.mubr.msk.f32.gmra.mxu1 %vm394_vm1, %v3484_v42  ;;  %8623 = vmatprep.subr.mxu1 %v16367_v60  ;;  %v1201_v9 = vcombine.high %v16493_v10, %v16493_v10  ;;  %v3502_v47 = vsel %vm3047_vm5, %v12169_v3, %v3501_v41  ;;  %v3730_v33 = vsel %vm3043_vm3, %v16479_v4, %v3729_v62 }
 0x32e   :  { %v1166_v58 = vrot.slane %v16492_v12, %v16468_v53  ;;  %8604 = vmatprep.mubr.msk.f32.mxu1 %vm9209_vm0, %v16367_v60  ;;  %8624 = vmatpush3.msra.mxu1 %v7692_v30  ;;  %v3491_v45 = vsel %vm3053_vm8, %v16494_v5, %v3490_v25  ;;  %v3508_v7 = vsel %vm3045_vm4, %v16495_v19, %v13062_v55  ;;  %v7689_v25 = vld [vmem:[%s14951_s2 + $0xd0] sm:$0xff] }
 0x32f   :  { %8625 = vmatprep.subr.mxu1 %v16367_v60  ;;  %v13089_v30 = vrot.slane %v2760_v61, %v16232_v54  ;;  %v3731_v42 = vsel %vm3045_vm4, %v16414_v44, %v3730_v33  ;;  %v3497_v41 = vsel %vm3051_vm7, %v12151_v48, %v12963_v13  ;;  %v3503_v13 = vsel %vm3049_vm6, %v16476_v50, %v3502_v47 }
 0x330   :  { %8626 = vmatpush3.msra.mxu1 %v7691_v39  ;;  %v13102_v39 = vrot.slane %v2761_v14, %v16232_v54  ;;  %v3732_v61 = vsel %vm3047_vm5, %v16416_v36, %v3731_v42  ;;  %v1168_v12 = vcombine.high %v1166_v58, %v1166_v58  ;;  %v7524_v10 = vrot.slane %v1166_v58, 9  ;;  %v16496_v14 = vld [vmem:[#allocation86_spill] sm:$0xff]  ;;  %v7688_v42 = vld [vmem:[%s14951_s2 + $0xc8] sm:$0xff] }
 0x331   :  { %8605 = vmatmul.mubr.msk.f32.gmra.mxu1 %vm394_vm1, %v3491_v45  ;;  %8627 = vmatprep.subr.mxu1 %v16367_v60  ;;  %v3733_v62 = vsel %vm3049_vm6, %v13089_v30, %v3732_v61  ;;  %v7531_v33 = vrot.slane %v1201_v9, 9  ;;  %v3509_v45 = vsel %vm3047_vm5, %v16496_v14, %v3508_v7  ;;  %v3498_v47 = vsel %vm3053_vm8, %v12154_v52, %v3497_v41  ;;  %v16497_v61 = vld [vmem:[#allocation13_spill] sm:$0xff]  ;;  %v7687_v7 = vld [vmem:[%s14951_s2 + $0xc0] sm:$0xff]  ;;  %v16498_v41 = vld [vmem:[#allocation8_spill] sm:$0xff] }
 0x332   :  { %8607 = vmatprep.mubr.msk.f32.mxu1 %vm9209_vm0, %v16367_v60  ;;  %8628 = vmatpush3.msra.mxu1 %v7690_v26  ;;  %v13120_v26 = vsel %vm3051_vm7, %v13102_v39, %v3733_v62  ;;  %v3504_v0 = vsel %vm3051_vm7, %v16497_v61, %v3503_v13  ;;  %v7525_v14 = vrot.slane %v1168_v12, 9  ;;  %v3510_v62 = vsel %vm3049_vm6, %v16479_v4, %v3509_v45  ;;  %v16499_v13 = vld [vmem:[#allocation80_spill] sm:$0xff] }
 0x333   :  { %8629 = vmatprep.subr.mxu1 %v16367_v60  ;;  %v2557_v19 = vmax.f32 %v1201_v9, %v7531_v33  ;;  %v7532_v21 = vrot.slane %v16499_v13, 9  ;;  %v3505_v63 = vsel %vm3053_vm8, %v16500_v1, %v3504_v0  ;;  %v3708_v61 = vsel %vm3041_vm2, %v12121_v34, %v16376_v11  ;;  %v16501_v33 = vld [vmem:[#allocation98_spill] sm:$0xff] }
 0x334   :  { %8630 = vmatpush3.msra.mxu1 %v7689_v25  ;;  %v1227_v25 = vrot.slane %v16498_v41, %v16468_v53  ;;  %v3511_v45 = vsel %vm3051_vm7, %v16414_v44, %v3510_v62  ;;  %v3709_v0 = vsel %vm3043_vm3, %v12127_v59, %v3708_v61 }
 0x335   :  { %8608 = vmatmul.mubr.msk.f32.gmra.mxu1 %vm394_vm1, %v3498_v47  ;;  %8631 = vmatprep.subr.mxu1 %v16367_v60  ;;  %v2550_v47 = vmax.f32 %v1166_v58, %v7524_v10  ;;  %v2551_v58 = vmax.f32 %v1168_v12, %v7525_v14  ;;  %v2558_v41 = vmax.f32 %v16499_v13, %v7532_v21 }
 0x336   :  { %8610 = vmatprep.mubr.msk.f32.mxu1 %vm9209_vm0, %v16367_v60  ;;  %8632 = vmatpush3.msra.mxu1 %v7688_v42  ;;  %v1235_v9 = vcombine.high %v1227_v25, %v1227_v25  ;;  %v1253_v42 = vcombine.high %v16501_v33, %v16501_v33  ;;  %v3512_v62 = vsel %vm3053_vm8, %v16416_v36, %v3511_v45  ;;  %v16503_v45 = vld [vmem:[#allocation141_spill] sm:$0xff] }
 0x337   :  { %8633 = vmatprep.subr.mxu1 %v16367_v60  ;;  %v2711_v10 = vmax.f32 %v2550_v47, %v2557_v19  ;;  %v2712_v12 = vmax.f32 %v2551_v58, %v2558_v41  ;;  %v3710_v19 = vsel %vm3045_vm4, %v12133_v18, %v3709_v0  ;;  %v3722_v14 = vsel %vm3041_vm2, %v12169_v3, %v12166_v43  ;;  %v16504_v33 = vld [vmem:[#allocation181_spill] sm:$0xff]  ;;  %v16505_v0 = vld [vmem:[#allocation172_spill] sm:$0xff] }
 0x338   :  { %8634 = vmatpush3.msra.mxu1 %v7687_v7  ;;  %v16502_v7 = vld [vmem:[#allocation159_spill] sm:$0xff]  ;;  %v7539_v61 = vrot.slane %v1235_v9, 9  ;;  %v7545_v13 = vrot.slane %v1253_v42, 9  ;;  %v3513_v58 = vsel %vm3041_vm2, %v16503_v45, %v16420_v46  ;;  %v3699_v41 = vsel %vm3051_vm7, %v16505_v0, %v12994_v40  ;;  %v16507_v46 = vld [vmem:[#allocation42_spill] sm:$0xff] }
 0x339   :  { %8611 = vmatmul.mubr.msk.f32.gmra.mxu1 %vm394_vm1, %v3505_v63  ;;  %8656 = vmatprep.subr.mxu1 %v16367_v60  ;;  %v1628_v63 = vcombine.high %v16502_v7, %v16502_v7  ;;  %v3657_v47 = vrot.slane %v2711_v10, %v16232_v54  ;;  %v1677_v7 = vcombine.high %v16504_v33, %v16504_v33 }
 0x33a   :  { %8613 = vmatprep.mubr.msk.f32.mxu1 %vm9209_vm0, %v16367_v60  ;;  %v3723_v10 = vsel %vm3043_vm3, %v16476_v50, %v3722_v14  ;;  %v13185_v45 = vrot.slane %v2712_v12, %v16232_v54  ;;  %v2565_v33 = vmax.f32 %v1235_v9, %v7539_v61  ;;  %v2571_v40 = vmax.f32 %v1253_v42, %v7545_v13  ;;  %v7708_v9 = vld [vmem:[%s14951_s2 + $0x130] sm:$0xff]  ;;  %v7707_v13 = vld [vmem:[%s14951_s2 + $0x128] sm:$0xff] }
 0x33b   :  { %v1642_v21 = vrot.slane %v1628_v63, %v16468_v53  ;;  %v7538_v63 = vrot.slane %v1227_v25, 9  ;;  %v16506_v53 = vld [vmem:[#allocation91_spill] sm:$0xff]  ;;  %v3724_v36 = vsel %vm3045_vm4, %v16507_v46, %v3723_v10  ;;  %v7643_v52 = vrot.slane %v1677_v7, 9  ;;  %v16509_v10 = vld [vmem:[#allocation22_spill] sm:$0xff] }
 0x33c   :  { %v7546_v1 = vrot.slane %v16506_v53, 9  ;;  %v4290_v42 = vsel %vm3043_vm3, %v12783_v8, %v12928_v28 }
 0x33d   :  { %8614 = vmatmul.mubr.msk.f32.gmra.mxu1 %vm394_vm1, %v3512_v62  ;;  %v3711_v62 = vsel %vm3047_vm5, %v3657_v47, %v3710_v19  ;;  %v3700_v19 = vsel %vm3053_vm8, %v12061_v20, %v3699_v41  ;;  %v1644_v44 = vcombine.high %v1642_v21, %v1642_v21  ;;  %v7636_v4 = vrot.slane %v1642_v21, 9  ;;  %v16508_v41 = vld [vmem:[#allocation107_spill] sm:$0xff] }
 0x33e   :  { %8616 = vmatprep.mubr.msk.f32.mxu1 %vm9209_vm0, %v16367_v60  ;;  %v3712_v14 = vsel %vm3049_vm6, %v13185_v45, %v3711_v62  ;;  %v2564_v12 = vmax.f32 %v1227_v25, %v7538_v63  ;;  %v2572_v61 = vmax.f32 %v16506_v53, %v7546_v1  ;;  %v4291_v8 = vsel %vm3045_vm4, %v16376_v11, %v4290_v42  ;;  %v16510_v1 = vld [vmem:[#allocation126_spill] sm:$0xff] }
 0x33f   :  { %v3713_v62 = vsel %vm3051_vm7, %v16508_v41, %v3712_v14  ;;  %v4303_v53 = vsel %vm3041_vm2, %v16460_v31, %v16510_v1  ;;  %v4292_v28 = vsel %vm3047_vm5, %v12121_v34, %v4291_v8  ;;  %v2669_v16 = vmax.f32 %v1677_v7, %v7643_v52  ;;  %v16512_v52 = vld [vmem:[#allocation103_spill] sm:$0xff]  ;;  %v7705_v7 = vld [vmem:[%s14951_s2 + $0x118] sm:$0xff] }
 0x340   :  { %v2718_v25 = vmax.f32 %v2564_v12, %v2571_v40  ;;  %v2719_v63 = vmax.f32 %v2565_v33, %v2572_v61  ;;  %v4293_v31 = vsel %vm3049_vm6, %v12127_v59, %v4292_v28  ;;  %v7637_v14 = vrot.slane %v1644_v44, 9  ;;  %v16513_v12 = vld [vmem:[#allocation147_spill] sm:$0xff] }
 0x341   :  { %8617 = vmatmul.mubr.msk.f32.gmra.mxu1 %vm394_vm1, %v3513_v58  ;;  %v7709_v58 = vld [vmem:[%s14951_s2 + $0x138] sm:$0xff]  ;;  %v4296_v40 = vsel %vm3041_vm2, %v16508_v41, %v13185_v45  ;;  %v4304_v61 = vsel %vm3043_vm3, %v16513_v12, %v4303_v53 }
 0x342   :  { %8635 = vmatprep.mubr.msk.f32.mxu1 %vm9209_vm0, %v16367_v60  ;;  %v4305_v8 = vsel %vm3045_vm4, %v12166_v43, %v4304_v61  ;;  %v2663_v28 = vmax.f32 %v1644_v44, %v7637_v14 }
 0x343   :  { %v4306_v53 = vsel %vm3047_vm5, %v12169_v3, %v4305_v8 }
 0x345   :  { %8636 = vmatmul.mubr.msk.f32.vlgmr.msra.gmra.mxu1 %vm394_vm1, %v3700_v19  ;;  %v3725_v19 = vsel %vm3047_vm5, %v16509_v10, %v3724_v36  ;;  %v7706_v36 = vld [vmem:[%s14951_s2 + $0x120] sm:$0xff] }
 0x346   :  { %8657 = vmatpush3.msra.mxu1 %v7709_v58  ;;  %8638 = vmatprep.mubr.msk.f32.mxu1 %vm9209_vm0, %v16367_v60  ;;  %v2662_v58 = vmax.f32 %v1642_v21, %v7636_v4  ;;  %v3714_v4 = vsel %vm3053_vm8, %v16512_v52, %v3713_v62  ;;  %v4294_v21 = vsel %vm3051_vm7, %v12133_v18, %v4293_v31  ;;  %v7703_v31 = vld [vmem:[%s14951_s2 + $0x108] sm:$0xff] }
 0x347   :  { %8658 = vmatprep.subr.mxu1 %v16367_v60  ;;  %v13243_v33 = vsel %vm3053_vm8, %v3657_v47, %v4294_v21  ;;  %v4246_v62 = vrot.slane %v2718_v25, %v16232_v54  ;;  %v4297_v47 = vsel %vm3043_vm3, %v16512_v52, %v4296_v40  ;;  %v3877_v25 = vsel %vm3041_vm2, %v12031_v27, %v12296_v17 }
 0x348   :  { %8659 = vmatpush3.msra.mxu1 %v7708_v9  ;;  %v16511_v9 = vld [vmem:[#allocation174_spill] sm:$0xff]  ;;  %v4315_v40 = vsel %vm3041_vm2, %v13102_v39, %v13089_v30 }
 0x349   :  { %8639 = vmatmul.mubr.msk.f32.gmra.mxu1 %vm394_vm1, %v13017_v2  ;;  %8660 = vmatprep.subr.mxu1 %v16367_v60  ;;  %v7644_v42 = vrot.slane %v16511_v9, 9  ;;  %v3726_v2 = vsel %vm3049_vm6, %v12181_v37, %v3725_v19  ;;  %v13257_v19 = vrot.slane %v2719_v63, %v16232_v54 }
 0x34a   :  { %8641 = vmatprep.mubr.msk.f32.mxu1 %vm9209_vm0, %v16367_v60  ;;  %8661 = vmatpush3.msra.mxu1 %v7707_v13  ;;  %v13253_v13 = vsel %vm3045_vm4, %v12880_v24, %v13062_v55  ;;  %v7704_v24 = vld [vmem:[%s14951_s2 + $0x110] sm:$0xff]  ;;  %v4298_v55 = vsel %vm3045_vm4, %v16483_v51, %v4297_v47  ;;  %v3727_v21 = vsel %vm3051_vm7, %v12184_v38, %v3726_v2  ;;  %v16516_v47 = vld [vmem:[#allocation122_spill] sm:$0xff] }
 0x34b   :  { %8662 = vmatprep.subr.mxu1 %v16367_v60  ;;  %v4299_v63 = vsel %vm3047_vm5, %v4246_v62, %v4298_v55  ;;  %v2670_v17 = vmax.f32 %v16511_v9, %v7644_v42  ;;  %v16514_v42 = vld [vmem:[#allocation101_spill] sm:$0xff] }
 0x34c   :  { %8663 = vmatpush3.msra.mxu1 %v7706_v36  ;;  %v4307_v36 = vsel %vm3049_vm6, %v16476_v50, %v4306_v53  ;;  %v13286_v44 = vsel %vm3049_vm6, %v13257_v19, %v4299_v63  ;;  %v4316_v2 = vsel %vm3043_vm3, %v16514_v42, %v4315_v40  ;;  %v3891_v63 = vsel %vm3041_vm2, %v12127_v59, %v12121_v34 }
 0x34d   :  { %8642 = vmatmul.mubr.msk.f32.gmra.mxu1 %vm394_vm1, %v3714_v4  ;;  %8664 = vmatprep.subr.mxu1 %v16367_v60  ;;  %v13290_v14 = vsel %vm3051_vm7, %v16507_v46, %v4307_v36  ;;  %v3721_v4 = vsel %vm3053_vm8, %v16513_v12, %v13047_v22  ;;  %v7702_v46 = vld [vmem:[%s14951_s2 + $0x100] sm:$0xff]  ;;  %v3878_v22 = vsel %vm3043_vm3, %v12037_v29, %v3877_v25 }
 0x34e   :  { %8644 = vmatprep.mubr.msk.f32.mxu1 %vm9209_vm0, %v16367_v60  ;;  %8665 = vmatpush3.msra.mxu1 %v7705_v7  ;;  %v2767_v7 = vmax.f32 %v2662_v58, %v2669_v16  ;;  %v2768_v9 = vmax.f32 %v2663_v28, %v2670_v17  ;;  %v3884_v16 = vsel %vm3041_vm2, %v16485_v23, %v12073_v49  ;;  %v16515_v58 = vld [vmem:[#allocation114_spill] sm:$0xff] }
 0x34f   :  { %8666 = vmatprep.subr.mxu1 %v16367_v60  ;;  %v4317_v61 = vsel %vm3045_vm4, %v16515_v58, %v4316_v2  ;;  %v3879_v55 = vsel %vm3045_vm4, %v16450_v32, %v3878_v22  ;;  %v3885_v28 = vsel %vm3043_vm3, %v12085_v35, %v3884_v16  ;;  %v3736_v2 = vsel %vm3041_vm2, %v16516_v47, %v16515_v58 }
 0x350   :  { %8667 = vmatpush3.msra.mxu1 %v7704_v24  ;;  %v4266_v30 = vrot.slane %v2767_v7, %v16232_v54  ;;  %v4270_v62 = vrot.slane %v2768_v9, %v16232_v54  ;;  %v4318_v8 = vsel %vm3047_vm5, %v16516_v47, %v4317_v61  ;;  %v3728_v24 = vsel %vm3053_vm8, %v12187_v15, %v3727_v21  ;;  %v16517_v7 = vld [vmem:[#allocation105_spill] sm:$0xff]  ;;  %v7721_v54 = vld [vmem:[%s14951_s2 + $0x160] sm:$0xff] }
 0x351   :  { %8645 = vmatmul.mubr.msk.f32.gmra.mxu1 %vm394_vm1, %v3721_v4  ;;  %8668 = vmatprep.subr.mxu1 %v16367_v60  ;;  %v3880_v36 = vsel %vm3047_vm5, %v16475_v57, %v3879_v55  ;;  %v3886_v17 = vsel %vm3045_vm4, %v12091_v56, %v3885_v28  ;;  %v3892_v4 = vsel %vm3043_vm3, %v12133_v18, %v3891_v63  ;;  %v16520_v55 = vld [vmem:[#allocation79_spill] sm:$0xff] }
 0x352   :  { %8647 = vmatprep.mubr.msk.f32.mxu1 %vm9209_vm0, %v16367_v60  ;;  %8669 = vmatpush3.msra.mxu1 %v7703_v31  ;;  %v4319_v53 = vsel %vm3049_vm6, %v4266_v30, %v4318_v8  ;;  %v3735_v31 = vsel %vm3053_vm8, %v16514_v42, %v13120_v26  ;;  %v3881_v21 = vsel %vm3049_vm6, %v16505_v0, %v3880_v36  ;;  %v16519_v8 = vld [vmem:[#allocation112_spill] sm:$0xff]  ;;  %v7724_v36 = vld [vmem:[%s14951_s2 + $0x178] sm:$0xff] }
 0x353   :  { %8670 = vmatprep.subr.mxu1 %v16367_v60  ;;  %v13332_v25 = vsel %vm3051_vm7, %v4270_v62, %v4319_v53  ;;  %v3898_v40 = vsel %vm3041_vm2, %v12501_v6, %v16517_v7  ;;  %v4498_v26 = vsel %vm3041_vm2, %v16514_v42, %v13102_v39  ;;  %v3893_v16 = vsel %vm3045_vm4, %v16494_v5, %v3892_v4 }
 0x354   :  { %8671 = vmatpush3.msra.mxu1 %v7702_v46  ;;  %v16518_v46 = vld [vmem:[#allocation116_spill] sm:$0xff]  ;;  %v4499_v9 = vsel %vm3043_vm3, %v16515_v58, %v4498_v26  ;;  %v3882_v30 = vsel %vm3051_vm7, %v12061_v20, %v3881_v21  ;;  %v3899_v61 = vsel %vm3043_vm3, %v12151_v48, %v3898_v40  ;;  %v3905_v28 = vsel %vm3041_vm2, %v16476_v50, %v12169_v3  ;;  %v16523_v21 = vld [vmem:[#allocation73_spill] sm:$0xff]  ;;  %v16524_v26 = vld [vmem:[#allocation111_spill] sm:$0xff] }
 0x355   :  { %8648 = vmatmul.mubr.msk.f32.gmra.mxu1 %vm394_vm1, %v3728_v24  ;;  %8693 = vmatprep.subr.mxu1 %v16367_v60  ;;  %v3887_v22 = vsel %vm3047_vm5, %v16518_v46, %v3886_v17  ;;  %v4500_v6 = vsel %vm3045_vm4, %v16516_v47, %v4499_v9  ;;  %v16522_v17 = vld [vmem:[#allocation165_spill] sm:$0xff]  ;;  %v3900_v40 = vsel %vm3045_vm4, %v16523_v21, %v3899_v61 }
 0x356   :  { %8650 = vmatprep.mubr.msk.f32.mxu1 %vm9209_vm0, %v16367_v60  ;;  %v4501_v24 = vsel %vm3047_vm5, %v16519_v8, %v4500_v6  ;;  %v3888_v53 = vsel %vm3049_vm6, %v16520_v55, %v3887_v22  ;;  %v3883_v4 = vsel %vm3053_vm8, %v16522_v17, %v3882_v30  ;;  %v16525_v9 = vld [vmem:[#allocation13_spill] sm:$0xff]  ;;  %v16526_v6 = vld [vmem:[#allocation176_spill] sm:$0xff]  ;;  %v16527_v30 = vld [vmem:[#allocation167_spill] sm:$0xff] }
 0x357   :  { %v13385_v63 = vsel %vm3049_vm6, %v4270_v62, %v4501_v24  ;;  %v3889_v22 = vsel %vm3051_vm7, %v16524_v26, %v3888_v53  ;;  %v7723_v62 = vld [vmem:[%s14951_s2 + $0x170] sm:$0xff]  ;;  %v3912_v61 = vsel %vm3041_vm2, %v16527_v30, %v16526_v6  ;;  %v7722_v24 = vld [vmem:[%s14951_s2 + $0x168] sm:$0xff] }
 0x358   :  { %16521 = vst [vmem:[#allocation133_spill] sm:$0xff] %v13385_v63  ;;  %v16528_v53 = vld [vmem:[#allocation144_spill] sm:$0xff]  ;;  %v16529_v63 = vld [vmem:[#allocation177_spill] sm:$0xff] }
 0x359   :  { %8651 = vmatmul.mubr.msk.f32.gmra.mxu1 %vm394_vm1, %v3735_v31  ;;  %v3894_v31 = vsel %vm3047_vm5, %v13185_v45, %v3893_v16 }
 0x35a   :  { %8653 = vmatprep.mubr.msk.f32.mxu1 %vm9209_vm0, %v16367_v60  ;;  %v3895_v16 = vsel %vm3049_vm6, %v16508_v41, %v3894_v31 }
 0x35d   :  { %8654 = vmatmul.mubr.msk.f32.gmra.mxu1 %vm394_vm1, %v3736_v2  ;;  %v3906_v2 = vsel %vm3043_vm3, %v16525_v9, %v3905_v28  ;;  %v3901_v28 = vsel %vm3047_vm5, %v16528_v53, %v3900_v40  ;;  %v3913_v40 = vsel %vm3043_vm3, %v16529_v63, %v3912_v61  ;;  %v16531_v61 = vld [vmem:[#allocation168_spill] sm:$0xff] }
 0x35e   :  { %8672 = vmatprep.mubr.msk.f32.mxu1 %vm9209_vm0, %v16367_v60  ;;  %v3907_v31 = vsel %vm3045_vm4, %v16509_v10, %v3906_v2  ;;  %v7720_v2 = vld [vmem:[%s14951_s2 + $0x158] sm:$0xff]  ;;  %v3914_v1 = vsel %vm3045_vm4, %v16531_v61, %v3913_v40 }
 0x361   :  { %8673 = vmatmul.mubr.msk.f32.vlgmr.msra.gmra.mxu1 %vm394_vm1, %v3883_v4  ;;  %v3896_v4 = vsel %vm3051_vm7, %v16512_v52, %v3895_v16  ;;  %v3908_v16 = vsel %vm3047_vm5, %v12181_v37, %v3907_v31  ;;  %v4060_v31 = vsel %vm3041_vm2, %v12037_v29, %v12031_v27  ;;  %v7717_v27 = vld [vmem:[%s14951_s2 + $0x140] sm:$0xff] }
 0x362   :  { %8694 = vmatpush3.msra.mxu1 %v7724_v36  ;;  %8675 = vmatprep.mubr.msk.f32.mxu1 %vm9209_vm0, %v16367_v60  ;;  %v3890_v36 = vsel %vm3053_vm8, %v16376_v11, %v3889_v22  ;;  %v16530_v22 = vld [vmem:[#allocation148_spill] sm:$0xff]  ;;  %v4061_v29 = vsel %vm3043_vm3, %v16450_v32, %v4060_v31 }
 0x363   :  { %8695 = vmatprep.subr.mxu1 %v16367_v60  ;;  %v4062_v32 = vsel %vm3045_vm4, %v16475_v57, %v4061_v29 }
 0x364   :  { %8696 = vmatpush3.msra.mxu1 %v7723_v62  ;;  %v3902_v62 = vsel %vm3049_vm6, %v16530_v22, %v3901_v28  ;;  %v7719_v28 = vld [vmem:[%s14951_s2 + $0x150] sm:$0xff] }
 0x365   :  { %8676 = vmatmul.mubr.msk.f32.gmra.mxu1 %vm394_vm1, %v3890_v36  ;;  %8697 = vmatprep.subr.mxu1 %v16367_v60  ;;  %v3897_v36 = vsel %vm3053_vm8, %v16483_v51, %v3896_v4  ;;  %v16532_v4 = vld [vmem:[#allocation178_spill] sm:$0xff] }
 0x366   :  { %8678 = vmatprep.mubr.msk.f32.mxu1 %vm9209_vm0, %v16367_v60  ;;  %8698 = vmatpush3.msra.mxu1 %v7722_v24  ;;  %v3903_v24 = vsel %vm3051_vm7, %v16513_v12, %v3902_v62  ;;  %v3915_v40 = vsel %vm3047_vm5, %v16532_v4, %v3914_v1  ;;  %v7718_v62 = vld [vmem:[%s14951_s2 + $0x148] sm:$0xff] }
 0x367   :  { %8699 = vmatprep.subr.mxu1 %v16367_v60  ;;  %v3916_v1 = vsel %vm3049_vm6, %v13102_v39, %v3915_v40  ;;  %v4074_v40 = vsel %vm3041_vm2, %v12133_v18, %v12127_v59 }
 0x368   :  { %8700 = vmatpush3.msra.mxu1 %v7721_v54  ;;  %v3909_v54 = vsel %vm3049_vm6, %v12184_v38, %v3908_v16  ;;  %v16533_v16 = vld [vmem:[#allocation83_spill] sm:$0xff]  ;;  %v3917_v31 = vsel %vm3051_vm7, %v16514_v42, %v3916_v1  ;;  %v16536_v1 = vld [vmem:[#allocation118_spill] sm:$0xff] }
 0x369   :  { %8679 = vmatmul.mubr.msk.f32.gmra.mxu1 %vm394_vm1, %v3897_v36  ;;  %8701 = vmatprep.subr.mxu1 %v16367_v60  ;;  %v3904_v36 = vsel %vm3053_vm8, %v12166_v43, %v3903_v24  ;;  %v4067_v24 = vsel %vm3041_vm2, %v16533_v16, %v16485_v23  ;;  %v4081_v16 = vsel %vm3041_vm2, %v12151_v48, %v16536_v1  ;;  %v7738_v1 = vld [vmem:[%s14951_s2 + $0x1b0] sm:$0xff] }
 0x36a   :  { %8681 = vmatprep.mubr.msk.f32.mxu1 %vm9209_vm0, %v16367_v60  ;;  %8702 = vmatpush3.msra.mxu1 %v7720_v2  ;;  %v3910_v2 = vsel %vm3051_vm7, %v12187_v15, %v3909_v54  ;;  %v4068_v39 = vsel %vm3043_vm3, %v12091_v56, %v4067_v24 }
 0x36b   :  { %8703 = vmatprep.subr.mxu1 %v16367_v60 }
 0x36c   :  { %8704 = vmatpush3.msra.mxu1 %v7719_v28  ;;  %v16534_v28 = vld [vmem:[#allocation10_spill] sm:$0xff] }
 0x36d   :  { %8682 = vmatmul.mubr.msk.f32.gmra.mxu1 %vm394_vm1, %v3904_v36  ;;  %8705 = vmatprep.subr.mxu1 %v16367_v60  ;;  %v3911_v54 = vsel %vm3053_vm8, %v16534_v28, %v3910_v2  ;;  %v3918_v36 = vsel %vm3053_vm8, %v16515_v58, %v3917_v31  ;;  %v4069_v2 = vsel %vm3045_vm4, %v16518_v46, %v4068_v39 }
 0x36e   :  { %8684 = vmatprep.mubr.msk.f32.mxu1 %vm9209_vm0, %v16367_v60  ;;  %8706 = vmatpush3.msra.mxu1 %v7718_v62  ;;  %v16535_v62 = vld [vmem:[#allocation61_spill] sm:$0xff]  ;;  %v4070_v24 = vsel %vm3047_vm5, %v16520_v55, %v4069_v2 }
 0x36f   :  { %8707 = vmatprep.subr.mxu1 %v16367_v60  ;;  %v4063_v57 = vsel %vm3047_vm5, %v16535_v62, %v4062_v32  ;;  %v16537_v32 = vld [vmem:[#allocation119_spill] sm:$0xff]  ;;  %v4071_v48 = vsel %vm3049_vm6, %v16524_v26, %v4070_v24  ;;  %v4088_v62 = vsel %vm3041_vm2, %v16525_v9, %v16476_v50 }
 0x370   :  { %8708 = vmatpush3.msra.mxu1 %v7717_v27  ;;  %v4075_v27 = vsel %vm3043_vm3, %v16494_v5, %v4074_v40  ;;  %v4064_v29 = vsel %vm3049_vm6, %v12061_v20, %v4063_v57  ;;  %v4082_v40 = vsel %vm3043_vm3, %v16523_v21, %v4081_v16  ;;  %v7739_v57 = vld [vmem:[%s14951_s2 + $0x1b8] sm:$0xff] }
 0x371   :  { %8685 = vmatmul.mubr.msk.f32.gmra.mxu1 %vm394_vm1, %v3911_v54  ;;  %8730 = vmatprep.subr.mxu1 %v16367_v60  ;;  %v3919_v54 = vsel %vm3041_vm2, %v16519_v8, %v16516_v47  ;;  %v4076_v31 = vsel %vm3045_vm4, %v16537_v32, %v4075_v27  ;;  %v4065_v39 = vsel %vm3051_vm7, %v16522_v17, %v4064_v29  ;;  %v16538_v27 = vld [vmem:[#allocation96_spill] sm:$0xff]  ;;  %v16539_v16 = vld [vmem:[#allocation142_spill] sm:$0xff] }
 0x372   :  { %8687 = vmatprep.mubr.msk.f32.mxu1 %vm9209_vm0, %v16367_v60  ;;  %v4066_v21 = vsel %vm3053_vm8, %v12073_v49, %v4065_v39  ;;  %v4083_v2 = vsel %vm3045_vm4, %v16528_v53, %v4082_v40  ;;  %v4072_v29 = vsel %vm3051_vm7, %v16538_v27, %v4071_v48  ;;  %v4089_v24 = vsel %vm3043_vm3, %v16539_v16, %v4088_v62  ;;  %v7737_v32 = vld [vmem:[%s14951_s2 + $0x1a8] sm:$0xff]  ;;  %v7736_v62 = vld [vmem:[%s14951_s2 + $0x1a0] sm:$0xff]  ;;  %v7734_v16 = vld [vmem:[%s14951_s2 + $0x190] sm:$0xff] }
 0x373   :  { %v4095_v53 = vsel %vm3041_vm2, %v16529_v63, %v16527_v30  ;;  %v4073_v39 = vsel %vm3053_vm8, %v12121_v34, %v4072_v29  ;;  %v4090_v40 = vsel %vm3045_vm4, %v12181_v37, %v4089_v24 }
 0x375   :  { %8688 = vmatmul.mubr.msk.f32.gmra.mxu1 %vm394_vm1, %v3918_v36  ;;  %v4077_v36 = vsel %vm3047_vm5, %v16508_v41, %v4076_v31  ;;  %v4084_v31 = vsel %vm3047_vm5, %v16530_v22, %v4083_v2  ;;  %v4096_v22 = vsel %vm3043_vm3, %v16531_v61, %v4095_v53  ;;  %v4091_v2 = vsel %vm3047_vm5, %v12184_v38, %v4090_v40  ;;  %v7732_v40 = vld [vmem:[%s14951_s2 + $0x180] sm:$0xff] }
 0x376   :  { %8690 = vmatprep.mubr.msk.f32.mxu1 %vm9209_vm0, %v16367_v60  ;;  %v4097_v29 = vsel %vm3045_vm4, %v16532_v4, %v4096_v22  ;;  %v4092_v24 = vsel %vm3049_vm6, %v12187_v15, %v4091_v2 }
 0x379   :  { %8691 = vmatmul.mubr.msk.f32.gmra.mxu1 %vm394_vm1, %v3919_v54  ;;  %v4078_v54 = vsel %vm3049_vm6, %v16512_v52, %v4077_v36 }
 0x37a   :  { %8709 = vmatprep.mubr.msk.f32.mxu1 %vm9209_vm0, %v16367_v60  ;;  %v4079_v48 = vsel %vm3051_vm7, %v16483_v51, %v4078_v54  ;;  %v16541_v54 = vld [vmem:[#allocation141_spill] sm:$0xff] }
 0x37b   :  { %v4080_v27 = vsel %vm3053_vm8, %v16517_v7, %v4079_v48  ;;  %v4098_v53 = vsel %vm3047_vm5, %v16541_v54, %v4097_v29  ;;  %v7752_v29 = vld [vmem:[%s14951_s2 + $0x1e8] sm:$0xff]  ;;  %v4311_v54 = vsel %vm3047_vm5, %v16526_v6, %v13253_v13  ;;  %v4463_v13 = vsel %vm3041_vm2, %v12061_v20, %v16505_v0  ;;  %v7747_v20 = vld [vmem:[%s14951_s2 + $0x1c0] sm:$0xff] }
 0x37c   :  { %v4099_v48 = vsel %vm3049_vm6, %v16514_v42, %v4098_v53  ;;  %v16546_v53 = vld [vmem:[#allocation121_spill] sm:$0xff]  ;;  %v4464_v0 = vsel %vm3043_vm3, %v16522_v17, %v4463_v13 }
 0x37d   :  { %8710 = vmatmul.mubr.msk.f32.vlgmr.msra.gmra.mxu1 %vm394_vm1, %v4066_v21  ;;  %v7735_v21 = vld [vmem:[%s14951_s2 + $0x198] sm:$0xff] }
 0x37e   :  { %8731 = vmatpush3.msra.mxu1 %v7739_v57  ;;  %8712 = vmatprep.mubr.msk.f32.mxu1 %vm9209_vm0, %v16367_v60  ;;  %v16540_v57 = vld [vmem:[#allocation56_spill] sm:$0xff] }
 0x37f   :  { %8732 = vmatprep.subr.mxu1 %v16367_v60  ;;  %v4085_v36 = vsel %vm3049_vm6, %v16540_v57, %v4084_v31  ;;  %v4100_v57 = vsel %vm3051_vm7, %v16515_v58, %v4099_v48  ;;  %v16544_v58 = vld [vmem:[#allocation150_spill] sm:$0xff] }
 0x380   :  { %8733 = vmatpush3.msra.mxu1 %v7738_v1  ;;  %v4086_v1 = vsel %vm3051_vm7, %v12166_v43, %v4085_v36  ;;  %v4101_v42 = vsel %vm3053_vm8, %v16516_v47, %v4100_v57  ;;  %v16543_v36 = vld [vmem:[#allocation130_spill] sm:$0xff]  ;;  %v4288_v2 = vsel %vm3051_vm7, %v12085_v35, %v16544_v58  ;;  %v4465_v57 = vsel %vm3045_vm4, %v12073_v49, %v4464_v0  ;;  %v16547_v58 = vld [vmem:[#allocation169_spill] sm:$0xff] }
 0x381   :  { %8713 = vmatmul.mubr.msk.f32.gmra.mxu1 %vm394_vm1, %v4073_v39  ;;  %8734 = vmatprep.subr.mxu1 %v16367_v60  ;;  %v4087_v31 = vsel %vm3053_vm8, %v12169_v3, %v4086_v1  ;;  %v4093_v39 = vsel %vm3051_vm7, %v16534_v28, %v4092_v24  ;;  %v7754_v47 = vld [vmem:[%s14951_s2 + $0x1f8] sm:$0xff]  ;;  %v16545_v1 = vld [vmem:[#allocation120_spill] sm:$0xff]  ;;  %v7751_v24 = vld [vmem:[%s14951_s2 + $0x1e0] sm:$0xff]  ;;  %v4466_v49 = vsel %vm3047_vm5, %v16485_v23, %v4465_v57 }
 0x382   :  { %8715 = vmatprep.mubr.msk.f32.mxu1 %vm9209_vm0, %v16367_v60  ;;  %8735 = vmatpush3.msra.mxu1 %v7737_v32  ;;  %v7733_v32 = vld [vmem:[%s14951_s2 + $0x188] sm:$0xff]  ;;  %v4467_v23 = vsel %vm3049_vm6, %v12085_v35, %v4466_v49 }
 0x383   :  { %8736 = vmatprep.subr.mxu1 %v16367_v60 }
 0x384   :  { %8737 = vmatpush3.msra.mxu1 %v7736_v62  ;;  %v16542_v62 = vld [vmem:[#allocation86_spill] sm:$0xff] }
 0x385   :  { %8716 = vmatmul.mubr.msk.f32.gmra.mxu1 %vm394_vm1, %v4080_v27  ;;  %8738 = vmatprep.subr.mxu1 %v16367_v60  ;;  %v4094_v22 = vsel %vm3053_vm8, %v16542_v62, %v4093_v39  ;;  %v4289_v27 = vsel %vm3053_vm8, %v12091_v56, %v4288_v2  ;;  %v7748_v39 = vld [vmem:[%s14951_s2 + $0x1c8] sm:$0xff]  ;;  %v4321_v2 = vsel %vm3053_vm8, %v16547_v58, %v13332_v25 }
 0x386   :  { %8718 = vmatprep.mubr.msk.f32.mxu1 %vm9209_vm0, %v16367_v60  ;;  %8739 = vmatpush3.msra.mxu1 %v7735_v21  ;;  %v4102_v21 = vsel %vm3041_vm2, %v16543_v36, %v16519_v8  ;;  %v7753_v8 = vld [vmem:[%s14951_s2 + $0x1f0] sm:$0xff] }
 0x387   :  { %8740 = vmatprep.subr.mxu1 %v16367_v60 }
 0x388   :  { %8741 = vmatpush3.msra.mxu1 %v7734_v16  ;;  %v4301_v16 = vsel %vm3051_vm7, %v16545_v1, %v13286_v44 }
 0x389   :  { %8719 = vmatmul.mubr.msk.f32.gmra.mxu1 %vm394_vm1, %v4087_v31  ;;  %8742 = vmatprep.subr.mxu1 %v16367_v60  ;;  %v4302_v44 = vsel %vm3053_vm8, %v16546_v53, %v4301_v16  ;;  %v4312_v31 = vsel %vm3049_vm6, %v16527_v30, %v4311_v54  ;;  %v16550_v16 = vld [vmem:[#allocation170_spill] sm:$0xff] }
 0x38a   :  { %8721 = vmatprep.mubr.msk.f32.mxu1 %vm9209_vm0, %v16367_v60  ;;  %8743 = vmatpush3.msra.mxu1 %v7733_v32  ;;  %v7749_v32 = vld [vmem:[%s14951_s2 + $0x1d0] sm:$0xff]  ;;  %v4313_v48 = vsel %vm3051_vm7, %v16529_v63, %v4312_v31 }
 0x38b   :  { %8744 = vmatprep.subr.mxu1 %v16367_v60 }
 0x38c   :  { %8745 = vmatpush3.msra.mxu1 %v7732_v40  ;;  %v4309_v40 = vsel %vm3053_vm8, %v16509_v10, %v13290_v14  ;;  %v4470_v14 = vsel %vm3041_vm2, %v16524_v26, %v16520_v55  ;;  %v4477_v55 = vsel %vm3041_vm2, %v16512_v52, %v16508_v41  ;;  %v16548_v52 = vld [vmem:[#allocation138_spill] sm:$0xff] }
 0x38d   :  { %8722 = vmatmul.mubr.msk.f32.gmra.mxu1 %vm394_vm1, %v4094_v22  ;;  %8767 = vmatprep.subr.mxu1 %v16367_v60  ;;  %v4314_v22 = vsel %vm3053_vm8, %v16531_v61, %v4313_v48  ;;  %v4471_v36 = vsel %vm3043_vm3, %v16376_v11, %v4470_v14  ;;  %v4478_v41 = vsel %vm3043_vm3, %v16483_v51, %v4477_v55 }
 0x38e   :  { %8724 = vmatprep.mubr.msk.f32.mxu1 %vm9209_vm0, %v16367_v60  ;;  %v4472_v11 = vsel %vm3045_vm4, %v12121_v34, %v4471_v36  ;;  %v4479_v51 = vsel %vm3045_vm4, %v16517_v7, %v4478_v41 }
 0x38f   :  { %v4473_v34 = vsel %vm3047_vm5, %v12127_v59, %v4472_v11  ;;  %v4480_v7 = vsel %vm3047_vm5, %v13257_v19, %v4479_v51 }
 0x390   :  { %v4474_v59 = vsel %vm3049_vm6, %v12133_v18, %v4473_v34 }
 0x391   :  { %8725 = vmatmul.mubr.msk.f32.gmra.mxu1 %vm394_vm1, %v4101_v42 }
 0x392   :  { %8727 = vmatprep.mubr.msk.f32.mxu1 %vm9209_vm0, %v16367_v60 }
 0x395   :  { %8728 = vmatmul.mubr.msk.f32.gmra.mxu1 %vm394_vm1, %v4102_v21 }
 0x396   :  { %8746 = vmatprep.mubr.msk.f32.mxu1 %vm9209_vm0, %v16367_v60 }
 0x399   :  { %8747 = vmatmul.mubr.msk.f32.vlgmr.msra.gmra.mxu1 %vm394_vm1, %v4289_v27 }
 0x39a   :  { %8768 = vmatpush3.msra.mxu1 %v7754_v47  ;;  %8749 = vmatprep.mubr.msk.f32.mxu1 %vm9209_vm0, %v16367_v60 }
 0x39b   :  { %8769 = vmatprep.subr.mxu1 %v16367_v60 }
 0x39c   :  { %8770 = vmatpush3.msra.mxu1 %v7753_v8  ;;  %v4484_v8 = vsel %vm3041_vm2, %v16513_v12, %v16548_v52  ;;  %v4468_v12 = vsel %vm3051_vm7, %v12091_v56, %v4467_v23 }
 0x39d   :  { %8750 = vmatmul.mubr.msk.f32.gmra.mxu1 %vm394_vm1, %v13243_v33  ;;  %8771 = vmatprep.subr.mxu1 %v16367_v60  ;;  %v7750_v33 = vld [vmem:[%s14951_s2 + $0x1d8] sm:$0xff]  ;;  %v4485_v35 = vsel %vm3043_vm3, %v12166_v43, %v4484_v8  ;;  %v4469_v56 = vsel %vm3053_vm8, %v16518_v46, %v4468_v12 }
 0x39e   :  { %8752 = vmatprep.mubr.msk.f32.mxu1 %vm9209_vm0, %v16367_v60  ;;  %8772 = vmatpush3.msra.mxu1 %v7752_v29  ;;  %v16549_v29 = vld [vmem:[#allocation151_spill] sm:$0xff]  ;;  %v4486_v43 = vsel %vm3045_vm4, %v12169_v3, %v4485_v35 }
 0x39f   :  { %8773 = vmatprep.subr.mxu1 %v16367_v60  ;;  %v4487_v3 = vsel %vm3047_vm5, %v16476_v50, %v4486_v43 }
 0x3a0   :  { %8774 = vmatpush3.msra.mxu1 %v7751_v24  ;;  %v13711_v62 = vpop.f32.mrf.mxu1  ;;  %v4322_v24 = vsel %vm3041_vm2, %v16550_v16, %v16549_v29 }
 0x3a1   :  { %8753 = vmatmul.mubr.msk.f32.gmra.mxu1 %vm394_vm1, %v4302_v44  ;;  %8775 = vmatprep.subr.mxu1 %v16367_v60  ;;  %v4491_v44 = vsel %vm3041_vm2, %v12187_v15, %v12184_v38  ;;  %v4481_v38 = vsel %vm3049_vm6, %v16545_v1, %v4480_v7  ;;  %v4488_v1 = vsel %vm3049_vm6, %v16525_v9, %v4487_v3 }
 0x3a2   :  { %8755 = vmatprep.mubr.msk.f32.mxu1 %vm9209_vm0, %v16367_v60  ;;  %8776 = vmatpush3.msra.mxu1 %v7750_v33  ;;  %v13719_v17 = vpop.f32.mrf.mxu0  ;;  %v8526_v42 = vpop.f32.mrf.mxu1  ;;  %v4492_v31 = vsel %vm3043_vm3, %v16534_v28, %v4491_v44  ;;  %v4482_v28 = vsel %vm3051_vm7, %v16546_v53, %v4481_v38  ;;  %v4489_v53 = vsel %vm3051_vm7, %v16509_v10, %v4488_v1 }
 0x3a3   :  { %8777 = vmatprep.subr.mxu1 %v16367_v60 }
 0x3a4   :  { %8778 = vmatpush3.msra.mxu1 %v7749_v32  ;;  %v8822_v26 = vpop.f32.mrf.mxu0  ;;  %v13729_v21 = vpop.f32.mrf.mxu1  ;;  %v4475_v32 = vsel %vm3051_vm7, %v16494_v5, %v4474_v59  ;;  %v4493_v5 = vsel %vm3045_vm4, %v16526_v6, %v4492_v31 }
 0x3a5   :  { %8756 = vmatmul.mubr.msk.f32.gmra.mxu1 %vm394_vm1, %v4309_v40  ;;  %8779 = vmatprep.subr.mxu1 %v16367_v60  ;;  %v4476_v19 = vsel %vm3053_vm8, %v13185_v45, %v4475_v32  ;;  %v4494_v50 = vsel %vm3047_vm5, %v16527_v30, %v4493_v5  ;;  %v16551_v45 = vld [vmem:[#allocation126_spill] sm:$0xff]  ;;  %v4490_v30 = vsel %vm3053_vm8, %v12181_v37, %v4489_v53  ;;  %v16552_v37 = vld [vmem:[#allocation133_spill] sm:$0xff] }
 0x3a6   :  { %8758 = vmatprep.mubr.msk.f32.mxu1 %vm9209_vm0, %v16367_v60  ;;  %8780 = vmatpush3.msra.mxu1 %v7748_v39  ;;  %v13739_v47 = vpop.f32.mrf.mxu0  ;;  %v8529_v27 = vpop.f32.mrf.mxu1  ;;  %v4483_v39 = vsel %vm3053_vm8, %v16551_v45, %v4482_v28  ;;  %v4495_v9 = vsel %vm3049_vm6, %v16529_v63, %v4494_v50  ;;  %v4503_v36 = vsel %vm3051_vm7, %v16547_v58, %v16552_v37  ;;  %v16553_v58 = vld [vmem:[#allocation45_spill] sm:$0xff] }
 0x3a7   :  { %8781 = vmatprep.subr.mxu1 %v16367_v60  ;;  %v4504_v26 = vsel %vm3053_vm8, %v16549_v29, %v4503_v36  ;;  %v4505_v11 = vsel %vm3041_vm2, %v16553_v58, %v16550_v16 }
 0x3a8   :  { %8782 = vmatpush3.msra.mxu1 %v7747_v20  ;;  %v8825_v25 = vpop.f32.mrf.mxu0 }
 0x3a9   :  { %8759 = vmatmul.mubr.msk.f32.gmra.mxu1 %vm394_vm1, %v4314_v22  ;;  %8841 = vmatprep.subr.mxu1 %v16367_v60  ;;  %v4496_v22 = vsel %vm3051_vm7, %v16531_v61, %v4495_v9 }
 0x3aa   :  { %8761 = vmatprep.mubr.msk.f32.mxu1 %vm9209_vm0, %v16367_v60  ;;  %v13755_v33 = vpop.f32.mrf.mxu1  ;;  %v4497_v63 = vsel %vm3053_vm8, %v16532_v4, %v4496_v22 }
 0x3ac   :  { %v8532_v54 = vpop.f32.mrf.mxu1 }
 0x3ad   :  { %8762 = vmatmul.mubr.msk.f32.gmra.mxu1 %vm394_vm1, %v4321_v2 }
 0x3ae   :  { %8764 = vmatprep.mubr.msk.f32.mxu1 %vm9209_vm0, %v16367_v60 }
 0x3b1   :  { %8765 = vmatmul.mubr.msk.f32.gmra.mxu1 %vm394_vm1, %v4322_v24  ;;  %v13780_v18 = vpop.f32.mrf.mxu0 }
 0x3b2   :  { %8783 = vmatprep.mubr.msk.f32.mxu1 %vm9209_vm0, %v16367_v60 }
 0x3b3   :  { %v8828_v15 = vpop.f32.mrf.mxu0 }
 0x3b5   :  { %8784 = vmatmul.mubr.msk.f32.vlgmr.msra.gmra.mxu1 %vm394_vm1, %v4469_v56  ;;  %v3186_v46 = vpop.f32.mrf.mxu1 }
 0x3b6   :  { %8786 = vmatprep.mubr.msk.f32.mxu1 %vm9209_vm0, %v16367_v60 }
 0x3b7   :  { %v8535_v13 = vpop.f32.mrf.mxu1 }
 0x3b9   :  { %8787 = vmatmul.mubr.msk.f32.gmra.mxu1 %vm394_vm1, %v4476_v19  ;;  %v3191_v40 = vpop.f32.mrf.mxu1 }
 0x3ba   :  { %8789 = vmatprep.mubr.msk.f32.mxu1 %vm9209_vm0, %v16367_v60  ;;  %v13805_v6 = vpop.f32.mrf.mxu0 }
 0x3bb   :  { %v8538_v20 = vpop.f32.mrf.mxu1 }
 0x3bc   :  { %v8831_v48 = vpop.f32.mrf.mxu0 }
 0x3bd   :  { %8790 = vmatmul.mubr.msk.f32.gmra.mxu1 %vm394_vm1, %v4483_v39 }
 0x3be   :  { %8792 = vmatprep.mubr.msk.f32.mxu1 %vm9209_vm0, %v16367_v60  ;;  %v3196_v14 = vpop.f32.mrf.mxu1 }
 0x3bf   :  { %v13817_v0 = vpop.f32.mrf.mxu0 }
 0x3c0   :  { %v8541_v57 = vpop.f32.mrf.mxu1 }
 0x3c1   :  { %8793 = vmatmul.mubr.msk.f32.gmra.mxu1 %vm394_vm1, %v4490_v30  ;;  %v8834_v10 = vpop.f32.mrf.mxu0 }
 0x3c2   :  { %8795 = vmatprep.mubr.msk.f32.mxu1 %vm9209_vm0, %v16367_v60  ;;  %v3201_v42 = vpop.f32.mrf.mxu1 }
 0x3c4   :  { %v8544_v61 = vpop.f32.mrf.mxu1 }
 0x3c5   :  { %8796 = vmatmul.mubr.msk.f32.gmra.mxu1 %vm394_vm1, %v4497_v63 }
 0x3c6   :  { %8798 = vmatprep.mubr.msk.f32.mxu1 %vm9209_vm0, %v16367_v60 }
 0x3c7   :  { %v13831_v55 = vpop.f32.mrf.mxu0 }
 0x3c9   :  { %v8837_v49 = vpop.f32.mrf.mxu0  ;;  %8799 = vmatmul.mubr.msk.f32.gmra.mxu1 %vm394_vm1, %v4504_v26 }
 0x3ca   :  { %8801 = vmatprep.mubr.msk.f32.mxu1 %vm9209_vm0, %v16367_v60  ;;  %v3378_v4 = vpop.f32.mrf.mxu1 }
 0x3cb   :  { %v3379_v2 = vadd.f32 %v3378_v4, %v13711_v62 }
 0x3cc   :  { %v8563_v27 = vpop.f32.mrf.mxu1 }
 0x3cd   :  { %8802 = vmatmul.mubr.msk.f32.gmra.mxu1 %vm394_vm1, %v4505_v11 }
 0x3ce   :  { %v13843_v41 = vpop.f32.mrf.mxu0  ;;  %8857 = vmatprep.mubr.msk.f32.mxu1 %vm9209_vm0, %v16367_v60 }
 0x3d0   :  { %v8840_v8 = vpop.f32.mrf.mxu0 }
 0x3d1   :  { %v3383_v52 = vpop.f32.mrf.mxu1 }
 0x3d2   :  { %v3384_v23 = vadd.f32 %v3383_v52, %v13729_v21 }
 0x3d3   :  { %v8566_v25 = vpop.f32.mrf.mxu1 }
 0x3d5   :  { %v3388_v34 = vpop.f32.mrf.mxu1 }
 0x3d6   :  { %v3389_v62 = vadd.f32 %v3388_v34, %v13755_v33 }
 0x3d7   :  { %v8569_v29 = vpop.f32.mrf.mxu1 }
 0x3d9   :  { %v3393_v24 = vpop.f32.mrf.mxu1 }
 0x3da   :  { %v3394_v51 = vadd.f32 %v3393_v24, %v3186_v46 }
 0x3db   :  { %v8572_v16 = vpop.f32.mrf.mxu1 }
 0x3dd   :  { %v3398_v12 = vpop.f32.mrf.mxu1 }
 0x3de   :  { %v3399_v35 = vadd.f32 %v3398_v12, %v3191_v40 }
 0x3df   :  { %v8575_v59 = vpop.f32.mrf.mxu1 }
 0x3e1   :  { %v3403_v54 = vpop.f32.mrf.mxu1 }
 0x3e2   :  { %v3404_v44 = vadd.f32 %v3403_v54, %v3196_v14 }
 0x3e3   :  { %v8578_v7 = vpop.f32.mrf.mxu1 }
 0x3e5   :  { %v3408_v56 = vpop.f32.mrf.mxu1 }
 0x3e6   :  { %v3409_v43 = vadd.f32 %v3408_v56, %v3201_v42 }
 0x3e7   :  { %v8581_v32 = vpop.f32.mrf.mxu1 }
 0x3e9   :  { %v3594_v31 = vpop.f32.mrf.mxu1 }
 0x3ea   :  { %v3628_v38 = vadd.f32 %v3594_v31, %v3379_v2 }
 0x3eb   :  { %v8600_v21 = vpop.f32.mrf.mxu1 }
 0x3ed   :  { %v3599_v15 = vpop.f32.mrf.mxu1 }
 0x3ee   :  { %v3629_v3 = vadd.f32 %v3599_v15, %v3384_v23 }
 0x3ef   :  { %v8603_v19 = vpop.f32.mrf.mxu1 }
 0x3f1   :  { %v3604_v33 = vpop.f32.mrf.mxu1 }
 0x3f2   :  { %v3630_v5 = vadd.f32 %v3604_v33, %v3389_v62 }
 0x3f3   :  { %v8606_v28 = vpop.f32.mrf.mxu1 }
 0x3f5   :  { %v3609_v46 = vpop.f32.mrf.mxu1 }
 0x3f6   :  { %v3631_v1 = vadd.f32 %v3609_v46, %v3394_v51 }
 0x3f7   :  { %v8609_v13 = vpop.f32.mrf.mxu1 }
 0x3f9   :  { %v3614_v50 = vpop.f32.mrf.mxu1 }
 0x3fa   :  { %v3632_v45 = vadd.f32 %v3614_v50, %v3399_v35 }
 0x3fb   :  { %v8612_v39 = vpop.f32.mrf.mxu1 }
 0x3fd   :  { %v3619_v40 = vpop.f32.mrf.mxu1 }
 0x3fe   :  { %v3633_v53 = vadd.f32 %v3619_v40, %v3404_v44 }
 0x3ff   :  { %v8615_v48 = vpop.f32.mrf.mxu1 }
 0x401   :  { %v3624_v9 = vpop.f32.mrf.mxu1 }
 0x402   :  { %v3634_v20 = vadd.f32 %v3624_v9, %v3409_v43 }
 0x403   :  { %v8618_v30 = vpop.f32.mrf.mxu1 }
 0x405   :  { %v3817_v14 = vpop.f32.mrf.mxu1 }
 0x406   :  { %v3851_v22 = vadd.f32 %v3817_v14, %v3628_v38 }
 0x407   :  { %v8637_v10 = vpop.f32.mrf.mxu1 }
 0x409   :  { %v3822_v57 = vpop.f32.mrf.mxu1 }
 0x40a   :  { %v3852_v63 = vadd.f32 %v3822_v57, %v3629_v3 }
 0x40b   :  { %v8640_v42 = vpop.f32.mrf.mxu1 }
 0x40d   :  { %v3827_v37 = vpop.f32.mrf.mxu1 }
 0x40e   :  { %v3853_v36 = vadd.f32 %v3827_v37, %v3630_v5 }
 0x40f   :  { %v8643_v61 = vpop.f32.mrf.mxu1 }
 0x411   :  { %v3832_v26 = vpop.f32.mrf.mxu1 }
 0x412   :  { %v3854_v49 = vadd.f32 %v3832_v26, %v3631_v1  ;;  %v7796_v26 = vld [vmem:[%s14951_s2 + $0x2b8] sm:$0xff] }
 0x413   :  { %v8646_v4 = vpop.f32.mrf.mxu1  ;;  %8842 = vmatpush3.msra.mxu1 %v7796_v26 }
 0x414   :  { %v7784_v4 = vld [vmem:[%s14951_s2 + $0x278] sm:$0xff]  ;;  %8843 = vmatprep.subr.mxu1 %v16367_v60 }
 0x415   :  { %v3837_v2 = vpop.f32.mrf.mxu1  ;;  %8861 = vmatpush3.msra.mxu0 %v7784_v4 }
 0x416   :  { %v3855_v58 = vadd.f32 %v3837_v2, %v3632_v45  ;;  %v7783_v2 = vld [vmem:[%s14951_s2 + $0x270] sm:$0xff]  ;;  %8862 = vmatprep.subr.mxu0 %v16367_v60 }
 0x417   :  { %v8649_v11 = vpop.f32.mrf.mxu1  ;;  %8863 = vmatpush3.msra.mxu0 %v7783_v2 }
 0x418   :  { %v7794_v11 = vld [vmem:[%s14951_s2 + $0x2a8] sm:$0xff]  ;;  %8864 = vmatprep.subr.mxu0 %v16367_v60 }
 0x419   :  { %v3842_v27 = vpop.f32.mrf.mxu1 }
 0x41a   :  { %v3856_v52 = vadd.f32 %v3842_v27, %v3633_v53  ;;  %v7782_v27 = vld [vmem:[%s14951_s2 + $0x268] sm:$0xff] }
 0x41b   :  { %v8652_v8 = vpop.f32.mrf.mxu1  ;;  %8865 = vmatpush3.msra.mxu0 %v7782_v27 }
 0x41c   :  { %v7793_v8 = vld [vmem:[%s14951_s2 + $0x2a0] sm:$0xff]  ;;  %8866 = vmatprep.subr.mxu0 %v16367_v60 }
 0x41d   :  { %v3847_v23 = vpop.f32.mrf.mxu1 }
 0x41e   :  { %v3857_v25 = vadd.f32 %v3847_v23, %v3634_v20  ;;  %v7781_v23 = vld [vmem:[%s14951_s2 + $0x260] sm:$0xff] }
 0x41f   :  { %v8655_v34 = vpop.f32.mrf.mxu1  ;;  %8867 = vmatpush3.msra.mxu0 %v7781_v23 }
 0x420   :  { %v7780_v34 = vld [vmem:[%s14951_s2 + $0x258] sm:$0xff]  ;;  %8868 = vmatprep.subr.mxu0 %v16367_v60 }
 0x421   :  { %v4000_v62 = vpop.f32.mrf.mxu1  ;;  %8869 = vmatpush3.msra.mxu0 %v7780_v34 }
 0x422   :  { %v4034_v29 = vadd.f32 %v4000_v62, %v3851_v22  ;;  %v7792_v62 = vld [vmem:[%s14951_s2 + $0x298] sm:$0xff]  ;;  %8870 = vmatprep.subr.mxu0 %v16367_v60 }
 0x423   :  { %v8674_v24 = vpop.f32.mrf.mxu1 }
 0x424   :  { %v7779_v24 = vld [vmem:[%s14951_s2 + $0x250] sm:$0xff] }
 0x425   :  { %v4005_v51 = vpop.f32.mrf.mxu1  ;;  %8871 = vmatpush3.msra.mxu0 %v7779_v24 }
 0x426   :  { %v4035_v16 = vadd.f32 %v4005_v51, %v3852_v63  ;;  %v7791_v51 = vld [vmem:[%s14951_s2 + $0x290] sm:$0xff]  ;;  %8872 = vmatprep.subr.mxu0 %v16367_v60 }
 0x427   :  { %v8677_v12 = vpop.f32.mrf.mxu1 }
 0x428   :  { %v7778_v12 = vld [vmem:[%s14951_s2 + $0x248] sm:$0xff] }
 0x429   :  { %v4010_v35 = vpop.f32.mrf.mxu1  ;;  %8873 = vmatpush3.msra.mxu0 %v7778_v12 }
 0x42a   :  { %v4036_v59 = vadd.f32 %v4010_v35, %v3853_v36  ;;  %v7790_v35 = vld [vmem:[%s14951_s2 + $0x288] sm:$0xff]  ;;  %8874 = vmatprep.subr.mxu0 %v16367_v60 }
 0x42b   :  { %v8680_v54 = vpop.f32.mrf.mxu1 }
 0x42c   :  { %v7777_v54 = vld [vmem:[%s14951_s2 + $0x240] sm:$0xff] }
 0x42d   :  { %v4015_v44 = vpop.f32.mrf.mxu1  ;;  %8875 = vmatpush3.msra.mxu0 %v7777_v54 }
 0x42e   :  { %v4037_v7 = vadd.f32 %v4015_v44, %v3854_v49  ;;  %v7795_v49 = vld [vmem:[%s14951_s2 + $0x2b0] sm:$0xff]  ;;  %8898 = vmatprep.subr.mxu0 %v16367_v60 }
 0x42f   :  { %v8683_v56 = vpop.f32.mrf.mxu1  ;;  %8844 = vmatpush3.msra.mxu1 %v7795_v49 }
 0x430   :  { %8845 = vmatprep.subr.mxu1 %v16367_v60  ;;  %v7789_v56 = vld [vmem:[%s14951_s2 + $0x280] sm:$0xff] }
 0x431   :  { %v4020_v43 = vpop.f32.mrf.mxu1  ;;  %8846 = vmatpush3.msra.mxu1 %v7794_v11 }
 0x432   :  { %v13849_v32 = vadd.f32 %v4020_v43, %v3855_v58  ;;  %8847 = vmatprep.subr.mxu1 %v16367_v60 }
 0x433   :  { %v8686_v31 = vpop.f32.mrf.mxu1  ;;  %8848 = vmatpush3.msra.mxu1 %v7793_v8 }
 0x434   :  { %8849 = vmatprep.subr.mxu1 %v16367_v60 }
 0x435   :  { %v4025_v38 = vpop.f32.mrf.mxu1  ;;  %8850 = vmatpush3.msra.mxu1 %v7792_v62 }
 0x436   :  { %v13851_v21 = vadd.f32 %v4025_v38, %v3856_v52  ;;  %8851 = vmatprep.subr.mxu1 %v16367_v60 }
 0x437   :  { %v8689_v15 = vpop.f32.mrf.mxu1  ;;  %8852 = vmatpush3.msra.mxu1 %v7791_v51 }
 0x438   :  { %8853 = vmatprep.subr.mxu1 %v16367_v60 }
 0x439   :  { %v4030_v3 = vpop.f32.mrf.mxu1  ;;  %8854 = vmatpush3.msra.mxu1 %v7790_v35 }
 0x43a   :  { %v13853_v19 = vadd.f32 %v4030_v3, %v3857_v25  ;;  %8855 = vmatprep.subr.mxu1 %v16367_v60 }
 0x43b   :  { %v8692_v33 = vpop.f32.mrf.mxu1  ;;  %8856 = vmatpush3.msra.mxu1 %v7789_v56 }
 0x43c   :  { %8879 = vmatprep.subr.mxu1 %v16367_v60 }
 0x43d   :  { %v4183_v5 = vpop.f32.mrf.mxu1 }
 0x43e   :  { %v13855_v28 = vadd.f32 %v4183_v5, %v4034_v29 }
 0x43f   :  { %v8711_v46 = vpop.f32.mrf.mxu1 }
 0x441   :  { %v4188_v1 = vpop.f32.mrf.mxu1 }
 0x442   :  { %v13857_v13 = vadd.f32 %v4188_v1, %v4035_v16 }
 0x443   :  { %v8714_v50 = vpop.f32.mrf.mxu1 }
 0x445   :  { %v4193_v45 = vpop.f32.mrf.mxu1 }
 0x446   :  { %v13859_v39 = vadd.f32 %v4193_v45, %v4036_v59 }
 0x447   :  { %v8717_v40 = vpop.f32.mrf.mxu1 }
 0x449   :  { %v4198_v53 = vpop.f32.mrf.mxu1 }
 0x44a   :  { %v13861_v48 = vadd.f32 %v4198_v53, %v4037_v7 }
 0x44b   :  { %v8720_v9 = vpop.f32.mrf.mxu1 }
 0x44d   :  { %v13863_v20 = vpop.f32.mrf.mxu1 }
 0x44f   :  { %v8723_v30 = vpop.f32.mrf.mxu1 }
 0x451   :  { %v13865_v14 = vpop.f32.mrf.mxu1 }
 0x453   :  { %v8726_v22 = vpop.f32.mrf.mxu1 }
 0x455   :  { %v13867_v10 = vpop.f32.mrf.mxu1 }
 0x457   :  { %v8729_v57 = vpop.f32.mrf.mxu1 }
 0x459   :  { %v13869_v63 = vpop.f32.mrf.mxu1 }
 0x45a   :  { %v4437_v31 = vadd.f32 %v13869_v63, %v13855_v28 }
 0x45b   :  { %v8748_v42 = vpop.f32.mrf.mxu1 }
 0x45d   :  { %v13887_v37 = vpop.f32.mrf.mxu1 }
 0x45e   :  { %v4438_v33 = vadd.f32 %v13887_v37, %v13857_v13 }
 0x45f   :  { %v8751_v36 = vpop.f32.mrf.mxu1 }
 0x461   :  { %v13889_v61 = vpop.f32.mrf.mxu1 }
 0x462   :  { %v4439_v45 = vadd.f32 %v13889_v61, %v13859_v39  ;;  %v4221_v61 = vadd.f32 %v13863_v20, %v13849_v32  ;;  %v4222_v32 = vadd.f32 %v13865_v14, %v13851_v21 }
 0x463   :  { %v8754_v58 = vpop.f32.mrf.mxu1 }
 0x465   :  { %v13911_v52 = vpop.f32.mrf.mxu1 }
 0x466   :  { %v4440_v39 = vadd.f32 %v13911_v52, %v13861_v48 }
 0x467   :  { %v8757_v25 = vpop.f32.mrf.mxu1 }
 0x469   :  { %v4423_v29 = vpop.f32.mrf.mxu1 }
 0x46a   :  { %v4441_v58 = vadd.f32 %v4423_v29, %v4221_v61 }
 0x46b   :  { %v8760_v16 = vpop.f32.mrf.mxu1 }
 0x46c   :  { %v4223_v16 = vadd.f32 %v13867_v10, %v13853_v19 }
 0x46d   :  { %v4428_v59 = vpop.f32.mrf.mxu1 }
 0x46e   :  { %v4442_v62 = vadd.f32 %v4428_v59, %v4222_v32  ;;  %v16554_v32 = vld [vmem:[#allocation12_spill] sm:$0xff] }
 0x46f   :  { %v8763_v44 = vpop.f32.mrf.mxu1 }
 0x471   :  { %v4433_v7 = vpop.f32.mrf.mxu1 }
 0x472   :  { %v4443_v44 = vadd.f32 %v4433_v7, %v4223_v16 }
 0x473   :  { %v8766_v43 = vpop.f32.mrf.mxu1 }
 0x475   :  { %v4586_v38 = vpop.f32.mrf.mxu1 }
 0x476   :  { %v4620_v15 = vadd.f32 %v4586_v38, %v4437_v31 }
 0x477   :  { %v8785_v3 = vpop.f32.mrf.mxu1 }
 0x478   :  { %v13962_v5 = vadd.f32 %v13719_v17, %v4620_v15 }
 0x479   :  { %v4591_v46 = vpop.f32.mrf.mxu1 }
 0x47a   :  { %v4621_v1 = vadd.f32 %v4591_v46, %v4438_v33  ;;  %v4833_v40 = vmul.f32 %v13962_v5, %v13962_v5  ;;  %v4812_v9 = vsel %vm394_vm1, %v13962_v5, 0.0 }
 0x47b   :  { %v8788_v50 = vpop.f32.mrf.mxu1 }
 0x47c   :  { %v13969_v28 = vadd.f32 %v13739_v47, %v4621_v1  ;;  %v4840_v63 = vsel %vm394_vm1, %v4833_v40, 0.0 }
 0x47d   :  { %v4596_v53 = vpop.f32.mrf.mxu1 }
 0x47e   :  { %v4813_v17 = vsel %vm394_vm1, %v13969_v28, 0.0  ;;  %v4834_v13 = vmul.f32 %v13969_v28, %v13969_v28  ;;  %v4622_v30 = vadd.f32 %v4596_v53, %v4439_v45 }
 0x47f   :  { %v4814_v22 = vadd.f32 %v4813_v17, %v4812_v9  ;;  %v8791_v57 = vpop.f32.mrf.mxu1 }
 0x480   :  { %v4841_v47 = vsel %vm394_vm1, %v4834_v13, 0.0  ;;  %v13982_v42 = vadd.f32 %v13780_v18, %v4622_v30 }
 0x481   :  { %v4842_v37 = vadd.f32 %v4841_v47, %v4840_v63  ;;  %v4601_v36 = vpop.f32.mrf.mxu1 }
 0x482   :  { %v4815_v26 = vsel %vm394_vm1, %v13982_v42, 0.0  ;;  %v4835_v49 = vmul.f32 %v13982_v42, %v13982_v42  ;;  %v4623_v4 = vadd.f32 %v4601_v36, %v4440_v39 }
 0x483   :  { %v4816_v48 = vadd.f32 %v4815_v26, %v4814_v22  ;;  %v8794_v2 = vpop.f32.mrf.mxu1 }
 0x484   :  { %v4843_v11 = vsel %vm394_vm1, %v4835_v49, 0.0  ;;  %v13992_v18 = vadd.f32 %v13805_v6, %v4623_v4  ;;  %v4810_v4 = vld [vmem:[%s14950_s3 + $0x2] sm:$0x1]  ;;  %v9211_v2 = vmov 1966171168  }
 0x485   :  { %v4844_v27 = vadd.f32 %v4843_v11, %v4842_v37  ;;  %v4606_v52 = vpop.f32.mrf.mxu1 }
 0x486   :  { %v4817_v20 = vsel %vm394_vm1, %v13992_v18, 0.0  ;;  %v4836_v8 = vmul.f32 %v13992_v18, %v13992_v18  ;;  %v4624_v23 = vadd.f32 %v4606_v52, %v4441_v58  ;;  %v4901_v58 = vunpack.c.l.s4 %v9211_v2 }
 0x487   :  { %v4818_v25 = vadd.f32 %v4817_v20, %v4816_v48  ;;  %v8797_v34 = vpop.f32.mrf.mxu1 }
 0x488   :  { %v4845_v29 = vsel %vm394_vm1, %v4836_v8, 0.0  ;;  %v4807_v6 = vadd.f32 %v13817_v0, %v4624_v23  ;;  %v4902_v8 = vunpack.c.0.s8 %v4901_v58 }
 0x489   :  { %v4846_v24 = vadd.f32 %v4845_v29, %v4844_v27  ;;  %v4611_v51 = vpop.f32.mrf.mxu1  ;;  %v4811_v27 = vld [vmem:[%s14950_s3 + $0x3] sm:$0x1] }
 0x48a   :  { %v4819_v21 = vsel %vm394_vm1, %v4807_v6, 0.0  ;;  %v4837_v14 = vmul.f32 %v4807_v6, %v4807_v6  ;;  %v4625_v12 = vadd.f32 %v4611_v51, %v4442_v62 }
 0x48b   :  { %v4820_v35 = vadd.f32 %v4819_v21, %v4818_v25  ;;  %v8800_v54 = vpop.f32.mrf.mxu1  ;;  %v16555_v21 = vld [vmem:[#allocation11_spill] sm:$0xff] }
 0x48c   :  { %v4847_v56 = vsel %vm394_vm1, %v4837_v14, 0.0  ;;  %v4808_v59 = vadd.f32 %v13831_v55, %v4625_v12  ;;  %v14025_v14 = vsub.s32 %v4902_v8, %v16555_v21 }
 0x48d   :  { %v4848_v43 = vadd.f32 %v4847_v56, %v4846_v24  ;;  %v4616_v31 = vpop.f32.mrf.mxu1 }
 0x48e   :  { %v4821_v0 = vsel %vm394_vm1, %v4808_v59, 0.0  ;;  %v4838_v38 = vmul.f32 %v4808_v59, %v4808_v59  ;;  %v4626_v15 = vadd.f32 %v4616_v31, %v4443_v44 }
 0x48f   :  { %v4822_v3 = vadd.f32 %v4821_v0, %v4820_v35  ;;  %v8803_v19 = vpop.f32.mrf.mxu1 }
 0x490   :  { %v4849_v10 = vsel %vm394_vm1, %v4838_v38, 0.0  ;;  %v4809_v33 = vadd.f32 %v13843_v41, %v4626_v15 }
 0x491   :  { %v4850_v46 = vadd.f32 %v4849_v10, %v4848_v43 }
 0x492   :  { %v4824_v7 = vsel %vm4823_vm10, %v4809_v33, 0.0  ;;  %v4839_v1 = vmul.f32 %v4809_v33, %v4809_v33 }
 0x493   :  { %v4825_v50 = vadd.f32 %v4824_v7, %v4822_v3 }
 0x494   :  { %v4851_v55 = vsel %vm4823_vm10, %v4839_v1, 0.0 }
 0x495   :  { %v4826_v45 = vrot.slane %v4825_v50, 4  ;;  %v4852_v40 = vadd.f32 %v4851_v55, %v4850_v46 }
 0x497   :  { %v4827_v53 = vadd.f32 %v4826_v45, %v4825_v50  ;;  %v4853_v9 = vrot.slane %v4852_v40, 4 }
 0x499   :  { %v4828_v17 = vrot.slane %v4827_v53, 2  ;;  %v4854_v13 = vadd.f32 %v4853_v9, %v4852_v40 }
 0x49b   :  { %v4829_v30 = vadd.f32 %v4828_v17, %v4827_v53  ;;  %v4855_v22 = vrot.slane %v4854_v13, 2 }
 0x49d   :  { %v4830_v57 = vrot.slane %v4829_v30, 1  ;;  %v4856_v39 = vadd.f32 %v4855_v22, %v4854_v13 }
 0x49f   :  { %v4831_v63 = vadd.f32 %v4830_v57, %v4829_v30  ;;  %v4857_v47 = vrot.slane %v4856_v39, 1 }
 0x4a1   :  { %v4832_v41 = vmul.f32 0.02, %v4831_v63  ;;  %v4858_v37 = vadd.f32 %v4857_v47, %v4856_v39 }
 0x4a3   :  { %v4859_v36 = vmul.f32 0.02, %v4858_v37  ;;  %v4860_v61 = vmul.f32 %v4832_v41, %v4832_v41 }
 0x4a5   :  { %v4861_v26 = vsub.f32 %v4859_v36, %v4860_v61 }
 0x4a7   :  { %v4862_v49 = vadd.f32 1e-05, %v4861_v26 }
 0x4a9   :  { %9202 = vrsqrt.f32 %v4862_v49 }
 0x4b6   :  { %v9203_v48 = vpop.eup %9202 }
 0x4b7   :  { %v4864_v11 = vmul.f32 %v9203_v48, %v4810_v4 }
 0x4b9   :  { %v4865_v52 = vmul.f32 %v4864_v11, %v4832_v41  ;;  %v4870_v20 = vrot.slane %v4864_v11, %v16554_v32 }
 0x4bb   :  { %v4866_v23 = vsub.f32 %v4811_v27, %v4865_v52  ;;  %v4871_v25 = vmul.f32 %v4870_v20, %v13962_v5  ;;  %v4872_v34 = vmul.f32 %v4870_v20, %v13969_v28  ;;  %v4873_v62 = vmul.f32 %v4870_v20, %v13982_v42 }
 0x4bc   :  { %v4874_v29 = vmul.f32 %v4870_v20, %v13992_v18  ;;  %v4875_v24 = vmul.f32 %v4870_v20, %v4807_v6  ;;  %v4876_v51 = vmul.f32 %v4870_v20, %v4808_v59 }
 0x4bd   :  { %v4880_v16 = vrot.slane %v4866_v23, %v16554_v32 }
 0x4bf   :  { %v4881_v12 = vadd.f32 %v4880_v16, %v4871_v25  ;;  %v4882_v35 = vadd.f32 %v4880_v16, %v4872_v34  ;;  %v4883_v54 = vadd.f32 %v4880_v16, %v4873_v62  ;;  %v4884_v44 = vadd.f32 %v4880_v16, %v4874_v29 }
 0x4c0   :  { %v4885_v56 = vadd.f32 %v4880_v16, %v4875_v24  ;;  %v4886_v43 = vadd.f32 %v4880_v16, %v4876_v51 }
 0x4c1   :  { %v4887_v5 = vmax.f32 %v4881_v12, 0.0  ;;  %v4888_v31 = vmax.f32 %v4882_v35, 0.0  ;;  %v4889_v28 = vmax.f32 %v4883_v54, 0.0  ;;  %v4890_v0 = vmax.f32 %v4884_v44, 0.0 }
 0x4c2   :  { %v4891_v42 = vmax.f32 %v4885_v56, 0.0  ;;  %v4892_v38 = vmax.f32 %v4886_v43, 0.0 }
 0x4c3   :  { %v4899_v18 = vcombine.high %v4887_v5, %v4887_v5  ;;  %v4906_v6 = vrot.slane %v4887_v5, %v14025_v14  ;;  %v4948_v59 = vcombine.high %v4888_v31, %v4888_v31  ;;  %v4955_v15 = vrot.slane %v4888_v31, %v14025_v14 }
 0x4c4   :  { %v5002_v3 = vrot.slane %v4889_v28, %v14025_v14  ;;  %v5019_v19 = vcombine.high %v4890_v0, %v4890_v0  ;;  %v5026_v10 = vrot.slane %v4890_v0, %v14025_v14  ;;  %v5068_v33 = vcombine.high %v4891_v42, %v4891_v42 }
 0x4c5   :  { %v4913_v46 = vrot.slane %v4899_v18, %v14025_v14  ;;  %v4914_v7 = vcombine.high %v4906_v6, %v4906_v6  ;;  %v14033_v1 = vrot.slane %v4906_v6, %v14025_v14  ;;  %v4962_v50 = vrot.slane %v4948_v59, %v14025_v14 }
 0x4c6   :  { %v4963_v55 = vcombine.high %v4955_v15, %v4955_v15  ;;  %v4971_v45 = vrot.slane %v4955_v15, %v14025_v14  ;;  %v5003_v40 = vcombine.high %v5002_v3, %v5002_v3  ;;  %v5010_v53 = vrot.slane %v5002_v3, %v14025_v14 }
 0x4c7   :  { %v4915_v9 = vcombine.high %v4913_v46, %v4913_v46  ;;  %v4929_v17 = vrot.slane %v4913_v46, %v14025_v14  ;;  %v4936_v13 = vrot.slane %v4914_v7, %v14025_v14  ;;  %v4944_v30 = vcombine.high %v14033_v1, %v14033_v1 }
 0x4c8   :  { %v4964_v22 = vcombine.high %v4962_v50, %v4962_v50  ;;  %v4978_v57 = vrot.slane %v4962_v50, %v14025_v14  ;;  %v4985_v39 = vrot.slane %v4963_v55, %v14025_v14  ;;  %v4993_v63 = vcombine.high %v4971_v45, %v4971_v45 }
 0x4c9   :  { %v4943_v47 = vrot.slane %v4915_v9, %v14025_v14  ;;  %v4945_v41 = vcombine.high %v4929_v17, %v4929_v17  ;;  %v4946_v37 = vcombine.high %v4936_v13, %v4936_v13  ;;  %v5017_v36 = vrot.slane %v5003_v40, %v14025_v14 }
 0x4ca   :  { %v4992_v61 = vrot.slane %v4964_v22, %v14025_v14  ;;  %v4994_v26 = vcombine.high %v4985_v39, %v4985_v39  ;;  %v5018_v49 = vcombine.high %v5010_v53, %v5010_v53  ;;  %v5033_v4 = vrot.slane %v5019_v19, %v14025_v14 }
 0x4cb   :  { %v4947_v48 = vcombine.high %v4943_v47, %v4943_v47  ;;  %v5034_v2 = vcombine.high %v5026_v10, %v5026_v10  ;;  %v5042_v58 = vrot.slane %v5026_v10, %v14025_v14  ;;  %v5075_v11 = vrot.slane %v4891_v42, %v14025_v14 }
 0x4cc   :  { %v4995_v27 = vcombine.high %v4992_v61, %v4992_v61  ;;  %v5035_v52 = vcombine.high %v5033_v4, %v5033_v4  ;;  %v5049_v20 = vrot.slane %v5033_v4, %v14025_v14  ;;  %v5082_v8 = vrot.slane %v5068_v33, %v14025_v14  ;;  %v5281_v4 = vld [vmem:[#allocation2] sm:$0xf] }
 0x4cd   :  { %v5056_v23 = vrot.slane %v5034_v2, %v14025_v14  ;;  %v5064_v25 = vcombine.high %v5042_v58, %v5042_v58  ;;  %v5083_v34 = vcombine.high %v5075_v11, %v5075_v11  ;;  %v5091_v62 = vrot.slane %v5075_v11, %v14025_v14  ;;  %v5285_v58 = vld [vmem:[#allocation2 + $0x10] sm:$0xf] }
 0x4ce   :  { %v5063_v29 = vrot.slane %v5035_v52, %v14025_v14  ;;  %v5065_v24 = vcombine.high %v5049_v20, %v5049_v20  ;;  %v5084_v51 = vcombine.high %v5082_v8, %v5082_v8  ;;  %v5098_v16 = vrot.slane %v5082_v8, %v14025_v14  ;;  %v16556_v52 = vld [vmem:[#allocation3_spill] sm:$0xff] }
 0x4cf   :  { %v5066_v12 = vcombine.high %v5056_v23, %v5056_v23  ;;  %v5105_v35 = vrot.slane %v5083_v34, %v14025_v14  ;;  %v5121_v54 = vrot.slane %v4892_v38, %v14025_v14  ;;  %v5171_v44 = vmax.f32 %v14033_v1, %v4936_v13 }
 0x4d0   :  { %v5067_v56 = vcombine.high %v5063_v29, %v5063_v29  ;;  %v5112_v43 = vrot.slane %v5084_v51, %v14025_v14  ;;  %v5113_v5 = vcombine.high %v5098_v16, %v5098_v16  ;;  %v5172_v31 = vmax.f32 %v4944_v30, %v4946_v37 }
 0x4d1   :  { %v5114_v28 = vcombine.high %v5105_v35, %v5105_v35  ;;  %v5122_v0 = vcombine.high %v5121_v54, %v5121_v54  ;;  %v5129_v42 = vrot.slane %v5121_v54, %v14025_v14  ;;  %v5173_v18 = vmax.f32 %v4943_v47, %v4945_v41 }
 0x4d2   :  { %v5174_v6 = vmax.f32 %v4947_v48, %v4971_v45  ;;  %v5175_v59 = vmax.f32 %v4993_v63, %v4994_v26  ;;  %v5176_v15 = vmax.f32 %v4978_v57, %v4992_v61  ;;  %v5177_v3 = vmax.f32 %v4995_v27, %v5010_v53 }
 0x4d3   :  { %v5136_v19 = vrot.slane %v5122_v0, %v14025_v14  ;;  %v5137_v10 = vcombine.high %v5129_v42, %v5129_v42  ;;  %v5178_v38 = vmax.f32 %v5017_v36, %v5018_v49  ;;  %v5179_v33 = vmax.f32 %v5056_v23, %v5064_v25 }
 0x4d4   :  { %v5180_v46 = vmax.f32 %v5066_v12, %v5049_v20  ;;  %v5181_v7 = vmax.f32 %v5065_v24, %v5067_v56  ;;  %v5182_v1 = vmax.f32 %v5091_v62, %v5105_v35  ;;  %v5183_v50 = vmax.f32 %v5114_v28, %v5098_v16  ;;  %v7949_v28 = vld [vmem:[%s14951_s2 + $0x650] sm:$0xff] }
 0x4d5   :  { %v5138_v55 = vcombine.high %v5136_v19, %v5136_v19  ;;  %v5184_v40 = vmax.f32 %v5112_v43, %v5113_v5  ;;  %v5185_v9 = vmax.f32 %v5129_v42, %v5136_v19  ;;  %v5187_v17 = vmax.f32 %v5171_v44, %v5173_v18 }
 0x4d6   :  { %v5188_v13 = vmax.f32 %v5172_v31, %v5174_v6  ;;  %v5189_v30 = vmax.f32 %v5175_v59, %v5177_v3  ;;  %v5190_v22 = vmax.f32 %v5176_v15, %v5178_v38  ;;  %v5191_v45 = vmax.f32 %v5179_v33, %v5181_v7  ;;  %v7817_v59 = vld [vmem:[%s14951_s2 + $0x338] sm:$0xff]  ;;  %v7816_v38 = vld [vmem:[%s14951_s2 + $0x330] sm:$0xff] }
 0x4d7   :  { %v5186_v39 = vmax.f32 %v5137_v10, %v5138_v55  ;;  %v5192_v57 = vmax.f32 %v5180_v46, %v5182_v1  ;;  %v5193_v53 = vmax.f32 %v5183_v50, %v5185_v9  ;;  %v14072_v20 = vrot.slane %v5281_v4, %v16556_v52  ;;  %v7815_v1 = vld [vmem:[%s14951_s2 + $0x328] sm:$0xff]  ;;  %v7814_v9 = vld [vmem:[%s14951_s2 + $0x320] sm:$0xff] }
 0x4d8   :  { %v5212_v63 = vcombine.low %v5187_v17, %v5188_v13  ;;  %v5227_v47 = vcombine.low %v5189_v30, %v5190_v22  ;;  %v14077_v23 = vrot.slane %v5285_v58, %v16556_v52  ;;  %v7806_v13 = vld [vmem:[%s14951_s2 + $0x2f8] sm:$0xff] }
 0x4d9   :  { %v5194_v41 = vmax.f32 %v5184_v40, %v5186_v39  ;;  %v5242_v37 = vcombine.low %v5191_v45, %v5192_v57  ;;  %v5309_v25 = vcombine.high %v14072_v20, %v14072_v20  ;;  %v7785_v51 = vrot.slane %v14072_v20, 9  ;;  %v7813_v22 = vld [vmem:[%s14951_s2 + $0x318] sm:$0xff]  ;;  %v7805_v57 = vld [vmem:[%s14951_s2 + $0x2f0] sm:$0xff] }
 0x4da   :  { %v5219_v36 = vrot.slane %v5212_v63, %v14025_v14  ;;  %v5234_v61 = vrot.slane %v5227_v47, %v14025_v14  ;;  %v5325_v34 = vcombine.high %v14077_v23, %v14077_v23  ;;  %v7787_v54 = vrot.slane %v14077_v23, 9  ;;  %v7804_v63 = vld [vmem:[%s14951_s2 + $0x2e8] sm:$0xff] }
 0x4db   :  { %v5249_v26 = vrot.slane %v5242_v37, %v14025_v14  ;;  %v5257_v49 = vcombine.low %v5193_v53, %v5194_v41  ;;  %v5340_v16 = vrot.slane %v5309_v25, 7  ;;  %v7812_v53 = vld [vmem:[%s14951_s2 + $0x310] sm:$0xff]  ;;  %v7811_v47 = vld [vmem:[%s14951_s2 + $0x308] sm:$0xff] }
 0x4dc   :  { %v5226_v48 = vrot.slane %v5219_v36, %v14025_v14  ;;  %v5241_v2 = vrot.slane %v5234_v61, %v14025_v14  ;;  %v5348_v44 = vrot.slane %v5325_v34, 7  ;;  %v7803_v36 = vld [vmem:[%s14951_s2 + $0x2e0] sm:$0xff]  ;;  %v7835_v25 = vld [vmem:[%s14951_s2 + $0x3a8] sm:$0xff] }
 0x4dd   :  { %v5256_v11 = vrot.slane %v5249_v26, %v14025_v14  ;;  %v5264_v27 = vrot.slane %v5257_v49, %v14025_v14  ;;  %v5341_v0 = vsel %vm14101_vm14, %v7785_v51, %v5340_v16  ;;  %v7810_v61 = vld [vmem:[%s14951_s2 + $0x300] sm:$0xff]  ;;  %v7802_v26 = vld [vmem:[%s14951_s2 + $0x2d8] sm:$0xff] }
 0x4de   :  { %5277 = vst.msk [vmem:[#allocation2 + $0x5] sm:$0x3] %vm4823_vm10, %v5226_v48  ;;  %5278 = vst.msk [vmem:[#allocation2 + $0x9] sm:$0x3] %vm4823_vm10, %v5241_v2  ;;  %v5349_v15 = vsel %vm14101_vm14, %v7787_v54, %v5348_v44  ;;  %v7837_v2 = vld [vmem:[%s14951_s2 + $0x3b8] sm:$0xff]  ;;  %v7799_v34 = vld [vmem:[%s14951_s2 + $0x2c0] sm:$0xff] }
 0x4df   :  { %v5271_v8 = vrot.slane %v5264_v27, %v14025_v14  ;;  %5279 = vst.msk [vmem:[#allocation2 + $0x15] sm:$0x3] %vm4823_vm10, %v5256_v11  ;;  %v7836_v11 = vld [vmem:[%s14951_s2 + $0x3b0] sm:$0xff]  ;;  %v7800_v27 = vld [vmem:[%s14951_s2 + $0x2c8] sm:$0xff]  ;;  %v7834_v51 = vld [vmem:[%s14951_s2 + $0x3a0] sm:$0xff] }
 0x4e0   :  { %v7828_v16 = vld [vmem:[%s14951_s2 + $0x378] sm:$0xff]  ;;  %v7827_v44 = vld [vmem:[%s14951_s2 + $0x370] sm:$0xff] }
 0x4e1   :  { %5280 = vst.msk [vmem:[#allocation2 + $0x19] sm:$0x3] %vm4823_vm10, %v5271_v8  ;;  %v7833_v54 = vld [vmem:[%s14951_s2 + $0x398] sm:$0xff] }
 0x4e5   :  { %v5282_v62 = vld [vmem:[#allocation2 + $0x4] sm:$0xf]  ;;  %v14136_v40 = vld [vmem:[#allocation2 + $0x8] sm:$0xf] }
 0x4e6   :  { %v5286_v29 = vld [vmem:[#allocation2 + $0x14] sm:$0xf]  ;;  %v14086_v14 = vrot.slane %v5282_v62, %v16556_v52  ;;  %v5452_v24 = vcombine.low %v5281_v4, %v5282_v62  ;;  %v5651_v45 = vcombine.low %v5282_v62, %v14136_v40 }
 0x4e7   :  { %v14091_v12 = vrot.slane %v5286_v29, %v16556_v52  ;;  %v5453_v35 = vcombine.low %v5285_v58, %v5286_v29  ;;  %v7801_v58 = vld [vmem:[%s14951_s2 + $0x2d0] sm:$0xff] }
 0x4e8   :  { %v5460_v56 = vrot.slane %v5452_v24, %v16556_v52  ;;  %v5317_v43 = vcombine.high %v14086_v14, %v14086_v14  ;;  %v7786_v42 = vrot.slane %v14086_v14, 9  ;;  %v14145_v30 = vld [vmem:[#allocation2 + $0x18] sm:$0xf]  ;;  %v5659_v41 = vrot.slane %v5651_v45, %v16556_v52 }
 0x4e9   :  { %v5467_v5 = vrot.slane %v5453_v35, %v16556_v52  ;;  %v5333_v31 = vcombine.high %v14091_v12, %v14091_v12  ;;  %v7788_v3 = vrot.slane %v14091_v12, 9  ;;  %v5652_v39 = vcombine.low %v5286_v29, %v14145_v30  ;;  %v7859_v45 = vld [vmem:[%s14951_s2 + $0x438] sm:$0xff] }
 0x4ea   :  { %v5344_v18 = vrot.slane %v5317_v43, 7  ;;  %v7807_v4 = vcombine.high %v14072_v20, %v14086_v14  ;;  %v7808_v48 = vcombine.high %v14077_v23, %v14091_v12  ;;  %v14206_v20 = vrot.slane %v14136_v40, %v16556_v52 }
 0x4eb   :  { %v5468_v6 = vcombine.low %v5460_v56, %v5467_v5  ;;  %v5352_v19 = vrot.slane %v5333_v31, 7  ;;  %v5666_v37 = vrot.slane %v5652_v39, %v16556_v52  ;;  %v14220_v62 = vrot.slane %v14145_v30, %v16556_v52  ;;  %v14249_v5 = vld [vmem:[#allocation2 + $0xc] sm:$0xf]  ;;  %v7823_v39 = vld [vmem:[%s14951_s2 + $0x350] sm:$0xff] }
 0x4ec   :  { %v14116_v10 = vsel %vm14101_vm14, %v7786_v42, %v5344_v18  ;;  %v5558_v8 = vrot.slane %v7807_v4, %v16556_v52  ;;  %v5565_v23 = vrot.slane %v7808_v48, %v16556_v52  ;;  %v5748_v29 = vcombine.high %v14206_v20, %v14206_v20  ;;  %v14259_v42 = vld [vmem:[#allocation2 + $0x1c] sm:$0xf]  ;;  %v7856_v48 = vld [vmem:[%s14951_s2 + $0x420] sm:$0xff] }
 0x4ed   :  { %8877 = vmatmul.mubr.msk.f32.vlgmr.msra.gmra.mxu0 %vm394_vm1, %v5468_v6  ;;  %v14124_v33 = vsel %vm14101_vm14, %v7788_v3, %v5352_v19  ;;  %v5363_v46 = vcombine.low %v5341_v0, %v14116_v10  ;;  %v5667_v49 = vcombine.low %v5659_v41, %v5666_v37  ;;  %v5756_v35 = vcombine.high %v14220_v62, %v14220_v62  ;;  %v7832_v0 = vld [vmem:[%s14951_s2 + $0x390] sm:$0xff]  ;;  %v7857_v37 = vld [vmem:[%s14951_s2 + $0x428] sm:$0xff] }
 0x4ee   :  { %8899 = vmatpush3.msra.mxu0 %v7817_v59  ;;  %v5364_v7 = vcombine.low %v5349_v15, %v14124_v33  ;;  %8914 = vmatprep.mubr.msk.f32.mxu0 %vm9209_vm0, %v16367_v60  ;;  %v5566_v24 = vcombine.low %v5558_v8, %v5565_v23  ;;  %v7838_v56 = vcombine.high %v14086_v14, %v14206_v20  ;;  %v5759_v31 = vrot.slane %v5748_v29, 7  ;;  %v7826_v14 = vld [vmem:[%s14951_s2 + $0x368] sm:$0xff]  ;;  %v7825_v15 = vld [vmem:[%s14951_s2 + $0x360] sm:$0xff]  ;;  %v7854_v23 = vld [vmem:[%s14951_s2 + $0x410] sm:$0xff] }
 0x4ef   :  { %8900 = vmatprep.subr.mxu0 %v16367_v60  ;;  %v5371_v50 = vrot.slane %v5363_v46, %v16556_v52  ;;  %v7839_v43 = vcombine.high %v14091_v12, %v14220_v62  ;;  %v7819_v12 = vrot.slane %v14206_v20, 9  ;;  %v5763_v18 = vrot.slane %v5756_v35, 7  ;;  %v7831_v59 = vld [vmem:[%s14951_s2 + $0x388] sm:$0xff] }
 0x4f0   :  { %8901 = vmatpush3.msra.mxu0 %v7816_v38  ;;  %v5378_v55 = vrot.slane %v5364_v7, %v16556_v52  ;;  %v14264_v6 = vrot.slane %v14249_v5, %v16556_v52  ;;  %v5881_v3 = vrot.slane %v7838_v56, %v16556_v52  ;;  %v7820_v46 = vrot.slane %v14220_v62, 9  ;;  %v7853_v29 = vld [vmem:[%s14951_s2 + $0x408] sm:$0xff] }
 0x4f1   :  { %8902 = vmatprep.subr.mxu0 %v16367_v60  ;;  %v5888_v19 = vrot.slane %v7839_v43, %v16556_v52  ;;  %v14278_v38 = vsel %vm14101_vm14, %v7819_v12, %v5759_v31  ;;  %v14283_v7 = vrot.slane %v14259_v42, %v16556_v52  ;;  %v7843_v43 = vld [vmem:[%s14951_s2 + $0x3d0] sm:$0xff]  ;;  %v5975_v31 = vcombine.low %v14145_v30, %v14259_v42  ;;  %v7841_v30 = vld [vmem:[%s14951_s2 + $0x3c0] sm:$0xff]  ;;  %v7868_v42 = vld [vmem:[%s14951_s2 + $0x478] sm:$0xff] }
 0x4f2   :  { %8903 = vmatpush3.msra.mxu0 %v7815_v1  ;;  %v5379_v17 = vcombine.low %v5371_v50, %v5378_v55  ;;  %v7830_v1 = vld [vmem:[%s14951_s2 + $0x380] sm:$0xff]  ;;  %v7824_v50 = vld [vmem:[%s14951_s2 + $0x358] sm:$0xff]  ;;  %v14295_v55 = vsel %vm14101_vm14, %v7820_v46, %v5763_v18  ;;  %v7867_v12 = vld [vmem:[%s14951_s2 + $0x470] sm:$0xff] }
 0x4f3   :  { %8904 = vmatprep.subr.mxu0 %v16367_v60  ;;  %v7866_v18 = vld [vmem:[%s14951_s2 + $0x468] sm:$0xff] }
 0x4f4   :  { %8905 = vmatpush3.msra.mxu0 %v7814_v9  ;;  %8858 = vmatmul.mubr.msk.f32.vlgmr.msra.gmra.mxu1 %vm394_vm1, %v5379_v17  ;;  %v6071_v9 = vcombine.high %v14264_v6, %v14264_v6  ;;  %v5889_v17 = vcombine.low %v5881_v3, %v5888_v19  ;;  %v7869_v3 = vcombine.high %v14206_v20, %v14264_v6  ;;  %v7863_v19 = vld [vmem:[%s14951_s2 + $0x450] sm:$0xff]  ;;  %v7862_v46 = vld [vmem:[%s14951_s2 + $0x448] sm:$0xff]  ;;  %v7861_v20 = vld [vmem:[%s14951_s2 + $0x440] sm:$0xff] }
 0x4f5   :  { %8880 = vmatpush3.msra.mxu1 %v7806_v13  ;;  %8906 = vmatprep.subr.mxu0 %v16367_v60  ;;  %v5774_v13 = vcombine.low %v14116_v10, %v14278_v38  ;;  %v7858_v10 = vld [vmem:[%s14951_s2 + $0x430] sm:$0xff] }
 0x4f6   :  { %8881 = vmatprep.subr.mxu1 %v16367_v60  ;;  %8907 = vmatpush3.msra.mxu0 %v7813_v22  ;;  %v5775_v22 = vcombine.low %v14124_v33, %v14295_v55  ;;  %v7822_v33 = vld [vmem:[%s14951_s2 + $0x348] sm:$0xff] }
 0x4f7   :  { %8882 = vmatpush3.msra.mxu1 %v7805_v57  ;;  %8908 = vmatprep.subr.mxu0 %v16367_v60  ;;  %v6079_v57 = vcombine.high %v14283_v7, %v14283_v7 }
 0x4f8   :  { %8883 = vmatprep.subr.mxu1 %v16367_v60  ;;  %8909 = vmatpush3.msra.mxu0 %v7812_v53  ;;  %v7850_v53 = vrot.slane %v14264_v6, 9  ;;  %v5789_v41 = vrot.slane %v5775_v22, %v16556_v52  ;;  %v7890_v22 = vld [vmem:[%s14951_s2 + $0x4f0] sm:$0xff] }
 0x4f9   :  { %8884 = vmatpush3.msra.mxu1 %v7804_v63  ;;  %8910 = vmatprep.subr.mxu0 %v16367_v60  ;;  %v6082_v63 = vrot.slane %v6071_v9, 7  ;;  %v7878_v9 = vld [vmem:[%s14951_s2 + $0x4b0] sm:$0xff] }
 0x4fa   :  { %8885 = vmatprep.subr.mxu1 %v16367_v60  ;;  %8911 = vmatpush3.msra.mxu0 %v7811_v47  ;;  %v5782_v47 = vrot.slane %v5774_v13, %v16556_v52  ;;  %v7877_v13 = vld [vmem:[%s14951_s2 + $0x4a8] sm:$0xff] }
 0x4fb   :  { %8886 = vmatpush3.msra.mxu1 %v7803_v36  ;;  %8912 = vmatprep.subr.mxu0 %v16367_v60  ;;  %v7821_v36 = vld [vmem:[%s14951_s2 + $0x340] sm:$0xff] }
 0x4fc   :  { %8887 = vmatprep.subr.mxu1 %v16367_v60  ;;  %8913 = vmatpush3.msra.mxu0 %v7810_v61  ;;  %v7851_v61 = vrot.slane %v14283_v7, 9  ;;  %v5790_v4 = vcombine.low %v5782_v47, %v5789_v41  ;;  %v7874_v47 = vld [vmem:[%s14951_s2 + $0x490] sm:$0xff]  ;;  %v7873_v41 = vld [vmem:[%s14951_s2 + $0x488] sm:$0xff] }
 0x4fd   :  { %8888 = vmatpush3.msra.mxu1 %v7802_v26  ;;  %8915 = vmatmul.mubr.msk.f32.vlgmr.msra.gmra.mxu0 %vm394_vm1, %v5667_v49  ;;  %v6086_v26 = vrot.slane %v6079_v57, 7  ;;  %v6083_v49 = vsel %vm14101_vm14, %v7850_v53, %v6082_v63  ;;  %v7876_v57 = vld [vmem:[%s14951_s2 + $0x4a0] sm:$0xff]  ;;  %v7875_v53 = vld [vmem:[%s14951_s2 + $0x498] sm:$0xff] }
 0x4fe   :  { %8936 = vmatprep.subr.mxu0 %v16367_v60  ;;  %8889 = vmatprep.subr.mxu1 %v16367_v60  ;;  %v6097_v8 = vcombine.low %v14278_v38, %v6083_v49  ;;  %v7870_v38 = vcombine.high %v14220_v62, %v14283_v7  ;;  %v7887_v63 = vld [vmem:[%s14951_s2 + $0x4d8] sm:$0xff]  ;;  %v7885_v49 = vld [vmem:[%s14951_s2 + $0x4c8] sm:$0xff] }
 0x4ff   :  { %8937 = vmatpush3.msra.mxu0 %v7837_v2  ;;  %8890 = vmatpush3.msra.mxu1 %v7801_v58  ;;  %v7848_v2 = vld [vmem:[%s14951_s2 + $0x3f8] sm:$0xff]  ;;  %v6087_v58 = vsel %vm14101_vm14, %v7851_v61, %v6086_v26  ;;  %v7886_v61 = vld [vmem:[%s14951_s2 + $0x4d0] sm:$0xff] }
 0x500   :  { %8938 = vmatprep.subr.mxu0 %v16367_v60  ;;  %8891 = vmatprep.subr.mxu1 %v16367_v60  ;;  %v6211_v6 = vrot.slane %v7870_v38, %v16556_v52 }
 0x501   :  { %8939 = vmatpush3.msra.mxu0 %v7836_v11  ;;  %8892 = vmatpush3.msra.mxu1 %v7800_v27  ;;  %v7855_v11 = vld [vmem:[%s14951_s2 + $0x418] sm:$0xff]  ;;  %v7847_v27 = vld [vmem:[%s14951_s2 + $0x3f0] sm:$0xff] }
 0x502   :  { %8940 = vmatprep.subr.mxu0 %v16367_v60  ;;  %8893 = vmatprep.subr.mxu1 %v16367_v60 }
 0x503   :  { %8941 = vmatpush3.msra.mxu0 %v7835_v25  ;;  %8894 = vmatpush3.msra.mxu1 %v7799_v34  ;;  %v7846_v25 = vld [vmem:[%s14951_s2 + $0x3e8] sm:$0xff]  ;;  %v6098_v34 = vcombine.low %v14295_v55, %v6087_v58  ;;  %v7879_v55 = vld [vmem:[%s14951_s2 + $0x4b8] sm:$0xff] }
 0x504   :  { %8895 = vmatprep.mubr.msk.f32.mxu1 %vm9209_vm0, %v16367_v60  ;;  %8942 = vmatprep.subr.mxu0 %v16367_v60 }
 0x505   :  { %8896 = vmatmul.mubr.msk.f32.vlgmr.msra.gmra.mxu1 %vm394_vm1, %v5566_v24  ;;  %8917 = vmatprep.subr.mxu1 %v16367_v60  ;;  %v7845_v24 = vld [vmem:[%s14951_s2 + $0x3e0] sm:$0xff]  ;;  %v6112_v35 = vrot.slane %v6098_v34, %v16556_v52 }
 0x506   :  { %8943 = vmatpush3.msra.mxu0 %v7834_v51  ;;  %8918 = vmatpush3.msra.mxu1 %v7828_v16  ;;  %v6105_v51 = vrot.slane %v6097_v8, %v16556_v52  ;;  %v7852_v16 = vld [vmem:[%s14951_s2 + $0x400] sm:$0xff] }
 0x507   :  { %8944 = vmatprep.subr.mxu0 %v16367_v60  ;;  %8919 = vmatprep.subr.mxu1 %v16367_v60 }
 0x508   :  { %8945 = vmatpush3.msra.mxu0 %v7833_v54  ;;  %8920 = vmatpush3.msra.mxu1 %v7827_v44  ;;  %v7844_v54 = vld [vmem:[%s14951_s2 + $0x3d8] sm:$0xff]  ;;  %v5974_v44 = vcombine.low %v14136_v40, %v14249_v5  ;;  %v6113_v56 = vcombine.low %v6105_v51, %v6112_v35  ;;  %v7842_v40 = vld [vmem:[%s14951_s2 + $0x3c8] sm:$0xff] }
 0x509   :  { %8946 = vmatprep.subr.mxu0 %v16367_v60  ;;  %8921 = vmatprep.subr.mxu1 %v16367_v60 }
 0x50a   :  { %8947 = vmatpush3.msra.mxu0 %v7832_v0  ;;  %8922 = vmatpush3.msra.mxu1 %v7826_v14  ;;  %v5982_v5 = vrot.slane %v5974_v44, %v16556_v52  ;;  %v5989_v0 = vrot.slane %v5975_v31, %v16556_v52 }
 0x50b   :  { %8948 = vmatprep.subr.mxu0 %v16367_v60  ;;  %8923 = vmatprep.subr.mxu1 %v16367_v60 }
 0x50c   :  { %8949 = vmatpush3.msra.mxu0 %v7831_v59  ;;  %8924 = vmatpush3.msra.mxu1 %v7825_v15  ;;  %v5990_v14 = vcombine.low %v5982_v5, %v5989_v0  ;;  %v7865_v59 = vld [vmem:[%s14951_s2 + $0x460] sm:$0xff]  ;;  %v7864_v15 = vld [vmem:[%s14951_s2 + $0x458] sm:$0xff] }
 0x50d   :  { %8950 = vmatprep.subr.mxu0 %v16367_v60  ;;  %8925 = vmatprep.subr.mxu1 %v16367_v60 }
 0x50e   :  { %8951 = vmatpush3.msra.mxu0 %v7830_v1  ;;  %8952 = vmatprep.mubr.msk.f32.mxu0 %vm9209_vm0, %v16367_v60  ;;  %v6204_v1 = vrot.slane %v7869_v3, %v16556_v52 }
 0x50f   :  { %8926 = vmatpush3.msra.mxu1 %v7824_v50  ;;  %8953 = vmatmul.mubr.msk.f32.vlgmr.msra.gmra.mxu0 %vm394_vm1, %v5889_v17  ;;  %v7891_v17 = vld [vmem:[%s14951_s2 + $0x4f8] sm:$0xff] }
 0x510   :  { %8974 = vmatprep.subr.mxu0 %v16367_v60  ;;  %8927 = vmatprep.subr.mxu1 %v16367_v60  ;;  %v6212_v62 = vcombine.low %v6204_v1, %v6211_v6 }
 0x511   :  { %8975 = vmatpush3.msra.mxu0 %v7859_v45  ;;  %8928 = vmatpush3.msra.mxu1 %v7823_v39  ;;  %v7889_v45 = vld [vmem:[%s14951_s2 + $0x4e8] sm:$0xff] }
 0x512   :  { %8976 = vmatprep.subr.mxu0 %v16367_v60  ;;  %8929 = vmatprep.subr.mxu1 %v16367_v60 }
 0x513   :  { %8977 = vmatpush3.msra.mxu0 %v7858_v10  ;;  %8930 = vmatpush3.msra.mxu1 %v7822_v33  ;;  %v7888_v10 = vld [vmem:[%s14951_s2 + $0x4e0] sm:$0xff] }
 0x514   :  { %8978 = vmatprep.subr.mxu0 %v16367_v60  ;;  %8931 = vmatprep.subr.mxu1 %v16367_v60 }
 0x515   :  { %8979 = vmatpush3.msra.mxu0 %v7857_v37  ;;  %8932 = vmatpush3.msra.mxu1 %v7821_v36  ;;  %v7872_v37 = vld [vmem:[%s14951_s2 + $0x480] sm:$0xff] }
 0x516   :  { %8933 = vmatprep.mubr.msk.f32.mxu1 %vm9209_vm0, %v16367_v60  ;;  %8980 = vmatprep.subr.mxu0 %v16367_v60 }
 0x517   :  { %8934 = vmatmul.mubr.msk.f32.vlgmr.msra.gmra.mxu1 %vm394_vm1, %v5790_v4  ;;  %8955 = vmatprep.subr.mxu1 %v16367_v60  ;;  %v7884_v4 = vld [vmem:[%s14951_s2 + $0x4c0] sm:$0xff] }
 0x518   :  { %8981 = vmatpush3.msra.mxu0 %v7856_v48  ;;  %8956 = vmatpush3.msra.mxu1 %v7848_v2 }
 0x519   :  { %8982 = vmatprep.subr.mxu0 %v16367_v60  ;;  %8957 = vmatprep.subr.mxu1 %v16367_v60 }
 0x51a   :  { %8983 = vmatpush3.msra.mxu0 %v7855_v11  ;;  %8958 = vmatpush3.msra.mxu1 %v7847_v27 }
 0x51b   :  { %8984 = vmatprep.subr.mxu0 %v16367_v60  ;;  %8959 = vmatprep.subr.mxu1 %v16367_v60 }
 0x51c   :  { %8985 = vmatpush3.msra.mxu0 %v7854_v23  ;;  %8960 = vmatpush3.msra.mxu1 %v7846_v25 }
 0x51d   :  { %8986 = vmatprep.subr.mxu0 %v16367_v60  ;;  %8961 = vmatprep.subr.mxu1 %v16367_v60 }
 0x51e   :  { %8987 = vmatpush3.msra.mxu0 %v7853_v29  ;;  %8962 = vmatpush3.msra.mxu1 %v7845_v24 }
 0x51f   :  { %8988 = vmatprep.subr.mxu0 %v16367_v60  ;;  %8963 = vmatprep.subr.mxu1 %v16367_v60 }
 0x520   :  { %8989 = vmatpush3.msra.mxu0 %v7852_v16  ;;  %8990 = vmatprep.mubr.msk.f32.mxu0 %vm9209_vm0, %v16367_v60 }
 0x521   :  { %8964 = vmatpush3.msra.mxu1 %v7844_v54  ;;  %8991 = vmatmul.mubr.msk.f32.vlgmr.msra.gmra.mxu0 %vm394_vm1, %v6113_v56 }
 0x522   :  { %8965 = vmatprep.subr.mxu1 %v16367_v60  ;;  %8971 = vmatprep.mubr.msk.f32.mxu1 %vm9209_vm0, %v16367_v60 }
 0x523   :  { %8966 = vmatpush3.msra.mxu1 %v7843_v43  ;;  %9012 = vmatprep.subr.mxu0 %v16367_v60 }
 0x524   :  { %8967 = vmatprep.subr.mxu1 %v16367_v60  ;;  %9028 = vmatprep.mubr.msk.f32.mxu0 %vm9209_vm0, %v16367_v60 }
 0x525   :  { %8968 = vmatpush3.msra.mxu1 %v7842_v40  ;;  %9013 = vmatpush3.msra.mxu0 %v7891_v17 }
 0x526   :  { %8969 = vmatprep.subr.mxu1 %v16367_v60  ;;  %9014 = vmatprep.subr.mxu0 %v16367_v60 }
 0x527   :  { %8970 = vmatpush3.msra.mxu1 %v7841_v30  ;;  %9015 = vmatpush3.msra.mxu0 %v7890_v22  ;;  %v6287_v22 = vld [vmem:[%s14950_s3 + $0x5] sm:$0x1] }
 0x528   :  { %8972 = vmatmul.mubr.msk.f32.vlgmr.msra.gmra.mxu1 %vm394_vm1, %v5990_v14  ;;  %8993 = vmatprep.subr.mxu1 %v16367_v60 }
 0x529   :  { %8994 = vmatpush3.msra.mxu1 %v7868_v42  ;;  %9009 = vmatprep.mubr.msk.f32.mxu1 %vm9209_vm0, %v16367_v60 }
 0x52a   :  { %8995 = vmatprep.subr.mxu1 %v16367_v60  ;;  %9016 = vmatprep.subr.mxu0 %v16367_v60 }
 0x52b   :  { %8996 = vmatpush3.msra.mxu1 %v7867_v12  ;;  %9017 = vmatpush3.msra.mxu0 %v7889_v45 }
 0x52c   :  { %8997 = vmatprep.subr.mxu1 %v16367_v60  ;;  %9018 = vmatprep.subr.mxu0 %v16367_v60 }
 0x52d   :  { %8998 = vmatpush3.msra.mxu1 %v7866_v18  ;;  %9019 = vmatpush3.msra.mxu0 %v7888_v10 }
 0x52e   :  { %8999 = vmatprep.subr.mxu1 %v16367_v60  ;;  %9020 = vmatprep.subr.mxu0 %v16367_v60 }
 0x52f   :  { %9000 = vmatpush3.msra.mxu1 %v7865_v59  ;;  %9021 = vmatpush3.msra.mxu0 %v7887_v63 }
 0x530   :  { %9001 = vmatprep.subr.mxu1 %v16367_v60  ;;  %9022 = vmatprep.subr.mxu0 %v16367_v60 }
 0x531   :  { %9002 = vmatpush3.msra.mxu1 %v7864_v15  ;;  %9023 = vmatpush3.msra.mxu0 %v7886_v61 }
 0x532   :  { %9003 = vmatprep.subr.mxu1 %v16367_v60  ;;  %9024 = vmatprep.subr.mxu0 %v16367_v60 }
 0x533   :  { %9004 = vmatpush3.msra.mxu1 %v7863_v19  ;;  %9025 = vmatpush3.msra.mxu0 %v7885_v49 }
 0x534   :  { %9005 = vmatprep.subr.mxu1 %v16367_v60  ;;  %9026 = vmatprep.subr.mxu0 %v16367_v60 }
 0x535   :  { %9006 = vmatpush3.msra.mxu1 %v7862_v46  ;;  %9027 = vmatpush3.msra.mxu0 %v7884_v4 }
 0x536   :  { %9007 = vmatprep.subr.mxu1 %v16367_v60  ;;  %9050 = vmatprep.subr.mxu0 %v16367_v60 }
 0x537   :  { %9008 = vmatpush3.msra.mxu1 %v7861_v20 }
 0x538   :  { %9010 = vmatmul.mubr.msk.f32.vlgmr.msra.gmra.mxu1 %vm394_vm1, %v6212_v62  ;;  %9031 = vmatprep.subr.mxu1 %v16367_v60 }
 0x539   :  { %9047 = vmatprep.mubr.msk.f32.mxu1 %vm9209_vm0, %v16367_v60  ;;  %9032 = vmatpush3.msra.mxu1 %v7879_v55 }
 0x53a   :  { %9033 = vmatprep.subr.mxu1 %v16367_v60 }
 0x53b   :  { %9034 = vmatpush3.msra.mxu1 %v7878_v9  ;;  %v6286_v9 = vld [vmem:[%s14950_s3 + $0x4] sm:$0x1] }
 0x53c   :  { %9035 = vmatprep.subr.mxu1 %v16367_v60 }
 0x53d   :  { %9036 = vmatpush3.msra.mxu1 %v7877_v13 }
 0x53e   :  { %9037 = vmatprep.subr.mxu1 %v16367_v60 }
 0x53f   :  { %9038 = vmatpush3.msra.mxu1 %v7876_v57 }
 0x540   :  { %9039 = vmatprep.subr.mxu1 %v16367_v60 }
 0x541   :  { %9040 = vmatpush3.msra.mxu1 %v7875_v53 }
 0x542   :  { %9041 = vmatprep.subr.mxu1 %v16367_v60 }
 0x543   :  { %9042 = vmatpush3.msra.mxu1 %v7874_v47  ;;  %v6349_v47 = vld [vmem:[#allocation2] sm:$0xf] }
 0x544   :  { %9043 = vmatprep.subr.mxu1 %v16367_v60  ;;  %v14536_v61 = vrot.slane %v6349_v47, %v16556_v52 }
 0x545   :  { %9044 = vmatpush3.msra.mxu1 %v7873_v41 }
 0x546   :  { %9045 = vmatprep.subr.mxu1 %v16367_v60 }
 0x547   :  { %9046 = vmatpush3.msra.mxu1 %v7872_v37 }
 0x548   :  { %9069 = vmatprep.subr.mxu1 %v16367_v60 }
 0x5ad   :  { %v5537_v7 = vpop.f32.mrf.mxu0 }
 0x5af   :  { %v8878_v50 = vpop.f32.mrf.mxu0 }
 0x5b4   :  { %v5448_v39 = vpop.f32.mrf.mxu1 }
 0x5b5   :  { %v5538_v34 = vadd.f32 %v5537_v7, %v5448_v39 }
 0x5b6   :  { %v8859_v33 = vpop.f32.mrf.mxu1 }
 0x5bd   :  { %v5736_v36 = vpop.f32.mrf.mxu0 }
 0x5bf   :  { %v8916_v26 = vpop.f32.mrf.mxu0 }
 0x5c5   :  { %v5635_v48 = vpop.f32.mrf.mxu1 }
 0x5c6   :  { %v5639_v29 = vadd.f32 %v5635_v48, %v5538_v34 }
 0x5c7   :  { %v8897_v2 = vpop.f32.mrf.mxu1 }
 0x5c8   :  { %v5740_v16 = vadd.f32 %v5736_v36, %v5639_v29  ;;  %v6353_v36 = vld [vmem:[#allocation2 + $0x10] sm:$0xf]  ;;  %v6377_v2 = vcombine.high %v14536_v61, %v14536_v61 }
 0x5c9   :  { %v14541_v4 = vrot.slane %v6353_v36, %v16556_v52 }
 0x5cb   :  { %v7882_v29 = vrot.slane %v14541_v4, 9 }
 0x5cf   :  { %v5958_v58 = vpop.f32.mrf.mxu0 }
 0x5d1   :  { %v8954_v11 = vpop.f32.mrf.mxu0 }
 0x5d7   :  { %v5859_v27 = vpop.f32.mrf.mxu1 }
 0x5d8   :  { %v5863_v35 = vadd.f32 %v5859_v27, %v5740_v16  ;;  %v7880_v27 = vrot.slane %v14536_v61, 9 }
 0x5d9   :  { %v8935_v8 = vpop.f32.mrf.mxu1 }
 0x5da   :  { %v5962_v54 = vadd.f32 %v5958_v58, %v5863_v35  ;;  %v6393_v58 = vcombine.high %v14541_v4, %v14541_v4  ;;  %v6404_v8 = vrot.slane %v6377_v2, 7  ;;  %v7930_v2 = vld [vmem:[%s14951_s2 + $0x5e8] sm:$0xff] }
 0x5e1   :  { %v6182_v23 = vpop.f32.mrf.mxu0 }
 0x5e3   :  { %v8992_v25 = vpop.f32.mrf.mxu0 }
 0x5e8   :  { %v6059_v24 = vpop.f32.mrf.mxu1 }
 0x5e9   :  { %v6063_v44 = vadd.f32 %v6059_v24, %v5962_v54  ;;  %v6412_v24 = vrot.slane %v6393_v58, 7  ;;  %v7894_v58 = vld [vmem:[%s14951_s2 + $0x500] sm:$0xff] }
 0x5ea   :  { %v8973_v51 = vpop.f32.mrf.mxu1 }
 0x5eb   :  { %v6186_v56 = vadd.f32 %v6182_v23, %v6063_v44  ;;  %v6405_v44 = vsel %vm14101_vm14, %v7880_v27, %v6404_v8 }
 0x5f8   :  { %v6281_v43 = vpop.f32.mrf.mxu1 }
 0x5f9   :  { %v6285_v31 = vadd.f32 %v6281_v43, %v6186_v56 }
 0x5fa   :  { %v9011_v40 = vpop.f32.mrf.mxu1 }
 0x5fb   :  { %v6288_v5 = vsel %vm394_vm1, %v6285_v31, 0.0  ;;  %v6296_v30 = vmul.f32 %v6285_v31, %v6285_v31 }
 0x5fc   :  { %v6289_v0 = vrot.slane %v6288_v5, 4 }
 0x5fd   :  { %v6297_v14 = vsel %vm394_vm1, %v6296_v30, 0.0 }
 0x5fe   :  { %v6290_v42 = vadd.f32 %v6289_v0, %v6288_v5  ;;  %v6298_v12 = vrot.slane %v6297_v14, 4  ;;  %v6413_v5 = vsel %vm14101_vm14, %v7882_v29, %v6412_v24  ;;  %v7912_v0 = vld [vmem:[%s14951_s2 + $0x578] sm:$0xff] }
 0x5ff   :  { %v7928_v24 = vld [vmem:[%s14951_s2 + $0x5d8] sm:$0xff] }
 0x600   :  { %v6291_v18 = vrot.slane %v6290_v42, 2  ;;  %v6299_v59 = vadd.f32 %v6298_v12, %v6297_v14 }
 0x602   :  { %v6292_v15 = vadd.f32 %v6291_v18, %v6290_v42  ;;  %v6300_v3 = vrot.slane %v6299_v59, 2 }
 0x604   :  { %v6293_v19 = vrot.slane %v6292_v15, 1  ;;  %v6301_v38 = vadd.f32 %v6300_v3, %v6299_v59  ;;  %v7911_v59 = vld [vmem:[%s14951_s2 + $0x570] sm:$0xff] }
 0x606   :  { %v6294_v46 = vadd.f32 %v6293_v19, %v6292_v15  ;;  %v6302_v1 = vrot.slane %v6301_v38, 1  ;;  %v7910_v19 = vld [vmem:[%s14951_s2 + $0x568] sm:$0xff] }
 0x608   :  { %v6295_v20 = vmul.f32 0.125, %v6294_v46  ;;  %v6303_v6 = vadd.f32 %v6302_v1, %v6301_v38 }
 0x60a   :  { %v6304_v62 = vmul.f32 0.125, %v6303_v6  ;;  %v6305_v7 = vmul.f32 %v6295_v20, %v6295_v20 }
 0x60c   :  { %v6306_v50 = vsub.f32 %v6304_v62, %v6305_v7  ;;  %v7901_v62 = vld [vmem:[%s14951_s2 + $0x538] sm:$0xff] }
 0x60e   :  { %v6307_v55 = vadd.f32 1e-05, %v6306_v50  ;;  %v7908_v50 = vld [vmem:[%s14951_s2 + $0x558] sm:$0xff] }
 0x610   :  { %9204 = vrsqrt.f32 %v6307_v55 }
 0x61d   :  { %v9205_v17 = vpop.eup %9204 }
 0x61e   :  { %v6309_v13 = vmul.f32 %v9205_v17, %v6286_v9  ;;  %v7900_v9 = vld [vmem:[%s14951_s2 + $0x530] sm:$0xff] }
 0x61f   :  { %v7907_v17 = vld [vmem:[%s14951_s2 + $0x550] sm:$0xff] }
 0x620   :  { %v6310_v45 = vmul.f32 %v6309_v13, %v6295_v20  ;;  %v6315_v39 = vrot.slane %v6309_v13, %v16554_v32  ;;  %v7909_v20 = vld [vmem:[%s14951_s2 + $0x560] sm:$0xff] }
 0x622   :  { %v6311_v57 = vsub.f32 %v6287_v22, %v6310_v45  ;;  %v6316_v10 = vmul.f32 %v6315_v39, %v6285_v31  ;;  %v7899_v22 = vld [vmem:[%s14951_s2 + $0x528] sm:$0xff] }
 0x623   :  { %v7906_v45 = vld [vmem:[%s14951_s2 + $0x548] sm:$0xff] }
 0x624   :  { %v6320_v33 = vrot.slane %v6311_v57, %v16554_v32  ;;  %v7898_v57 = vld [vmem:[%s14951_s2 + $0x520] sm:$0xff] }
 0x626   :  { %v6321_v53 = vadd.f32 %v6320_v33, %v6316_v10  ;;  %v7905_v10 = vld [vmem:[%s14951_s2 + $0x540] sm:$0xff] }
 0x628   :  { %v6322_v63 = vmax.f32 %v6321_v53, 0.0  ;;  %v7897_v53 = vld [vmem:[%s14951_s2 + $0x518] sm:$0xff] }
 0x62a   :  { %v6324_v41 = vcombine.high %v6322_v63, %v6322_v63  ;;  %v6331_v37 = vrot.slane %v6322_v63, %v16556_v52 }
 0x62c   :  { %v6338_v26 = vrot.slane %v6324_v41, %v16556_v52  ;;  %v6339_v49 = vcombine.high %v6331_v37, %v6331_v37  ;;  %6345 = vst.msk [vmem:[#allocation2 + $0x5] sm:$0x3] %vm4823_vm10, %v6331_v37  ;;  %v7932_v41 = vld [vmem:[%s14951_s2 + $0x5f8] sm:$0xff]  ;;  %v7896_v37 = vld [vmem:[%s14951_s2 + $0x510] sm:$0xff] }
 0x62e   :  { %v6340_v48 = vcombine.high %v6338_v26, %v6338_v26  ;;  %6346 = vst.msk [vmem:[#allocation2 + $0x9] sm:$0x3] %vm4823_vm10, %v6339_v49  ;;  %6347 = vst.msk [vmem:[#allocation2 + $0x15] sm:$0x3] %vm4823_vm10, %v6338_v26  ;;  %v7931_v49 = vld [vmem:[%s14951_s2 + $0x5f0] sm:$0xff] }
 0x630   :  { %6348 = vst.msk [vmem:[#allocation2 + $0x19] sm:$0x3] %vm4823_vm10, %v6340_v48 }
 0x633   :  { %v14550_v11 = vld [vmem:[#allocation2 + $0x4] sm:$0xf] }
 0x634   :  { %v14555_v23 = vrot.slane %v14550_v11, %v16556_v52  ;;  %v6516_v25 = vcombine.low %v6349_v47, %v14550_v11 }
 0x635   :  { %v6354_v34 = vld [vmem:[#allocation2 + $0x14] sm:$0xf]  ;;  %v14608_v7 = vld [vmem:[#allocation2 + $0x8] sm:$0xf] }
 0x636   :  { %v14560_v51 = vrot.slane %v6354_v34, %v16556_v52  ;;  %v6517_v16 = vcombine.low %v6353_v36, %v6354_v34  ;;  %v6385_v35 = vcombine.high %v14555_v23, %v14555_v23  ;;  %v6524_v54 = vrot.slane %v6516_v25, %v16556_v52  ;;  %v7929_v25 = vld [vmem:[%s14951_s2 + $0x5e0] sm:$0xff] }
 0x637   :  { %v7881_v31 = vrot.slane %v14555_v23, 9  ;;  %v14599_v1 = vld [vmem:[#allocation2 + $0x18] sm:$0xf]  ;;  %v6715_v13 = vcombine.low %v14550_v11, %v14608_v7  ;;  %v7902_v36 = vcombine.high %v14536_v61, %v14555_v23  ;;  %v14675_v48 = vrot.slane %v14608_v7, %v16556_v52 }
 0x638   :  { %v6531_v56 = vrot.slane %v6517_v16, %v16556_v52  ;;  %v6401_v43 = vcombine.high %v14560_v51, %v14560_v51  ;;  %v6408_v40 = vrot.slane %v6385_v35, 7  ;;  %v7883_v42 = vrot.slane %v14560_v51, 9  ;;  %v7922_v16 = vld [vmem:[%s14951_s2 + $0x5b0] sm:$0xff] }
 0x639   :  { %v6716_v55 = vcombine.low %v6354_v34, %v14599_v1  ;;  %v6723_v33 = vrot.slane %v6715_v13, %v16556_v52  ;;  %v7903_v47 = vcombine.high %v14541_v4, %v14560_v51  ;;  %v14662_v26 = vrot.slane %v14599_v1, %v16556_v52  ;;  %v7895_v4 = vld [vmem:[%s14951_s2 + $0x508] sm:$0xff]  ;;  %v7923_v34 = vld [vmem:[%s14951_s2 + $0x5b8] sm:$0xff] }
 0x63a   :  { %v6532_v30 = vcombine.low %v6524_v54, %v6531_v56  ;;  %v14578_v14 = vsel %vm14101_vm14, %v7881_v31, %v6408_v40  ;;  %v6416_v12 = vrot.slane %v6401_v43, 7  ;;  %v6622_v11 = vrot.slane %v7902_v36, %v16556_v52  ;;  %v14711_v54 = vld [vmem:[#allocation2 + $0x1c] sm:$0xf]  ;;  %v7927_v56 = vld [vmem:[%s14951_s2 + $0x5d0] sm:$0xff]  ;;  %v7921_v43 = vld [vmem:[%s14951_s2 + $0x5a8] sm:$0xff] }
 0x63b   :  { %v6427_v18 = vcombine.low %v6405_v44, %v14578_v14  ;;  %v6730_v39 = vrot.slane %v6716_v55, %v16556_v52  ;;  %v6629_v61 = vrot.slane %v7903_v47, %v16556_v52  ;;  %v6820_v27 = vcombine.high %v14662_v26, %v14662_v26  ;;  %v14723_v31 = vld [vmem:[#allocation2 + $0xc] sm:$0xf]  ;;  %v7918_v55 = vld [vmem:[%s14951_s2 + $0x590] sm:$0xff] }
 0x63c   :  { %9048 = vmatmul.mubr.msk.f32.vlgmr.msra.gmra.mxu1 %vm394_vm1, %v6532_v30  ;;  %v14588_v15 = vsel %vm14101_vm14, %v7883_v42, %v6416_v12  ;;  %v6812_v29 = vcombine.high %v14675_v48, %v14675_v48  ;;  %v7934_v35 = vcombine.high %v14560_v51, %v14662_v26  ;;  %v7933_v51 = vcombine.high %v14555_v23, %v14675_v48  ;;  %v7920_v23 = vld [vmem:[%s14951_s2 + $0x5a0] sm:$0xff]  ;;  %v7917_v13 = vld [vmem:[%s14951_s2 + $0x588] sm:$0xff] }
 0x63d   :  { %9070 = vmatpush3.msra.mxu1 %v7912_v0  ;;  %v6428_v3 = vcombine.low %v6413_v5, %v14588_v15  ;;  %9085 = vmatprep.mubr.msk.f32.mxu1 %vm9209_vm0, %v16367_v60  ;;  %v6435_v38 = vrot.slane %v6427_v18, %v16556_v52  ;;  %v6731_v63 = vcombine.low %v6723_v33, %v6730_v39  ;;  %v6827_v44 = vrot.slane %v6820_v27, 7  ;;  %v7926_v0 = vld [vmem:[%s14951_s2 + $0x5c8] sm:$0xff]  ;;  %v7940_v27 = vld [vmem:[%s14951_s2 + $0x620] sm:$0xff] }
 0x63e   :  { %9071 = vmatprep.subr.mxu1 %v16367_v60  ;;  %v6630_v8 = vcombine.low %v6622_v11, %v6629_v61  ;;  %v6823_v40 = vrot.slane %v6812_v29, 7  ;;  %v7915_v5 = vrot.slane %v14662_v26, 9  ;;  %v14728_v30 = vrot.slane %v14711_v54, %v16556_v52  ;;  %v7948_v11 = vld [vmem:[%s14951_s2 + $0x648] sm:$0xff]  ;;  %v7939_v29 = vld [vmem:[%s14951_s2 + $0x618] sm:$0xff] }
 0x63f   :  { %9072 = vmatpush3.msra.mxu1 %v7911_v59  ;;  %v6442_v46 = vrot.slane %v6428_v3, %v16556_v52  ;;  %v6952_v42 = vrot.slane %v7934_v35, %v16556_v52  ;;  %v7914_v12 = vrot.slane %v14675_v48, 9  ;;  %v14746_v59 = vrot.slane %v14723_v31, %v16556_v52  ;;  %v7925_v3 = vld [vmem:[%s14951_s2 + $0x5c0] sm:$0xff]  ;;  %v7938_v35 = vld [vmem:[%s14951_s2 + $0x610] sm:$0xff] }
 0x640   :  { %9073 = vmatprep.subr.mxu1 %v16367_v60  ;;  %v14742_v18 = vsel %vm14101_vm14, %v7915_v5, %v6827_v44  ;;  %v7038_v44 = vcombine.low %v14608_v7, %v14723_v31  ;;  %v7936_v7 = vld [vmem:[%s14951_s2 + $0x600] sm:$0xff]  ;;  %v7962_v31 = vld [vmem:[%s14951_s2 + $0x6b0] sm:$0xff] }
 0x641   :  { %9074 = vmatpush3.msra.mxu1 %v7910_v19  ;;  %v6443_v6 = vcombine.low %v6435_v38, %v6442_v46  ;;  %v6945_v19 = vrot.slane %v7933_v51, %v16556_v52  ;;  %v7919_v38 = vld [vmem:[%s14951_s2 + $0x598] sm:$0xff]  ;;  %v14759_v46 = vsel %vm14101_vm14, %v7914_v12, %v6823_v40  ;;  %v7961_v40 = vld [vmem:[%s14951_s2 + $0x6a8] sm:$0xff]  ;;  %v7960_v5 = vld [vmem:[%s14951_s2 + $0x6a0] sm:$0xff]  ;;  %v7964_v12 = vcombine.high %v14675_v48, %v14746_v59 }
 0x642   :  { %9075 = vmatprep.subr.mxu1 %v16367_v60  ;;  %v7963_v51 = vld [vmem:[%s14951_s2 + $0x6b8] sm:$0xff] }
 0x643   :  { %9076 = vmatpush3.msra.mxu1 %v7909_v20  ;;  %9029 = vmatmul.mubr.msk.f32.vlgmr.msra.gmra.mxu0 %vm394_vm1, %v6443_v6  ;;  %v7143_v20 = vcombine.high %v14728_v30, %v14728_v30  ;;  %v6953_v6 = vcombine.low %v6945_v19, %v6952_v42  ;;  %v7958_v42 = vld [vmem:[%s14951_s2 + $0x690] sm:$0xff] }
 0x644   :  { %9051 = vmatpush3.msra.mxu0 %v7901_v62  ;;  %9077 = vmatprep.subr.mxu1 %v16367_v60  ;;  %v6839_v62 = vcombine.low %v14588_v15, %v14742_v18  ;;  %v6838_v15 = vcombine.low %v14578_v14, %v14759_v46  ;;  %v7952_v14 = vld [vmem:[%s14951_s2 + $0x668] sm:$0xff] }
 0x645   :  { %9052 = vmatprep.subr.mxu0 %v16367_v60  ;;  %9078 = vmatpush3.msra.mxu1 %v7908_v50  ;;  %v7954_v50 = vld [vmem:[%s14951_s2 + $0x678] sm:$0xff] }
 0x646   :  { %9053 = vmatpush3.msra.mxu0 %v7900_v9  ;;  %9079 = vmatprep.subr.mxu1 %v16367_v60  ;;  %v7135_v9 = vcombine.high %v14746_v59, %v14746_v59  ;;  %v6853_v39 = vrot.slane %v6839_v62, %v16556_v52 }
 0x647   :  { %9054 = vmatprep.subr.mxu0 %v16367_v60  ;;  %9080 = vmatpush3.msra.mxu1 %v7907_v17  ;;  %v7953_v17 = vld [vmem:[%s14951_s2 + $0x670] sm:$0xff] }
 0x648   :  { %9055 = vmatpush3.msra.mxu0 %v7899_v22  ;;  %9081 = vmatprep.subr.mxu1 %v16367_v60  ;;  %v7946_v22 = vrot.slane %v14728_v30, 9  ;;  %v7146_v33 = vrot.slane %v7135_v9, 7 }
 0x649   :  { %9056 = vmatprep.subr.mxu0 %v16367_v60  ;;  %9082 = vmatpush3.msra.mxu1 %v7906_v45  ;;  %v7150_v45 = vrot.slane %v7143_v20, 7 }
 0x64a   :  { %9057 = vmatpush3.msra.mxu0 %v7898_v57  ;;  %9083 = vmatprep.subr.mxu1 %v16367_v60  ;;  %v7916_v57 = vld [vmem:[%s14951_s2 + $0x580] sm:$0xff] }
 0x64b   :  { %9058 = vmatprep.subr.mxu0 %v16367_v60  ;;  %9084 = vmatpush3.msra.mxu1 %v7905_v10  ;;  %v7945_v10 = vrot.slane %v14746_v59, 9 }
 0x64c   :  { %9059 = vmatpush3.msra.mxu0 %v7897_v53  ;;  %9086 = vmatmul.mubr.msk.f32.vlgmr.msra.gmra.mxu1 %vm394_vm1, %v6731_v63  ;;  %v6846_v53 = vrot.slane %v6838_v15, %v16556_v52  ;;  %v7151_v63 = vsel %vm14101_vm14, %v7946_v22, %v7150_v45 }
 0x64d   :  { %9107 = vmatprep.subr.mxu1 %v16367_v60  ;;  %9060 = vmatprep.subr.mxu0 %v16367_v60  ;;  %v7147_v36 = vsel %vm14101_vm14, %v7945_v10, %v7146_v33  ;;  %v7162_v61 = vcombine.low %v14742_v18, %v7151_v63  ;;  %v7957_v18 = vld [vmem:[%s14951_s2 + $0x688] sm:$0xff] }
 0x64e   :  { %9108 = vmatpush3.msra.mxu1 %v7932_v41  ;;  %9061 = vmatpush3.msra.mxu0 %v7896_v37  ;;  %v6854_v47 = vcombine.low %v6846_v53, %v6853_v39  ;;  %v7951_v41 = vld [vmem:[%s14951_s2 + $0x660] sm:$0xff]  ;;  %v7943_v37 = vld [vmem:[%s14951_s2 + $0x638] sm:$0xff] }
 0x64f   :  { %9109 = vmatprep.subr.mxu1 %v16367_v60  ;;  %9062 = vmatprep.subr.mxu0 %v16367_v60 }
 0x650   :  { %9110 = vmatpush3.msra.mxu1 %v7931_v49  ;;  %9063 = vmatpush3.msra.mxu0 %v7895_v4  ;;  %v7950_v49 = vld [vmem:[%s14951_s2 + $0x658] sm:$0xff]  ;;  %v7942_v4 = vld [vmem:[%s14951_s2 + $0x630] sm:$0xff] }
 0x651   :  { %9111 = vmatprep.subr.mxu1 %v16367_v60  ;;  %9064 = vmatprep.subr.mxu0 %v16367_v60 }
 0x652   :  { %9112 = vmatpush3.msra.mxu1 %v7930_v2  ;;  %9065 = vmatpush3.msra.mxu0 %v7894_v58  ;;  %v7941_v2 = vld [vmem:[%s14951_s2 + $0x628] sm:$0xff]  ;;  %v7161_v58 = vcombine.low %v14759_v46, %v7147_v36 }
 0x653   :  { %9066 = vmatprep.mubr.msk.f32.mxu0 %vm9209_vm0, %v16367_v60  ;;  %9113 = vmatprep.subr.mxu1 %v16367_v60 }
 0x654   :  { %9067 = vmatmul.mubr.msk.f32.vlgmr.msra.gmra.mxu0 %vm394_vm1, %v6630_v8  ;;  %9088 = vmatprep.subr.mxu0 %v16367_v60  ;;  %v7176_v8 = vrot.slane %v7162_v61, %v16556_v52 }
 0x655   :  { %9114 = vmatpush3.msra.mxu1 %v7929_v25  ;;  %9089 = vmatpush3.msra.mxu0 %v7923_v34  ;;  %v7947_v25 = vld [vmem:[%s14951_s2 + $0x640] sm:$0xff]  ;;  %v7169_v34 = vrot.slane %v7161_v58, %v16556_v52 }
 0x656   :  { %9115 = vmatprep.subr.mxu1 %v16367_v60  ;;  %9090 = vmatprep.subr.mxu0 %v16367_v60 }
 0x657   :  { %9116 = vmatpush3.msra.mxu1 %v7928_v24  ;;  %9091 = vmatpush3.msra.mxu0 %v7922_v16  ;;  %v7039_v24 = vcombine.low %v14599_v1, %v14711_v54  ;;  %v7177_v16 = vcombine.low %v7169_v34, %v7176_v8  ;;  %v7937_v1 = vld [vmem:[%s14951_s2 + $0x608] sm:$0xff] }
 0x658   :  { %9117 = vmatprep.subr.mxu1 %v16367_v60  ;;  %9092 = vmatprep.subr.mxu0 %v16367_v60 }
 0x659   :  { %9118 = vmatpush3.msra.mxu1 %v7927_v56  ;;  %9093 = vmatpush3.msra.mxu0 %v7921_v43  ;;  %v7053_v54 = vrot.slane %v7039_v24, %v16556_v52  ;;  %v7046_v56 = vrot.slane %v7038_v44, %v16556_v52 }
 0x65a   :  { %9119 = vmatprep.subr.mxu1 %v16367_v60  ;;  %9094 = vmatprep.subr.mxu0 %v16367_v60 }
 0x65b   :  { %9120 = vmatpush3.msra.mxu1 %v7926_v0  ;;  %9095 = vmatpush3.msra.mxu0 %v7920_v23  ;;  %v7054_v43 = vcombine.low %v7046_v56, %v7053_v54  ;;  %v7959_v0 = vld [vmem:[%s14951_s2 + $0x698] sm:$0xff]  ;;  %v7965_v23 = vcombine.high %v14662_v26, %v14728_v30  ;;  %v7956_v26 = vld [vmem:[%s14951_s2 + $0x680] sm:$0xff]  ;;  %v7268_v30 = vrot.slane %v7964_v12, %v16556_v52 }
 0x65c   :  { %9121 = vmatprep.subr.mxu1 %v16367_v60  ;;  %9096 = vmatprep.subr.mxu0 %v16367_v60  ;;  %v7350_v56 = vld [vmem:[%s14950_s3 + $0x6] sm:$0x1] }
 0x65d   :  { %9122 = vmatpush3.msra.mxu1 %v7925_v3  ;;  %9123 = vmatprep.mubr.msk.f32.mxu1 %vm9209_vm0, %v16367_v60  ;;  %v7275_v3 = vrot.slane %v7965_v23, %v16556_v52 }
 0x65e   :  { %9097 = vmatpush3.msra.mxu0 %v7919_v38  ;;  %9124 = vmatmul.mubr.msk.f32.vlgmr.msra.gmra.mxu1 %vm394_vm1, %v6953_v6 }
 0x65f   :  { %9145 = vmatprep.subr.mxu1 %v16367_v60  ;;  %9098 = vmatprep.subr.mxu0 %v16367_v60  ;;  %v7276_v48 = vcombine.low %v7268_v30, %v7275_v3  ;;  %v7428_v3 = vsub.s32 1, %v16555_v21 }
 0x660   :  { %9146 = vmatpush3.msra.mxu1 %v7954_v50  ;;  %9099 = vmatpush3.msra.mxu0 %v7918_v55 }
 0x661   :  { %9147 = vmatprep.subr.mxu1 %v16367_v60  ;;  %9100 = vmatprep.subr.mxu0 %v16367_v60 }
 0x662   :  { %9148 = vmatpush3.msra.mxu1 %v7953_v17  ;;  %9101 = vmatpush3.msra.mxu0 %v7917_v13 }
 0x663   :  { %9149 = vmatprep.subr.mxu1 %v16367_v60  ;;  %9102 = vmatprep.subr.mxu0 %v16367_v60 }
 0x664   :  { %9150 = vmatpush3.msra.mxu1 %v7952_v14  ;;  %9103 = vmatpush3.msra.mxu0 %v7916_v57 }
 0x665   :  { %9104 = vmatprep.mubr.msk.f32.mxu0 %vm9209_vm0, %v16367_v60  ;;  %9151 = vmatprep.subr.mxu1 %v16367_v60 }
 0x666   :  { %9105 = vmatmul.mubr.msk.f32.vlgmr.msra.gmra.mxu0 %vm394_vm1, %v6854_v47  ;;  %9126 = vmatprep.subr.mxu0 %v16367_v60 }
 0x667   :  { %9152 = vmatpush3.msra.mxu1 %v7951_v41  ;;  %9127 = vmatpush3.msra.mxu0 %v7943_v37 }
 0x668   :  { %9153 = vmatprep.subr.mxu1 %v16367_v60  ;;  %9128 = vmatprep.subr.mxu0 %v16367_v60 }
 0x669   :  { %9154 = vmatpush3.msra.mxu1 %v7950_v49  ;;  %9129 = vmatpush3.msra.mxu0 %v7942_v4 }
 0x66a   :  { %9155 = vmatprep.subr.mxu1 %v16367_v60  ;;  %9130 = vmatprep.subr.mxu0 %v16367_v60 }
 0x66b   :  { %9156 = vmatpush3.msra.mxu1 %v7949_v28  ;;  %9131 = vmatpush3.msra.mxu0 %v7941_v2 }
 0x66c   :  { %9157 = vmatprep.subr.mxu1 %v16367_v60  ;;  %9132 = vmatprep.subr.mxu0 %v16367_v60 }
 0x66d   :  { %9158 = vmatpush3.msra.mxu1 %v7948_v11  ;;  %9133 = vmatpush3.msra.mxu0 %v7940_v27 }
 0x66e   :  { %9159 = vmatprep.subr.mxu1 %v16367_v60  ;;  %9134 = vmatprep.subr.mxu0 %v16367_v60 }
 0x66f   :  { %9160 = vmatpush3.msra.mxu1 %v7947_v25  ;;  %9161 = vmatprep.mubr.msk.f32.mxu1 %vm9209_vm0, %v16367_v60 }
 0x670   :  { %9135 = vmatpush3.msra.mxu0 %v7939_v29  ;;  %9162 = vmatmul.mubr.msk.f32.vlgmr.msra.gmra.mxu1 %vm394_vm1, %v7177_v16 }
 0x671   :  { %9136 = vmatprep.subr.mxu0 %v16367_v60  ;;  %9142 = vmatprep.mubr.msk.f32.mxu0 %vm9209_vm0, %v16367_v60 }
 0x672   :  { %9137 = vmatpush3.msra.mxu0 %v7938_v35 }
 0x673   :  { %9138 = vmatprep.subr.mxu0 %v16367_v60 }
 0x674   :  { %9139 = vmatpush3.msra.mxu0 %v7937_v1 }
 0x675   :  { %9140 = vmatprep.subr.mxu0 %v16367_v60 }
 0x676   :  { %9141 = vmatpush3.msra.mxu0 %v7936_v7 }
 0x677   :  { %9143 = vmatmul.mubr.msk.f32.vlgmr.msra.gmra.mxu0 %vm394_vm1, %v7054_v43  ;;  %9164 = vmatprep.subr.mxu0 %v16367_v60 }
 0x678   :  { %9165 = vmatpush3.msra.mxu0 %v7963_v51  ;;  %9180 = vmatprep.mubr.msk.f32.mxu0 %vm9209_vm0, %v16367_v60 }
 0x679   :  { %9166 = vmatprep.subr.mxu0 %v16367_v60 }
 0x67a   :  { %9167 = vmatpush3.msra.mxu0 %v7962_v31  ;;  %v7351_v31 = vld [vmem:[%s14950_s3 + $0x7] sm:$0x1]  ;;  %s9212_s3 = smov 64  }
 0x67b   :  { %9168 = vmatprep.subr.mxu0 %v16367_v60 }
 0x67c   :  { %9169 = vmatpush3.msra.mxu0 %v7961_v40 }
 0x67d   :  { %9170 = vmatprep.subr.mxu0 %v16367_v60 }
 0x67e   :  { %9171 = vmatpush3.msra.mxu0 %v7960_v5 }
 0x67f   :  { %9172 = vmatprep.subr.mxu0 %v16367_v60 }
 0x680   :  { %9173 = vmatpush3.msra.mxu0 %v7959_v0 }
 0x681   :  { %9174 = vmatprep.subr.mxu0 %v16367_v60 }
 0x682   :  { %9175 = vmatpush3.msra.mxu0 %v7958_v42 }
 0x683   :  { %9176 = vmatprep.subr.mxu0 %v16367_v60 }
 0x684   :  { %9177 = vmatpush3.msra.mxu0 %v7957_v18 }
 0x685   :  { %9178 = vmatprep.subr.mxu0 %v16367_v60 }
 0x686   :  { %9179 = vmatpush3.msra.mxu0 %v7956_v26 }
 0x687   :  { %9181 = vmatmul.mubr.msk.f32.vlgmr.msra.gmra.mxu0 %vm394_vm1, %v7276_v48 }
 0x6fc   :  { %v6601_v59 = vpop.f32.mrf.mxu1 }
 0x6fe   :  { %v9049_v19 = vpop.f32.mrf.mxu1 }
 0x703   :  { %v6512_v38 = vpop.f32.mrf.mxu0 }
 0x704   :  { %v6602_v45 = vadd.f32 %v6601_v59, %v6512_v38 }
 0x705   :  { %v9030_v46 = vpop.f32.mrf.mxu0 }
 0x70c   :  { %v6800_v20 = vpop.f32.mrf.mxu1 }
 0x70e   :  { %v9087_v6 = vpop.f32.mrf.mxu1 }
 0x714   :  { %v6699_v62 = vpop.f32.mrf.mxu0 }
 0x715   :  { %v6703_v60 = vadd.f32 %v6699_v62, %v6602_v45 }
 0x716   :  { %v9068_v50 = vpop.f32.mrf.mxu0 }
 0x717   :  { %v6804_v57 = vadd.f32 %v6800_v20, %v6703_v60 }
 0x71e   :  { %v7022_v55 = vpop.f32.mrf.mxu1 }
 0x720   :  { %v9125_v9 = vpop.f32.mrf.mxu1 }
 0x726   :  { %v6923_v15 = vpop.f32.mrf.mxu0 }
 0x727   :  { %v6927_v10 = vadd.f32 %v6923_v15, %v6804_v57 }
 0x728   :  { %v9106_v17 = vpop.f32.mrf.mxu0 }
 0x729   :  { %v7026_v33 = vadd.f32 %v7022_v55, %v6927_v10 }
 0x730   :  { %v7246_v13 = vpop.f32.mrf.mxu1 }
 0x732   :  { %v9163_v22 = vpop.f32.mrf.mxu1 }
 0x737   :  { %v7123_v39 = vpop.f32.mrf.mxu0 }
 0x738   :  { %v7127_v53 = vadd.f32 %v7123_v39, %v7026_v33 }
 0x739   :  { %v9144_v14 = vpop.f32.mrf.mxu0 }
 0x73a   :  { %v7250_v63 = vadd.f32 %v7246_v13, %v7127_v53 }
 0x747   :  { %v7345_v47 = vpop.f32.mrf.mxu0 }
 0x748   :  { %v7349_v41 = vadd.f32 %v7345_v47, %v7250_v63 }
 0x749   :  { %v9182_v37 = vpop.f32.mrf.mxu0 }
 0x74a   :  { %v7352_v36 = vsel %vm394_vm1, %v7349_v41, 0.0  ;;  %v7360_v49 = vmul.f32 %v7349_v41, %v7349_v41 }
 0x74b   :  { %v7353_v4 = vrot.slane %v7352_v36, 4 }
 0x74c   :  { %v7361_v61 = vsel %vm394_vm1, %v7360_v49, 0.0 }
 0x74d   :  { %v7354_v28 = vadd.f32 %v7353_v4, %v7352_v36  ;;  %v7362_v2 = vrot.slane %v7361_v61, 4 }
 0x74f   :  { %v7355_v58 = vrot.slane %v7354_v28, 2  ;;  %v7363_v11 = vadd.f32 %v7362_v2, %v7361_v61 }
 0x751   :  { %v7356_v27 = vadd.f32 %v7355_v58, %v7354_v28  ;;  %v7364_v8 = vrot.slane %v7363_v11, 2 }
 0x753   :  { %v7357_v25 = vrot.slane %v7356_v27, 1  ;;  %v7365_v34 = vadd.f32 %v7364_v8, %v7363_v11 }
 0x755   :  { %v7358_v29 = vadd.f32 %v7357_v25, %v7356_v27  ;;  %v7366_v24 = vrot.slane %v7365_v34, 1 }
 0x757   :  { %v7359_v16 = vmul.f32 0.125, %v7358_v29  ;;  %v7367_v35 = vadd.f32 %v7366_v24, %v7365_v34 }
 0x759   :  { %v7368_v44 = vmul.f32 0.125, %v7367_v35  ;;  %v7369_v1 = vmul.f32 %v7359_v16, %v7359_v16 }
 0x75b   :  { %v7370_v54 = vsub.f32 %v7368_v44, %v7369_v1 }
 0x75d   :  { %v7371_v7 = vadd.f32 1e-05, %v7370_v54 }
 0x75f   :  { %9206 = vrsqrt.f32 %v7371_v7 }
 0x76c   :  { %v9207_v43 = vpop.eup %9206 }
 0x76d   :  { %v7373_v51 = vmul.f32 %v9207_v43, %v7350_v56 }
 0x76f   :  { %v7374_v40 = vmul.f32 %v7373_v51, %v7359_v16  ;;  %v7379_v5 = vrot.slane %v7373_v51, %v16554_v32 }
 0x771   :  { %v7375_v0 = vsub.f32 %v7351_v31, %v7374_v40  ;;  %v7380_v23 = vmul.f32 %v7379_v5, %v7349_v41 }
 0x773   :  { %v7384_v42 = vrot.slane %v7375_v0, %v16554_v32 }
 0x775   :  { %v7385_v12 = vadd.f32 %v7384_v42, %v7380_v23 }
 0x777   :  { %v7386_v18 = vmax.f32 %v7385_v12, 0.0 }
 0x779   :  { %v7388_v26 = vcombine.high %v7386_v18, %v7386_v18  ;;  %v7395_v30 = vrot.slane %v7386_v18, %v16556_v52 }
 0x77b   :  { %v7402_v48 = vrot.slane %v7388_v26, %v16556_v52  ;;  %v7403_v59 = vcombine.high %v7395_v30, %v7395_v30  ;;  %v7408_v19 = vrot.slane %v7395_v30, %v16554_v32  ;;  %v7429_v38 = vrot.slane %v7395_v30, %v7428_v3 }
 0x77d   :  { %v7404_v46 = vcombine.high %v7402_v48, %v7402_v48  ;;  %v7412_v20 = vrot.slane %v7403_v59, %v16554_v32  ;;  %v7416_v6 = vrot.slane %v7402_v48, %v16554_v32  ;;  %v7433_v62 = vrot.slane %v7403_v59, %v7428_v3 }
 0x77e   :  { %v7437_v50 = vrot.slane %v7402_v48, %v7428_v3 }
 0x77f   :  { %v7420_v55 = vrot.slane %v7404_v46, %v16554_v32  ;;  %v7441_v9 = vrot.slane %v7404_v46, %v7428_v3  ;;  %v7442_v21 = vsel %vm3043_vm3, %v7433_v62, %v7429_v38  ;;  %v7421_v15 = vsel %vm3041_vm2, %v7412_v20, %v7408_v19 }
 0x780   :  { %v7443_v52 = vsel %vm3045_vm4, %v7437_v50, %v7442_v21  ;;  %v7422_v17 = vsel %vm3043_vm3, %v7416_v6, %v7421_v15 }
 0x781   :  { %v7444_v13 = vsel %vm3047_vm5, %v7441_v9, %v7443_v52  ;;  %v7423_v22 = vsel %vm3045_vm4, %v7420_v55, %v7422_v17 }
 0x782   :  { %7445 = vrot.lane.b32.xlu0 %v7444_v13, %s9212_s3  ;;  %7425 = vst.msk [vmem:[%s14952_s4] sm:$0xf] %vm5195_vm9, %v7423_v22 }
 0x7f4   :  { %v7446_v32 = vpop.permute.xlu0 %7445 }
 0x7f5   :  { %7449 = vst.msk [vmem:[%s14952_s4 - $0x1] sm:$0x1e] %vm7448_vm15, %v7446_v32 }

</bundles_post_ra>
